<compile_context>
chip_gen: v5e
topology: v5e:2x2
jax: 0.10.0
libtpu: 0.0.40
codegen_flags: <defaults>
</compile_context>

<pallas_src>
import functools

import jax
import jax.numpy as jnp
from jax.experimental import pallas as pl
from jax.experimental.pallas import tpu as pltpu


# ---------------------------------------------------------------------------
# In-kernel math helpers (f32 elementwise -> portable to v5e; bf16 MXU operands)
# ---------------------------------------------------------------------------
def _layernorm(x, g, b, eps=1e-6):
    # TODO(synk): eps=1e-6 matches typical ViT/SigLIP configs; nn.LayerNorm default is 1e-5.
    mu = jnp.mean(x, axis=-1, keepdims=True)
    var = jnp.mean((x - mu) ** 2, axis=-1, keepdims=True)
    return (x - mu) * jax.lax.rsqrt(var + eps) * g + b


def _gelu(x):
    # TODO(synk): PyTorch nn.GELU defaults to the exact erf form; tanh approx used here.
    c = 0.7978845608028654  # sqrt(2/pi)
    return 0.5 * x * (1.0 + jnp.tanh(c * (x + 0.044715 * x * x * x)))


def _softmax_rows(s):
    s = s - jnp.max(s, axis=-1, keepdims=True)
    p = jnp.exp(s)
    # reciprocal on the EUP slot instead of a VALU divide
    return p * pl.reciprocal(jnp.sum(p, axis=-1, keepdims=True), approx=True)


def _vit_block(x, B, N, ln1g, ln1b, wqkv, bqkv, wo, bo, ln2g, ln2b,
               w1, b1, w2, b2, num_heads):
    """Pre-LN ViT block on x: (B*N, D) f32 activations; big weights are bf16."""
    BN, D = x.shape
    hd = D // num_heads          # 128 -> every head slab is a full lane tile
    scale = 1.0 / (hd ** 0.5)
    bf16 = jnp.bfloat16

    # --- multi-head self-attention (pre-LN); dense matmuls see all B*N rows ---
    h = _layernorm(x, ln1g, ln1b)
    qkv = jnp.dot(h.astype(bf16), wqkv, preferred_element_type=jnp.float32) + bqkv
    q = qkv[:, :D].reshape(B, N, D)          # 128-aligned column slices
    k = qkv[:, D:2 * D].reshape(B, N, D)
    v = qkv[:, 2 * D:].reshape(B, N, D)

    # Attention is batched over B via 3-D einsums (never mixes batch rows).
    # Heads are a tiny static unroll over lane-aligned 128-wide slabs; the concat
    # relayout is avoided by splitting Wo rows per head and accumulating.
    # TODO(synk): fold heads into the einsum batch axis if num_heads grows.
    attn = None
    for hh in range(num_heads):
        sl = slice(hh * hd, (hh + 1) * hd)
        qh = q[:, :, sl].astype(bf16)        # (B, N, hd)
        kh = k[:, :, sl].astype(bf16)
        vh = v[:, :, sl].astype(bf16)
        s = jnp.einsum('bqd,bkd->bqk', qh, kh,
                       preferred_element_type=jnp.float32) * scale
        p = _softmax_rows(s).astype(bf16)
        oh = jnp.einsum('bqk,bkd->bqd', p, vh,
                        preferred_element_type=jnp.float32)          # (B, N, hd)
        part = jnp.dot(oh.reshape(BN, hd).astype(bf16), wo[sl, :],
                       preferred_element_type=jnp.float32)           # (BN, D)
        attn = part if attn is None else attn + part
    x = x + attn + bo

    # --- MLP (pre-LN) ---------------------------------------------------------
    h2 = _layernorm(x, ln2g, ln2b)
    m = jnp.dot(h2.astype(bf16), w1, preferred_element_type=jnp.float32) + b1
    m = _gelu(m)
    m = jnp.dot(m.astype(bf16), w2, preferred_element_type=jnp.float32) + b2
    return x + m


# ---------------------------------------------------------------------------
# Single fused kernel: encoder + decoder (whole batch in one invocation)
# ---------------------------------------------------------------------------
def _autoencoder_kernel(
        tok_ref, patch_w, enc_pos,
        e_l1g, e_l1b, e_wqkv, e_bqkv, e_wo, e_bo, e_l2g, e_l2b, e_w1, e_b1, e_w2, e_b2,
        dec_in_w, dec_pos,
        d_l1g, d_l1b, d_wqkv, d_bqkv, d_wo, d_bo, d_l2g, d_l2b, d_w1, d_b1, d_w2, d_b2,
        dec_ln_g, dec_ln_b, dec_out_w, dec_out_b,
        o_ref, *, num_heads):
    B, N, PDp = tok_ref.shape
    D = enc_pos.shape[-1]
    bf16 = jnp.bfloat16

    # ------------- encoder: patch embed + pos + ViT block -> latent z ---------
    tok = tok_ref[...].reshape(B * N, PDp)       # fold batch into matmul rows
    emb = jnp.dot(tok.astype(bf16), patch_w[...],
                  preferred_element_type=jnp.float32)
    # enc_pos already includes the patch-embed bias (folded at param prep)
    x = (emb.reshape(B, N, D) + enc_pos[...]).reshape(B * N, D)
    z = _vit_block(x, B, N, e_l1g[...], e_l1b[...], e_wqkv[...], e_bqkv[...],
                   e_wo[...], e_bo[...], e_l2g[...], e_l2b[...],
                   e_w1[...], e_b1[...], e_w2[...], e_b2[...], num_heads)

    # ------------- decoder: in-proj + pos + ViT block + LN + pixel proj -------
    h = jnp.dot(z.astype(bf16), dec_in_w[...], preferred_element_type=jnp.float32)
    # dec_pos already includes the input-projection bias (folded at param prep)
    h = (h.reshape(B, N, D) + dec_pos[...]).reshape(B * N, D)
    h = _vit_block(h, B, N, d_l1g[...], d_l1b[...], d_wqkv[...], d_bqkv[...],
                   d_wo[...], d_bo[...], d_l2g[...], d_l2b[...],
                   d_w1[...], d_b1[...], d_w2[...], d_b2[...], num_heads)
    hn = _layernorm(h, dec_ln_g[...], dec_ln_b[...])
    out = jnp.dot(hn.astype(bf16), dec_out_w[...],
                  preferred_element_type=jnp.float32) + dec_out_b[...]
    o_ref[...] = out.reshape(B, N, PDp).astype(o_ref.dtype)


# ---------------------------------------------------------------------------
# pallas_call wrapper
# ---------------------------------------------------------------------------
_BLOCK_KEYS = ("ln1_g", "ln1_b", "wqkv", "bqkv", "wo", "bo",
               "ln2_g", "ln2_b", "w1", "b1", "w2", "b2")


def autoencoder_pallas(tok_pad, params, *, heads):
    B, N, PDp = tok_pad.shape
    args = ([tok_pad, params["patch_w"], params["enc_pos"]]
            + [params["enc_block"][k] for k in _BLOCK_KEYS]
            + [params["dec_in_w"], params["dec_pos"]]
            + [params["dec_block"][k] for k in _BLOCK_KEYS]
            + [params["dec_ln_g"], params["dec_ln_b"],
               params["dec_out_w"], params["dec_out_b"]])
    vmem = pl.BlockSpec(memory_space=pltpu.MemorySpace.VMEM)
    return pl.pallas_call(
        functools.partial(_autoencoder_kernel, num_heads=heads),
        out_shape=jax.ShapeDtypeStruct((B, N, PDp), jnp.float32),
        in_specs=[vmem] * len(args),     # whole arrays resident in VMEM (~3 MB total)
        out_specs=vmem,
    )(*args)


# ---------------------------------------------------------------------------
# JAX glue: patchify / unpatchify (pure layout plumbing)
# ---------------------------------------------------------------------------
def patchify(x, P):
    # (B, C, H, W) -> (B, N, P*P*C)
    B, C, H, W = x.shape
    x = x.reshape(B, C, H // P, P, W // P, P)
    x = x.transpose(0, 2, 4, 3, 5, 1)
    return x.reshape(B, (H // P) * (W // P), P * P * C)


def unpatchify(t, P, C, H, W):
    # (B, N, P*P*C) -> (B, C, H, W)
    B = t.shape[0]
    Hp, Wp = H // P, W // P
    x = t.reshape(B, Hp, Wp, P, P, C)
    x = x.transpose(0, 5, 1, 3, 2, 4)
    return x.reshape(B, C, H, W)


# ---------------------------------------------------------------------------
# Parameter init (deterministic, synthetic); big matmul weights stored bf16.
# Patch-embed / input-projection biases are folded into the pos-embed tables.
# ---------------------------------------------------------------------------
def init_params(key, D, mlp_ratio, patch_dim_pad, n_tokens):
    ks = jax.random.split(key, 8)
    s = 0.02
    F = D * mlp_ratio
    bf16 = jnp.bfloat16

    def block_params(k):
        kk = jax.random.split(k, 4)
        return dict(
            ln1_g=jnp.ones((1, D), jnp.float32),
            ln1_b=jnp.zeros((1, D), jnp.float32),
            wqkv=(s * jax.random.normal(kk[0], (D, 3 * D), jnp.float32)).astype(bf16),
            bqkv=jnp.zeros((1, 3 * D), jnp.float32),
            wo=(s * jax.random.normal(kk[1], (D, D), jnp.float32)).astype(bf16),
            bo=jnp.zeros((1, D), jnp.float32),
            ln2_g=jnp.ones((1, D), jnp.float32),
            ln2_b=jnp.zeros((1, D), jnp.float32),
            w1=(s * jax.random.normal(kk[2], (D, F), jnp.float32)).astype(bf16),
            b1=jnp.zeros((1, F), jnp.float32),
            w2=(s * jax.random.normal(kk[3], (F, D), jnp.float32)).astype(bf16),
            b2=jnp.zeros((1, D), jnp.float32),
        )

    patch_b = jnp.zeros((1, D), jnp.float32)
    dec_in_b = jnp.zeros((1, D), jnp.float32)
    return dict(
        patch_w=(s * jax.random.normal(ks[0], (patch_dim_pad, D), jnp.float32)).astype(bf16),
        enc_pos=s * jax.random.normal(ks[1], (n_tokens, D), jnp.float32) + patch_b,
        enc_block=block_params(ks[2]),
        dec_in_w=(s * jax.random.normal(ks[3], (D, D), jnp.float32)).astype(bf16),
        dec_pos=s * jax.random.normal(ks[4], (n_tokens, D), jnp.float32) + dec_in_b,
        dec_block=block_params(ks[5]),
        dec_ln_g=jnp.ones((1, D), jnp.float32),
        dec_ln_b=jnp.zeros((1, D), jnp.float32),
        dec_out_w=(s * jax.random.normal(ks[6], (D, patch_dim_pad), jnp.float32)).astype(bf16),
        dec_out_b=jnp.zeros((1, patch_dim_pad), jnp.float32),
    )


# ---------------------------------------------------------------------------
# AutoEncoder.forward == decode(encode(x)), fused into one kernel call
# ---------------------------------------------------------------------------
def autoencoder_forward(x, params, *, patch=4, heads=2):
    B, C, H, W = x.shape
    tok = patchify(x, patch)                       # (B, N, patch_dim)
    PD = tok.shape[-1]
    PDp = params["patch_w"].shape[0]               # lane-dense padded patch_dim
    tok = jnp.pad(tok, ((0, 0), (0, 0), (0, PDp - PD)))   # zero-pad keeps padded
    out_tok = autoencoder_pallas(tok, params, heads=heads)  # (B, N, PD_pad)
    return unpatchify(out_tok[:, :, :PD], patch, C, H, W)


# ---------------------------------------------------------------------------
if __name__ == "__main__":
    B, C, H, W = 2, 3, 16, 16
    PATCH = 4
    D = 256            # lane-dense hidden (multiple of 128)
    HEADS = 2          # head_dim = 128 -> lane-aligned head slabs
    MLP_RATIO = 2
    N_TOK = (H // PATCH) * (W // PATCH)        # 16 tokens
    PATCH_DIM = PATCH * PATCH * C              # 48
    PATCH_DIM_PAD = 128                        # padded to full lane width

    key = jax.random.PRNGKey(0)
    k_x, k_p = jax.random.split(key)
    x = jax.random.normal(k_x, (B, C, H, W), jnp.float32)
    params = init_params(k_p, D, MLP_RATIO, PATCH_DIM_PAD, N_TOK)

    fwd = jax.jit(functools.partial(autoencoder_forward, patch=PATCH, heads=HEADS))
    y = fwd(x, params)
    jax.block_until_ready(y)
    assert y.shape == (B, C, H, W), y.shape
    assert bool(jnp.all(jnp.isfinite(y)))
    print("KERNEL_OK")
</pallas_src>

<mosaic_0001>
module attributes {stable_mosaic.version = 11 : i64} {
  func.func @_autoencoder_kernel(%arg0: memref<2x16x128xf32, #tpu.memory_space<vmem>>, %arg1: memref<128x256xbf16, #tpu.memory_space<vmem>>, %arg2: memref<16x256xf32, #tpu.memory_space<vmem>>, %arg3: memref<1x256xf32, #tpu.memory_space<vmem>>, %arg4: memref<1x256xf32, #tpu.memory_space<vmem>>, %arg5: memref<256x768xbf16, #tpu.memory_space<vmem>>, %arg6: memref<1x768xf32, #tpu.memory_space<vmem>>, %arg7: memref<256x256xbf16, #tpu.memory_space<vmem>>, %arg8: memref<1x256xf32, #tpu.memory_space<vmem>>, %arg9: memref<1x256xf32, #tpu.memory_space<vmem>>, %arg10: memref<1x256xf32, #tpu.memory_space<vmem>>, %arg11: memref<256x512xbf16, #tpu.memory_space<vmem>>, %arg12: memref<1x512xf32, #tpu.memory_space<vmem>>, %arg13: memref<512x256xbf16, #tpu.memory_space<vmem>>, %arg14: memref<1x256xf32, #tpu.memory_space<vmem>>, %arg15: memref<256x256xbf16, #tpu.memory_space<vmem>>, %arg16: memref<16x256xf32, #tpu.memory_space<vmem>>, %arg17: memref<1x256xf32, #tpu.memory_space<vmem>>, %arg18: memref<1x256xf32, #tpu.memory_space<vmem>>, %arg19: memref<256x768xbf16, #tpu.memory_space<vmem>>, %arg20: memref<1x768xf32, #tpu.memory_space<vmem>>, %arg21: memref<256x256xbf16, #tpu.memory_space<vmem>>, %arg22: memref<1x256xf32, #tpu.memory_space<vmem>>, %arg23: memref<1x256xf32, #tpu.memory_space<vmem>>, %arg24: memref<1x256xf32, #tpu.memory_space<vmem>>, %arg25: memref<256x512xbf16, #tpu.memory_space<vmem>>, %arg26: memref<1x512xf32, #tpu.memory_space<vmem>>, %arg27: memref<512x256xbf16, #tpu.memory_space<vmem>>, %arg28: memref<1x256xf32, #tpu.memory_space<vmem>>, %arg29: memref<1x256xf32, #tpu.memory_space<vmem>>, %arg30: memref<1x256xf32, #tpu.memory_space<vmem>>, %arg31: memref<256x128xbf16, #tpu.memory_space<vmem>>, %arg32: memref<1x128xf32, #tpu.memory_space<vmem>>, %arg33: memref<2x16x128xf32, #tpu.memory_space<vmem>>) attributes {dimension_semantics = [], scalar_prefetch = 0 : i64, scratch_operands = 0 : i64, tpu.core_type = #tpu.core_type<tc>} {
    %c0 = arith.constant 0 : index
    %c0_0 = arith.constant 0 : index
    %c0_1 = arith.constant 0 : index
    %0 = vector.load %arg0[%c0, %c0_0, %c0_1] : memref<2x16x128xf32, #tpu.memory_space<vmem>>, vector<2x16x128xf32>
    %1 = vector.shape_cast %0 : vector<2x16x128xf32> to vector<32x128xf32>
    %2 = arith.truncf %1 : vector<32x128xf32> to vector<32x128xbf16>
    %c0_2 = arith.constant 0 : index
    %c0_3 = arith.constant 0 : index
    %3 = vector.load %arg1[%c0_2, %c0_3] : memref<128x256xbf16, #tpu.memory_space<vmem>>, vector<128x256xbf16>
    %cst = arith.constant dense<0.000000e+00> : vector<32x256xf32>
    %4 = tpu.matmul %2, %3, %cst {dimension_numbers = #tpu.dot_dimension_numbers<[1], [0], [0], [1], [0, 0, 1, 1], [], []>} : vector<32x128xbf16>, vector<128x256xbf16>, vector<32x256xf32> -> vector<32x256xf32>
    %5 = vector.shape_cast %4 : vector<32x256xf32> to vector<2x16x256xf32>
    %c0_4 = arith.constant 0 : index
    %c0_5 = arith.constant 0 : index
    %6 = vector.load %arg2[%c0_4, %c0_5] : memref<16x256xf32, #tpu.memory_space<vmem>>, vector<16x256xf32>
    %7 = vector.shape_cast %6 : vector<16x256xf32> to vector<1x16x256xf32>
    %8 = vector.broadcast %7 : vector<1x16x256xf32> to vector<2x16x256xf32>
    %9 = arith.addf %5, %8 : vector<2x16x256xf32>
    %10 = vector.shape_cast %9 : vector<2x16x256xf32> to vector<32x256xf32>
    %c0_6 = arith.constant 0 : index
    %c0_7 = arith.constant 0 : index
    %11 = vector.load %arg3[%c0_6, %c0_7] : memref<1x256xf32, #tpu.memory_space<vmem>>, vector<1x256xf32>
    %c0_8 = arith.constant 0 : index
    %c0_9 = arith.constant 0 : index
    %12 = vector.load %arg4[%c0_8, %c0_9] : memref<1x256xf32, #tpu.memory_space<vmem>>, vector<1x256xf32>
    %c0_10 = arith.constant 0 : index
    %c0_11 = arith.constant 0 : index
    %13 = vector.load %arg5[%c0_10, %c0_11] : memref<256x768xbf16, #tpu.memory_space<vmem>>, vector<256x768xbf16>
    %c0_12 = arith.constant 0 : index
    %c0_13 = arith.constant 0 : index
    %14 = vector.load %arg6[%c0_12, %c0_13] : memref<1x768xf32, #tpu.memory_space<vmem>>, vector<1x768xf32>
    %c0_14 = arith.constant 0 : index
    %c0_15 = arith.constant 0 : index
    %15 = vector.load %arg7[%c0_14, %c0_15] : memref<256x256xbf16, #tpu.memory_space<vmem>>, vector<256x256xbf16>
    %c0_16 = arith.constant 0 : index
    %c0_17 = arith.constant 0 : index
    %16 = vector.load %arg8[%c0_16, %c0_17] : memref<1x256xf32, #tpu.memory_space<vmem>>, vector<1x256xf32>
    %c0_18 = arith.constant 0 : index
    %c0_19 = arith.constant 0 : index
    %17 = vector.load %arg9[%c0_18, %c0_19] : memref<1x256xf32, #tpu.memory_space<vmem>>, vector<1x256xf32>
    %c0_20 = arith.constant 0 : index
    %c0_21 = arith.constant 0 : index
    %18 = vector.load %arg10[%c0_20, %c0_21] : memref<1x256xf32, #tpu.memory_space<vmem>>, vector<1x256xf32>
    %c0_22 = arith.constant 0 : index
    %c0_23 = arith.constant 0 : index
    %19 = vector.load %arg11[%c0_22, %c0_23] : memref<256x512xbf16, #tpu.memory_space<vmem>>, vector<256x512xbf16>
    %c0_24 = arith.constant 0 : index
    %c0_25 = arith.constant 0 : index
    %20 = vector.load %arg12[%c0_24, %c0_25] : memref<1x512xf32, #tpu.memory_space<vmem>>, vector<1x512xf32>
    %c0_26 = arith.constant 0 : index
    %c0_27 = arith.constant 0 : index
    %21 = vector.load %arg13[%c0_26, %c0_27] : memref<512x256xbf16, #tpu.memory_space<vmem>>, vector<512x256xbf16>
    %c0_28 = arith.constant 0 : index
    %c0_29 = arith.constant 0 : index
    %22 = vector.load %arg14[%c0_28, %c0_29] : memref<1x256xf32, #tpu.memory_space<vmem>>, vector<1x256xf32>
    %cst_30 = arith.constant dense<0.000000e+00> : vector<32xf32>
    %23 = vector.multi_reduction <add>, %10, %cst_30 [1] : vector<32x256xf32> to vector<32xf32>
    %24 = vector.shape_cast %23 : vector<32xf32> to vector<32x1xf32>
    %cst_31 = arith.constant 2.560000e+02 : f32
    %25 = vector.broadcast %cst_31 : f32 to vector<32x1xf32>
    %26 = arith.divf %24, %25 : vector<32x1xf32>
    %27 = vector.broadcast %26 : vector<32x1xf32> to vector<32x256xf32>
    %28 = arith.subf %10, %27 : vector<32x256xf32>
    %29 = arith.mulf %28, %28 : vector<32x256xf32>
    %cst_32 = arith.constant dense<0.000000e+00> : vector<32xf32>
    %30 = vector.multi_reduction <add>, %29, %cst_32 [1] : vector<32x256xf32> to vector<32xf32>
    %31 = vector.shape_cast %30 : vector<32xf32> to vector<32x1xf32>
    %cst_33 = arith.constant 2.560000e+02 : f32
    %32 = vector.broadcast %cst_33 : f32 to vector<32x1xf32>
    %33 = arith.divf %31, %32 : vector<32x1xf32>
    %34 = vector.broadcast %26 : vector<32x1xf32> to vector<32x256xf32>
    %35 = arith.subf %10, %34 : vector<32x256xf32>
    %cst_34 = arith.constant 9.99999997E-7 : f32
    %36 = vector.broadcast %cst_34 : f32 to vector<32x1xf32>
    %37 = arith.addf %33, %36 : vector<32x1xf32>
    %38 = math.rsqrt %37 : vector<32x1xf32>
    %39 = vector.broadcast %38 : vector<32x1xf32> to vector<32x256xf32>
    %40 = arith.mulf %35, %39 : vector<32x256xf32>
    %41 = vector.broadcast %11 : vector<1x256xf32> to vector<32x256xf32>
    %42 = arith.mulf %40, %41 : vector<32x256xf32>
    %43 = vector.broadcast %12 : vector<1x256xf32> to vector<32x256xf32>
    %44 = arith.addf %42, %43 : vector<32x256xf32>
    %45 = arith.truncf %44 : vector<32x256xf32> to vector<32x256xbf16>
    %cst_35 = arith.constant dense<0.000000e+00> : vector<32x768xf32>
    %46 = tpu.matmul %45, %13, %cst_35 {dimension_numbers = #tpu.dot_dimension_numbers<[1], [0], [0], [1], [0, 0, 1, 1], [], []>} : vector<32x256xbf16>, vector<256x768xbf16>, vector<32x768xf32> -> vector<32x768xf32>
    %47 = vector.broadcast %14 : vector<1x768xf32> to vector<32x768xf32>
    %48 = arith.addf %46, %47 : vector<32x768xf32>
    %49 = vector.extract_strided_slice %48 {offsets = [0, 0], sizes = [32, 256], strides = [1, 1]} : vector<32x768xf32> to vector<32x256xf32>
    %50 = vector.shape_cast %49 : vector<32x256xf32> to vector<2x16x256xf32>
    %51 = vector.extract_strided_slice %48 {offsets = [0, 256], sizes = [32, 256], strides = [1, 1]} : vector<32x768xf32> to vector<32x256xf32>
    %52 = vector.shape_cast %51 : vector<32x256xf32> to vector<2x16x256xf32>
    %53 = vector.extract_strided_slice %48 {offsets = [0, 512], sizes = [32, 256], strides = [1, 1]} : vector<32x768xf32> to vector<32x256xf32>
    %54 = vector.shape_cast %53 : vector<32x256xf32> to vector<2x16x256xf32>
    %55 = vector.extract_strided_slice %50 {offsets = [0, 0, 0], sizes = [2, 16, 128], strides = [1, 1, 1]} : vector<2x16x256xf32> to vector<2x16x128xf32>
    %56 = arith.truncf %55 : vector<2x16x128xf32> to vector<2x16x128xbf16>
    %57 = vector.extract_strided_slice %52 {offsets = [0, 0, 0], sizes = [2, 16, 128], strides = [1, 1, 1]} : vector<2x16x256xf32> to vector<2x16x128xf32>
    %58 = arith.truncf %57 : vector<2x16x128xf32> to vector<2x16x128xbf16>
    %59 = vector.extract_strided_slice %54 {offsets = [0, 0, 0], sizes = [2, 16, 128], strides = [1, 1, 1]} : vector<2x16x256xf32> to vector<2x16x128xf32>
    %60 = arith.truncf %59 : vector<2x16x128xf32> to vector<2x16x128xbf16>
    "tpu.trace_start"() <{level = 10 : i32, message = "bqd,bkd->bqk"}> : () -> ()
    %cst_36 = arith.constant dense<0.000000e+00> : vector<2x16x16xf32>
    %61 = tpu.matmul %56, %58, %cst_36 {dimension_numbers = #tpu.dot_dimension_numbers<[2], [2], [1], [1], [0, 0, 0, 1, 1, 1], [0], [0]>} : vector<2x16x128xbf16>, vector<2x16x128xbf16>, vector<2x16x16xf32> -> vector<2x16x16xf32>
    "tpu.trace_stop"() : () -> ()
    %cst_37 = arith.constant 0.0883883461 : f32
    %62 = vector.broadcast %cst_37 : f32 to vector<2x16x16xf32>
    %63 = arith.mulf %61, %62 : vector<2x16x16xf32>
    %cst_38 = arith.constant dense<0xFF800000> : vector<2x16xf32>
    %64 = vector.multi_reduction <maximumf>, %63, %cst_38 [2] : vector<2x16x16xf32> to vector<2x16xf32>
    %65 = vector.shape_cast %64 : vector<2x16xf32> to vector<2x16x1xf32>
    %66 = vector.broadcast %65 : vector<2x16x1xf32> to vector<2x16x16xf32>
    %67 = arith.subf %63, %66 : vector<2x16x16xf32>
    %68 = math.exp %67 : vector<2x16x16xf32>
    %cst_39 = arith.constant dense<0.000000e+00> : vector<2x16xf32>
    %69 = vector.multi_reduction <add>, %68, %cst_39 [2] : vector<2x16x16xf32> to vector<2x16xf32>
    %70 = vector.shape_cast %69 : vector<2x16xf32> to vector<2x16x1xf32>
    %71 = tpu.reciprocal %70 {approx = true} : vector<2x16x1xf32> -> vector<2x16x1xf32>
    %72 = vector.broadcast %71 : vector<2x16x1xf32> to vector<2x16x16xf32>
    %73 = arith.mulf %68, %72 : vector<2x16x16xf32>
    %74 = arith.truncf %73 : vector<2x16x16xf32> to vector<2x16x16xbf16>
    "tpu.trace_start"() <{level = 10 : i32, message = "bqk,bkd->bqd"}> : () -> ()
    %cst_40 = arith.constant dense<0.000000e+00> : vector<2x16x128xf32>
    %75 = tpu.matmul %74, %60, %cst_40 {dimension_numbers = #tpu.dot_dimension_numbers<[2], [1], [1], [2], [0, 0, 0, 1, 1, 2], [0], [0]>} : vector<2x16x16xbf16>, vector<2x16x128xbf16>, vector<2x16x128xf32> -> vector<2x16x128xf32>
    "tpu.trace_stop"() : () -> ()
    %76 = vector.shape_cast %75 : vector<2x16x128xf32> to vector<32x128xf32>
    %77 = arith.truncf %76 : vector<32x128xf32> to vector<32x128xbf16>
    %78 = vector.extract_strided_slice %15 {offsets = [0, 0], sizes = [128, 256], strides = [1, 1]} : vector<256x256xbf16> to vector<128x256xbf16>
    %cst_41 = arith.constant dense<0.000000e+00> : vector<32x256xf32>
    %79 = tpu.matmul %77, %78, %cst_41 {dimension_numbers = #tpu.dot_dimension_numbers<[1], [0], [0], [1], [0, 0, 1, 1], [], []>} : vector<32x128xbf16>, vector<128x256xbf16>, vector<32x256xf32> -> vector<32x256xf32>
    %80 = vector.extract_strided_slice %50 {offsets = [0, 0, 128], sizes = [2, 16, 128], strides = [1, 1, 1]} : vector<2x16x256xf32> to vector<2x16x128xf32>
    %81 = arith.truncf %80 : vector<2x16x128xf32> to vector<2x16x128xbf16>
    %82 = vector.extract_strided_slice %52 {offsets = [0, 0, 128], sizes = [2, 16, 128], strides = [1, 1, 1]} : vector<2x16x256xf32> to vector<2x16x128xf32>
    %83 = arith.truncf %82 : vector<2x16x128xf32> to vector<2x16x128xbf16>
    %84 = vector.extract_strided_slice %54 {offsets = [0, 0, 128], sizes = [2, 16, 128], strides = [1, 1, 1]} : vector<2x16x256xf32> to vector<2x16x128xf32>
    %85 = arith.truncf %84 : vector<2x16x128xf32> to vector<2x16x128xbf16>
    "tpu.trace_start"() <{level = 10 : i32, message = "bqd,bkd->bqk"}> : () -> ()
    %cst_42 = arith.constant dense<0.000000e+00> : vector<2x16x16xf32>
    %86 = tpu.matmul %81, %83, %cst_42 {dimension_numbers = #tpu.dot_dimension_numbers<[2], [2], [1], [1], [0, 0, 0, 1, 1, 1], [0], [0]>} : vector<2x16x128xbf16>, vector<2x16x128xbf16>, vector<2x16x16xf32> -> vector<2x16x16xf32>
    "tpu.trace_stop"() : () -> ()
    %cst_43 = arith.constant 0.0883883461 : f32
    %87 = vector.broadcast %cst_43 : f32 to vector<2x16x16xf32>
    %88 = arith.mulf %86, %87 : vector<2x16x16xf32>
    %cst_44 = arith.constant dense<0xFF800000> : vector<2x16xf32>
    %89 = vector.multi_reduction <maximumf>, %88, %cst_44 [2] : vector<2x16x16xf32> to vector<2x16xf32>
    %90 = vector.shape_cast %89 : vector<2x16xf32> to vector<2x16x1xf32>
    %91 = vector.broadcast %90 : vector<2x16x1xf32> to vector<2x16x16xf32>
    %92 = arith.subf %88, %91 : vector<2x16x16xf32>
    %93 = math.exp %92 : vector<2x16x16xf32>
    %cst_45 = arith.constant dense<0.000000e+00> : vector<2x16xf32>
    %94 = vector.multi_reduction <add>, %93, %cst_45 [2] : vector<2x16x16xf32> to vector<2x16xf32>
    %95 = vector.shape_cast %94 : vector<2x16xf32> to vector<2x16x1xf32>
    %96 = tpu.reciprocal %95 {approx = true} : vector<2x16x1xf32> -> vector<2x16x1xf32>
    %97 = vector.broadcast %96 : vector<2x16x1xf32> to vector<2x16x16xf32>
    %98 = arith.mulf %93, %97 : vector<2x16x16xf32>
    %99 = arith.truncf %98 : vector<2x16x16xf32> to vector<2x16x16xbf16>
    "tpu.trace_start"() <{level = 10 : i32, message = "bqk,bkd->bqd"}> : () -> ()
    %cst_46 = arith.constant dense<0.000000e+00> : vector<2x16x128xf32>
    %100 = tpu.matmul %99, %85, %cst_46 {dimension_numbers = #tpu.dot_dimension_numbers<[2], [1], [1], [2], [0, 0, 0, 1, 1, 2], [0], [0]>} : vector<2x16x16xbf16>, vector<2x16x128xbf16>, vector<2x16x128xf32> -> vector<2x16x128xf32>
    "tpu.trace_stop"() : () -> ()
    %101 = vector.shape_cast %100 : vector<2x16x128xf32> to vector<32x128xf32>
    %102 = arith.truncf %101 : vector<32x128xf32> to vector<32x128xbf16>
    %103 = vector.extract_strided_slice %15 {offsets = [128, 0], sizes = [128, 256], strides = [1, 1]} : vector<256x256xbf16> to vector<128x256xbf16>
    %cst_47 = arith.constant dense<0.000000e+00> : vector<32x256xf32>
    %104 = tpu.matmul %102, %103, %cst_47 {dimension_numbers = #tpu.dot_dimension_numbers<[1], [0], [0], [1], [0, 0, 1, 1], [], []>} : vector<32x128xbf16>, vector<128x256xbf16>, vector<32x256xf32> -> vector<32x256xf32>
    %105 = arith.addf %79, %104 : vector<32x256xf32>
    %106 = arith.addf %10, %105 : vector<32x256xf32>
    %107 = vector.broadcast %16 : vector<1x256xf32> to vector<32x256xf32>
    %108 = arith.addf %106, %107 : vector<32x256xf32>
    %cst_48 = arith.constant dense<0.000000e+00> : vector<32xf32>
    %109 = vector.multi_reduction <add>, %108, %cst_48 [1] : vector<32x256xf32> to vector<32xf32>
    %110 = vector.shape_cast %109 : vector<32xf32> to vector<32x1xf32>
    %cst_49 = arith.constant 2.560000e+02 : f32
    %111 = vector.broadcast %cst_49 : f32 to vector<32x1xf32>
    %112 = arith.divf %110, %111 : vector<32x1xf32>
    %113 = vector.broadcast %112 : vector<32x1xf32> to vector<32x256xf32>
    %114 = arith.subf %108, %113 : vector<32x256xf32>
    %115 = arith.mulf %114, %114 : vector<32x256xf32>
    %cst_50 = arith.constant dense<0.000000e+00> : vector<32xf32>
    %116 = vector.multi_reduction <add>, %115, %cst_50 [1] : vector<32x256xf32> to vector<32xf32>
    %117 = vector.shape_cast %116 : vector<32xf32> to vector<32x1xf32>
    %cst_51 = arith.constant 2.560000e+02 : f32
    %118 = vector.broadcast %cst_51 : f32 to vector<32x1xf32>
    %119 = arith.divf %117, %118 : vector<32x1xf32>
    %120 = vector.broadcast %112 : vector<32x1xf32> to vector<32x256xf32>
    %121 = arith.subf %108, %120 : vector<32x256xf32>
    %cst_52 = arith.constant 9.99999997E-7 : f32
    %122 = vector.broadcast %cst_52 : f32 to vector<32x1xf32>
    %123 = arith.addf %119, %122 : vector<32x1xf32>
    %124 = math.rsqrt %123 : vector<32x1xf32>
    %125 = vector.broadcast %124 : vector<32x1xf32> to vector<32x256xf32>
    %126 = arith.mulf %121, %125 : vector<32x256xf32>
    %127 = vector.broadcast %17 : vector<1x256xf32> to vector<32x256xf32>
    %128 = arith.mulf %126, %127 : vector<32x256xf32>
    %129 = vector.broadcast %18 : vector<1x256xf32> to vector<32x256xf32>
    %130 = arith.addf %128, %129 : vector<32x256xf32>
    %131 = arith.truncf %130 : vector<32x256xf32> to vector<32x256xbf16>
    %cst_53 = arith.constant dense<0.000000e+00> : vector<32x512xf32>
    %132 = tpu.matmul %131, %19, %cst_53 {dimension_numbers = #tpu.dot_dimension_numbers<[1], [0], [0], [1], [0, 0, 1, 1], [], []>} : vector<32x256xbf16>, vector<256x512xbf16>, vector<32x512xf32> -> vector<32x512xf32>
    %133 = vector.broadcast %20 : vector<1x512xf32> to vector<32x512xf32>
    %134 = arith.addf %132, %133 : vector<32x512xf32>
    %cst_54 = arith.constant 5.000000e-01 : f32
    %135 = vector.broadcast %cst_54 : f32 to vector<32x512xf32>
    %136 = arith.mulf %135, %134 : vector<32x512xf32>
    %cst_55 = arith.constant 4.471500e-02 : f32
    %137 = vector.broadcast %cst_55 : f32 to vector<32x512xf32>
    %138 = arith.mulf %137, %134 : vector<32x512xf32>
    %139 = arith.mulf %138, %134 : vector<32x512xf32>
    %140 = arith.mulf %139, %134 : vector<32x512xf32>
    %141 = arith.addf %134, %140 : vector<32x512xf32>
    %cst_56 = arith.constant 0.797884583 : f32
    %142 = vector.broadcast %cst_56 : f32 to vector<32x512xf32>
    %143 = arith.mulf %142, %141 : vector<32x512xf32>
    %144 = math.tanh %143 : vector<32x512xf32>
    %cst_57 = arith.constant 1.000000e+00 : f32
    %145 = vector.broadcast %cst_57 : f32 to vector<32x512xf32>
    %146 = arith.addf %145, %144 : vector<32x512xf32>
    %147 = arith.mulf %136, %146 : vector<32x512xf32>
    %148 = arith.truncf %147 : vector<32x512xf32> to vector<32x512xbf16>
    %cst_58 = arith.constant dense<0.000000e+00> : vector<32x256xf32>
    %149 = tpu.matmul %148, %21, %cst_58 {dimension_numbers = #tpu.dot_dimension_numbers<[1], [0], [0], [1], [0, 0, 1, 1], [], []>} : vector<32x512xbf16>, vector<512x256xbf16>, vector<32x256xf32> -> vector<32x256xf32>
    %150 = vector.broadcast %22 : vector<1x256xf32> to vector<32x256xf32>
    %151 = arith.addf %149, %150 : vector<32x256xf32>
    %152 = arith.addf %108, %151 : vector<32x256xf32>
    %153 = arith.truncf %152 : vector<32x256xf32> to vector<32x256xbf16>
    %c0_59 = arith.constant 0 : index
    %c0_60 = arith.constant 0 : index
    %154 = vector.load %arg15[%c0_59, %c0_60] : memref<256x256xbf16, #tpu.memory_space<vmem>>, vector<256x256xbf16>
    %cst_61 = arith.constant dense<0.000000e+00> : vector<32x256xf32>
    %155 = tpu.matmul %153, %154, %cst_61 {dimension_numbers = #tpu.dot_dimension_numbers<[1], [0], [0], [1], [0, 0, 1, 1], [], []>} : vector<32x256xbf16>, vector<256x256xbf16>, vector<32x256xf32> -> vector<32x256xf32>
    %156 = vector.shape_cast %155 : vector<32x256xf32> to vector<2x16x256xf32>
    %c0_62 = arith.constant 0 : index
    %c0_63 = arith.constant 0 : index
    %157 = vector.load %arg16[%c0_62, %c0_63] : memref<16x256xf32, #tpu.memory_space<vmem>>, vector<16x256xf32>
    %158 = vector.shape_cast %157 : vector<16x256xf32> to vector<1x16x256xf32>
    %159 = vector.broadcast %158 : vector<1x16x256xf32> to vector<2x16x256xf32>
    %160 = arith.addf %156, %159 : vector<2x16x256xf32>
    %161 = vector.shape_cast %160 : vector<2x16x256xf32> to vector<32x256xf32>
    %c0_64 = arith.constant 0 : index
    %c0_65 = arith.constant 0 : index
    %162 = vector.load %arg17[%c0_64, %c0_65] : memref<1x256xf32, #tpu.memory_space<vmem>>, vector<1x256xf32>
    %c0_66 = arith.constant 0 : index
    %c0_67 = arith.constant 0 : index
    %163 = vector.load %arg18[%c0_66, %c0_67] : memref<1x256xf32, #tpu.memory_space<vmem>>, vector<1x256xf32>
    %c0_68 = arith.constant 0 : index
    %c0_69 = arith.constant 0 : index
    %164 = vector.load %arg19[%c0_68, %c0_69] : memref<256x768xbf16, #tpu.memory_space<vmem>>, vector<256x768xbf16>
    %c0_70 = arith.constant 0 : index
    %c0_71 = arith.constant 0 : index
    %165 = vector.load %arg20[%c0_70, %c0_71] : memref<1x768xf32, #tpu.memory_space<vmem>>, vector<1x768xf32>
    %c0_72 = arith.constant 0 : index
    %c0_73 = arith.constant 0 : index
    %166 = vector.load %arg21[%c0_72, %c0_73] : memref<256x256xbf16, #tpu.memory_space<vmem>>, vector<256x256xbf16>
    %c0_74 = arith.constant 0 : index
    %c0_75 = arith.constant 0 : index
    %167 = vector.load %arg22[%c0_74, %c0_75] : memref<1x256xf32, #tpu.memory_space<vmem>>, vector<1x256xf32>
    %c0_76 = arith.constant 0 : index
    %c0_77 = arith.constant 0 : index
    %168 = vector.load %arg23[%c0_76, %c0_77] : memref<1x256xf32, #tpu.memory_space<vmem>>, vector<1x256xf32>
    %c0_78 = arith.constant 0 : index
    %c0_79 = arith.constant 0 : index
    %169 = vector.load %arg24[%c0_78, %c0_79] : memref<1x256xf32, #tpu.memory_space<vmem>>, vector<1x256xf32>
    %c0_80 = arith.constant 0 : index
    %c0_81 = arith.constant 0 : index
    %170 = vector.load %arg25[%c0_80, %c0_81] : memref<256x512xbf16, #tpu.memory_space<vmem>>, vector<256x512xbf16>
    %c0_82 = arith.constant 0 : index
    %c0_83 = arith.constant 0 : index
    %171 = vector.load %arg26[%c0_82, %c0_83] : memref<1x512xf32, #tpu.memory_space<vmem>>, vector<1x512xf32>
    %c0_84 = arith.constant 0 : index
    %c0_85 = arith.constant 0 : index
    %172 = vector.load %arg27[%c0_84, %c0_85] : memref<512x256xbf16, #tpu.memory_space<vmem>>, vector<512x256xbf16>
    %c0_86 = arith.constant 0 : index
    %c0_87 = arith.constant 0 : index
    %173 = vector.load %arg28[%c0_86, %c0_87] : memref<1x256xf32, #tpu.memory_space<vmem>>, vector<1x256xf32>
    %cst_88 = arith.constant dense<0.000000e+00> : vector<32xf32>
    %174 = vector.multi_reduction <add>, %161, %cst_88 [1] : vector<32x256xf32> to vector<32xf32>
    %175 = vector.shape_cast %174 : vector<32xf32> to vector<32x1xf32>
    %cst_89 = arith.constant 2.560000e+02 : f32
    %176 = vector.broadcast %cst_89 : f32 to vector<32x1xf32>
    %177 = arith.divf %175, %176 : vector<32x1xf32>
    %178 = vector.broadcast %177 : vector<32x1xf32> to vector<32x256xf32>
    %179 = arith.subf %161, %178 : vector<32x256xf32>
    %180 = arith.mulf %179, %179 : vector<32x256xf32>
    %cst_90 = arith.constant dense<0.000000e+00> : vector<32xf32>
    %181 = vector.multi_reduction <add>, %180, %cst_90 [1] : vector<32x256xf32> to vector<32xf32>
    %182 = vector.shape_cast %181 : vector<32xf32> to vector<32x1xf32>
    %cst_91 = arith.constant 2.560000e+02 : f32
    %183 = vector.broadcast %cst_91 : f32 to vector<32x1xf32>
    %184 = arith.divf %182, %183 : vector<32x1xf32>
    %185 = vector.broadcast %177 : vector<32x1xf32> to vector<32x256xf32>
    %186 = arith.subf %161, %185 : vector<32x256xf32>
    %cst_92 = arith.constant 9.99999997E-7 : f32
    %187 = vector.broadcast %cst_92 : f32 to vector<32x1xf32>
    %188 = arith.addf %184, %187 : vector<32x1xf32>
    %189 = math.rsqrt %188 : vector<32x1xf32>
    %190 = vector.broadcast %189 : vector<32x1xf32> to vector<32x256xf32>
    %191 = arith.mulf %186, %190 : vector<32x256xf32>
    %192 = vector.broadcast %162 : vector<1x256xf32> to vector<32x256xf32>
    %193 = arith.mulf %191, %192 : vector<32x256xf32>
    %194 = vector.broadcast %163 : vector<1x256xf32> to vector<32x256xf32>
    %195 = arith.addf %193, %194 : vector<32x256xf32>
    %196 = arith.truncf %195 : vector<32x256xf32> to vector<32x256xbf16>
    %cst_93 = arith.constant dense<0.000000e+00> : vector<32x768xf32>
    %197 = tpu.matmul %196, %164, %cst_93 {dimension_numbers = #tpu.dot_dimension_numbers<[1], [0], [0], [1], [0, 0, 1, 1], [], []>} : vector<32x256xbf16>, vector<256x768xbf16>, vector<32x768xf32> -> vector<32x768xf32>
    %198 = vector.broadcast %165 : vector<1x768xf32> to vector<32x768xf32>
    %199 = arith.addf %197, %198 : vector<32x768xf32>
    %200 = vector.extract_strided_slice %199 {offsets = [0, 0], sizes = [32, 256], strides = [1, 1]} : vector<32x768xf32> to vector<32x256xf32>
    %201 = vector.shape_cast %200 : vector<32x256xf32> to vector<2x16x256xf32>
    %202 = vector.extract_strided_slice %199 {offsets = [0, 256], sizes = [32, 256], strides = [1, 1]} : vector<32x768xf32> to vector<32x256xf32>
    %203 = vector.shape_cast %202 : vector<32x256xf32> to vector<2x16x256xf32>
    %204 = vector.extract_strided_slice %199 {offsets = [0, 512], sizes = [32, 256], strides = [1, 1]} : vector<32x768xf32> to vector<32x256xf32>
    %205 = vector.shape_cast %204 : vector<32x256xf32> to vector<2x16x256xf32>
    %206 = vector.extract_strided_slice %201 {offsets = [0, 0, 0], sizes = [2, 16, 128], strides = [1, 1, 1]} : vector<2x16x256xf32> to vector<2x16x128xf32>
    %207 = arith.truncf %206 : vector<2x16x128xf32> to vector<2x16x128xbf16>
    %208 = vector.extract_strided_slice %203 {offsets = [0, 0, 0], sizes = [2, 16, 128], strides = [1, 1, 1]} : vector<2x16x256xf32> to vector<2x16x128xf32>
    %209 = arith.truncf %208 : vector<2x16x128xf32> to vector<2x16x128xbf16>
    %210 = vector.extract_strided_slice %205 {offsets = [0, 0, 0], sizes = [2, 16, 128], strides = [1, 1, 1]} : vector<2x16x256xf32> to vector<2x16x128xf32>
    %211 = arith.truncf %210 : vector<2x16x128xf32> to vector<2x16x128xbf16>
    "tpu.trace_start"() <{level = 10 : i32, message = "bqd,bkd->bqk"}> : () -> ()
    %cst_94 = arith.constant dense<0.000000e+00> : vector<2x16x16xf32>
    %212 = tpu.matmul %207, %209, %cst_94 {dimension_numbers = #tpu.dot_dimension_numbers<[2], [2], [1], [1], [0, 0, 0, 1, 1, 1], [0], [0]>} : vector<2x16x128xbf16>, vector<2x16x128xbf16>, vector<2x16x16xf32> -> vector<2x16x16xf32>
    "tpu.trace_stop"() : () -> ()
    %cst_95 = arith.constant 0.0883883461 : f32
    %213 = vector.broadcast %cst_95 : f32 to vector<2x16x16xf32>
    %214 = arith.mulf %212, %213 : vector<2x16x16xf32>
    %cst_96 = arith.constant dense<0xFF800000> : vector<2x16xf32>
    %215 = vector.multi_reduction <maximumf>, %214, %cst_96 [2] : vector<2x16x16xf32> to vector<2x16xf32>
    %216 = vector.shape_cast %215 : vector<2x16xf32> to vector<2x16x1xf32>
    %217 = vector.broadcast %216 : vector<2x16x1xf32> to vector<2x16x16xf32>
    %218 = arith.subf %214, %217 : vector<2x16x16xf32>
    %219 = math.exp %218 : vector<2x16x16xf32>
    %cst_97 = arith.constant dense<0.000000e+00> : vector<2x16xf32>
    %220 = vector.multi_reduction <add>, %219, %cst_97 [2] : vector<2x16x16xf32> to vector<2x16xf32>
    %221 = vector.shape_cast %220 : vector<2x16xf32> to vector<2x16x1xf32>
    %222 = tpu.reciprocal %221 {approx = true} : vector<2x16x1xf32> -> vector<2x16x1xf32>
    %223 = vector.broadcast %222 : vector<2x16x1xf32> to vector<2x16x16xf32>
    %224 = arith.mulf %219, %223 : vector<2x16x16xf32>
    %225 = arith.truncf %224 : vector<2x16x16xf32> to vector<2x16x16xbf16>
    "tpu.trace_start"() <{level = 10 : i32, message = "bqk,bkd->bqd"}> : () -> ()
    %cst_98 = arith.constant dense<0.000000e+00> : vector<2x16x128xf32>
    %226 = tpu.matmul %225, %211, %cst_98 {dimension_numbers = #tpu.dot_dimension_numbers<[2], [1], [1], [2], [0, 0, 0, 1, 1, 2], [0], [0]>} : vector<2x16x16xbf16>, vector<2x16x128xbf16>, vector<2x16x128xf32> -> vector<2x16x128xf32>
    "tpu.trace_stop"() : () -> ()
    %227 = vector.shape_cast %226 : vector<2x16x128xf32> to vector<32x128xf32>
    %228 = arith.truncf %227 : vector<32x128xf32> to vector<32x128xbf16>
    %229 = vector.extract_strided_slice %166 {offsets = [0, 0], sizes = [128, 256], strides = [1, 1]} : vector<256x256xbf16> to vector<128x256xbf16>
    %cst_99 = arith.constant dense<0.000000e+00> : vector<32x256xf32>
    %230 = tpu.matmul %228, %229, %cst_99 {dimension_numbers = #tpu.dot_dimension_numbers<[1], [0], [0], [1], [0, 0, 1, 1], [], []>} : vector<32x128xbf16>, vector<128x256xbf16>, vector<32x256xf32> -> vector<32x256xf32>
    %231 = vector.extract_strided_slice %201 {offsets = [0, 0, 128], sizes = [2, 16, 128], strides = [1, 1, 1]} : vector<2x16x256xf32> to vector<2x16x128xf32>
    %232 = arith.truncf %231 : vector<2x16x128xf32> to vector<2x16x128xbf16>
    %233 = vector.extract_strided_slice %203 {offsets = [0, 0, 128], sizes = [2, 16, 128], strides = [1, 1, 1]} : vector<2x16x256xf32> to vector<2x16x128xf32>
    %234 = arith.truncf %233 : vector<2x16x128xf32> to vector<2x16x128xbf16>
    %235 = vector.extract_strided_slice %205 {offsets = [0, 0, 128], sizes = [2, 16, 128], strides = [1, 1, 1]} : vector<2x16x256xf32> to vector<2x16x128xf32>
    %236 = arith.truncf %235 : vector<2x16x128xf32> to vector<2x16x128xbf16>
    "tpu.trace_start"() <{level = 10 : i32, message = "bqd,bkd->bqk"}> : () -> ()
    %cst_100 = arith.constant dense<0.000000e+00> : vector<2x16x16xf32>
    %237 = tpu.matmul %232, %234, %cst_100 {dimension_numbers = #tpu.dot_dimension_numbers<[2], [2], [1], [1], [0, 0, 0, 1, 1, 1], [0], [0]>} : vector<2x16x128xbf16>, vector<2x16x128xbf16>, vector<2x16x16xf32> -> vector<2x16x16xf32>
    "tpu.trace_stop"() : () -> ()
    %cst_101 = arith.constant 0.0883883461 : f32
    %238 = vector.broadcast %cst_101 : f32 to vector<2x16x16xf32>
    %239 = arith.mulf %237, %238 : vector<2x16x16xf32>
    %cst_102 = arith.constant dense<0xFF800000> : vector<2x16xf32>
    %240 = vector.multi_reduction <maximumf>, %239, %cst_102 [2] : vector<2x16x16xf32> to vector<2x16xf32>
    %241 = vector.shape_cast %240 : vector<2x16xf32> to vector<2x16x1xf32>
    %242 = vector.broadcast %241 : vector<2x16x1xf32> to vector<2x16x16xf32>
    %243 = arith.subf %239, %242 : vector<2x16x16xf32>
    %244 = math.exp %243 : vector<2x16x16xf32>
    %cst_103 = arith.constant dense<0.000000e+00> : vector<2x16xf32>
    %245 = vector.multi_reduction <add>, %244, %cst_103 [2] : vector<2x16x16xf32> to vector<2x16xf32>
    %246 = vector.shape_cast %245 : vector<2x16xf32> to vector<2x16x1xf32>
    %247 = tpu.reciprocal %246 {approx = true} : vector<2x16x1xf32> -> vector<2x16x1xf32>
    %248 = vector.broadcast %247 : vector<2x16x1xf32> to vector<2x16x16xf32>
    %249 = arith.mulf %244, %248 : vector<2x16x16xf32>
    %250 = arith.truncf %249 : vector<2x16x16xf32> to vector<2x16x16xbf16>
    "tpu.trace_start"() <{level = 10 : i32, message = "bqk,bkd->bqd"}> : () -> ()
    %cst_104 = arith.constant dense<0.000000e+00> : vector<2x16x128xf32>
    %251 = tpu.matmul %250, %236, %cst_104 {dimension_numbers = #tpu.dot_dimension_numbers<[2], [1], [1], [2], [0, 0, 0, 1, 1, 2], [0], [0]>} : vector<2x16x16xbf16>, vector<2x16x128xbf16>, vector<2x16x128xf32> -> vector<2x16x128xf32>
    "tpu.trace_stop"() : () -> ()
    %252 = vector.shape_cast %251 : vector<2x16x128xf32> to vector<32x128xf32>
    %253 = arith.truncf %252 : vector<32x128xf32> to vector<32x128xbf16>
    %254 = vector.extract_strided_slice %166 {offsets = [128, 0], sizes = [128, 256], strides = [1, 1]} : vector<256x256xbf16> to vector<128x256xbf16>
    %cst_105 = arith.constant dense<0.000000e+00> : vector<32x256xf32>
    %255 = tpu.matmul %253, %254, %cst_105 {dimension_numbers = #tpu.dot_dimension_numbers<[1], [0], [0], [1], [0, 0, 1, 1], [], []>} : vector<32x128xbf16>, vector<128x256xbf16>, vector<32x256xf32> -> vector<32x256xf32>
    %256 = arith.addf %230, %255 : vector<32x256xf32>
    %257 = arith.addf %161, %256 : vector<32x256xf32>
    %258 = vector.broadcast %167 : vector<1x256xf32> to vector<32x256xf32>
    %259 = arith.addf %257, %258 : vector<32x256xf32>
    %cst_106 = arith.constant dense<0.000000e+00> : vector<32xf32>
    %260 = vector.multi_reduction <add>, %259, %cst_106 [1] : vector<32x256xf32> to vector<32xf32>
    %261 = vector.shape_cast %260 : vector<32xf32> to vector<32x1xf32>
    %cst_107 = arith.constant 2.560000e+02 : f32
    %262 = vector.broadcast %cst_107 : f32 to vector<32x1xf32>
    %263 = arith.divf %261, %262 : vector<32x1xf32>
    %264 = vector.broadcast %263 : vector<32x1xf32> to vector<32x256xf32>
    %265 = arith.subf %259, %264 : vector<32x256xf32>
    %266 = arith.mulf %265, %265 : vector<32x256xf32>
    %cst_108 = arith.constant dense<0.000000e+00> : vector<32xf32>
    %267 = vector.multi_reduction <add>, %266, %cst_108 [1] : vector<32x256xf32> to vector<32xf32>
    %268 = vector.shape_cast %267 : vector<32xf32> to vector<32x1xf32>
    %cst_109 = arith.constant 2.560000e+02 : f32
    %269 = vector.broadcast %cst_109 : f32 to vector<32x1xf32>
    %270 = arith.divf %268, %269 : vector<32x1xf32>
    %271 = vector.broadcast %263 : vector<32x1xf32> to vector<32x256xf32>
    %272 = arith.subf %259, %271 : vector<32x256xf32>
    %cst_110 = arith.constant 9.99999997E-7 : f32
    %273 = vector.broadcast %cst_110 : f32 to vector<32x1xf32>
    %274 = arith.addf %270, %273 : vector<32x1xf32>
    %275 = math.rsqrt %274 : vector<32x1xf32>
    %276 = vector.broadcast %275 : vector<32x1xf32> to vector<32x256xf32>
    %277 = arith.mulf %272, %276 : vector<32x256xf32>
    %278 = vector.broadcast %168 : vector<1x256xf32> to vector<32x256xf32>
    %279 = arith.mulf %277, %278 : vector<32x256xf32>
    %280 = vector.broadcast %169 : vector<1x256xf32> to vector<32x256xf32>
    %281 = arith.addf %279, %280 : vector<32x256xf32>
    %282 = arith.truncf %281 : vector<32x256xf32> to vector<32x256xbf16>
    %cst_111 = arith.constant dense<0.000000e+00> : vector<32x512xf32>
    %283 = tpu.matmul %282, %170, %cst_111 {dimension_numbers = #tpu.dot_dimension_numbers<[1], [0], [0], [1], [0, 0, 1, 1], [], []>} : vector<32x256xbf16>, vector<256x512xbf16>, vector<32x512xf32> -> vector<32x512xf32>
    %284 = vector.broadcast %171 : vector<1x512xf32> to vector<32x512xf32>
    %285 = arith.addf %283, %284 : vector<32x512xf32>
    %cst_112 = arith.constant 5.000000e-01 : f32
    %286 = vector.broadcast %cst_112 : f32 to vector<32x512xf32>
    %287 = arith.mulf %286, %285 : vector<32x512xf32>
    %cst_113 = arith.constant 4.471500e-02 : f32
    %288 = vector.broadcast %cst_113 : f32 to vector<32x512xf32>
    %289 = arith.mulf %288, %285 : vector<32x512xf32>
    %290 = arith.mulf %289, %285 : vector<32x512xf32>
    %291 = arith.mulf %290, %285 : vector<32x512xf32>
    %292 = arith.addf %285, %291 : vector<32x512xf32>
    %cst_114 = arith.constant 0.797884583 : f32
    %293 = vector.broadcast %cst_114 : f32 to vector<32x512xf32>
    %294 = arith.mulf %293, %292 : vector<32x512xf32>
    %295 = math.tanh %294 : vector<32x512xf32>
    %cst_115 = arith.constant 1.000000e+00 : f32
    %296 = vector.broadcast %cst_115 : f32 to vector<32x512xf32>
    %297 = arith.addf %296, %295 : vector<32x512xf32>
    %298 = arith.mulf %287, %297 : vector<32x512xf32>
    %299 = arith.truncf %298 : vector<32x512xf32> to vector<32x512xbf16>
    %cst_116 = arith.constant dense<0.000000e+00> : vector<32x256xf32>
    %300 = tpu.matmul %299, %172, %cst_116 {dimension_numbers = #tpu.dot_dimension_numbers<[1], [0], [0], [1], [0, 0, 1, 1], [], []>} : vector<32x512xbf16>, vector<512x256xbf16>, vector<32x256xf32> -> vector<32x256xf32>
    %301 = vector.broadcast %173 : vector<1x256xf32> to vector<32x256xf32>
    %302 = arith.addf %300, %301 : vector<32x256xf32>
    %303 = arith.addf %259, %302 : vector<32x256xf32>
    %c0_117 = arith.constant 0 : index
    %c0_118 = arith.constant 0 : index
    %304 = vector.load %arg29[%c0_117, %c0_118] : memref<1x256xf32, #tpu.memory_space<vmem>>, vector<1x256xf32>
    %c0_119 = arith.constant 0 : index
    %c0_120 = arith.constant 0 : index
    %305 = vector.load %arg30[%c0_119, %c0_120] : memref<1x256xf32, #tpu.memory_space<vmem>>, vector<1x256xf32>
    %cst_121 = arith.constant dense<0.000000e+00> : vector<32xf32>
    %306 = vector.multi_reduction <add>, %303, %cst_121 [1] : vector<32x256xf32> to vector<32xf32>
    %307 = vector.shape_cast %306 : vector<32xf32> to vector<32x1xf32>
    %cst_122 = arith.constant 2.560000e+02 : f32
    %308 = vector.broadcast %cst_122 : f32 to vector<32x1xf32>
    %309 = arith.divf %307, %308 : vector<32x1xf32>
    %310 = vector.broadcast %309 : vector<32x1xf32> to vector<32x256xf32>
    %311 = arith.subf %303, %310 : vector<32x256xf32>
    %312 = arith.mulf %311, %311 : vector<32x256xf32>
    %cst_123 = arith.constant dense<0.000000e+00> : vector<32xf32>
    %313 = vector.multi_reduction <add>, %312, %cst_123 [1] : vector<32x256xf32> to vector<32xf32>
    %314 = vector.shape_cast %313 : vector<32xf32> to vector<32x1xf32>
    %cst_124 = arith.constant 2.560000e+02 : f32
    %315 = vector.broadcast %cst_124 : f32 to vector<32x1xf32>
    %316 = arith.divf %314, %315 : vector<32x1xf32>
    %317 = vector.broadcast %309 : vector<32x1xf32> to vector<32x256xf32>
    %318 = arith.subf %303, %317 : vector<32x256xf32>
    %cst_125 = arith.constant 9.99999997E-7 : f32
    %319 = vector.broadcast %cst_125 : f32 to vector<32x1xf32>
    %320 = arith.addf %316, %319 : vector<32x1xf32>
    %321 = math.rsqrt %320 : vector<32x1xf32>
    %322 = vector.broadcast %321 : vector<32x1xf32> to vector<32x256xf32>
    %323 = arith.mulf %318, %322 : vector<32x256xf32>
    %324 = vector.broadcast %304 : vector<1x256xf32> to vector<32x256xf32>
    %325 = arith.mulf %323, %324 : vector<32x256xf32>
    %326 = vector.broadcast %305 : vector<1x256xf32> to vector<32x256xf32>
    %327 = arith.addf %325, %326 : vector<32x256xf32>
    %328 = arith.truncf %327 : vector<32x256xf32> to vector<32x256xbf16>
    %c0_126 = arith.constant 0 : index
    %c0_127 = arith.constant 0 : index
    %329 = vector.load %arg31[%c0_126, %c0_127] : memref<256x128xbf16, #tpu.memory_space<vmem>>, vector<256x128xbf16>
    %cst_128 = arith.constant dense<0.000000e+00> : vector<32x128xf32>
    %330 = tpu.matmul %328, %329, %cst_128 {dimension_numbers = #tpu.dot_dimension_numbers<[1], [0], [0], [1], [0, 0, 1, 1], [], []>} : vector<32x256xbf16>, vector<256x128xbf16>, vector<32x128xf32> -> vector<32x128xf32>
    %c0_129 = arith.constant 0 : index
    %c0_130 = arith.constant 0 : index
    %331 = vector.load %arg32[%c0_129, %c0_130] : memref<1x128xf32, #tpu.memory_space<vmem>>, vector<1x128xf32>
    %332 = vector.broadcast %331 : vector<1x128xf32> to vector<32x128xf32>
    %333 = arith.addf %330, %332 : vector<32x128xf32>
    %334 = vector.shape_cast %333 : vector<32x128xf32> to vector<2x16x128xf32>
    %c0_131 = arith.constant 0 : index
    %c0_132 = arith.constant 0 : index
    %c0_133 = arith.constant 0 : index
    %335 = vector.load %arg33[%c0_131, %c0_132, %c0_133] : memref<2x16x128xf32, #tpu.memory_space<vmem>>, vector<2x16x128xf32>
    tpu.vector_store %arg33[%c0_131, %c0_132, %c0_133], %334 {strides = array<i32>} : memref<2x16x128xf32, #tpu.memory_space<vmem>>, vector<2x16x128xf32>,
    return
  }
}

</mosaic_0001>

<bundles_post_ra>
// kernel: autoencoder_forward.1
= control target key start
LH: loop header
LB: loop body
LE: loop exit
PB: predicated region body
PF: predicated region fallthrough
CT: control target
= control target key end

     0   :  { %s10837_s6 = smov 1   ;;  %s10838_s10 = smov 2   ;;  %s12974_s0 = inlined_call_operand.smem [shape: u32[34], index: -1, kind: input, shape index: {}] }
   0x1   :  { %s10906_s5 = sld [smem:[%s12974_s0]]   ;;  %s10839_s14 = smov 3  }
   0x2   :  { %s10911_s9 = sld [smem:[%s12974_s0 + %s10837_s6]]   ;;  %s10840_s18 = smov 4  }
   0x3   :  { %s10916_s13 = sld [smem:[%s12974_s0 + %s10838_s10]]   ;;  %s10841_s22 = smov 5  }
   0x4   :  { %s10921_s17 = sld [smem:[%s12974_s0 + %s10839_s14]]   ;;  %s10842_s26 = smov 6  }
   0x5   :  { %s10926_s21 = sld [smem:[%s12974_s0 + %s10840_s18]]   ;;  %s10843_s30 = smov 7  }
   0x6   :  { %s10931_s25 = sld [smem:[%s12974_s0 + %s10841_s22]]   ;;  %s10844_s4 = smov 8  }
   0x7   :  { %12985 = sst [smem:[#allocation45_spill]] %s10906_s5  ;;  %s10845_s10 = smov 9  }
   0x8   :  { %12986 = sst [smem:[#allocation46_spill]] %s10911_s9  ;;  %s10846_s15 = smov 10  }
   0x9   :  { %s10936_s29 = sld [smem:[%s12974_s0 + %s10842_s26]]   ;;  %s10847_s20 = smov 11  }
   0xa   :  { %12987 = sst [smem:[#allocation47_spill]] %s10921_s17  ;;  %s10848_s26 = smov 12  }
   0xb   :  { %12988 = sst [smem:[#allocation48_spill]] %s10926_s21  ;;  %s10849_s1 = smov 13  }
   0xc   :  { %12989 = sst [smem:[#allocation49_spill]] %s10931_s25  ;;  %s10850_s7 = smov 14  }
   0xd   :  { %s10941_s3 = sld [smem:[%s12974_s0 + %s10843_s30]]   ;;  %s10852_s22 = smov 16  }
   0xe   :  { %s10946_s8 = sld [smem:[%s12974_s0 + %s10844_s4]]   ;;  %s10853_s28 = smov 17  }
   0xf   :  { %12990 = sst [smem:[#allocation50_spill]] %s10936_s29 }
  0x10   :  { %s10951_s14 = sld [smem:[%s12974_s0 + %s10845_s10]]  }
  0x11   :  { %s10956_s19 = sld [smem:[%s12974_s0 + %s10846_s15]]   ;;  %s10851_s15 = smov 15  }
  0x12   :  { %s10961_s24 = sld [smem:[%s12974_s0 + %s10847_s20]]  }
  0x13   :  { %12991 = sst [smem:[#allocation51_spill]] %s10941_s3 }
  0x14   :  { %12992 = sst [smem:[#allocation52_spill]] %s10946_s8 }
  0x15   :  { %s10966_s30 = sld [smem:[%s12974_s0 + %s10848_s26]]  }
  0x16   :  { %12993 = sst [smem:[#allocation53_spill]] %s10951_s14 }
  0x17   :  { %12994 = sst [smem:[#allocation54_spill]] %s10956_s19 }
  0x18   :  { %s10971_s6 = sld [smem:[%s12974_s0 + %s10849_s1]]  }
  0x19   :  { %s10976_s12 = sld [smem:[%s12974_s0 + %s10850_s7]]   ;;  %s10854_s7 = smov 18  }
  0x1a   :  { %s10981_s20 = sld [smem:[%s12974_s0 + %s10851_s15]]   ;;  %s10855_s15 = smov 19  }
  0x1b   :  { %s10986_s27 = sld [smem:[%s12974_s0 + %s10852_s22]]   ;;  %s10856_s22 = smov 20  }
  0x1c   :  { %s10991_s4 = sld [smem:[%s12974_s0 + %s10853_s28]]   ;;  %s10857_s28 = smov 21  }
  0x1d   :  { %s10996_s19 = sld [smem:[%s12974_s0 + %s10854_s7]]   ;;  %s10858_s7 = smov 22  }
  0x1e   :  { %s11001_s14 = sld [smem:[%s12974_s0 + %s10855_s15]]   ;;  %s10859_s15 = smov 23  }
  0x1f   :  { %s11006_s8 = sld [smem:[%s12974_s0 + %s10856_s22]]   ;;  %s10860_s22 = smov 24  }
  0x20   :  { %s11011_s3 = sld [smem:[%s12974_s0 + %s10857_s28]]   ;;  %s10861_s28 = smov 25  }
  0x21   :  { %s11016_s29 = sld [smem:[%s12974_s0 + %s10858_s7]]   ;;  %s10862_s7 = smov 26  }
  0x22   :  { %s11026_s21 = sld [smem:[%s12974_s0 + %s10860_s22]]   ;;  %s10864_s22 = smov 28  }
  0x23   :  { %s11031_s17 = sld [smem:[%s12974_s0 + %s10861_s28]]   ;;  %s10865_s28 = smov 29  }
  0x24   :  { %12995 = sst [smem:[#allocation55_spill]] %s11001_s14 }
  0x25   :  { %s11021_s14 = sld [smem:[%s12974_s0 + %s10859_s15]]   ;;  %s10863_s15 = smov 27  }
  0x26   :  { %12996 = sst [smem:[#allocation56_spill]] %s11011_s3 }
  0x27   :  { %s11036_s25 = sld [smem:[%s12974_s0 + %s10862_s7]]   ;;  %s10866_s7 = smov 30  }
  0x28   :  { %s11041_s5 = sld [smem:[%s12974_s0 + %s10863_s15]]   ;;  %s10867_s15 = smov 31  }
  0x29   :  { %12998 = sst [smem:[#allocation58_spill]] %s11031_s17 }
  0x2a   :  { %s11046_s9 = sld [smem:[%s12974_s0 + %s10864_s22]]   ;;  %s10868_s22 = smov 32  }
  0x2b   :  { %12997 = sst [smem:[#allocation57_spill]] %s11021_s14 }
  0x2c   :  { %s11051_s17 = sld [smem:[%s12974_s0 + %s10865_s28]]   ;;  %s10869_s28 = smov 33  }
  0x2d   :  { %s11056_s14 = sld [smem:[%s12974_s0 + %s10866_s7]]  }
  0x2e   :  { %12999 = sst [smem:[#allocation59_spill]] %s11041_s5 }
  0x2f   :  { %s11061_s5 = sld [smem:[%s12974_s0 + %s10867_s15]]  }
  0x30   :  { %s11066_s3 = sld [smem:[%s12974_s0 + %s10868_s22]]  }
  0x32   :  { %13000 = sst [smem:[#allocation60_spill]] %s11051_s17 }
  0x33   :  { %s11071_s17 = sld [smem:[%s12974_s0 + %s10869_s28]]  }
  0x34   :  { %72 = vsyncpa [#allocation3], 0 }
  0x35   :  { %73 = vsyncpa [#allocation5], 0 }
  0x36   :  { %74 = vsyncpa [#allocation8], 0 }
  0x37   :  { %75 = vsyncpa [#allocation11], 0 }
  0x38   :  { %76 = vsyncpa [#allocation14], 0 }
  0x39   :  { %77 = vsyncpa [#allocation17], 0 }
  0x3a   :  { %78 = vsyncpa [#allocation20], 0 }
  0x3b   :  { %79 = vsyncpa [#allocation23], 0 }
  0x3c   :  { %80 = vsyncpa [#allocation26], 0 }
  0x3d   :  { %81 = vsyncpa [#allocation29], 0 }
  0x3e   :  { %82 = vsyncpa [#allocation32], 0  ;;  %s120_s7 = sshll.u32 %s10961_s24, 4  ;;  %s10870_s10 = smov [#allocation4]   ;;  %s121_s7 = int_to_ptr.hbm [resolvable:$true] %s120_s7 }
  0x3f   :  { %s122_s0 = sshll.u32 %s10870_s10, 4  ;;  %s144_s11 = sshll.u32 %s10971_s6, 4  ;;  %s123_s0 = int_to_ptr.vmem [resolvable:$true] %s122_s0  ;;  %s145_s11 = int_to_ptr.hbm [resolvable:$true] %s144_s11 }
  0x40   :  { %s10311_s15 = sshra.s32 %s121_s7, 4  ;;  %s10315_s18 = scalar_lea.hbm %s10961_s24, 512  ;;  %s10312_s15 = int_to_ptr.hbm [resolvable:$true] %s10311_s15 }
  0x41   :  { %s10313_s16 = scalar_lea.hbm %s10312_s15, 512  ;;  %p10316_p1 = scmp.lt.s32.totalorder %s10312_s15, %s10961_s24 }
  0x42   :  { %p10314_p0 = scmp.ne.s32.totalorder %s10312_s15, %s10313_s16  ;;  %p10317_p2 = scmp.lt.s32.totalorder %s10315_s18, %s10313_s16 }
  0x44   :  { %p10318_p3 = por %p10317_p2, %p10316_p1 }
  0x46   :  { %p10319_p4 = pnand %p10318_p3, %p10314_p0 }
  0x48   :  { %10322 = shalt.err (!%p10319_p4)
}
  0x49   :  { %s10871_s22 = smov 256   ;;  %s10872_s23 = smov 16  }
  0x4a   :  { %128 = dma.hbm_to_vmem [thread:$0]  %s121_s7, 8192, %s123_s0, [#allocation5], %s10871_s22, %s10871_s22, %s10872_s23  }
  0x4b   :  { %s10873_s26 = smov [#allocation7]   ;;  %s10335_s1 = sshra.s32 %s145_s11, 4  ;;  %s10336_s1 = int_to_ptr.hbm [resolvable:$true] %s10335_s1 }
  0x4c   :  { %s146_s28 = sshll.u32 %s10873_s26, 4  ;;  %s10337_s2 = scalar_lea.hbm %s10336_s1, 512  ;;  %s147_s28 = int_to_ptr.vmem [resolvable:$true] %s146_s28 }
  0x4d   :  { %p10338_p5 = scmp.ne.s32.totalorder %s10336_s1, %s10337_s2  ;;  %s10339_s24 = scalar_lea.hbm %s10971_s6, 512 }
  0x4e   :  { %p10340_p6 = scmp.lt.s32.totalorder %s10336_s1, %s10971_s6  ;;  %p10341_p7 = scmp.lt.s32.totalorder %s10339_s24, %s10337_s2 }
  0x50   :  { %p10342_p8 = por %p10341_p7, %p10340_p6 }
  0x52   :  { %p10343_p9 = pnand %p10342_p8, %p10338_p5 }
  0x54   :  { %10346 = shalt.err (!%p10343_p9)
}
  0x55   :  { %s10874_s10 = smov 128   ;;  %s10875_s7 = smov 8  }
  0x56   :  { %152 = dma.hbm_to_vmem [thread:$0]  %s145_s11, 8192, %s147_s28, [#allocation8], %s10874_s10, %s10874_s10, %s10875_s7  }
  0x57   :  { %s168_s0 = sshll.u32 %s10981_s20, 4  ;;  %s10876_s15 = smov [#allocation10]   ;;  %s169_s0 = int_to_ptr.hbm [resolvable:$true] %s168_s0 }
  0x58   :  { %s170_s16 = sshll.u32 %s10876_s15, 4  ;;  %s195_s6 = sshll.u32 %s10991_s4, 4  ;;  %s171_s16 = int_to_ptr.vmem [resolvable:$true] %s170_s16  ;;  %s196_s6 = int_to_ptr.hbm [resolvable:$true] %s195_s6 }
  0x59   :  { %s10359_s18 = sshra.s32 %s169_s0, 4  ;;  %s10363_s1 = scalar_lea.hbm %s10981_s20, 256  ;;  %s10360_s18 = int_to_ptr.hbm [resolvable:$true] %s10359_s18 }
  0x5a   :  { %s10361_s26 = scalar_lea.hbm %s10360_s18, 256  ;;  %p10364_p11 = scmp.lt.s32.totalorder %s10360_s18, %s10981_s20 }
  0x5b   :  { %p10362_p10 = scmp.ne.s32.totalorder %s10360_s18, %s10361_s26  ;;  %p10365_p12 = scmp.lt.s32.totalorder %s10363_s1, %s10361_s26 }
  0x5d   :  { %p10366_p13 = por %p10365_p12, %p10364_p11 }
  0x5f   :  { %p10367_p0 = pnand %p10366_p13, %p10362_p10 }
  0x61   :  { %10370 = shalt.err (!%p10367_p0)
}
  0x62   :  { %176 = dma.hbm_to_vmem [thread:$0]  %s169_s0, 4096, %s171_s16, [#allocation11], %s10874_s10, %s10874_s10, %s10875_s7  }
  0x63   :  { %s10877_s11 = smov [#allocation13]   ;;  %s219_s2 = sshll.u32 %s11006_s8, 4  ;;  %s220_s2 = int_to_ptr.hbm [resolvable:$true] %s219_s2 }
  0x64   :  { %s197_s28 = sshll.u32 %s10877_s11, 4  ;;  %s10383_s24 = sshra.s32 %s196_s6, 4  ;;  %s198_s28 = int_to_ptr.vmem [resolvable:$true] %s197_s28  ;;  %s10384_s24 = int_to_ptr.hbm [resolvable:$true] %s10383_s24 }
  0x65   :  { %s10385_s20 = scalar_lea.hbm %s10384_s24, 2  ;;  %s10387_s15 = scalar_lea.hbm %s10991_s4, 2 }
  0x66   :  { %p10386_p1 = scmp.ne.s32.totalorder %s10384_s24, %s10385_s20  ;;  %p10388_p2 = scmp.lt.s32.totalorder %s10384_s24, %s10991_s4 }
  0x67   :  { %p10389_p3 = scmp.lt.s32.totalorder %s10387_s15, %s10385_s20 }
  0x69   :  { %p10390_p4 = por %p10389_p3, %p10388_p2 }
  0x6b   :  { %p10391_p5 = pnand %p10390_p4, %p10386_p1 }
  0x6d   :  { %10394 = shalt.err (!%p10391_p5)
}
  0x6e   :  { %200 = dma.hbm_to_vmem [thread:$0]  %s196_s6, 32, %s198_s28, [#allocation14]  }
  0x6f   :  { %s243_s0 = sshll.u32 %s11016_s29, 4  ;;  %s10878_s16 = smov [#allocation16]   ;;  %s244_s0 = int_to_ptr.hbm [resolvable:$true] %s243_s0 }
  0x70   :  { %s221_s18 = sshll.u32 %s10878_s16, 4  ;;  %s10407_s26 = sshra.s32 %s220_s2, 4  ;;  %s222_s18 = int_to_ptr.vmem [resolvable:$true] %s221_s18  ;;  %s10408_s26 = int_to_ptr.hbm [resolvable:$true] %s10407_s26 }
  0x71   :  { %s10409_s1 = scalar_lea.hbm %s10408_s26, 6  ;;  %s10411_s11 = scalar_lea.hbm %s11006_s8, 6 }
  0x72   :  { %p10410_p6 = scmp.ne.s32.totalorder %s10408_s26, %s10409_s1  ;;  %p10412_p7 = scmp.lt.s32.totalorder %s10408_s26, %s11006_s8 }
  0x73   :  { %p10413_p8 = scmp.lt.s32.totalorder %s10411_s11, %s10409_s1 }
  0x75   :  { %p10414_p9 = por %p10413_p8, %p10412_p7 }
  0x77   :  { %p10415_p10 = pnand %p10414_p9, %p10410_p6 }
  0x79   :  { %10418 = shalt.err (!%p10415_p10)
}
  0x7a   :  { %224 = dma.hbm_to_vmem [thread:$0]  %s220_s2, 96, %s222_s18, [#allocation17]  }
  0x7b   :  { %s10879_s4 = smov [#allocation19]   ;;  %s265_s28 = sshll.u32 %s11026_s21, 4  ;;  %s266_s28 = int_to_ptr.hbm [resolvable:$true] %s265_s28 }
  0x7c   :  { %s245_s6 = sshll.u32 %s10879_s4, 4  ;;  %s10431_s24 = sshra.s32 %s244_s0, 4  ;;  %s246_s6 = int_to_ptr.vmem [resolvable:$true] %s245_s6  ;;  %s10432_s24 = int_to_ptr.hbm [resolvable:$true] %s10431_s24 }
  0x7d   :  { %s10433_s20 = scalar_lea.hbm %s10432_s24, 2  ;;  %s10435_s15 = scalar_lea.hbm %s11016_s29, 2 }
  0x7e   :  { %p10434_p11 = scmp.ne.s32.totalorder %s10432_s24, %s10433_s20  ;;  %p10436_p12 = scmp.lt.s32.totalorder %s10432_s24, %s11016_s29 }
  0x7f   :  { %p10437_p13 = scmp.lt.s32.totalorder %s10435_s15, %s10433_s20 }
  0x81   :  { %p10438_p0 = por %p10437_p13, %p10436_p12 }
  0x83   :  { %p10439_p1 = pnand %p10438_p0, %p10434_p11 }
  0x85   :  { %10442 = shalt.err (!%p10439_p1)
}
  0x86   :  { %248 = dma.hbm_to_vmem [thread:$0]  %s244_s0, 32, %s246_s6, [#allocation20]  }
  0x87   :  { %s289_s8 = sshll.u32 %s11036_s25, 4  ;;  %s10880_s2 = smov [#allocation22]   ;;  %s290_s8 = int_to_ptr.hbm [resolvable:$true] %s289_s8 }
  0x88   :  { %s267_s16 = sshll.u32 %s10880_s2, 4  ;;  %s10455_s18 = sshra.s32 %s266_s28, 4  ;;  %s268_s16 = int_to_ptr.vmem [resolvable:$true] %s267_s16  ;;  %s10456_s18 = int_to_ptr.hbm [resolvable:$true] %s10455_s18 }
  0x89   :  { %s10457_s26 = scalar_lea.hbm %s10456_s18, 2  ;;  %s10459_s1 = scalar_lea.hbm %s11026_s21, 2 }
  0x8a   :  { %p10458_p2 = scmp.ne.s32.totalorder %s10456_s18, %s10457_s26  ;;  %p10460_p3 = scmp.lt.s32.totalorder %s10456_s18, %s11026_s21 }
  0x8b   :  { %p10461_p4 = scmp.lt.s32.totalorder %s10459_s1, %s10457_s26 }
  0x8d   :  { %p10462_p5 = por %p10461_p4, %p10460_p3 }
  0x8f   :  { %p10463_p6 = pnand %p10462_p5, %p10458_p2 }
  0x91   :  { %10466 = shalt.err (!%p10463_p6)
}
  0x92   :  { %270 = dma.hbm_to_vmem [thread:$0]  %s266_s28, 32, %s268_s16, [#allocation23]  }
  0x93   :  { %s10881_s29 = smov [#allocation25]   ;;  %s313_s11 = sshll.u32 %s11046_s9, 4  ;;  %s314_s11 = int_to_ptr.hbm [resolvable:$true] %s313_s11 }
  0x94   :  { %s291_s0 = sshll.u32 %s10881_s29, 4  ;;  %s10479_s4 = sshra.s32 %s290_s8, 4  ;;  %s292_s0 = int_to_ptr.vmem [resolvable:$true] %s291_s0  ;;  %s10480_s4 = int_to_ptr.hbm [resolvable:$true] %s10479_s4 }
  0x95   :  { %s10481_s6 = scalar_lea.hbm %s10480_s4, 4  ;;  %s10483_s24 = scalar_lea.hbm %s11036_s25, 4 }
  0x96   :  { %p10482_p7 = scmp.ne.s32.totalorder %s10480_s4, %s10481_s6  ;;  %p10484_p8 = scmp.lt.s32.totalorder %s10480_s4, %s11036_s25 }
  0x97   :  { %p10485_p9 = scmp.lt.s32.totalorder %s10483_s24, %s10481_s6 }
  0x99   :  { %p10486_p10 = por %p10485_p9, %p10484_p8 }
  0x9b   :  { %p10487_p11 = pnand %p10486_p10, %p10482_p7 }
  0x9d   :  { %10490 = shalt.err (!%p10487_p11)
}
  0x9e   :  { %294 = dma.hbm_to_vmem [thread:$0]  %s290_s8, 64, %s292_s0, [#allocation26]  }
  0x9f   :  { %s335_s21 = sshll.u32 %s11056_s14, 4  ;;  %s10882_s28 = smov [#allocation28]   ;;  %s336_s21 = int_to_ptr.hbm [resolvable:$true] %s335_s21 }
  0xa0   :  { %s315_s20 = sshll.u32 %s10882_s28, 4  ;;  %s10503_s15 = sshra.s32 %s314_s11, 4  ;;  %s316_s20 = int_to_ptr.vmem [resolvable:$true] %s315_s20  ;;  %s10504_s15 = int_to_ptr.hbm [resolvable:$true] %s10503_s15 }
  0xa1   :  { %s10505_s2 = scalar_lea.hbm %s10504_s15, 2  ;;  %s10507_s16 = scalar_lea.hbm %s11046_s9, 2 }
  0xa2   :  { %p10506_p12 = scmp.ne.s32.totalorder %s10504_s15, %s10505_s2  ;;  %p10508_p13 = scmp.lt.s32.totalorder %s10504_s15, %s11046_s9 }
  0xa3   :  { %p10509_p0 = scmp.lt.s32.totalorder %s10507_s16, %s10505_s2 }
  0xa5   :  { %p10510_p1 = por %p10509_p0, %p10508_p13 }
  0xa7   :  { %p10511_p2 = pnand %p10510_p1, %p10506_p12 }
  0xa9   :  { %10514 = shalt.err (!%p10511_p2)
}
  0xaa   :  { %318 = dma.hbm_to_vmem [thread:$0]  %s314_s11, 32, %s316_s20, [#allocation29]  }
  0xab   :  { %s10883_s25 = smov [#allocation31]   ;;  %s91_s18 = sshll.u32 %s10916_s13, 4  ;;  %s11111_s18 = int_to_ptr.hbm [resolvable:$true] %s91_s18 }
  0xac   :  { %s337_s8 = sshll.u32 %s10883_s25, 4  ;;  %s10527_s26 = sshra.s32 %s336_s21, 4  ;;  %s338_s8 = int_to_ptr.vmem [resolvable:$true] %s337_s8  ;;  %s10528_s26 = int_to_ptr.hbm [resolvable:$true] %s10527_s26 }
  0xad   :  { %s10529_s1 = scalar_lea.hbm %s10528_s26, 2  ;;  %s10531_s29 = scalar_lea.hbm %s11056_s14, 2 }
  0xae   :  { %p10530_p3 = scmp.ne.s32.totalorder %s10528_s26, %s10529_s1  ;;  %p10532_p4 = scmp.lt.s32.totalorder %s10528_s26, %s11056_s14 }
  0xaf   :  { %p10533_p5 = scmp.lt.s32.totalorder %s10531_s29, %s10529_s1 }
  0xb1   :  { %p10534_p6 = por %p10533_p5, %p10532_p4 }
  0xb3   :  { %p10535_p7 = pnand %p10534_p6, %p10530_p3 }
  0xb5   :  { %10538 = shalt.err (!%p10535_p7)
}
  0xb6   :  { %340 = dma.hbm_to_vmem [thread:$0]  %s336_s21, 32, %s338_s8, [#allocation32]  }
  0xb7   :  { %s134_s9 = sshll.u32 %s10966_s30, 4  ;;  %s10884_s0 = smov [#allocation2]   ;;  %s135_s9 = int_to_ptr.hbm [resolvable:$true] %s134_s9 }
  0xb8   :  { %s93_s11 = sshll.u32 %s10884_s0, 4  ;;  %s10551_s4 = sshra.s32 %s11111_s18, 4  ;;  %s94_s11 = int_to_ptr.vmem [resolvable:$true] %s93_s11  ;;  %s10552_s4 = int_to_ptr.hbm [resolvable:$true] %s10551_s4 }
  0xb9   :  { %s10553_s6 = scalar_lea.hbm %s10552_s4, 32  ;;  %s10555_s24 = scalar_lea.hbm %s10916_s13, 32 }
  0xba   :  { %p10554_p8 = scmp.ne.s32.totalorder %s10552_s4, %s10553_s6  ;;  %p10556_p9 = scmp.lt.s32.totalorder %s10552_s4, %s10916_s13 }
  0xbb   :  { %p10557_p10 = scmp.lt.s32.totalorder %s10555_s24, %s10553_s6 }
  0xbd   :  { %p10558_p11 = por %p10557_p10, %p10556_p9 }
  0xbf   :  { %p10559_p12 = pnand %p10558_p11, %p10554_p8 }
  0xc1   :  { %10562 = shalt.err (!%p10559_p12)
}
  0xc2   :  { %99 = dma.hbm_to_vmem [thread:$0]  %s11111_s18, 512, %s94_s11, [#allocation3], %s10871_s22, %s10871_s22, %s10872_s23  }
  0xc3   :  { %s10885_s14 = smov [#allocation6]   ;;  %s158_s28 = sshll.u32 %s10976_s12, 4  ;;  %s159_s28 = int_to_ptr.hbm [resolvable:$true] %s158_s28 }
  0xc4   :  { %s136_s21 = sshll.u32 %s10885_s14, 4  ;;  %s10575_s20 = sshra.s32 %s135_s9, 4  ;;  %s137_s21 = int_to_ptr.vmem [resolvable:$true] %s136_s21  ;;  %s10576_s20 = int_to_ptr.hbm [resolvable:$true] %s10575_s20 }
  0xc5   :  { %s10577_s13 = scalar_lea.hbm %s10576_s20, 4  ;;  %s10579_s15 = scalar_lea.hbm %s10966_s30, 4 }
  0xc6   :  { %p10578_p13 = scmp.ne.s32.totalorder %s10576_s20, %s10577_s13  ;;  %p10580_p0 = scmp.lt.s32.totalorder %s10576_s20, %s10966_s30 }
  0xc7   :  { %p10581_p1 = scmp.lt.s32.totalorder %s10579_s15, %s10577_s13 }
  0xc9   :  { %p10582_p2 = por %p10581_p1, %p10580_p0 }
  0xcb   :  { %p10583_p3 = pnand %p10582_p2, %p10578_p13 }
  0xcd   :  { %10586 = shalt.err (!%p10583_p3)
}
  0xce   :  { %139 = dma.hbm_to_vmem [thread:$0]  %s135_s9, 64, %s137_s21, [#allocation5]  }
  0xcf   :  { %s181_s2 = sshll.u32 %s10986_s27, 4  ;;  %s10886_s16 = smov [#allocation9]   ;;  %s11127_s2 = int_to_ptr.hbm [resolvable:$true] %s181_s2 }
  0xd0   :  { %s160_s25 = sshll.u32 %s10886_s16, 4  ;;  %s10599_s8 = sshra.s32 %s159_s28, 4  ;;  %s161_s25 = int_to_ptr.vmem [resolvable:$true] %s160_s25  ;;  %s10600_s8 = int_to_ptr.hbm [resolvable:$true] %s10599_s8 }
  0xd1   :  { %s10601_s18 = scalar_lea.hbm %s10600_s8, 2  ;;  %s10603_s26 = scalar_lea.hbm %s10976_s12, 2 }
  0xd2   :  { %p10602_p4 = scmp.ne.s32.totalorder %s10600_s8, %s10601_s18  ;;  %p10604_p5 = scmp.lt.s32.totalorder %s10600_s8, %s10976_s12 }
  0xd3   :  { %p10605_p6 = scmp.lt.s32.totalorder %s10603_s26, %s10601_s18 }
  0xd5   :  { %p10606_p7 = por %p10605_p6, %p10604_p5 }
  0xd7   :  { %p10607_p8 = pnand %p10606_p7, %p10602_p4 }
  0xd9   :  { %10610 = shalt.err (!%p10607_p8)
}
  0xda   :  { %163 = dma.hbm_to_vmem [thread:$0]  %s159_s28, 32, %s161_s25, [#allocation8]  }
  0xdb   :  { %s10887_s30 = smov [#allocation12]   ;;  %s206_s29 = sshll.u32 %s10996_s19, 4  ;;  %s207_s29 = int_to_ptr.hbm [resolvable:$true] %s206_s29 }
  0xdc   :  { %s183_s1 = sshll.u32 %s10887_s30, 4  ;;  %s10623_s9 = sshra.s32 %s11127_s2, 4  ;;  %s184_s1 = int_to_ptr.vmem [resolvable:$true] %s183_s1  ;;  %s10624_s9 = int_to_ptr.hbm [resolvable:$true] %s10623_s9 }
  0xdd   :  { %s10625_s0 = scalar_lea.hbm %s10624_s9, 32  ;;  %s10627_s11 = scalar_lea.hbm %s10986_s27, 32 }
  0xde   :  { %p10626_p9 = scmp.ne.s32.totalorder %s10624_s9, %s10625_s0  ;;  %p10628_p10 = scmp.lt.s32.totalorder %s10624_s9, %s10986_s27 }
  0xdf   :  { %p10629_p11 = scmp.lt.s32.totalorder %s10627_s11, %s10625_s0 }
  0xe1   :  { %p10630_p12 = por %p10629_p11, %p10628_p10 }
  0xe3   :  { %p10631_p13 = pnand %p10630_p12, %p10626_p9 }
  0xe5   :  { %10634 = shalt.err (!%p10631_p13)
}
  0xe6   :  { %s13001_s12 = sld [smem:[#allocation56_spill]]  ;;  %s10888_s6 = smov [#allocation15]  }
  0xe7   :  { %189 = dma.hbm_to_vmem [thread:$0]  %s11127_s2, 512, %s184_s1, [#allocation11], %s10871_s22, %s10871_s22, %s10872_s23  }
  0xe8   :  { %s208_s24 = sshll.u32 %s10888_s6, 4  ;;  %s10647_s14 = sshra.s32 %s207_s29, 4  ;;  %s209_s24 = int_to_ptr.vmem [resolvable:$true] %s208_s24  ;;  %s10648_s14 = int_to_ptr.hbm [resolvable:$true] %s10647_s14 }
  0xe9   :  { %s10649_s27 = scalar_lea.hbm %s10648_s14, 2  ;;  %s10651_s21 = scalar_lea.hbm %s10996_s19, 2 }
  0xea   :  { %p10650_p0 = scmp.ne.s32.totalorder %s10648_s14, %s10649_s27  ;;  %p10652_p1 = scmp.lt.s32.totalorder %s10648_s14, %s10996_s19 }
  0xeb   :  { %p10653_p2 = scmp.lt.s32.totalorder %s10651_s21, %s10649_s27 }
  0xec   :  { %s229_s4 = sshll.u32 %s13001_s12, 4  ;;  %s11140_s4 = int_to_ptr.hbm [resolvable:$true] %s229_s4 }
  0xed   :  { %p10654_p3 = por %p10653_p2, %p10652_p1 }
  0xef   :  { %p10655_p4 = pnand %p10654_p3, %p10650_p0 }
  0xf1   :  { %10658 = shalt.err (!%p10655_p4)
}
  0xf2   :  { %211 = dma.hbm_to_vmem [thread:$0]  %s207_s29, 32, %s209_s24, [#allocation14]  }
  0xf3   :  { %s13002_s28 = sld [smem:[#allocation57_spill]]  ;;  %s10889_s20 = smov [#allocation18]  }
  0xf4   :  { %s231_s13 = sshll.u32 %s10889_s20, 4  ;;  %s10671_s2 = sshra.s32 %s11140_s4, 4  ;;  %s232_s13 = int_to_ptr.vmem [resolvable:$true] %s231_s13  ;;  %s10672_s2 = int_to_ptr.hbm [resolvable:$true] %s10671_s2 }
  0xf5   :  { %s10673_s16 = scalar_lea.hbm %s10672_s2, 256  ;;  %s10675_s25 = scalar_lea.hbm %s13001_s12, 256 }
  0xf6   :  { %p10674_p5 = scmp.ne.s32.totalorder %s10672_s2, %s10673_s16  ;;  %p10676_p6 = scmp.lt.s32.totalorder %s10672_s2, %s13001_s12 }
  0xf7   :  { %p10677_p7 = scmp.lt.s32.totalorder %s10675_s25, %s10673_s16 }
  0xf9   :  { %s254_s15 = sshll.u32 %s13002_s28, 4  ;;  %p10678_p8 = por %p10677_p7, %p10676_p6  ;;  %s255_s15 = int_to_ptr.hbm [resolvable:$true] %s254_s15 }
  0xfb   :  { %p10679_p9 = pnand %p10678_p8, %p10674_p5 }
  0xfd   :  { %10682 = shalt.err (!%p10679_p9)
}
  0xfe   :  { %s13003_s19 = sld [smem:[#allocation58_spill]]  ;;  %s10890_s18 = smov [#allocation21]  }
  0xff   :  { %237 = dma.hbm_to_vmem [thread:$0]  %s11140_s4, 4096, %s232_s13, [#allocation17], %s10874_s10, %s10874_s10, %s10875_s7  }
 0x100   :  { %s256_s26 = sshll.u32 %s10890_s18, 4  ;;  %s10695_s30 = sshra.s32 %s255_s15, 4  ;;  %s257_s26 = int_to_ptr.vmem [resolvable:$true] %s256_s26  ;;  %s10696_s30 = int_to_ptr.hbm [resolvable:$true] %s10695_s30 }
 0x101   :  { %s10697_s1 = scalar_lea.hbm %s10696_s30, 2  ;;  %s10699_s29 = scalar_lea.hbm %s13002_s28, 2 }
 0x102   :  { %p10698_p10 = scmp.ne.s32.totalorder %s10696_s30, %s10697_s1  ;;  %p10700_p11 = scmp.lt.s32.totalorder %s10696_s30, %s13002_s28 }
 0x103   :  { %p10701_p12 = scmp.lt.s32.totalorder %s10699_s29, %s10697_s1 }
 0x104   :  { %s275_s8 = sshll.u32 %s13003_s19, 4  ;;  %s11153_s8 = int_to_ptr.hbm [resolvable:$true] %s275_s8 }
 0x105   :  { %p10702_p13 = por %p10701_p12, %p10700_p11 }
 0x107   :  { %p10703_p0 = pnand %p10702_p13, %p10698_p10 }
 0x109   :  { %10706 = shalt.err (!%p10703_p0)
}
 0x10a   :  { %259 = dma.hbm_to_vmem [thread:$0]  %s255_s15, 32, %s257_s26, [#allocation20]  }
 0x10b   :  { %s13004_s9 = sld [smem:[#allocation59_spill]]  ;;  %s10891_s0 = smov [#allocation24]  }
 0x10c   :  { %s277_s11 = sshll.u32 %s10891_s0, 4  ;;  %s10719_s4 = sshra.s32 %s11153_s8, 4  ;;  %s278_s11 = int_to_ptr.vmem [resolvable:$true] %s277_s11  ;;  %s10720_s4 = int_to_ptr.hbm [resolvable:$true] %s10719_s4 }
 0x10d   :  { %s10721_s6 = scalar_lea.hbm %s10720_s4, 512  ;;  %s10723_s24 = scalar_lea.hbm %s13003_s19, 512 }
 0x10e   :  { %p10722_p1 = scmp.ne.s32.totalorder %s10720_s4, %s10721_s6  ;;  %p10724_p2 = scmp.lt.s32.totalorder %s10720_s4, %s13003_s19 }
 0x10f   :  { %p10725_p3 = scmp.lt.s32.totalorder %s10723_s24, %s10721_s6 }
 0x111   :  { %s299_s12 = sshll.u32 %s13004_s9, 4  ;;  %p10726_p4 = por %p10725_p3, %p10724_p2  ;;  %s11158_s12 = int_to_ptr.hbm [resolvable:$true] %s299_s12 }
 0x113   :  { %p10727_p5 = pnand %p10726_p4, %p10722_p1 }
 0x115   :  { %10730 = shalt.err (!%p10727_p5)
}
 0x116   :  { %s13005_s14 = sld [smem:[#allocation60_spill]]  ;;  %s10892_s21 = smov [#allocation27]  }
 0x117   :  { %283 = dma.hbm_to_vmem [thread:$0]  %s11153_s8, 8192, %s278_s11, [#allocation23], %s10871_s22, %s10871_s22, %s10872_s23  }
 0x118   :  { %s301_s28 = sshll.u32 %s10892_s21, 4  ;;  %s10743_s20 = sshra.s32 %s11158_s12, 4  ;;  %s302_s28 = int_to_ptr.vmem [resolvable:$true] %s301_s28  ;;  %s10744_s20 = int_to_ptr.hbm [resolvable:$true] %s10743_s20 }
 0x119   :  { %s10745_s13 = scalar_lea.hbm %s10744_s20, 512  ;;  %s10747_s15 = scalar_lea.hbm %s13004_s9, 512 }
 0x11a   :  { %p10746_p6 = scmp.ne.s32.totalorder %s10744_s20, %s10745_s13  ;;  %p10748_p7 = scmp.lt.s32.totalorder %s10744_s20, %s13004_s9 }
 0x11b   :  { %p10749_p8 = scmp.lt.s32.totalorder %s10747_s15, %s10745_s13 }
 0x11c   :  { %s324_s27 = sshll.u32 %s13005_s14, 4  ;;  %s325_s27 = int_to_ptr.hbm [resolvable:$true] %s324_s27 }
 0x11d   :  { %p10750_p9 = por %p10749_p8, %p10748_p7 }
 0x11f   :  { %p10751_p10 = pnand %p10750_p9, %p10746_p6 }
 0x121   :  { %10754 = shalt.err (!%p10751_p10)
}
 0x122   :  { %307 = dma.hbm_to_vmem [thread:$0]  %s11158_s12, 8192, %s302_s28, [#allocation26], %s10874_s10, %s10874_s10, %s10875_s7  }
 0x123   :  { %s10893_s22 = smov [#allocation30]   ;;  %s345_s2 = sshll.u32 %s11061_s5, 4  ;;  %s11176_s2 = int_to_ptr.hbm [resolvable:$true] %s345_s2 }
 0x124   :  { %s326_s23 = sshll.u32 %s10893_s22, 4  ;;  %s10767_s16 = sshra.s32 %s325_s27, 4  ;;  %s327_s23 = int_to_ptr.vmem [resolvable:$true] %s326_s23  ;;  %s10768_s16 = int_to_ptr.hbm [resolvable:$true] %s10767_s16 }
 0x125   :  { %s10769_s25 = scalar_lea.hbm %s10768_s16, 2  ;;  %s10771_s19 = scalar_lea.hbm %s13005_s14, 2 }
 0x126   :  { %p10770_p11 = scmp.ne.s32.totalorder %s10768_s16, %s10769_s25  ;;  %p10772_p12 = scmp.lt.s32.totalorder %s10768_s16, %s13005_s14 }
 0x127   :  { %p10773_p13 = scmp.lt.s32.totalorder %s10771_s19, %s10769_s25 }
 0x129   :  { %p10774_p0 = por %p10773_p13, %p10772_p12 }
 0x12b   :  { %p10775_p1 = pnand %p10774_p0, %p10770_p11 }
 0x12d   :  { %10778 = shalt.err (!%p10775_p1)
}
 0x12e   :  { %329 = dma.hbm_to_vmem [thread:$0]  %s325_s27, 32, %s327_s23, [#allocation29]  }
 0x12f   :  { %s10894_s10 = smov [#allocation33]   ;;  %s10791_s8 = sshra.s32 %s11176_s2, 4  ;;  %s10792_s8 = int_to_ptr.hbm [resolvable:$true] %s10791_s8 }
 0x130   :  { %s347_s7 = sshll.u32 %s10894_s10, 4  ;;  %s10793_s18 = scalar_lea.hbm %s10792_s8, 128  ;;  %s348_s7 = int_to_ptr.vmem [resolvable:$true] %s347_s7 }
 0x131   :  { %p10794_p2 = scmp.ne.s32.totalorder %s10792_s8, %s10793_s18  ;;  %s10795_s26 = scalar_lea.hbm %s11061_s5, 128 }
 0x132   :  { %p10796_p3 = scmp.lt.s32.totalorder %s10792_s8, %s11061_s5  ;;  %p10797_p4 = scmp.lt.s32.totalorder %s10795_s26, %s10793_s18 }
 0x134   :  { %p10798_p5 = por %p10797_p4, %p10796_p3 }
 0x136   :  { %p10799_p6 = pnand %p10798_p5, %p10794_p2 }
 0x138   :  { %10802 = shalt.err (!%p10799_p6)
}
 0x139   :  { %s10895_s30 = smov 64   ;;  %s10896_s1 = smov 4  }
 0x13a   :  { %353 = dma.hbm_to_vmem [thread:$0]  %s11176_s2, 2048, %s348_s7, [#allocation32], %s10895_s30, %s10895_s30, %s10896_s1  }
 0x13b   :  { %10815 = dma.done.wait [#allocation3], 512  }
 0x13c   :  { %10816 = vsyncadd [#allocation3], 4294966784 }
 0x13d   :  { %10817 = dma.done.wait [#allocation5], 8256  }
 0x13e   :  { %10818 = vsyncadd [#allocation5], 4294959040 }
 0x13f   :  { %10819 = dma.done.wait [#allocation8], 8224  }
 0x140   :  { %10820 = vsyncadd [#allocation8], 4294959072 }
 0x141   :  { %10821 = dma.done.wait [#allocation11], 4608  }
 0x142   :  { %10822 = vsyncadd [#allocation11], 4294962688 }
 0x143   :  { %10823 = dma.done.wait [#allocation14], 64  }
 0x144   :  { %10824 = vsyncadd [#allocation14], 4294967232 }
 0x145   :  { %10825 = dma.done.wait [#allocation17], 4192  }
 0x146   :  { %10826 = vsyncadd [#allocation17], 4294963104 }
 0x147   :  { %10827 = dma.done.wait [#allocation20], 64  }
 0x148   :  { %10828 = vsyncadd [#allocation20], 4294967232 }
 0x149   :  { %10829 = dma.done.wait [#allocation23], 8224  }
 0x14a   :  { %10830 = vsyncadd [#allocation23], 4294959072 }
 0x14b   :  { %10831 = dma.done.wait [#allocation26], 8256  }
 0x14c   :  { %10832 = vsyncadd [#allocation26], 4294959040 }
 0x14d   :  { %10833 = dma.done.wait [#allocation29], 64  }
 0x14e   :  { %10834 = vsyncadd [#allocation29], 4294967232 }
 0x14f   :  { %10835 = dma.done.wait [#allocation32], 2080  }
 0x150   :  { %10836 = vsyncadd [#allocation32], 4294965216  ;;  %s13006_s5 = sld [smem:[#allocation46_spill]]  ;;  %v581_v54 = vld [vmem:[#allocation2] sm:$0xff]  ;;  %v582_v55 = vld [vmem:[#allocation2 + $0x8] sm:$0xff]  ;;  %vm1783_vm13 = vcmask 130048  }
 0x151   :  { %s13007_s29 = sld [smem:[#allocation45_spill]]  ;;  %v583_v61 = vld [vmem:[#allocation2 + $0x10] sm:$0xff]  ;;  %v584_v62 = vld [vmem:[#allocation2 + $0x18] sm:$0xff] }
 0x152   :  { %s13008_s9 = sld [smem:[#allocation49_spill]] }
 0x153   :  { %s13009_s0 = sld [smem:[#allocation47_spill]] }
 0x154   :  { %s13010_s11 = sld [smem:[#allocation48_spill]] }
 0x155   :  { %s13013_s12 = sld [smem:[#allocation50_spill]] }
 0x156   :  { %v7233_v0 = vld [vmem:[%s13006_s5 + $0x70] sm:$0xf]  ;;  %v9502_v1 = vld [vmem:[%s13006_s5 + $0x74] sm:$0xf0]  ;;  %v9501_v2 = vld [vmem:[%s13006_s5 + $0x74] sm:$0xf] }
 0x157   :  { %v7234_v3 = vor.u32 %v9502_v1, %v7233_v0  ;;  %v7235_v4 = vld [vmem:[%s13006_s5 + $0x78] sm:$0xf0]  ;;  %v7225_v5 = vld [vmem:[%s13006_s5 + $0x60] sm:$0xf]  ;;  %v9500_v6 = vld [vmem:[%s13006_s5 + $0x64] sm:$0xf0] }
 0x158   :  { %v7238_v7 = vor.u32 %v9501_v2, %v7235_v4  ;;  %v9499_v8 = vld [vmem:[%s13006_s5 + $0x64] sm:$0xf]  ;;  %v7227_v9 = vld [vmem:[%s13006_s5 + $0x68] sm:$0xf0]  ;;  %v7226_v10 = vor.u32 %v9500_v6, %v7225_v5  ;;  %v7217_v12 = vld [vmem:[%s13006_s5 + $0x50] sm:$0xf] }
 0x159   :  { %543 = vmatpush.bf16.msra.mxu0 %v7234_v3  ;;  %v7230_v11 = vor.u32 %v9499_v8, %v7227_v9  ;;  %v9498_v13 = vld [vmem:[%s13006_s5 + $0x54] sm:$0xf0]  ;;  %v9497_v14 = vld [vmem:[%s13006_s5 + $0x54] sm:$0xf]  ;;  %v7219_v15 = vld [vmem:[%s13006_s5 + $0x58] sm:$0xf0] }
 0x15a   :  { %562 = vmatpush.bf16.msra.mxu1 %v7238_v7  ;;  %v7218_v16 = vor.u32 %v9498_v13, %v7217_v12  ;;  %v7222_v17 = vor.u32 %v9497_v14, %v7219_v15  ;;  %v7209_v18 = vld [vmem:[%s13006_s5 + $0x40] sm:$0xf]  ;;  %v9496_v19 = vld [vmem:[%s13006_s5 + $0x44] sm:$0xf0]  ;;  %v9495_v20 = vld [vmem:[%s13006_s5 + $0x44] sm:$0xf] }
 0x15b   :  { %v7211_v21 = vld [vmem:[%s13006_s5 + $0x48] sm:$0xf0]  ;;  %v7210_v22 = vor.u32 %v9496_v19, %v7209_v18  ;;  %v7201_v24 = vld [vmem:[%s13006_s5 + $0x30] sm:$0xf]  ;;  %v9494_v25 = vld [vmem:[%s13006_s5 + $0x34] sm:$0xf0] }
 0x15c   :  { %v7214_v23 = vor.u32 %v9495_v20, %v7211_v21  ;;  %v9493_v26 = vld [vmem:[%s13006_s5 + $0x34] sm:$0xf]  ;;  %v7203_v27 = vld [vmem:[%s13006_s5 + $0x38] sm:$0xf0]  ;;  %v7202_v28 = vor.u32 %v9494_v25, %v7201_v24  ;;  %v7193_v30 = vld [vmem:[%s13006_s5 + $0x20] sm:$0xf] }
 0x15d   :  { %544 = vmatpush.bf16.msra.mxu0 %v7226_v10  ;;  %v7206_v29 = vor.u32 %v9493_v26, %v7203_v27  ;;  %v9492_v31 = vld [vmem:[%s13006_s5 + $0x24] sm:$0xf0]  ;;  %v9491_v32 = vld [vmem:[%s13006_s5 + $0x24] sm:$0xf]  ;;  %v7195_v33 = vld [vmem:[%s13006_s5 + $0x28] sm:$0xf0] }
 0x15e   :  { %563 = vmatpush.bf16.msra.mxu1 %v7230_v11  ;;  %v7194_v34 = vor.u32 %v9492_v31, %v7193_v30  ;;  %v7198_v35 = vor.u32 %v9491_v32, %v7195_v33  ;;  %v7185_v36 = vld [vmem:[%s13006_s5 + $0x10] sm:$0xf]  ;;  %v9490_v37 = vld [vmem:[%s13006_s5 + $0x14] sm:$0xf0]  ;;  %v9489_v38 = vld [vmem:[%s13006_s5 + $0x14] sm:$0xf] }
 0x15f   :  { %v7187_v39 = vld [vmem:[%s13006_s5 + $0x18] sm:$0xf0]  ;;  %v7186_v40 = vor.u32 %v9490_v37, %v7185_v36  ;;  %v7177_v42 = vld [vmem:[%s13006_s5] sm:$0xf]  ;;  %v9488_v43 = vld [vmem:[%s13006_s5 + $0x4] sm:$0xf0] }
 0x160   :  { %v7190_v41 = vor.u32 %v9489_v38, %v7187_v39  ;;  %v9487_v44 = vld [vmem:[%s13006_s5 + $0x4] sm:$0xf]  ;;  %v7179_v45 = vld [vmem:[%s13006_s5 + $0x8] sm:$0xf0]  ;;  %v7178_v46 = vor.u32 %v9488_v43, %v7177_v42  ;;  %v443_v51 = vld [vmem:[%s13007_s29 + $0x10] sm:$0xff]  ;;  %v10897_v14 = vmov 256.0  }
 0x161   :  { %545 = vmatpush.bf16.msra.mxu0 %v7218_v16  ;;  %v441_v47 = vld [vmem:[%s13007_s29] sm:$0xff]  ;;  %v442_v48 = vld [vmem:[%s13007_s29 + $0x8] sm:$0xff]  ;;  %v7182_v49 = vor.u32 %v9487_v44, %v7179_v45  ;;  %v444_v52 = vld [vmem:[%s13007_s29 + $0x18] sm:$0xff]  ;;  %10141 = vrcp.f32 %v10897_v14  ;;  %s13014_s4 = sld [smem:[#allocation51_spill]] }
 0x162   :  { %564 = vmatpush.bf16.msra.mxu1 %v7222_v17  ;;  %v445_v50 = vpack.c.bf16 %v442_v48, %v441_v47  ;;  %v446_v53 = vpack.c.bf16 %v444_v52, %v443_v51  ;;  %v7601_v51 = vld [vmem:[%s13008_s9 + $0x2d0] sm:$0xf]  ;;  %v9587_v14 = vld [vmem:[%s13008_s9 + $0x2a4] sm:$0xf]  ;;  %s13015_s6 = sld [smem:[#allocation52_spill]] }
 0x163   :  { %s13016_s24 = sld [smem:[#allocation53_spill]] }
 0x164   :  { %s13017_s14 = sld [smem:[#allocation54_spill]] }
 0x165   :  { %546 = vmatpush.bf16.msra.mxu0 %v7210_v22  ;;  %s13018_s27 = sld [smem:[#allocation55_spill]] }
 0x166   :  { %565 = vmatpush.bf16.msra.mxu1 %v7214_v23 }
 0x167   :  { %v10142_v15 = vpop.eup %10141 }
 0x168   :  { %v870_v16 = vmul.f32 256.0, %v10142_v15  ;;  %vm874_vm0 = vweird.f32 %v10142_v15 }
 0x169   :  { %547 = vmatpush.bf16.msra.mxu0 %v7202_v28 }
 0x16a   :  { %566 = vmatpush.bf16.msra.mxu1 %v7206_v29  ;;  %v871_v17 = vsub.f32 1.0, %v870_v16 }
 0x16c   :  { %v872_v18 = vmul.f32 %v10142_v15, %v871_v17  ;;  %v7361_v17 = vld [vmem:[%s13008_s9 + $0xf0] sm:$0xf] }
 0x16d   :  { %548 = vmatpush.bf16.msra.mxu0 %v7194_v34 }
 0x16e   :  { %567 = vmatpush.bf16.msra.mxu1 %v7198_v35  ;;  %v873_v19 = vadd.f32 %v10142_v15, %v872_v18  ;;  %v9536_v18 = vld [vmem:[%s13008_s9 + $0x104] sm:$0xf0] }
 0x170   :  { %v11244_v20 = vsel %vm874_vm0, %v10142_v15, %v873_v19  ;;  %v7579_v15 = vld [vmem:[%s13008_s9 + $0x2b8] sm:$0xf0]  ;;  %v7553_v19 = vld [vmem:[%s13008_s9 + $0x270] sm:$0xf] }
 0x171   :  { %549 = vmatpush.bf16.msra.mxu0 %v7186_v40  ;;  %v7582_v16 = vor.u32 %v9587_v14, %v7579_v15  ;;  %v9563_v15 = vld [vmem:[%s13008_s9 + $0x1e4] sm:$0xf] }
 0x172   :  { %568 = vmatpush.bf16.msra.mxu1 %v7190_v41 }
 0x175   :  { %550 = vmatpush.bf16.msra.mxu0 %v7178_v46 }
 0x176   :  { %569 = vmatpush.bf16.msra.mxu1 %v7182_v49  ;;  %v7409_v49 = vld [vmem:[%s13008_s9 + $0x150] sm:$0xf] }
 0x178   :  { %551 = vmatmul.bf16.vlgmr.msra.gmra.mxu0 %v445_v50 }
 0x179   :  { %570 = vmatmul.bf16.vlgmr.msra.gmra.mxu1 %v445_v50  ;;  %v9548_v50 = vld [vmem:[%s13008_s9 + $0x164] sm:$0xf0] }
 0x17a   :  { %v7410_v52 = vor.u32 %v9548_v50, %v7409_v49  ;;  %v7313_v50 = vld [vmem:[%s13008_s9 + $0x90] sm:$0xf] }
 0x17c   :  { %1487 = vmatpush.bf16.msra.mxu2 %v7410_v52  ;;  %v7505_v52 = vld [vmem:[%s13008_s9 + $0x210] sm:$0xf] }
 0x188   :  { %556 = vmatmul.bf16.gmra.mxu0 %v446_v53 }
 0x189   :  { %575 = vmatmul.bf16.gmra.mxu1 %v446_v53  ;;  %v9596_v53 = vld [vmem:[%s13008_s9 + $0x2e4] sm:$0xf0] }
 0x1f5   :  { %v552_v56 = vpop.f32.mrf.mxu0 }
 0x1f6   :  { %v11220_v57 = vadd.f32 %v581_v54, %v552_v56  ;;  %v571_v58 = vpop.f32.mrf.mxu1  ;;  %v7602_v56 = vor.u32 %v9596_v53, %v7601_v51  ;;  %v9524_v51 = vld [vmem:[%s13008_s9 + $0xa4] sm:$0xf0] }
 0x1f7   :  { %v11222_v59 = vadd.f32 %v582_v55, %v571_v58  ;;  %v7314_v53 = vor.u32 %v9524_v51, %v7313_v50  ;;  %v9551_v51 = vld [vmem:[%s13008_s9 + $0x184] sm:$0xf] }
 0x1f8   :  { %1506 = vmatpush.bf16.msra.mxu3 %v7602_v56  ;;  %v7315_v56 = vld [vmem:[%s13008_s9 + $0xa8] sm:$0xf0] }
 0x1f9   :  { %v857_v60 = vadd.f32 %v11222_v59, %v11220_v57 }
 0x1fb   :  { %858 = vadd.xlane.f32.xlu0 %v857_v60  ;;  %v9593_v60 = vld [vmem:[%s13008_s9 + $0x2d4] sm:$0xf] }
 0x1fd   :  { %v554_v63 = vpop.f32.mrf.mxu0 }
 0x1fe   :  { %v11226_v0 = vadd.f32 %v583_v61, %v554_v63  ;;  %v573_v1 = vpop.f32.mrf.mxu1  ;;  %v7385_v63 = vld [vmem:[%s13008_s9 + $0x120] sm:$0xf] }
 0x1ff   :  { %v11228_v2 = vadd.f32 %v584_v62, %v573_v1  ;;  %v9542_v1 = vld [vmem:[%s13008_s9 + $0x134] sm:$0xf0] }
 0x201   :  { %v860_v3 = vadd.f32 %v11228_v2, %v11226_v0 }
 0x203   :  { %861 = vadd.xlane.f32.xlu0 %v860_v3  ;;  %v7577_v3 = vld [vmem:[%s13008_s9 + $0x2a0] sm:$0xf] }
 0x205   :  { %v557_v4 = vpop.f32.mrf.mxu0 }
 0x206   :  { %v11232_v5 = vadd.f32 %v581_v54, %v557_v4  ;;  %v576_v6 = vpop.f32.mrf.mxu1  ;;  %v9545_v54 = vld [vmem:[%s13008_s9 + $0x154] sm:$0xf]  ;;  %v7386_v4 = vor.u32 %v9542_v1, %v7385_v63  ;;  %v7289_v1 = vld [vmem:[%s13008_s9 + $0x60] sm:$0xf] }
 0x207   :  { %v11234_v7 = vadd.f32 %v582_v55, %v576_v6  ;;  %v7411_v55 = vld [vmem:[%s13008_s9 + $0x168] sm:$0xf0]  ;;  %v9590_v6 = vld [vmem:[%s13008_s9 + $0x2b4] sm:$0xf0] }
 0x208   :  { %v7414_v58 = vor.u32 %v9545_v54, %v7411_v55  ;;  %1488 = vmatpush.bf16.msra.mxu2 %v7386_v4  ;;  %v9572_v54 = vld [vmem:[%s13008_s9 + $0x224] sm:$0xf0]  ;;  %v9521_v55 = vld [vmem:[%s13008_s9 + $0x94] sm:$0xf]  ;;  %v7481_v4 = vld [vmem:[%s13008_s9 + $0x1e0] sm:$0xf] }
 0x209   :  { %v863_v8 = vadd.f32 %v11234_v7, %v11232_v5 }
 0x20a   :  { %1525 = vmatpush.bf16.msrb.mxu0 %v7414_v58  ;;  %v7506_v58 = vor.u32 %v9572_v54, %v7505_v52  ;;  %v7435_v52 = vld [vmem:[%s13008_s9 + $0x198] sm:$0xf0]  ;;  %v7417_v54 = vld [vmem:[%s13008_s9 + $0x158] sm:$0xf] }
 0x20b   :  { %864 = vadd.xlane.f32.xlu1 %v863_v8  ;;  %v9539_v8 = vld [vmem:[%s13008_s9 + $0x124] sm:$0xf] }
 0x20d   :  { %v559_v9 = vpop.f32.mrf.mxu0 }
 0x20e   :  { %v11238_v10 = vadd.f32 %v583_v61, %v559_v9  ;;  %v578_v11 = vpop.f32.mrf.mxu1  ;;  %v7603_v61 = vld [vmem:[%s13008_s9 + $0x2e8] sm:$0xf0]  ;;  %v7387_v9 = vld [vmem:[%s13008_s9 + $0x138] sm:$0xf0] }
 0x20f   :  { %v11240_v12 = vadd.f32 %v584_v62, %v578_v11  ;;  %v7606_v62 = vor.u32 %v9593_v60, %v7603_v61  ;;  %v7578_v11 = vor.u32 %v9590_v6, %v7577_v3  ;;  %v7318_v60 = vor.u32 %v9521_v55, %v7315_v56  ;;  %v9569_v61 = vld [vmem:[%s13008_s9 + $0x214] sm:$0xf]  ;;  %v9518_v3 = vld [vmem:[%s13008_s9 + $0x74] sm:$0xf0]  ;;  %v9549_v55 = vld [vmem:[%s13008_s9 + $0x16c] sm:$0xf0] }
 0x210   :  { %v7290_v6 = vor.u32 %v9518_v3, %v7289_v1  ;;  %v7609_v56 = vld [vmem:[%s13008_s9 + $0x2d8] sm:$0xf] }
 0x211   :  { %v866_v13 = vadd.f32 %v11240_v12, %v11238_v10  ;;  %1544 = vmatpush.bf16.msrb.mxu1 %v7606_v62  ;;  %1507 = vmatpush.bf16.msra.mxu3 %v7578_v11  ;;  %v7507_v62 = vld [vmem:[%s13008_s9 + $0x228] sm:$0xf0]  ;;  %v7291_v11 = vld [vmem:[%s13008_s9 + $0x78] sm:$0xf0] }
 0x212   :  { %v7510_v63 = vor.u32 %v9569_v61, %v7507_v62  ;;  %v9546_v61 = vld [vmem:[%s13008_s9 + $0x15c] sm:$0xf]  ;;  %v7419_v62 = vld [vmem:[%s13008_s9 + $0x170] sm:$0xf0] }
 0x213   :  { %867 = vadd.xlane.f32.xlu1 %v866_v13  ;;  %v7390_v13 = vor.u32 %v9539_v8, %v7387_v9  ;;  %v9566_v8 = vld [vmem:[%s13008_s9 + $0x1f4] sm:$0xf0]  ;;  %v9515_v9 = vld [vmem:[%s13008_s9 + $0x64] sm:$0xf]  ;;  %v7422_v3 = vor.u32 %v9546_v61, %v7419_v62  ;;  %v7537_v62 = vld [vmem:[%s13008_s9 + $0x248] sm:$0xf] }
 0x214   :  { %v7294_v14 = vor.u32 %v9515_v9, %v7291_v11  ;;  %v7393_v11 = vld [vmem:[%s13008_s9 + $0x128] sm:$0xf] }
 0x215   :  { %1526 = vmatpush.bf16.msrb.mxu0 %v7390_v13  ;;  %1545 = vmatpush.bf16.msrb.mxu1 %v7582_v16  ;;  %v7482_v13 = vor.u32 %v9566_v8, %v7481_v4  ;;  %v7483_v16 = vld [vmem:[%s13008_s9 + $0x1f8] sm:$0xf0] }
 0x216   :  { %v9594_v4 = vld [vmem:[%s13008_s9 + $0x2dc] sm:$0xf] }
 0x26e   :  { %v859_v21 = vpop.xlane.xlu0 %858 }
 0x26f   :  { %v876_v22 = vmul.f32 %v11244_v20, %v859_v21  ;;  %v7362_v21 = vor.u32 %v9536_v18, %v7361_v17  ;;  %v7486_v17 = vor.u32 %v9563_v15, %v7483_v16  ;;  %v7265_v18 = vld [vmem:[%s13008_s9 + $0x30] sm:$0xf] }
 0x271   :  { %v11248_v23 = vsub.f32 %v11220_v57, %v876_v22  ;;  %v11251_v24 = vsub.f32 %v11222_v59, %v876_v22  ;;  %v9584_v22 = vld [vmem:[%s13008_s9 + $0x284] sm:$0xf0]  ;;  %1489 = vmatpush.bf16.msra.mxu2 %v7362_v21  ;;  %v7457_v21 = vld [vmem:[%s13008_s9 + $0x1b0] sm:$0xf] }
 0x273   :  { %v888_v25 = vmul.f32 %v11248_v23, %v11248_v23  ;;  %v889_v26 = vmul.f32 %v11251_v24, %v11251_v24 }
 0x275   :  { %v896_v27 = vadd.f32 %v889_v26, %v888_v25  ;;  %v9533_v25 = vld [vmem:[%s13008_s9 + $0xf4] sm:$0xf]  ;;  %v7363_v26 = vld [vmem:[%s13008_s9 + $0x108] sm:$0xf0] }
 0x276   :  { %v862_v28 = vpop.xlane.xlu0 %861 }
 0x277   :  { %v877_v29 = vmul.f32 %v11244_v20, %v862_v28  ;;  %897 = vadd.xlane.f32.xlu2 %v896_v27  ;;  %v7554_v27 = vor.u32 %v9584_v22, %v7553_v19  ;;  %v7366_v28 = vor.u32 %v9533_v25, %v7363_v26  ;;  %v9512_v19 = vld [vmem:[%s13008_s9 + $0x44] sm:$0xf0]  ;;  %v9509_v26 = vld [vmem:[%s13008_s9 + $0x34] sm:$0xf] }
 0x278   :  { %v7266_v22 = vor.u32 %v9512_v19, %v7265_v18  ;;  %v9560_v25 = vld [vmem:[%s13008_s9 + $0x1c4] sm:$0xf0]  ;;  %v9591_v18 = vld [vmem:[%s13008_s9 + $0x2bc] sm:$0xf0]  ;;  %v9540_v19 = vld [vmem:[%s13008_s9 + $0x12c] sm:$0xf] }
 0x279   :  { %v11259_v30 = vsub.f32 %v11226_v0, %v877_v29  ;;  %v11262_v31 = vsub.f32 %v11228_v2, %v877_v29  ;;  %v9581_v29 = vld [vmem:[%s13008_s9 + $0x274] sm:$0xf]  ;;  %1508 = vmatpush.bf16.msra.mxu3 %v7554_v27  ;;  %1527 = vmatpush.bf16.msrb.mxu0 %v7366_v28  ;;  %v7267_v27 = vld [vmem:[%s13008_s9 + $0x48] sm:$0xf0]  ;;  %v7458_v28 = vor.u32 %v9560_v25, %v7457_v21  ;;  %v7395_v25 = vld [vmem:[%s13008_s9 + $0x140] sm:$0xf0] }
 0x27b   :  { %v890_v32 = vmul.f32 %v11259_v30, %v11259_v30  ;;  %v891_v33 = vmul.f32 %v11262_v31, %v11262_v31 }
 0x27d   :  { %v899_v34 = vadd.f32 %v891_v33, %v890_v32  ;;  %v7555_v32 = vld [vmem:[%s13008_s9 + $0x288] sm:$0xf0] }
 0x27e   :  { %v865_v35 = vpop.xlane.xlu1 %864  ;;  %v7558_v33 = vor.u32 %v9581_v29, %v7555_v32  ;;  %v7270_v29 = vor.u32 %v9509_v26, %v7267_v27  ;;  %v9557_v32 = vld [vmem:[%s13008_s9 + $0x1b4] sm:$0xf]  ;;  %v9588_v26 = vld [vmem:[%s13008_s9 + $0x2ac] sm:$0xf]  ;;  %v7587_v27 = vld [vmem:[%s13008_s9 + $0x2c0] sm:$0xf0] }
 0x27f   :  { %v878_v36 = vmul.f32 %v11244_v20, %v865_v35  ;;  %900 = vadd.xlane.f32.xlu2 %v899_v34  ;;  %v7337_v34 = vld [vmem:[%s13008_s9 + $0xc0] sm:$0xf]  ;;  %v9530_v35 = vld [vmem:[%s13008_s9 + $0xd4] sm:$0xf0] }
 0x280   :  { %1546 = vmatpush.bf16.msrb.mxu1 %v7558_v33  ;;  %v7459_v33 = vld [vmem:[%s13008_s9 + $0x1c8] sm:$0xf0] }
 0x281   :  { %v11270_v37 = vsub.f32 %v11232_v5, %v878_v36  ;;  %v11273_v38 = vsub.f32 %v11234_v7, %v878_v36  ;;  %v7529_v36 = vld [vmem:[%s13008_s9 + $0x240] sm:$0xf] }
 0x283   :  { %v892_v39 = vmul.f32 %v11270_v37, %v11270_v37  ;;  %v893_v40 = vmul.f32 %v11273_v38, %v11273_v38 }
 0x285   :  { %v902_v41 = vadd.f32 %v893_v40, %v892_v39  ;;  %v7338_v39 = vor.u32 %v9530_v35, %v7337_v34  ;;  %v9578_v40 = vld [vmem:[%s13008_s9 + $0x254] sm:$0xf0]  ;;  %v7462_v35 = vor.u32 %v9557_v32, %v7459_v33 }
 0x286   :  { %v868_v42 = vpop.xlane.xlu1 %867  ;;  %v7369_v33 = vld [vmem:[%s13008_s9 + $0xf8] sm:$0xf] }
 0x287   :  { %v879_v43 = vmul.f32 %v11244_v20, %v868_v42  ;;  %903 = vadd.xlane.f32.xlu0 %v902_v41  ;;  %v9527_v41 = vld [vmem:[%s13008_s9 + $0xc4] sm:$0xf]  ;;  %v7339_v42 = vld [vmem:[%s13008_s9 + $0xd8] sm:$0xf0]  ;;  %1490 = vmatpush.bf16.msra.mxu2 %v7338_v39  ;;  %v7241_v39 = vld [vmem:[%s13008_s9] sm:$0xf] }
 0x289   :  { %v11281_v44 = vsub.f32 %v11238_v10, %v879_v43  ;;  %v11284_v45 = vsub.f32 %v11240_v12, %v879_v43  ;;  %v7530_v43 = vor.u32 %v9578_v40, %v7529_v36  ;;  %v9506_v40 = vld [vmem:[%s13008_s9 + $0x14] sm:$0xf0] }
 0x28b   :  { %v894_v46 = vmul.f32 %v11281_v44, %v11281_v44  ;;  %v895_v47 = vmul.f32 %v11284_v45, %v11284_v45  ;;  %1509 = vmatpush.bf16.msra.mxu3 %v7530_v43  ;;  %1491 = vmatpush.bf16.msra.mxu2 %v7314_v53  ;;  %v9554_v43 = vld [vmem:[%s13008_s9 + $0x194] sm:$0xf0]  ;;  %v7438_v53 = vor.u32 %v9551_v51, %v7435_v52  ;;  %v593_v51 = vld [vmem:[%s13009_s0] sm:$0x3] }
 0x28d   :  { %v905_v48 = vadd.f32 %v895_v47, %v894_v46  ;;  %v7342_v46 = vor.u32 %v9527_v41, %v7339_v42  ;;  %v9575_v47 = vld [vmem:[%s13008_s9 + $0x244] sm:$0xf]  ;;  %v7433_v41 = vld [vmem:[%s13008_s9 + $0x180] sm:$0xf]  ;;  %v7242_v42 = vor.u32 %v9506_v40, %v7241_v39  ;;  %v9585_v39 = vld [vmem:[%s13008_s9 + $0x28c] sm:$0xf0] }
 0x28e   :  { %v9534_v40 = vld [vmem:[%s13008_s9 + $0xfc] sm:$0xf] }
 0x28f   :  { %906 = vadd.xlane.f32.xlu1 %v905_v48  ;;  %v7531_v48 = vld [vmem:[%s13008_s9 + $0x258] sm:$0xf0]  ;;  %1528 = vmatpush.bf16.msrb.mxu0 %v7342_v46  ;;  %v9503_v46 = vld [vmem:[%s13008_s9 + $0x4] sm:$0xf] }
 0x290   :  { %v7534_v49 = vor.u32 %v9575_v47, %v7531_v48  ;;  %1510 = vmatpush.bf16.msra.mxu3 %v7506_v58  ;;  %1492 = vmatpush.bf16.msra.mxu2 %v7290_v6  ;;  %v7243_v47 = vld [vmem:[%s13008_s9 + $0x18] sm:$0xf0]  ;;  %v7418_v58 = vor.u32 %v9549_v55, %v7417_v54  ;;  %v7611_v6 = vld [vmem:[%s13008_s9 + $0x2f0] sm:$0xf0]  ;;  %v7345_v55 = vld [vmem:[%s13008_s9 + $0xc8] sm:$0xf] }
 0x291   :  { %v7246_v50 = vor.u32 %v9503_v46, %v7243_v47  ;;  %v7614_v9 = vor.u32 %v9594_v4, %v7611_v6  ;;  %v9528_v6 = vld [vmem:[%s13008_s9 + $0xcc] sm:$0xf] }
 0x292   :  { %1547 = vmatpush.bf16.msrb.mxu1 %v7534_v49  ;;  %v7434_v49 = vor.u32 %v9554_v43, %v7433_v41  ;;  %v7371_v41 = vld [vmem:[%s13008_s9 + $0x110] sm:$0xf0] }
 0x293   :  { %1529 = vmatpush.bf16.msrb.mxu0 %v7318_v60  ;;  %v9597_v60 = vld [vmem:[%s13008_s9 + $0x2ec] sm:$0xf0]  ;;  %v7374_v47 = vor.u32 %v9534_v40, %v7371_v41  ;;  %v9570_v40 = vld [vmem:[%s13008_s9 + $0x21c] sm:$0xf]  ;;  %v7515_v41 = vld [vmem:[%s13008_s9 + $0x230] sm:$0xf0] }
 0x294   :  { %1511 = vmatpush.bf16.msra.mxu3 %v7482_v13  ;;  %1493 = vmatpush.bf16.msra.mxu2 %v7266_v22  ;;  %v7610_v1 = vor.u32 %v9597_v60, %v7609_v56  ;;  %v9543_v13 = vld [vmem:[%s13008_s9 + $0x13c] sm:$0xf0] }
 0x295   :  { %v9531_v56 = vld [vmem:[%s13008_s9 + $0xdc] sm:$0xf0] }
 0x296   :  { %1548 = vmatpush.bf16.msrb.mxu1 %v7510_v63  ;;  %v7346_v61 = vor.u32 %v9531_v56, %v7345_v55 }
 0x297   :  { %1530 = vmatpush.bf16.msrb.mxu0 %v7294_v14  ;;  %v7585_v14 = vld [vmem:[%s13008_s9 + $0x2a8] sm:$0xf] }
 0x298   :  { %1512 = vmatpush.bf16.msra.mxu3 %v7458_v28  ;;  %1494 = vmatpush.bf16.msra.mxu2 %v7242_v42  ;;  %v7586_v22 = vor.u32 %v9591_v18, %v7585_v14  ;;  %v7398_v28 = vor.u32 %v9540_v19, %v7395_v25  ;;  %v11412_v14 = vperm.slane %v593_v51, 1  ;;  %v7513_v25 = vld [vmem:[%s13008_s9 + $0x218] sm:$0xf] }
 0x29a   :  { %1549 = vmatpush.bf16.msrb.mxu1 %v7486_v17  ;;  %v7394_v17 = vor.u32 %v9543_v13, %v7393_v11  ;;  %v594_v11 = vld [vmem:[%s13010_s11] sm:$0x3]  ;;  %v11410_v13 = vperm.slane %v593_v51, 0 }
 0x29b   :  { %1531 = vmatpush.bf16.msrb.mxu0 %v7270_v29  ;;  %v7590_v29 = vor.u32 %v9588_v26, %v7587_v27 }
 0x29c   :  { %1513 = vmatpush.bf16.msra.mxu3 %v7434_v49  ;;  %1563 = vmatpush.bf16.msrb.mxu2 %v7418_v58  ;;  %v9582_v49 = vld [vmem:[%s13008_s9 + $0x27c] sm:$0xf] }
 0x29e   :  { %1550 = vmatpush.bf16.msrb.mxu1 %v7462_v35  ;;  %v7561_v35 = vld [vmem:[%s13008_s9 + $0x278] sm:$0xf] }
 0x29f   :  { %1532 = vmatpush.bf16.msrb.mxu0 %v7246_v50  ;;  %v7562_v46 = vor.u32 %v9585_v39, %v7561_v35  ;;  %v7563_v50 = vld [vmem:[%s13008_s9 + $0x290] sm:$0xf0] }
 0x2a0   :  { %1582 = vmatpush.bf16.msrb.mxu3 %v7610_v1  ;;  %1564 = vmatpush.bf16.msrb.mxu2 %v7394_v17  ;;  %v7539_v17 = vld [vmem:[%s13008_s9 + $0x260] sm:$0xf0] }
 0x2a2   :  { %1551 = vmatpush.bf16.msrb.mxu1 %v7438_v53  ;;  %v7566_v53 = vor.u32 %v9582_v49, %v7563_v50 }
 0x2a3   :  { %1601 = vmatpush.bf16.msra.mxu0 %v7422_v3 }
 0x2a4   :  { %1583 = vmatpush.bf16.msrb.mxu3 %v7586_v22  ;;  %v9525_v22 = vld [vmem:[%s13008_s9 + $0xac] sm:$0xf0] }
 0x2a6   :  { %1620 = vmatpush.bf16.msra.mxu1 %v7614_v9  ;;  %v9576_v9 = vld [vmem:[%s13008_s9 + $0x24c] sm:$0xf] }
 0x2a7   :  { %1602 = vmatpush.bf16.msra.mxu0 %v7398_v28  ;;  %v7542_v19 = vor.u32 %v9576_v9, %v7539_v17  ;;  %v9573_v28 = vld [vmem:[%s13008_s9 + $0x22c] sm:$0xf0] }
 0x2a8   :  { %1584 = vmatpush.bf16.msrb.mxu3 %v7562_v46  ;;  %v9519_v46 = vld [vmem:[%s13008_s9 + $0x7c] sm:$0xf0]  ;;  %v9561_v17 = vld [vmem:[%s13008_s9 + $0x1cc] sm:$0xf0] }
 0x2aa   :  { %1621 = vmatpush.bf16.msra.mxu1 %v7590_v29  ;;  %v9522_v29 = vld [vmem:[%s13008_s9 + $0x9c] sm:$0xf] }
 0x2ab   :  { %1603 = vmatpush.bf16.msra.mxu0 %v7374_v47  ;;  %v7489_v47 = vld [vmem:[%s13008_s9 + $0x1e8] sm:$0xf] }
 0x2ae   :  { %1622 = vmatpush.bf16.msra.mxu1 %v7566_v53  ;;  %v9516_v53 = vld [vmem:[%s13008_s9 + $0x6c] sm:$0xf] }
 0x2b2   :  { %1623 = vmatpush.bf16.msra.mxu1 %v7542_v19 }
 0x2ea   :  { %v898_v34 = vpop.xlane.xlu2 %897 }
 0x2eb   :  { %v908_v36 = vmul.f32 %v898_v34, %v11244_v20  ;;  %v9537_v34 = vld [vmem:[%s13008_s9 + $0x10c] sm:$0xf0] }
 0x2ed   :  { %v11353_v48 = vadd.f32 1e-06, %v908_v36  ;;  %v7370_v36 = vor.u32 %v9537_v34, %v7369_v33  ;;  %v11426_v33 = vperm.slane %v594_v11, 0 }
 0x2ef   :  { %10143 = vrsqrt.f32 %v11353_v48  ;;  %1565 = vmatpush.bf16.msrb.mxu2 %v7370_v36  ;;  %vm922_vm2 = vweird.f32 %v11353_v48  ;;  %v7514_v36 = vor.u32 %v9573_v28, %v7513_v25  ;;  %v7275_v25 = vld [vmem:[%s13008_s9 + $0x50] sm:$0xf0] }
 0x2f2   :  { %v901_v63 = vpop.xlane.xlu2 %900 }
 0x2f3   :  { %v909_v8 = vmul.f32 %v901_v63, %v11244_v20  ;;  %v9579_v63 = vld [vmem:[%s13008_s9 + $0x25c] sm:$0xf0]  ;;  %1566 = vmatpush.bf16.msrb.mxu2 %v7346_v61 }
 0x2f4   :  { %v7538_v4 = vor.u32 %v9579_v63, %v7537_v62  ;;  %v7299_v62 = vld [vmem:[%s13008_s9 + $0x80] sm:$0xf0] }
 0x2f5   :  { %v11370_v15 = vpop.eup %10143  ;;  %v11372_v16 = vadd.f32 1e-06, %v909_v8  ;;  %v7347_v8 = vld [vmem:[%s13008_s9 + $0xe0] sm:$0xf0] }
 0x2f6   :  { %v917_v21 = vmul.f32 %v11370_v15, %v11353_v48  ;;  %vm923_vm1 = vweird.f32 %v11370_v15  ;;  %v7350_v48 = vor.u32 %v9528_v6, %v7347_v8  ;;  %1585 = vmatpush.bf16.msrb.mxu3 %v7538_v4  ;;  %v7491_v4 = vld [vmem:[%s13008_s9 + $0x200] sm:$0xf0]  ;;  %v9513_v6 = vld [vmem:[%s13008_s9 + $0x4c] sm:$0xf0]  ;;  %v11452_v8 = vperm.slane %v594_v11, 1 }
 0x2f7   :  { %10145 = vrsqrt.f32 %v11372_v16  ;;  %vm924_vm3 = vmor %vm922_vm2, %vm923_vm1  ;;  %vm932_vm5 = vweird.f32 %v11372_v16 }
 0x2f8   :  { %v918_v32 = vmul.f32 %v11370_v15, %v917_v21  ;;  %v7321_v21 = vld [vmem:[%s13008_s9 + $0x98] sm:$0xf]  ;;  %1604 = vmatpush.bf16.msra.mxu0 %v7350_v48 }
 0x2f9   :  { %v7322_v27 = vor.u32 %v9525_v22, %v7321_v21  ;;  %v7465_v48 = vld [vmem:[%s13008_s9 + $0x1b8] sm:$0xf]  ;;  %v9510_v22 = vld [vmem:[%s13008_s9 + $0x3c] sm:$0xf] }
 0x2fa   :  { %v919_v42 = vmul.f32 0.5, %v918_v32  ;;  %v904_v43 = vpop.xlane.xlu0 %903  ;;  %v7323_v32 = vld [vmem:[%s13008_s9 + $0xb0] sm:$0xf0]  ;;  %1586 = vmatpush.bf16.msrb.mxu3 %v7514_v36  ;;  %v7466_v21 = vor.u32 %v9561_v17, %v7465_v48  ;;  %v9598_v17 = vld [vmem:[%s13008_s9 + $0x2f4] sm:$0xf0] }
 0x2fb   :  { %v910_v52 = vmul.f32 %v904_v43, %v11244_v20  ;;  %v7326_v39 = vor.u32 %v9522_v29, %v7323_v32  ;;  %1567 = vmatpush.bf16.msrb.mxu2 %v7322_v27  ;;  %v7297_v43 = vld [vmem:[%s13008_s9 + $0x68] sm:$0xf]  ;;  %v7278_v32 = vor.u32 %v9510_v22, %v7275_v25  ;;  %v9595_v22 = vld [vmem:[%s13008_s9 + $0x2e4] sm:$0xf]  ;;  %v7619_v25 = vld [vmem:[%s13008_s9 + $0x2f8] sm:$0xf0] }
 0x2fc   :  { %v920_v54 = vsub.f32 1.5, %v919_v42  ;;  %v7518_v42 = vor.u32 %v9570_v40, %v7515_v41  ;;  %v7298_v51 = vor.u32 %v9519_v46, %v7297_v43  ;;  %v7441_v40 = vld [vmem:[%s13008_s9 + $0x188] sm:$0xf]  ;;  %v9555_v41 = vld [vmem:[%s13008_s9 + $0x19c] sm:$0xf0] }
 0x2fd   :  { %v11396_v58 = vpop.eup %10145  ;;  %v11398_v60 = vadd.f32 1e-06, %v910_v52  ;;  %v9567_v52 = vld [vmem:[%s13008_s9 + $0x1fc] sm:$0xf0]  ;;  %1605 = vmatpush.bf16.msra.mxu0 %v7326_v39  ;;  %v7251_v43 = vld [vmem:[%s13008_s9 + $0x20] sm:$0xf0] }
 0x2fe   :  { %v921_v1 = vmul.f32 %v11370_v15, %v920_v54  ;;  %v927_v3 = vmul.f32 %v11396_v58, %v11372_v16  ;;  %vm933_vm4 = vweird.f32 %v11396_v58  ;;  %v7490_v61 = vor.u32 %v9567_v52, %v7489_v47  ;;  %1624 = vmatpush.bf16.msra.mxu1 %v7518_v42 }
 0x2ff   :  { %10147 = vrsqrt.f32 %v11398_v60  ;;  %vm934_vm6 = vmor %vm932_vm5, %vm933_vm4  ;;  %1568 = vmatpush.bf16.msrb.mxu2 %v7298_v51  ;;  %v7442_v47 = vor.u32 %v9555_v41, %v7441_v40  ;;  %vm942_vm8 = vweird.f32 %v11398_v60  ;;  %v9589_v40 = vld [vmem:[%s13008_s9 + $0x2b4] sm:$0xf]  ;;  %v7595_v41 = vld [vmem:[%s13008_s9 + $0x2c8] sm:$0xf0] }
 0x300   :  { %v928_v18 = vmul.f32 %v11396_v58, %v927_v3  ;;  %v925_v26 = vsel %vm924_vm3, %v11370_v15, %v921_v1  ;;  %v7302_v3 = vor.u32 %v9516_v53, %v7299_v62  ;;  %1587 = vmatpush.bf16.msrb.mxu3 %v7490_v61 }
 0x301   :  { %v956_v49 = vmul.f32 %v925_v26, %v11248_v23  ;;  %v957_v55 = vmul.f32 %v925_v26, %v11251_v24  ;;  %v9564_v23 = vld [vmem:[%s13008_s9 + $0x1ec] sm:$0xf]  ;;  %v7273_v24 = vld [vmem:[%s13008_s9 + $0x38] sm:$0xf]  ;;  %v9558_v26 = vld [vmem:[%s13008_s9 + $0x1bc] sm:$0xf] }
 0x302   :  { %v929_v34 = vmul.f32 0.5, %v928_v18  ;;  %v907_v35 = vpop.xlane.xlu1 %906  ;;  %v7494_v16 = vor.u32 %v9564_v23, %v7491_v4  ;;  %v7274_v9 = vor.u32 %v9513_v6, %v7273_v24  ;;  %1606 = vmatpush.bf16.msra.mxu0 %v7302_v3  ;;  %v7425_v6 = vld [vmem:[%s13008_s9 + $0x160] sm:$0xf] }
 0x303   :  { %v911_v15 = vmul.f32 %v907_v35, %v11244_v20  ;;  %v969_v18 = vmul.f32 %v11410_v13, %v956_v49  ;;  %v970_v27 = vmul.f32 %v11412_v14, %v957_v55  ;;  %v9507_v35 = vld [vmem:[%s13008_s9 + $0x1c] sm:$0xf0]  ;;  %v9552_v49 = vld [vmem:[%s13008_s9 + $0x18c] sm:$0xf] }
 0x304   :  { %v930_v50 = vsub.f32 1.5, %v929_v34  ;;  %v7249_v34 = vld [vmem:[%s13008_s9 + $0x8] sm:$0xf]  ;;  %1625 = vmatpush.bf16.msra.mxu1 %v7494_v16  ;;  %1569 = vmatpush.bf16.msrb.mxu2 %v7274_v9  ;;  %v9550_v16 = vld [vmem:[%s13008_s9 + $0x174] sm:$0xf0] }
 0x305   :  { %v11438_v54 = vpop.eup %10147  ;;  %v11441_v56 = vadd.f32 1e-06, %v911_v15  ;;  %v7250_v42 = vor.u32 %v9507_v35, %v7249_v34  ;;  %1588 = vmatpush.bf16.msrb.mxu3 %v7466_v21  ;;  %v982_v52 = vadd.f32 %v11426_v33, %v969_v18  ;;  %v983_v53 = vadd.f32 %v11452_v8, %v970_v27  ;;  %v7617_v9 = vld [vmem:[%s13008_s9 + $0x2e0] sm:$0xf]  ;;  %v9547_v18 = vld [vmem:[%s13008_s9 + $0x164] sm:$0xf] }
 0x306   :  { %v931_v63 = vmul.f32 %v11396_v58, %v930_v50  ;;  %v937_v1 = vmul.f32 %v11438_v54, %v11398_v60  ;;  %vm943_vm7 = vweird.f32 %v11438_v54  ;;  %v7443_v50 = vld [vmem:[%s13008_s9 + $0x1a0] sm:$0xf0]  ;;  %1607 = vmatpush.bf16.msra.mxu0 %v7278_v32  ;;  %v7426_v48 = vor.u32 %v9550_v16, %v7425_v6  ;;  %v9544_v32 = vld [vmem:[%s13008_s9 + $0x144] sm:$0xf0]  ;;  %v9541_v35 = vld [vmem:[%s13008_s9 + $0x134] sm:$0xf] }
 0x307   :  { %10149 = vrsqrt.f32 %v11441_v56  ;;  %vm944_vm9 = vmor %vm942_vm8, %vm943_vm7  ;;  %v7446_v4 = vor.u32 %v9552_v49, %v7443_v50  ;;  %vm952_vm11 = vweird.f32 %v11441_v56  ;;  %v9532_v16 = vld [vmem:[%s13008_s9 + $0xe4] sm:$0xf0] }
 0x308   :  { %v935_v19 = vsel %vm934_vm6, %v11396_v58, %v931_v63  ;;  %v938_v11 = vmul.f32 %v11438_v54, %v937_v1  ;;  %v7467_v58 = vld [vmem:[%s13008_s9 + $0x1d0] sm:$0xf0]  ;;  %1570 = vmatpush.bf16.msrb.mxu2 %v7250_v42  ;;  %v11537_v42 = vor.u32 %v9589_v40, %v7595_v41  ;;  %v7523_v40 = vld [vmem:[%s13008_s9 + $0x238] sm:$0xf0]  ;;  %v7305_v41 = vld [vmem:[%s13008_s9 + $0x70] sm:$0xf] }
 0x309   :  { %v958_v28 = vmul.f32 %v935_v19, %v11259_v30  ;;  %v959_v29 = vmul.f32 %v935_v19, %v11262_v31  ;;  %v7470_v39 = vor.u32 %v9558_v26, %v7467_v58  ;;  %v9504_v31 = vld [vmem:[%s13008_s9 + $0xc] sm:$0xf]  ;;  %1589 = vmatpush.bf16.msrb.mxu3 %v7442_v47  ;;  %v7593_v58 = vld [vmem:[%s13008_s9 + $0x2b0] sm:$0xf] }
 0x30a   :  { %v939_v36 = vmul.f32 0.5, %v938_v11  ;;  %v7254_v3 = vor.u32 %v9504_v31, %v7251_v43  ;;  %v7618_v11 = vor.u32 %v9598_v17, %v7617_v9  ;;  %v7377_v31 = vld [vmem:[%s13008_s9 + $0x100] sm:$0xf]  ;;  %v9538_v43 = vld [vmem:[%s13008_s9 + $0x114] sm:$0xf0] }
 0x30b   :  { %v971_v15 = vmul.f32 %v11410_v13, %v958_v28  ;;  %v972_v30 = vmul.f32 %v11412_v14, %v959_v29  ;;  %1626 = vmatpush.bf16.msra.mxu1 %v7470_v39  ;;  %v11516_v28 = vor.u32 %v9595_v22, %v7619_v25  ;;  %v7401_v29 = vld [vmem:[%s13008_s9 + $0x130] sm:$0xf]  ;;  %v7403_v39 = vld [vmem:[%s13008_s9 + $0x148] sm:$0xf0]  ;;  %v7378_v50 = vor.u32 %v9538_v43, %v7377_v31  ;;  %v9577_v22 = vld [vmem:[%s13008_s9 + $0x254] sm:$0xf] }
 0x30c   :  { %v940_v46 = vsub.f32 1.5, %v939_v36  ;;  %1608 = vmatpush.bf16.msra.mxu0 %v7254_v3  ;;  %v9583_v3 = vld [vmem:[%s13008_s9 + $0x284] sm:$0xf]  ;;  %v7545_v9 = vld [vmem:[%s13008_s9 + $0x250] sm:$0xf] }
 0x30d   :  { %v11480_v51 = vpop.eup %10149  ;;  %v984_v55 = vadd.f32 %v11426_v33, %v971_v15  ;;  %v985_v61 = vadd.f32 %v11452_v8, %v972_v30  ;;  %v11535_v30 = vor.u32 %v9541_v35, %v7403_v39  ;;  %v7547_v25 = vld [vmem:[%s13008_s9 + $0x268] sm:$0xf0]  ;;  %v7331_v35 = vld [vmem:[%s13008_s9 + $0xb8] sm:$0xf0]  ;;  %v9571_v39 = vld [vmem:[%s13008_s9 + $0x224] sm:$0xf] }
 0x30e   :  { %v941_v62 = vmul.f32 %v11438_v54, %v940_v46  ;;  %v947_v23 = vmul.f32 %v11480_v51, %v11441_v56  ;;  %vm953_vm10 = vweird.f32 %v11480_v51  ;;  %v9592_v56 = vld [vmem:[%s13008_s9 + $0x2c4] sm:$0xf0]  ;;  %v7569_v46 = vld [vmem:[%s13008_s9 + $0x280] sm:$0xf]  ;;  %v11601_v31 = vor.u32 %v9571_v39, %v7523_v40 }
 0x30f   :  { %v11490_v63 = vpack.c.bf16 %v984_v55, %v982_v52  ;;  %v11492_v1 = vpack.c.bf16 %v985_v61, %v983_v53  ;;  %1627 = vmatpush.bf16.msra.mxu1 %v7446_v4  ;;  %vm11523_vm12 = vmor %vm952_vm11, %vm953_vm10  ;;  %v7594_v36 = vor.u32 %v9592_v56, %v7593_v58  ;;  %v9586_v52 = vld [vmem:[%s13008_s9 + $0x294] sm:$0xf0]  ;;  %v9535_v53 = vld [vmem:[%s13008_s9 + $0x104] sm:$0xf]  ;;  %v11582_v58 = vor.u32 %v9577_v22, %v7547_v25 }
 0x310   :  { %v945_v24 = vsel %vm944_vm9, %v11438_v54, %v941_v62  ;;  %v948_v60 = vmul.f32 %v11480_v51, %v947_v23  ;;  %v7427_v54 = vld [vmem:[%s13008_s9 + $0x178] sm:$0xf0]  ;;  %v7570_v62 = vor.u32 %v9586_v52, %v7569_v46  ;;  %v9523_v56 = vld [vmem:[%s13008_s9 + $0xa4] sm:$0xf]  ;;  %v9520_v43 = vld [vmem:[%s13008_s9 + $0x84] sm:$0xf0] }
 0x311   :  { %1495 = vmatmul.bf16.vlgmr.msra.gmra.mxu2 %v11490_v63  ;;  %1514 = vmatmul.bf16.vlgmr.msra.gmra.mxu3 %v11492_v1  ;;  %v11509_v21 = vor.u32 %v9547_v18, %v7427_v54  ;;  %v960_v26 = vmul.f32 %v945_v24, %v11270_v37  ;;  %v961_v27 = vmul.f32 %v945_v24, %v11273_v38  ;;  %v7379_v55 = vld [vmem:[%s13008_s9 + $0x118] sm:$0xf0]  ;;  %v7353_v24 = vld [vmem:[%s13008_s9 + $0xd0] sm:$0xf]  ;;  %v9529_v54 = vld [vmem:[%s13008_s9 + $0xd4] sm:$0xf] }
 0x312   :  { %v949_v19 = vmul.f32 0.5, %v948_v60  ;;  %1533 = vmatmul.bf16.vlgmr.msrb.gmra.mxu0 %v11490_v63  ;;  %1552 = vmatmul.bf16.vlgmr.msrb.gmra.mxu1 %v11492_v1  ;;  %v7402_v38 = vor.u32 %v9544_v32, %v7401_v29  ;;  %v11550_v23 = vor.u32 %v9535_v53, %v7379_v55  ;;  %v7571_v4 = vld [vmem:[%s13008_s9 + $0x298] sm:$0xf0]  ;;  %v7497_v46 = vld [vmem:[%s13008_s9 + $0x1f0] sm:$0xf] }
 0x313   :  { %1639 = vmatpush.bf16.msra.mxu2 %v7426_v48  ;;  %1658 = vmatpush.bf16.msra.mxu3 %v7618_v11  ;;  %v973_v47 = vmul.f32 %v11410_v13, %v960_v26  ;;  %v974_v49 = vmul.f32 %v11412_v14, %v961_v27  ;;  %v9580_v48 = vld [vmem:[%s13008_s9 + $0x264] sm:$0xf0]  ;;  %v7355_v11 = vld [vmem:[%s13008_s9 + $0xe8] sm:$0xf0]  ;;  %v9517_v52 = vld [vmem:[%s13008_s9 + $0x74] sm:$0xf] }
 0x314   :  { %v950_v34 = vsub.f32 1.5, %v949_v19  ;;  %1677 = vmatpush.bf16.msrb.mxu0 %v11509_v21  ;;  %1696 = vmatpush.bf16.msrb.mxu1 %v11516_v28  ;;  %v7546_v19 = vor.u32 %v9580_v48, %v7545_v9  ;;  %v11580_v32 = vor.u32 %v9529_v54, %v7355_v11  ;;  %v7307_v53 = vld [vmem:[%s13008_s9 + $0x88] sm:$0xf0]  ;;  %v9565_v55 = vld [vmem:[%s13008_s9 + $0x1f4] sm:$0xf] }
 0x315   :  { %v987_v26 = vadd.f32 %v11452_v8, %v974_v49  ;;  %v7306_v49 = vor.u32 %v9520_v43, %v7305_v41  ;;  %v7283_v9 = vld [vmem:[%s13008_s9 + $0x58] sm:$0xf0]  ;;  %v9556_v11 = vld [vmem:[%s13008_s9 + $0x1a4] sm:$0xf0]  ;;  %v11669_v40 = vld [vmem:[%s13013_s12] sm:$0x3f] }
 0x316   :  { %v951_v15 = vmul.f32 %v11480_v51, %v950_v34  ;;  %v7521_v34 = vld [vmem:[%s13008_s9 + $0x220] sm:$0xf]  ;;  %v7475_v54 = vld [vmem:[%s13008_s9 + $0x1d8] sm:$0xf0]  ;;  %v998_v41 = vperm.slane %v11669_v40, 3 }
 0x317   :  { %1640 = vmatpush.bf16.msra.mxu2 %v7402_v38  ;;  %1659 = vmatpush.bf16.msra.mxu3 %v7594_v36  ;;  %v9574_v38 = vld [vmem:[%s13008_s9 + $0x234] sm:$0xf0] }
 0x318   :  { %v955_v61 = vsel %vm11523_vm12, %v11480_v51, %v951_v15  ;;  %1678 = vmatpush.bf16.msrb.mxu0 %v11535_v30  ;;  %1697 = vmatpush.bf16.msrb.mxu1 %v11537_v42  ;;  %v11559_v51 = vor.u32 %v9583_v3, %v7571_v4  ;;  %v7522_v36 = vor.u32 %v9574_v38, %v7521_v34  ;;  %v9514_v3 = vld [vmem:[%s13008_s9 + $0x54] sm:$0xf0]  ;;  %v7473_v4 = vld [vmem:[%s13008_s9 + $0x1c0] sm:$0xf]  ;;  %v7451_v34 = vld [vmem:[%s13008_s9 + $0x1a8] sm:$0xf0] }
 0x319   :  { %v962_v60 = vmul.f32 %v955_v61, %v11281_v44  ;;  %v963_v6 = vmul.f32 %v955_v61, %v11284_v45  ;;  %v986_v44 = vadd.f32 %v11426_v33, %v973_v47  ;;  %v7354_v45 = vor.u32 %v9532_v16, %v7353_v24  ;;  %v9568_v47 = vld [vmem:[%s13008_s9 + $0x204] sm:$0xf0]  ;;  %v7499_v61 = vld [vmem:[%s13008_s9 + $0x208] sm:$0xf0]  ;;  %v9562_v24 = vld [vmem:[%s13008_s9 + $0x1d4] sm:$0xf0] }
 0x31a   :  { %v11599_v15 = vor.u32 %v9523_v56, %v7331_v35  ;;  %v9511_v16 = vld [vmem:[%s13008_s9 + $0x44] sm:$0xf] }
 0x31b   :  { %v975_v17 = vmul.f32 %v11410_v13, %v962_v60  ;;  %v976_v18 = vmul.f32 %v11412_v14, %v963_v6  ;;  %1641 = vmatpush.bf16.msra.mxu2 %v7378_v50  ;;  %1660 = vmatpush.bf16.msra.mxu3 %v7570_v62  ;;  %v7498_v50 = vor.u32 %v9568_v47, %v7497_v46  ;;  %v7281_v62 = vld [vmem:[%s13008_s9 + $0x40] sm:$0xf]  ;;  %v11673_v46 = vperm.slane %v11669_v40, 2 }
 0x31c   :  { %1679 = vmatpush.bf16.msrb.mxu0 %v11550_v23  ;;  %1698 = vmatpush.bf16.msrb.mxu1 %v11559_v51  ;;  %v7310_v60 = vor.u32 %v9517_v52, %v7307_v53  ;;  %v7502_v6 = vor.u32 %v9565_v55, %v7499_v61  ;;  %v7282_v48 = vor.u32 %v9514_v3, %v7281_v62 }
 0x31d   :  { %v988_v27 = vadd.f32 %v11426_v33, %v975_v17  ;;  %v989_v13 = vadd.f32 %v11452_v8, %v976_v18  ;;  %v7329_v33 = vld [vmem:[%s13008_s9 + $0xa0] sm:$0xf]  ;;  %v9526_v8 = vld [vmem:[%s13008_s9 + $0xb4] sm:$0xf0]  ;;  %v7474_v17 = vor.u32 %v9562_v24, %v7473_v4  ;;  %v9559_v18 = vld [vmem:[%s13008_s9 + $0x1c4] sm:$0xf]  ;;  %v7286_v22 = vor.u32 %v9511_v16, %v7283_v9 }
 0x31e   :  { %v7330_v37 = vor.u32 %v9526_v8, %v7329_v33  ;;  %v7478_v25 = vor.u32 %v9559_v18, %v7475_v54  ;;  %v7259_v33 = vld [vmem:[%s13008_s9 + $0x28] sm:$0xf0]  ;;  %v9553_v8 = vld [vmem:[%s13008_s9 + $0x194] sm:$0xf]  ;;  %v995_v24 = vperm.slane %v11669_v40, 0 }
 0x31f   :  { %v11576_v14 = vpack.c.bf16 %v988_v27, %v986_v44  ;;  %v11578_v29 = vpack.c.bf16 %v989_v13, %v987_v26  ;;  %1642 = vmatpush.bf16.msra.mxu2 %v7354_v45  ;;  %1661 = vmatpush.bf16.msra.mxu3 %v7546_v19  ;;  %v7257_v44 = vld [vmem:[%s13008_s9 + $0x10] sm:$0xf]  ;;  %v9508_v45 = vld [vmem:[%s13008_s9 + $0x24] sm:$0xf0]  ;;  %v9505_v26 = vld [vmem:[%s13008_s9 + $0x14] sm:$0xf]  ;;  %v7454_v38 = vor.u32 %v9553_v8, %v7451_v34 }
 0x320   :  { %1680 = vmatpush.bf16.msrb.mxu0 %v11580_v32  ;;  %1699 = vmatpush.bf16.msrb.mxu1 %v11582_v58  ;;  %v7449_v19 = vld [vmem:[%s13008_s9 + $0x190] sm:$0xf]  ;;  %v7258_v27 = vor.u32 %v9508_v45, %v7257_v44 }
 0x321   :  { %1500 = vmatmul.bf16.gmra.mxu2 %v11576_v14  ;;  %1519 = vmatmul.bf16.gmra.mxu3 %v11578_v29  ;;  %v7450_v13 = vor.u32 %v9556_v11, %v7449_v19 }
 0x322   :  { %1538 = vmatmul.bf16.gmra.mxu0 %v11576_v14  ;;  %1557 = vmatmul.bf16.gmra.mxu1 %v11578_v29 }
 0x323   :  { %1643 = vmatpush.bf16.msra.mxu2 %v7330_v37  ;;  %1662 = vmatpush.bf16.msra.mxu3 %v7522_v36  ;;  %v7262_v37 = vor.u32 %v9505_v26, %v7259_v33 }
 0x324   :  { %1681 = vmatpush.bf16.msrb.mxu0 %v11599_v15  ;;  %1700 = vmatpush.bf16.msrb.mxu1 %v11601_v31 }
 0x327   :  { %1644 = vmatpush.bf16.msra.mxu2 %v7306_v49  ;;  %1663 = vmatpush.bf16.msra.mxu3 %v7498_v50  ;;  %v996_v50 = vperm.slane %v11669_v40, 1 }
 0x328   :  { %1682 = vmatpush.bf16.msrb.mxu0 %v7310_v60  ;;  %1701 = vmatpush.bf16.msrb.mxu1 %v7502_v6 }
 0x32b   :  { %1645 = vmatpush.bf16.msra.mxu2 %v7282_v48  ;;  %1664 = vmatpush.bf16.msra.mxu3 %v7474_v17 }
 0x32c   :  { %1683 = vmatpush.bf16.msrb.mxu0 %v7286_v22  ;;  %1702 = vmatpush.bf16.msrb.mxu1 %v7478_v25 }
 0x32f   :  { %1646 = vmatpush.bf16.msra.mxu2 %v7258_v27  ;;  %1665 = vmatpush.bf16.msra.mxu3 %v7450_v13 }
 0x330   :  { %1684 = vmatpush.bf16.msrb.mxu0 %v7262_v37  ;;  %1703 = vmatpush.bf16.msrb.mxu1 %v7454_v38 }
 0x331   :  { %1571 = vmatmul.bf16.vlgmr.msrb.gmra.mxu2 %v11490_v63  ;;  %1590 = vmatmul.bf16.vlgmr.msrb.gmra.mxu3 %v11492_v1 }
 0x332   :  { %1609 = vmatmul.bf16.vlgmr.msra.gmra.mxu0 %v11490_v63  ;;  %1628 = vmatmul.bf16.vlgmr.msra.gmra.mxu1 %v11492_v1 }
 0x333   :  { %10063 = vmatpush.bf16.msrb.mxu2 %v11509_v21  ;;  %10071 = vmatpush.bf16.msrb.mxu3 %v11516_v28 }
 0x337   :  { %10064 = vmatpush.bf16.msrb.mxu2 %v11535_v30  ;;  %10072 = vmatpush.bf16.msrb.mxu3 %v11537_v42 }
 0x33b   :  { %10065 = vmatpush.bf16.msrb.mxu2 %v11550_v23  ;;  %10073 = vmatpush.bf16.msrb.mxu3 %v11559_v51 }
 0x33f   :  { %10066 = vmatpush.bf16.msrb.mxu2 %v11580_v32  ;;  %10074 = vmatpush.bf16.msrb.mxu3 %v11582_v58 }
 0x341   :  { %1576 = vmatmul.bf16.gmra.mxu2 %v11576_v14  ;;  %1595 = vmatmul.bf16.gmra.mxu3 %v11578_v29 }
 0x342   :  { %1614 = vmatmul.bf16.gmra.mxu0 %v11576_v14  ;;  %1633 = vmatmul.bf16.gmra.mxu1 %v11578_v29 }
 0x343   :  { %10067 = vmatpush.bf16.msrb.mxu2 %v11599_v15  ;;  %10075 = vmatpush.bf16.msrb.mxu3 %v11601_v31 }
 0x347   :  { %10068 = vmatpush.bf16.msrb.mxu2 %v7310_v60  ;;  %10076 = vmatpush.bf16.msrb.mxu3 %v7502_v6 }
 0x34b   :  { %10069 = vmatpush.bf16.msrb.mxu2 %v7286_v22  ;;  %10077 = vmatpush.bf16.msrb.mxu3 %v7478_v25 }
 0x34f   :  { %10070 = vmatpush.bf16.msrb.mxu2 %v7262_v37  ;;  %10078 = vmatpush.bf16.msrb.mxu3 %v7454_v38 }
 0x351   :  { %1647 = vmatmul.bf16.vlgmr.msra.gmra.mxu2 %v11490_v63  ;;  %1666 = vmatmul.bf16.vlgmr.msra.gmra.mxu3 %v11492_v1 }
 0x352   :  { %1685 = vmatmul.bf16.vlgmr.msrb.gmra.mxu0 %v11490_v63  ;;  %1704 = vmatmul.bf16.vlgmr.msrb.gmra.mxu1 %v11492_v1 }
 0x361   :  { %1652 = vmatmul.bf16.gmra.mxu2 %v11576_v14  ;;  %1671 = vmatmul.bf16.gmra.mxu3 %v11578_v29 }
 0x371   :  { %1690 = vmatmul.bf16.vlgmr.msrb.gmra.mxu2 %v11576_v14  ;;  %1709 = vmatmul.bf16.vlgmr.msrb.gmra.mxu3 %v11578_v29 }
 0x38f   :  { %v1534_v21 = vpop.f32.mrf.mxu0  ;;  %v1553_v28 = vpop.f32.mrf.mxu1 }
 0x390   :  { %v1535_v4 = vadd.f32 %v1534_v21, %v996_v50 }
 0x392   :  { %v1554_v44 = vadd.f32 %v1553_v28, %v1535_v4 }
 0x394   :  { %v1496_v30 = vpop.f32.mrf.mxu2  ;;  %v1515_v42 = vpop.f32.mrf.mxu3  ;;  %v1890_v37 = vpack.c.bf16 %v1554_v44, %v1554_v44 }
 0x395   :  { %v1497_v19 = vadd.f32 %v1496_v30, %v995_v24 }
 0x397   :  { %v1536_v23 = vpop.f32.mrf.mxu0  ;;  %v1555_v51 = vpop.f32.mrf.mxu1  ;;  %v1516_v21 = vadd.f32 %v1515_v42, %v1497_v19 }
 0x398   :  { %v1537_v53 = vadd.f32 %v1536_v23, %v996_v50 }
 0x39a   :  { %v1556_v16 = vadd.f32 %v1555_v51, %v1537_v53 }
 0x39c   :  { %v1498_v32 = vpop.f32.mrf.mxu2  ;;  %v1517_v58 = vpop.f32.mrf.mxu3  ;;  %v1891_v25 = vpack.c.bf16 %v1556_v16, %v1556_v16 }
 0x39d   :  { %v1499_v48 = vadd.f32 %v1498_v32, %v995_v24 }
 0x39e   :  { %v1905_v51 = vunpack.c.l.b16 %v1891_v25 }
 0x39f   :  { %v11654_v63 = vpop.f32.mrf.mxu0  ;;  %v11656_v1 = vpop.f32.mrf.mxu1  ;;  %v1518_v8 = vadd.f32 %v1517_v58, %v1499_v48 }
 0x3a0   :  { %v1540_v4 = vadd.f32 %v11654_v63, %v996_v50 }
 0x3a4   :  { %v11658_v56 = vpop.f32.mrf.mxu2  ;;  %v11660_v35 = vpop.f32.mrf.mxu3 }
 0x3a7   :  { %v1541_v14 = vpop.f32.mrf.mxu0  ;;  %v11662_v36 = vpop.f32.mrf.mxu1 }
 0x3ac   :  { %v11664_v29 = vpop.f32.mrf.mxu2  ;;  %v11666_v39 = vpop.f32.mrf.mxu3 }
 0x3af   :  { %v1610_v15 = vpop.f32.mrf.mxu0  ;;  %v1629_v31 = vpop.f32.mrf.mxu1 }
 0x3b0   :  { %v1611_v43 = vadd.f32 %v1610_v15, %v998_v41  ;;  %v1716_v15 = vpack.c.bf16 %v1518_v8, %v1518_v8 }
 0x3b2   :  { %v1630_v52 = vadd.f32 %v1629_v31, %v1611_v43  ;;  %v1904_v43 = vunpack.c.l.b16 %v1890_v37  ;;  %v1730_v42 = vunpack.c.l.b16 %v1716_v15  ;;  %v1000_v37 = vperm.slane %v11669_v40, 5 }
 0x3b4   :  { %v1572_v47 = vpop.f32.mrf.mxu2  ;;  %v1591_v49 = vpop.f32.mrf.mxu3  ;;  %v1894_v60 = vpack.c.bf16 %v1630_v52, %v1630_v52  ;;  %v1906_v53 = vpack.c.b16 %v1905_v51, %v1904_v43 }
 0x3b5   :  { %v1573_v55 = vadd.f32 %v1572_v47, %v11673_v46 }
 0x3b6   :  { %v1910_v11 = vunpack.c.l.b16 %v1894_v60 }
 0x3b7   :  { %v1612_v61 = vpop.f32.mrf.mxu0  ;;  %v1631_v62 = vpop.f32.mrf.mxu1  ;;  %v1592_v9 = vadd.f32 %v1591_v49, %v1573_v55  ;;  %v1715_v49 = vpack.c.bf16 %v1516_v21, %v1516_v21  ;;  %v1542_v55 = vadd.f32 %v1541_v14, %v996_v50 }
 0x3b8   :  { %v1613_v3 = vadd.f32 %v1612_v61, %v998_v41 }
 0x3b9   :  { %v1719_v26 = vpack.c.bf16 %v1592_v9, %v1592_v9  ;;  %v1729_v60 = vunpack.c.l.b16 %v1715_v49  ;;  %v1561_v9 = vadd.f32 %v11662_v36, %v1542_v55 }
 0x3ba   :  { %v1632_v6 = vadd.f32 %v1631_v62, %v1613_v3 }
 0x3bb   :  { %v1735_v32 = vunpack.c.l.b16 %v1719_v26 }
 0x3bc   :  { %v1895_v17 = vpack.c.bf16 %v1632_v6, %v1632_v6  ;;  %v1574_v18 = vpop.f32.mrf.mxu2  ;;  %v1593_v54 = vpop.f32.mrf.mxu3 }
 0x3bd   :  { %v1575_v45 = vadd.f32 %v1574_v18, %v11673_v46  ;;  %v1504_v18 = vadd.f32 %v11664_v29, %v995_v24 }
 0x3be   :  { %v1911_v22 = vunpack.c.l.b16 %v1895_v17  ;;  %v1731_v17 = vpack.c.b16 %v1730_v42, %v1729_v60 }
 0x3bf   :  { %v1594_v27 = vadd.f32 %v1593_v54, %v1575_v45  ;;  %v1615_v13 = vpop.f32.mrf.mxu0  ;;  %v1634_v33 = vpop.f32.mrf.mxu1  ;;  %v1559_v45 = vadd.f32 %v11656_v1, %v1540_v4 }
 0x3c0   :  { %v1912_v34 = vpack.c.b16 %v1911_v22, %v1910_v11  ;;  %v1616_v23 = vadd.f32 %v1615_v13, %v998_v41  ;;  %v1893_v11 = vpack.c.bf16 %v1561_v9, %v1561_v9 }
 0x3c1   :  { %v1720_v38 = vpack.c.bf16 %v1594_v27, %v1594_v27  ;;  %v1523_v27 = vadd.f32 %v11666_v39, %v1504_v18  ;;  %v1892_v13 = vpack.c.bf16 %v1559_v45, %v1559_v45 }
 0x3c2   :  { %1921 = vmatpush.bf16.xpose.msra.mxu0 %v1912_v34  ;;  %v1635_v52 = vadd.f32 %v1634_v33, %v1616_v23  ;;  %v1931_v1 = vunpack.c.l.b16 %v1893_v11 }
 0x3c3   :  { %v1736_v28 = vunpack.c.l.b16 %v1720_v38  ;;  %v1930_v23 = vunpack.c.l.b16 %v1892_v13 }
 0x3c4   :  { %v1577_v31 = vpop.f32.mrf.mxu2  ;;  %v1596_v30 = vpop.f32.mrf.mxu3  ;;  %v1896_v6 = vpack.c.bf16 %v1635_v52, %v1635_v52 }
 0x3c5   :  { %v1737_v47 = vpack.c.b16 %v1736_v28, %v1735_v32  ;;  %v1578_v58 = vadd.f32 %v1577_v31, %v11673_v46  ;;  %v1932_v39 = vpack.c.b16 %v1931_v1, %v1930_v23 }
 0x3c6   :  { %v1936_v63 = vunpack.c.l.b16 %v1896_v6 }
 0x3c7   :  { %v1617_v61 = vpop.f32.mrf.mxu0  ;;  %v1636_v62 = vpop.f32.mrf.mxu1  ;;  %1746 = vmatpush.bf16.xpose.msra.mxu2 %v1737_v47  ;;  %v1597_v48 = vadd.f32 %v1596_v30, %v1578_v58 }
 0x3c8   :  { %v1618_v3 = vadd.f32 %v1617_v61, %v998_v41  ;;  %v1502_v41 = vadd.f32 %v11658_v56, %v995_v24  ;;  %v999_v56 = vperm.slane %v11669_v40, 4  ;;  %v1718_v24 = vpack.c.bf16 %v1523_v27, %v1523_v27 }
 0x3c9   :  { %1922 = vmatmul.bf16.vlgmr.msra.gmra.mxu0 %v1906_v53  ;;  %v1721_v22 = vpack.c.bf16 %v1597_v48, %v1597_v48 }
 0x3ca   :  { %v1637_v16 = vadd.f32 %v1636_v62, %v1618_v3  ;;  %v1521_v8 = vadd.f32 %v11660_v35, %v1502_v41  ;;  %v1756_v31 = vunpack.c.l.b16 %v1718_v24 }
 0x3cc   :  { %v1897_v14 = vpack.c.bf16 %v1637_v16, %v1637_v16  ;;  %v1579_v54 = vpop.f32.mrf.mxu2  ;;  %v1598_v44 = vpop.f32.mrf.mxu3  ;;  %v1717_v32 = vpack.c.bf16 %v1521_v8, %v1521_v8 }
 0x3cd   :  { %v1580_v19 = vadd.f32 %v1579_v54, %v11673_v46  ;;  %v1761_v46 = vunpack.c.l.b16 %v1721_v22 }
 0x3ce   :  { %v1937_v50 = vunpack.c.l.b16 %v1897_v14  ;;  %1747 = vmatmul.bf16.vlgmr.msra.gmra.mxu2 %v1731_v17  ;;  %v1755_v47 = vunpack.c.l.b16 %v1717_v32 }
 0x3cf   :  { %v1599_v25 = vadd.f32 %v1598_v44, %v1580_v19  ;;  %v1686_v36 = vpop.f32.mrf.mxu0  ;;  %v1705_v26 = vpop.f32.mrf.mxu1 }
 0x3d0   :  { %v1938_v29 = vpack.c.b16 %v1937_v50, %v1936_v63  ;;  %v1687_v35 = vadd.f32 %v1686_v36, %v1000_v37  ;;  %v1757_v53 = vpack.c.b16 %v1756_v31, %v1755_v47 }
 0x3d1   :  { %v1722_v33 = vpack.c.bf16 %v1599_v25, %v1599_v25 }
 0x3d2   :  { %1947 = vmatpush.bf16.xpose.msra.mxu1 %v1938_v29  ;;  %v1706_v55 = vadd.f32 %v1705_v26, %v1687_v35 }
 0x3d3   :  { %v1762_v34 = vunpack.c.l.b16 %v1722_v33 }
 0x3d4   :  { %v1648_v38 = vpop.f32.mrf.mxu2  ;;  %v1667_v21 = vpop.f32.mrf.mxu3  ;;  %v1898_v4 = vpack.c.bf16 %v1706_v55, %v1706_v55 }
 0x3d5   :  { %v1763_v51 = vpack.c.b16 %v1762_v34, %v1761_v46  ;;  %v1649_v28 = vadd.f32 %v1648_v38, %v999_v56 }
 0x3d6   :  { %v2013_v48 = vunpack.c.l.b16 %v1898_v4 }
 0x3d7   :  { %v1688_v15 = vpop.f32.mrf.mxu0  ;;  %1772 = vmatpush.bf16.xpose.msra.mxu3 %v1763_v51  ;;  %v1707_v43 = vpop.f32.mrf.mxu1  ;;  %v1668_v52 = vadd.f32 %v1667_v21, %v1649_v28 }
 0x3d8   :  { %v1689_v30 = vadd.f32 %v1688_v15, %v1000_v37 }
 0x3d9   :  { %1948 = vmatmul.bf16.vlgmr.msra.gmra.mxu1 %v1932_v39  ;;  %v1723_v42 = vpack.c.bf16 %v1668_v52, %v1668_v52 }
 0x3da   :  { %v1708_v49 = vadd.f32 %v1707_v43, %v1689_v30 }
 0x3db   :  { %v1839_v16 = vunpack.c.l.b16 %v1723_v42 }
 0x3dc   :  { %v1650_v40 = vpop.f32.mrf.mxu2  ;;  %v1669_v58 = vpop.f32.mrf.mxu3  ;;  %v1899_v62 = vpack.c.bf16 %v1708_v49, %v1708_v49 }
 0x3dd   :  { %v1651_v61 = vadd.f32 %v1650_v40, %v999_v56 }
 0x3de   :  { %1773 = vmatmul.bf16.vlgmr.msra.gmra.mxu3 %v1757_v53  ;;  %v2014_v6 = vunpack.c.l.b16 %v1899_v62 }
 0x3df   :  { %v1670_v3 = vadd.f32 %v1669_v58, %v1651_v61 }
 0x3e0   :  { %v2015_v54 = vpack.c.b16 %v2014_v6, %v2013_v48 }
 0x3e1   :  { %v1724_v60 = vpack.c.bf16 %v1670_v3, %v1670_v3 }
 0x3e3   :  { %v1840_v9 = vunpack.c.l.b16 %v1724_v60 }
 0x3e4   :  { %v1653_v17 = vpop.f32.mrf.mxu2  ;;  %v1672_v18 = vpop.f32.mrf.mxu3 }
 0x3e5   :  { %v1841_v14 = vpack.c.b16 %v1840_v9, %v1839_v16  ;;  %v1654_v44 = vadd.f32 %v1653_v17, %v999_v56 }
 0x3e7   :  { %1853 = vmatpush.bf16.msrb.mxu2 %v1841_v14  ;;  %v1673_v45 = vadd.f32 %v1672_v18, %v1654_v44 }
 0x3e9   :  { %v1725_v50 = vpack.c.bf16 %v1673_v45, %v1673_v45 }
 0x3eb   :  { %2027 = vmatpush.bf16.msra.mxu2 %v2015_v54  ;;  %v1867_v25 = vunpack.c.l.b16 %v1725_v50 }
 0x3ec   :  { %v1655_v19 = vpop.f32.mrf.mxu2  ;;  %v1674_v41 = vpop.f32.mrf.mxu3 }
 0x3ed   :  { %v1656_v63 = vadd.f32 %v1655_v19, %v999_v56 }
 0x3ef   :  { %v1675_v11 = vadd.f32 %v1674_v41, %v1656_v63 }
 0x3f1   :  { %v1726_v22 = vpack.c.bf16 %v1675_v11, %v1675_v11 }
 0x3f3   :  { %v1868_v36 = vunpack.c.l.b16 %v1726_v22 }
 0x3f4   :  { %v1691_v26 = vpop.f32.mrf.mxu2  ;;  %v1710_v27 = vpop.f32.mrf.mxu3 }
 0x3f5   :  { %v1869_v29 = vpack.c.b16 %v1868_v36, %v1867_v25  ;;  %v1692_v13 = vadd.f32 %v1691_v26, %v1000_v37 }
 0x3f7   :  { %1881 = vmatpush.bf16.msrb.mxu3 %v1869_v29  ;;  %v1711_v33 = vadd.f32 %v1710_v27, %v1692_v13 }
 0x3f9   :  { %v1900_v34 = vpack.c.bf16 %v1711_v33, %v1711_v33 }
 0x3fb   :  { %v2041_v21 = vunpack.c.l.b16 %v1900_v34 }
 0x3fc   :  { %v1693_v8 = vpop.f32.mrf.mxu2  ;;  %v1712_v46 = vpop.f32.mrf.mxu3 }
 0x3fd   :  { %v1694_v1 = vadd.f32 %v1693_v8, %v1000_v37 }
 0x3ff   :  { %v1713_v24 = vadd.f32 %v1712_v46, %v1694_v1 }
 0x401   :  { %v1901_v38 = vpack.c.bf16 %v1713_v24, %v1713_v24 }
 0x403   :  { %v2042_v23 = vunpack.c.l.b16 %v1901_v38 }
 0x405   :  { %v2043_v56 = vpack.c.b16 %v2042_v23, %v2041_v21 }
 0x407   :  { %2055 = vmatpush.bf16.msra.mxu3 %v2043_v56 }
 0x446   :  { %v1923_v31 = vpop.f32.mrf.mxu0 }
 0x447   :  { %v1954_v30 = vmul.f32 0.088388346, %v1923_v31 }
 0x449   :  { %v1958_v49 = vsel %vm1783_vm13, %v1954_v30, -inf }
 0x44e   :  { %v1925_v53 = vpop.f32.mrf.mxu0 }
 0x44f   :  { %v1955_v40 = vmul.f32 0.088388346, %v1925_v53 }
 0x451   :  { %v1748_v51 = vpop.f32.mrf.mxu2  ;;  %v1961_v3 = vsel %vm1783_vm13, %v1955_v40, -inf }
 0x452   :  { %v1779_v32 = vmul.f32 0.088388346, %v1748_v51 }
 0x454   :  { %v1784_v39 = vsel %vm1783_vm13, %v1779_v32, -inf }
 0x455   :  { %1785 = vmax.xlane.f32.xlu2 %v1784_v39 }
 0x456   :  { %v1949_v35 = vpop.f32.mrf.mxu1 }
 0x457   :  { %v1956_v60 = vmul.f32 0.088388346, %v1949_v35 }
 0x459   :  { %v1750_v28 = vpop.f32.mrf.mxu2  ;;  %v1964_v6 = vsel %vm1783_vm13, %v1956_v60, -inf }
 0x45a   :  { %v1780_v15 = vmul.f32 0.088388346, %v1750_v28 }
 0x45c   :  { %v1787_v37 = vsel %vm1783_vm13, %v1780_v15, -inf }
 0x45d   :  { %1788 = vmax.xlane.f32.xlu0 %v1787_v37 }
 0x45e   :  { %v1951_v55 = vpop.f32.mrf.mxu1 }
 0x45f   :  { %v1957_v58 = vmul.f32 0.088388346, %v1951_v55 }
 0x461   :  { %v1774_v43 = vpop.f32.mrf.mxu3  ;;  %v1967_v42 = vsel %vm1783_vm13, %v1957_v58, -inf }
 0x462   :  { %v1781_v47 = vmul.f32 0.088388346, %v1774_v43 }
 0x464   :  { %v1790_v52 = vsel %vm1783_vm13, %v1781_v47, -inf }
 0x465   :  { %1959 = vmax.xlane.f32.xlu0 %v1958_v49  ;;  %1791 = vmax.xlane.f32.xlu1 %v1790_v52 }
 0x469   :  { %v1776_v61 = vpop.f32.mrf.mxu3 }
 0x46a   :  { %v1782_v62 = vmul.f32 0.088388346, %v1776_v61 }
 0x46c   :  { %v1793_v4 = vsel %vm1783_vm13, %v1782_v62, -inf }
 0x46d   :  { %1968 = vmax.xlane.f32.xlu0 %v1967_v42  ;;  %1962 = vmax.xlane.f32.xlu1 %v1961_v3 }
 0x46e   :  { %1794 = vmax.xlane.f32.xlu2 %v1793_v4 }
 0x476   :  { %1965 = vmax.xlane.f32.xlu2 %v1964_v6 }
 0x4c8   :  { %v1786_v16 = vpop.xlane.xlu2 %1785 }
 0x4c9   :  { %v1796_v9 = vsub.f32 %v1779_v32, %v1786_v16 }
 0x4cb   :  { %v1800_v48 = vmul.f32 1.442695, %v1796_v9  ;;  %v7749_v9 = vld [vmem:[%s13014_s4 + $0x70] sm:$0xf] }
 0x4cd   :  { %10151 = vpow2.f32 %v1800_v48  ;;  %v9614_v48 = vld [vmem:[%s13014_s4 + $0x74] sm:$0xf0] }
 0x4d0   :  { %v1789_v17 = vpop.xlane.xlu0 %1788 }
 0x4d1   :  { %v1797_v18 = vsub.f32 %v1780_v15, %v1789_v17 }
 0x4d3   :  { %v10152_v14 = vpop.eup %10151  ;;  %v1802_v54 = vmul.f32 1.442695, %v1797_v18  ;;  %v7750_v18 = vor.u32 %v9614_v48, %v7749_v9  ;;  %v9607_v48 = vld [vmem:[%s13014_s4 + $0x44] sm:$0xf] }
 0x4d4   :  { %v1808_v44 = vsel %vm1783_vm13, %v10152_v14, 0.0 }
 0x4d5   :  { %10153 = vpow2.f32 %v1802_v54  ;;  %1809 = vadd.xlane.f32.xlu1 %v1808_v44  ;;  %v9612_v54 = vld [vmem:[%s13014_s4 + $0x64] sm:$0xf0] }
 0x4d8   :  { %v1960_v45 = vpop.xlane.xlu0 %1959  ;;  %v1792_v19 = vpop.xlane.xlu1 %1791 }
 0x4d9   :  { %v1970_v41 = vsub.f32 %v1954_v30, %v1960_v45  ;;  %v1798_v63 = vsub.f32 %v1781_v47, %v1792_v19 }
 0x4db   :  { %v10154_v50 = vpop.eup %10153  ;;  %v1974_v11 = vmul.f32 1.442695, %v1970_v41  ;;  %v1804_v22 = vmul.f32 1.442695, %v1798_v63  ;;  %v7733_v41 = vld [vmem:[%s13014_s4 + $0x50] sm:$0xf] }
 0x4dc   :  { %v1811_v25 = vsel %vm1783_vm13, %v10154_v50, 0.0  ;;  %v9610_v63 = vld [vmem:[%s13014_s4 + $0x54] sm:$0xf0] }
 0x4dd   :  { %10155 = vpow2.f32 %v1974_v11  ;;  %1812 = vadd.xlane.f32.xlu2 %v1811_v25  ;;  %v9630_v11 = vld [vmem:[%s13014_s4 + $0xf4] sm:$0xf0] }
 0x4de   :  { %10157 = vpow2.f32 %v1804_v22 }
 0x4e0   :  { %v1969_v36 = vpop.xlane.xlu0 %1968  ;;  %v1963_v26 = vpop.xlane.xlu1 %1962 }
 0x4e1   :  { %v1973_v27 = vsub.f32 %v1957_v58, %v1969_v36  ;;  %v1971_v29 = vsub.f32 %v1955_v40, %v1963_v26  ;;  %v1795_v13 = vpop.xlane.xlu2 %1794  ;;  %v9629_v36 = vld [vmem:[%s13014_s4 + $0xf4] sm:$0xf]  ;;  %v7687_v26 = vld [vmem:[%s13014_s4 + $0xf8] sm:$0xf0] }
 0x4e2   :  { %v1799_v33 = vsub.f32 %v1782_v62, %v1795_v13 }
 0x4e3   :  { %v10156_v8 = vpop.eup %10155  ;;  %v1980_v1 = vmul.f32 1.442695, %v1973_v27  ;;  %v1976_v46 = vmul.f32 1.442695, %v1971_v29 }
 0x4e4   :  { %v10158_v34 = vpop.eup %10157  ;;  %v1806_v24 = vmul.f32 1.442695, %v1799_v33  ;;  %v1982_v38 = vsel %vm1783_vm13, %v10156_v8, 0.0  ;;  %v7734_v33 = vor.u32 %v9610_v63, %v7733_v41  ;;  %v7677_v41 = vld [vmem:[%s13014_s4 + $0xe0] sm:$0xf] }
 0x4e5   :  { %10159 = vpow2.f32 %v1980_v1  ;;  %v1814_v21 = vsel %vm1783_vm13, %v10158_v34, 0.0  ;;  %1983 = vadd.xlane.f32.xlu2 %v1982_v38  ;;  %v9628_v63 = vld [vmem:[%s13014_s4 + $0xe4] sm:$0xf0] }
 0x4e6   :  { %10161 = vpow2.f32 %v1976_v46  ;;  %1815 = vadd.xlane.f32.xlu0 %v1814_v21  ;;  %v7725_v21 = vld [vmem:[%s13014_s4 + $0x40] sm:$0xf] }
 0x4e7   :  { %10163 = vpow2.f32 %v1806_v24 }
 0x4e9   :  { %v1966_v23 = vpop.xlane.xlu2 %1965 }
 0x4ea   :  { %v1972_v56 = vsub.f32 %v1956_v60, %v1966_v23  ;;  %v9608_v23 = vld [vmem:[%s13014_s4 + $0x44] sm:$0xf0] }
 0x4eb   :  { %v11702_v51 = vpop.eup %10159 }
 0x4ec   :  { %v10162_v32 = vpop.eup %10161  ;;  %v1978_v39 = vmul.f32 1.442695, %v1972_v56  ;;  %v1991_v28 = vsel %vm1783_vm13, %v11702_v51, 0.0 }
 0x4ed   :  { %v10164_v15 = vpop.eup %10163  ;;  %v1985_v31 = vsel %vm1783_vm13, %v10162_v32, 0.0  ;;  %1992 = vadd.xlane.f32.xlu2 %v1991_v28 }
 0x4ee   :  { %10165 = vpow2.f32 %v1978_v39  ;;  %1986 = vadd.xlane.f32.xlu0 %v1985_v31  ;;  %v1817_v35 = vsel %vm1783_vm13, %v10164_v15, 0.0  ;;  %v7751_v39 = vld [vmem:[%s13014_s4 + $0x78] sm:$0xf0] }
 0x4ef   :  { %1818 = vadd.xlane.f32.xlu1 %v1817_v35 }
 0x4f4   :  { %v11708_v37 = vpop.eup %10165 }
 0x4f5   :  { %v1988_v30 = vsel %vm1783_vm13, %v11708_v37, 0.0 }
 0x4f7   :  { %1989 = vadd.xlane.f32.xlu1 %v1988_v30  ;;  %v7726_v30 = vor.u32 %v9608_v23, %v7725_v21  ;;  %v7701_v21 = vld [vmem:[%s13014_s4 + $0x10] sm:$0xf]  ;;  %v9602_v23 = vld [vmem:[%s13014_s4 + $0x14] sm:$0xf0] }
 0x548   :  { %v1810_v43 = vpop.xlane.xlu1 %1809 }
 0x549   :  { %10167 = vrcp.f32 %v1810_v43 }
 0x54f   :  { %v10168_v49 = vpop.eup %10167 }
 0x550   :  { %v1813_v47 = vpop.xlane.xlu2 %1812  ;;  %v1824_v52 = vmul.f32 %v10168_v49, %v10152_v14  ;;  %v7741_v14 = vld [vmem:[%s13014_s4 + $0x60] sm:$0xf]  ;;  %v7717_v49 = vld [vmem:[%s13014_s4 + $0x30] sm:$0xf] }
 0x551   :  { %10169 = vrcp.f32 %v1813_v47  ;;  %v7742_v45 = vor.u32 %v9612_v54, %v7741_v14  ;;  %v9605_v54 = vld [vmem:[%s13014_s4 + $0x34] sm:$0xf] }
 0x552   :  { %v1828_v55 = vpack.c.bf16 %v1824_v52, %v1824_v52  ;;  %v9606_v52 = vld [vmem:[%s13014_s4 + $0x34] sm:$0xf0] }
 0x554   :  { %v1834_v42 = vunpack.c.l.b16 %v1828_v55  ;;  %v9611_v55 = vld [vmem:[%s13014_s4 + $0x64] sm:$0xf] }
 0x557   :  { %v10170_v53 = vpop.eup %10169 }
 0x558   :  { %v1825_v40 = vmul.f32 %v10170_v53, %v10154_v50  ;;  %v1984_v61 = vpop.xlane.xlu2 %1983  ;;  %v7685_v50 = vld [vmem:[%s13014_s4 + $0xf0] sm:$0xf] }
 0x559   :  { %v1816_v58 = vpop.xlane.xlu0 %1815  ;;  %10171 = vrcp.f32 %v1984_v61  ;;  %v7686_v25 = vor.u32 %v9630_v11, %v7685_v50  ;;  %v7718_v61 = vor.u32 %v9606_v52, %v7717_v49  ;;  %v9627_v50 = vld [vmem:[%s13014_s4 + $0xe4] sm:$0xf]  ;;  %v7678_v11 = vor.u32 %v9628_v63, %v7677_v41  ;;  %v9600_v49 = vld [vmem:[%s13014_s4 + $0x4] sm:$0xf0] }
 0x55a   :  { %v1829_v62 = vpack.c.bf16 %v1825_v40, %v1825_v40  ;;  %10173 = vrcp.f32 %v1816_v58  ;;  %v7743_v40 = vld [vmem:[%s13014_s4 + $0x68] sm:$0xf0]  ;;  %v9616_v41 = vld [vmem:[%s13014_s4 + $0x84] sm:$0xf0]  ;;  %v9615_v63 = vld [vmem:[%s13014_s4 + $0x84] sm:$0xf] }
 0x55b   :  { %2144 = vmatpush.bf16.msrb.mxu0 %v7686_v25  ;;  %v7709_v25 = vld [vmem:[%s13014_s4 + $0x20] sm:$0xf] }
 0x55c   :  { %v1835_v3 = vunpack.c.l.b16 %v1829_v62 }
 0x55e   :  { %v1836_v4 = vpack.c.b16 %v1835_v3, %v1834_v42  ;;  %v7746_v42 = vor.u32 %v9611_v55, %v7743_v40  ;;  %v9599_v55 = vld [vmem:[%s13014_s4 + $0x4] sm:$0xf]  ;;  %v7695_v40 = vld [vmem:[%s13014_s4 + $0x8] sm:$0xf0] }
 0x55f   :  { %v10172_v6 = vpop.eup %10171  ;;  %2145 = vmatpush.bf16.msrb.mxu0 %v7678_v11  ;;  %v7631_v11 = vld [vmem:[%s13014_s4 + $0x88] sm:$0xf0] }
 0x560   :  { %7623 = vmatmul.msk.bf16.vlgmr.msrb.gmra.mxu2 %vm1783_vm13, %v1836_v4  ;;  %v10174_v17 = vpop.eup %10173  ;;  %v1998_v44 = vmul.f32 %v10172_v6, %v10156_v8  ;;  %v7690_v8 = vor.u32 %v9629_v36, %v7687_v26  ;;  %v9609_v4 = vld [vmem:[%s13014_s4 + $0x54] sm:$0xf]  ;;  %v9604_v36 = vld [vmem:[%s13014_s4 + $0x24] sm:$0xf0] }
 0x561   :  { %v1987_v60 = vpop.xlane.xlu0 %1986  ;;  %2262 = vmatpush.bf16.msrb.mxu2 %v7750_v18  ;;  %v1826_v19 = vmul.f32 %v10174_v17, %v10158_v34  ;;  %v1993_v34 = vpop.xlane.xlu2 %1992  ;;  %v7727_v17 = vld [vmem:[%s13014_s4 + $0x48] sm:$0xf0] }
 0x562   :  { %10175 = vrcp.f32 %v1987_v60  ;;  %v1819_v16 = vpop.xlane.xlu1 %1818  ;;  %v2002_v29 = vpack.c.bf16 %v1998_v44, %v1998_v44  ;;  %2163 = vmatpush.bf16.msrb.mxu1 %v7690_v8  ;;  %v7735_v60 = vld [vmem:[%s13014_s4 + $0x58] sm:$0xf0]  ;;  %v7730_v14 = vor.u32 %v9607_v48, %v7727_v17  ;;  %v7647_v17 = vld [vmem:[%s13014_s4 + $0xa8] sm:$0xf0] }
 0x563   :  { %10177 = vrcp.f32 %v1819_v16  ;;  %v1830_v1 = vpack.c.bf16 %v1826_v19, %v1826_v19  ;;  %v7738_v16 = vor.u32 %v9609_v4, %v7735_v60  ;;  %v7719_v44 = vld [vmem:[%s13014_s4 + $0x38] sm:$0xf0] }
 0x564   :  { %v2008_v28 = vunpack.c.l.b16 %v2002_v29  ;;  %v9603_v29 = vld [vmem:[%s13014_s4 + $0x24] sm:$0xf]  ;;  %v7655_v4 = vld [vmem:[%s13014_s4 + $0xb8] sm:$0xf0] }
 0x565   :  { %2263 = vmatpush.bf16.msrb.mxu2 %v7742_v45  ;;  %v7722_v45 = vor.u32 %v9605_v54, %v7719_v44  ;;  %v9617_v54 = vld [vmem:[%s13014_s4 + $0x94] sm:$0xf] }
 0x568   :  { %v10176_v22 = vpop.eup %10175 }
 0x569   :  { %v10178_v27 = vpop.eup %10177  ;;  %v1999_v13 = vmul.f32 %v10176_v22, %v10162_v32  ;;  %v9613_v32 = vld [vmem:[%s13014_s4 + $0x74] sm:$0xf]  ;;  %2264 = vmatpush.bf16.msrb.mxu2 %v7734_v33  ;;  %v7679_v22 = vld [vmem:[%s13014_s4 + $0xe8] sm:$0xf0]  ;;  %v7669_v33 = vld [vmem:[%s13014_s4 + $0xd0] sm:$0xf] }
 0x56a   :  { %v1827_v46 = vmul.f32 %v10178_v27, %v10164_v15  ;;  %v1990_v24 = vpop.xlane.xlu1 %1989  ;;  %v1862_v15 = vunpack.c.l.b16 %v1830_v1  ;;  %v7754_v47 = vor.u32 %v9613_v32, %v7751_v39  ;;  %v7682_v26 = vor.u32 %v9627_v50, %v7679_v22  ;;  %v9626_v1 = vld [vmem:[%s13014_s4 + $0xd4] sm:$0xf0]  ;;  %v7703_v39 = vld [vmem:[%s13014_s4 + $0x18] sm:$0xf0] }
 0x56b   :  { %v2003_v38 = vpack.c.bf16 %v1999_v13, %v1999_v13  ;;  %10179 = vrcp.f32 %v1990_v24  ;;  %v7710_v27 = vor.u32 %v9604_v36, %v7709_v25  ;;  %v7711_v13 = vld [vmem:[%s13014_s4 + $0x28] sm:$0xf0]  ;;  %v7670_v24 = vor.u32 %v9626_v1, %v7669_v33 }
 0x56c   :  { %v1831_v56 = vpack.c.bf16 %v1827_v46, %v1827_v46  ;;  %10181 = vrcp.f32 %v1993_v34  ;;  %v7714_v8 = vor.u32 %v9603_v29, %v7711_v13  ;;  %v9625_v46 = vld [vmem:[%s13014_s4 + $0xd4] sm:$0xf]  ;;  %v7671_v34 = vld [vmem:[%s13014_s4 + $0xd8] sm:$0xf0]  ;;  %2164 = vmatpush.bf16.msrb.mxu1 %v7682_v26  ;;  %v7702_v32 = vor.u32 %v9602_v23, %v7701_v21  ;;  %v724_v23 = vld [vmem:[%s13015_s6] sm:$0x3] }
 0x56d   :  { %v2009_v31 = vunpack.c.l.b16 %v2003_v38  ;;  %2265 = vmatpush.bf16.msrb.mxu2 %v7726_v30  ;;  %v7674_v38 = vor.u32 %v9625_v46, %v7671_v34  ;;  %2146 = vmatpush.bf16.msrb.mxu0 %v7670_v24  ;;  %v7634_v22 = vor.u32 %v9615_v63, %v7631_v11 }
 0x56e   :  { %v1863_v35 = vunpack.c.l.b16 %v1831_v56  ;;  %v9601_v56 = vld [vmem:[%s13014_s4 + $0x14] sm:$0xf] }
 0x56f   :  { %v2010_v43 = vpack.c.b16 %v2009_v31, %v2008_v28  ;;  %v7706_v28 = vor.u32 %v9601_v56, %v7703_v39  ;;  %v7661_v31 = vld [vmem:[%s13014_s4 + $0xc0] sm:$0xf] }
 0x570   :  { %v1864_v53 = vpack.c.b16 %v1863_v35, %v1862_v15  ;;  %2165 = vmatpush.bf16.msrb.mxu1 %v7674_v38  ;;  %v9624_v15 = vld [vmem:[%s13014_s4 + $0xc4] sm:$0xf0]  ;;  %v9623_v35 = vld [vmem:[%s13014_s4 + $0xc4] sm:$0xf] }
 0x571   :  { %v10180_v58 = vpop.eup %10179  ;;  %7625 = vmatmul.msk.bf16.vlgmr.msra.gmra.mxu2 %vm1783_vm13, %v2010_v43  ;;  %v7662_v30 = vor.u32 %v9624_v15, %v7661_v31  ;;  %v7663_v43 = vld [vmem:[%s13014_s4 + $0xc8] sm:$0xf0]  ;;  %v2310_v15 = vperm.slane %v724_v23, 1 }
 0x572   :  { %7624 = vmatmul.msk.bf16.vlgmr.msrb.gmra.mxu3 %vm1783_vm13, %v1864_v53  ;;  %v10182_v62 = vpop.eup %10181  ;;  %v2000_v3 = vmul.f32 %v10180_v58, %v11708_v37  ;;  %2266 = vmatpush.bf16.msrb.mxu2 %v7718_v61  ;;  %v7666_v52 = vor.u32 %v9623_v35, %v7663_v43  ;;  %v7698_v58 = vor.u32 %v9599_v55, %v7695_v40  ;;  %v7653_v61 = vld [vmem:[%s13014_s4 + $0xb0] sm:$0xf] }
 0x573   :  { %2281 = vmatpush.bf16.msrb.mxu3 %v7754_v47  ;;  %v2001_v6 = vmul.f32 %v10182_v62, %v11702_v51  ;;  %v7693_v47 = vld [vmem:[%s13014_s4] sm:$0xf]  ;;  %2147 = vmatpush.bf16.msrb.mxu0 %v7662_v30  ;;  %v9622_v62 = vld [vmem:[%s13014_s4 + $0xb4] sm:$0xf0] }
 0x574   :  { %v2004_v9 = vpack.c.bf16 %v2000_v3, %v2000_v3  ;;  %v7694_v53 = vor.u32 %v9600_v49, %v7693_v47  ;;  %2166 = vmatpush.bf16.msrb.mxu1 %v7666_v52  ;;  %v7654_v3 = vor.u32 %v9622_v62, %v7653_v61 }
 0x575   :  { %v2005_v18 = vpack.c.bf16 %v2001_v6, %v2001_v6  ;;  %v7645_v6 = vld [vmem:[%s13014_s4 + $0xa0] sm:$0xf] }
 0x576   :  { %v2036_v37 = vunpack.c.l.b16 %v2004_v9  ;;  %2267 = vmatpush.bf16.msrb.mxu2 %v7710_v27  ;;  %v9619_v9 = vld [vmem:[%s13014_s4 + $0xa4] sm:$0xf] }
 0x577   :  { %2282 = vmatpush.bf16.msrb.mxu3 %v7746_v42  ;;  %v2037_v51 = vunpack.c.l.b16 %v2005_v18  ;;  %v9621_v42 = vld [vmem:[%s13014_s4 + $0xb4] sm:$0xf]  ;;  %2148 = vmatpush.bf16.msrb.mxu0 %v7654_v3  ;;  %v7650_v18 = vor.u32 %v9619_v9, %v7647_v17 }
 0x578   :  { %v7658_v60 = vor.u32 %v9621_v42, %v7655_v4 }
 0x579   :  { %v2038_v19 = vpack.c.b16 %v2037_v51, %v2036_v37  ;;  %v9618_v37 = vld [vmem:[%s13014_s4 + $0x94] sm:$0xf0]  ;;  %v7639_v51 = vld [vmem:[%s13014_s4 + $0x98] sm:$0xf0] }
 0x57a   :  { %2268 = vmatpush.bf16.msrb.mxu2 %v7702_v32  ;;  %2167 = vmatpush.bf16.msrb.mxu1 %v7658_v60 }
 0x57b   :  { %2283 = vmatpush.bf16.msrb.mxu3 %v7738_v16  ;;  %v9620_v16 = vld [vmem:[%s13014_s4 + $0xa4] sm:$0xf0] }
 0x57c   :  { %v7646_v48 = vor.u32 %v9620_v16, %v7645_v6 }
 0x57e   :  { %2269 = vmatpush.bf16.msrb.mxu2 %v7694_v53  ;;  %2149 = vmatpush.bf16.msrb.mxu0 %v7646_v48 }
 0x57f   :  { %2284 = vmatpush.bf16.msrb.mxu3 %v7730_v14  ;;  %v7637_v14 = vld [vmem:[%s13014_s4 + $0x90] sm:$0xf]  ;;  %2168 = vmatpush.bf16.msrb.mxu1 %v7650_v18 }
 0x580   :  { %v7638_v44 = vor.u32 %v9618_v37, %v7637_v14 }
 0x582   :  { %7626 = vmatmul.msk.bf16.vlgmr.msra.gmra.mxu3 %vm1783_vm13, %v2038_v19  ;;  %2150 = vmatpush.bf16.msrb.mxu0 %v7638_v44  ;;  %v7629_v19 = vld [vmem:[%s13014_s4 + $0x80] sm:$0xf] }
 0x583   :  { %2285 = vmatpush.bf16.msrb.mxu3 %v7722_v45  ;;  %v7642_v45 = vor.u32 %v9617_v54, %v7639_v51  ;;  %v7630_v50 = vor.u32 %v9616_v41, %v7629_v19 }
 0x585   :  { %2169 = vmatpush.bf16.msrb.mxu1 %v7642_v45 }
 0x586   :  { %2151 = vmatpush.bf16.msrb.mxu0 %v7630_v50 }
 0x587   :  { %2286 = vmatpush.bf16.msrb.mxu3 %v7714_v8 }
 0x589   :  { %2170 = vmatpush.bf16.msrb.mxu1 %v7634_v22 }
 0x58b   :  { %2287 = vmatpush.bf16.msrb.mxu3 %v7706_v28  ;;  %v2309_v28 = vperm.slane %v724_v23, 0 }
 0x58f   :  { %2288 = vmatpush.bf16.msrb.mxu3 %v7698_v58 }
 0x5e3   :  { %v1855_v25 = vpop.f32.mrf.mxu2 }
 0x5eb   :  { %v1857_v36 = vpop.f32.mrf.mxu2 }
 0x5ec   :  { %v1888_v26 = vpack.c.bf16 %v1857_v36, %v1855_v25 }
 0x5ee   :  { %2270 = vmatmul.bf16.vlgmr.msrb.gmra.mxu2 %v1888_v26  ;;  %2289 = vmatmul.bf16.vlgmr.msrb.gmra.mxu3 %v1888_v26 }
 0x5f4   :  { %v2029_v27 = vpop.f32.mrf.mxu2 }
 0x5f5   :  { %v1883_v29 = vpop.f32.mrf.mxu3 }
 0x5fc   :  { %v2031_v13 = vpop.f32.mrf.mxu2 }
 0x5fd   :  { %v1885_v33 = vpop.f32.mrf.mxu3  ;;  %v2062_v8 = vpack.c.bf16 %v2031_v13, %v2029_v27 }
 0x5fe   :  { %v1889_v1 = vpack.c.bf16 %v1885_v33, %v1883_v29 }
 0x5ff   :  { %2152 = vmatmul.bf16.vlgmr.msrb.gmra.mxu0 %v2062_v8  ;;  %2171 = vmatmul.bf16.vlgmr.msrb.gmra.mxu1 %v2062_v8 }
 0x600   :  { %2275 = vmatmul.bf16.gmra.mxu2 %v1889_v1  ;;  %2294 = vmatmul.bf16.gmra.mxu3 %v1889_v1 }
 0x605   :  { %v2057_v46 = vpop.f32.mrf.mxu3 }
 0x60d   :  { %v2059_v34 = vpop.f32.mrf.mxu3 }
 0x60e   :  { %v2063_v24 = vpack.c.bf16 %v2059_v34, %v2057_v46 }
 0x610   :  { %2157 = vmatmul.bf16.gmra.mxu0 %v2063_v24  ;;  %2176 = vmatmul.bf16.gmra.mxu1 %v2063_v24 }
 0x671   :  { %v2271_v38 = vpop.f32.mrf.mxu2  ;;  %v2290_v21 = vpop.f32.mrf.mxu3 }
 0x679   :  { %v2273_v43 = vpop.f32.mrf.mxu2  ;;  %v2292_v47 = vpop.f32.mrf.mxu3 }
 0x67c   :  { %v2153_v56 = vpop.f32.mrf.mxu0  ;;  %v2172_v32 = vpop.f32.mrf.mxu1 }
 0x67d   :  { %v2272_v39 = vadd.f32 %v2271_v38, %v2153_v56  ;;  %v2291_v31 = vadd.f32 %v2290_v21, %v2172_v32 }
 0x67f   :  { %v2300_v35 = vadd.f32 %v2272_v39, %v11220_v57  ;;  %v2301_v30 = vadd.f32 %v2291_v31, %v11222_v59 }
 0x681   :  { %v11785_v49 = vadd.f32 %v2309_v28, %v2300_v35  ;;  %v11787_v52 = vadd.f32 %v2310_v15, %v2301_v30 }
 0x683   :  { %v2321_v53 = vadd.f32 %v11787_v52, %v11785_v49  ;;  %v2276_v3 = vpop.f32.mrf.mxu2  ;;  %v2295_v4 = vpop.f32.mrf.mxu3 }
 0x684   :  { %v2155_v55 = vpop.f32.mrf.mxu0  ;;  %v2174_v40 = vpop.f32.mrf.mxu1 }
 0x685   :  { %v2274_v58 = vadd.f32 %v2273_v43, %v2155_v55  ;;  %v2293_v61 = vadd.f32 %v2292_v47, %v2174_v40  ;;  %2322 = vadd.xlane.f32.xlu0 %v2321_v53  ;;  %v7869_v47 = vld [vmem:[#allocation4 + $0xe0] sm:$0xf]  ;;  %v9661_v53 = vld [vmem:[#allocation4 + $0xec] sm:$0xf0] }
 0x686   :  { %v7997_v55 = vld [vmem:[#allocation4 + $0x1e0] sm:$0xf]  ;;  %v7870_v40 = vor.u32 %v9661_v53, %v7869_v47 }
 0x687   :  { %v2302_v62 = vadd.f32 %v2274_v58, %v11226_v0  ;;  %v2303_v57 = vadd.f32 %v2293_v61, %v11228_v2  ;;  %v9693_v58 = vld [vmem:[#allocation4 + $0x1ec] sm:$0xf0]  ;;  %v9659_v61 = vld [vmem:[#allocation4 + $0xe4] sm:$0xf]  ;;  %v7805_v53 = vld [vmem:[#allocation4 + $0x60] sm:$0xf] }
 0x688   :  { %2780 = vmatpush.bf16.msra.mxu0 %v7870_v40  ;;  %v7933_v40 = vld [vmem:[#allocation4 + $0x160] sm:$0xf] }
 0x689   :  { %v11793_v42 = vadd.f32 %v2309_v28, %v2302_v62  ;;  %v11795_v59 = vadd.f32 %v2310_v15, %v2303_v57  ;;  %v7871_v62 = vld [vmem:[#allocation4 + $0xf0] sm:$0xf0]  ;;  %v7998_v57 = vor.u32 %v9693_v58, %v7997_v55  ;;  %v9645_v55 = vld [vmem:[#allocation4 + $0x6c] sm:$0xf0] }
 0x68a   :  { %v7806_v58 = vor.u32 %v9645_v55, %v7805_v53  ;;  %v9663_v53 = vld [vmem:[#allocation4 + $0x104] sm:$0xf]  ;;  %v7887_v55 = vld [vmem:[#allocation4 + $0x110] sm:$0xf0] }
 0x68b   :  { %v2324_v60 = vadd.f32 %v11795_v59, %v11793_v42  ;;  %v2278_v14 = vpop.f32.mrf.mxu2  ;;  %v2297_v37 = vpop.f32.mrf.mxu3  ;;  %2799 = vmatpush.bf16.msra.mxu1 %v7998_v57  ;;  %v7807_v57 = vld [vmem:[#allocation4 + $0x70] sm:$0xf0] }
 0x68d   :  { %v2158_v6 = vpop.f32.mrf.mxu0  ;;  %v2177_v16 = vpop.f32.mrf.mxu1  ;;  %2325 = vadd.xlane.f32.xlu1 %v2324_v60  ;;  %v7999_v60 = vld [vmem:[#allocation4 + $0x1f0] sm:$0xf0] }
 0x68e   :  { %v2277_v9 = vadd.f32 %v2276_v3, %v2158_v6  ;;  %v2296_v48 = vadd.f32 %v2295_v4, %v2177_v16  ;;  %v7874_v3 = vor.u32 %v9659_v61, %v7871_v62  ;;  %v9691_v4 = vld [vmem:[#allocation4 + $0x1e4] sm:$0xf]  ;;  %v7853_v16 = vld [vmem:[#allocation4 + $0xc0] sm:$0xf]  ;;  %v9677_v61 = vld [vmem:[#allocation4 + $0x16c] sm:$0xf0] }
 0x68f   :  { %v8002_v6 = vor.u32 %v9691_v4, %v7999_v60  ;;  %v9643_v62 = vld [vmem:[#allocation4 + $0x64] sm:$0xf] }
 0x690   :  { %v2304_v17 = vadd.f32 %v2277_v9, %v11232_v5  ;;  %v2305_v0 = vadd.f32 %v2296_v48, %v11234_v7  ;;  %2818 = vmatpush.bf16.msra.mxu2 %v7874_v3  ;;  %v9657_v9 = vld [vmem:[#allocation4 + $0xcc] sm:$0xf0]  ;;  %v7981_v48 = vld [vmem:[#allocation4 + $0x1c0] sm:$0xf]  ;;  %v7934_v3 = vor.u32 %v9677_v61, %v7933_v40  ;;  %v7810_v4 = vor.u32 %v9643_v62, %v7807_v57  ;;  %v9675_v60 = vld [vmem:[#allocation4 + $0x164] sm:$0xf] }
 0x691   :  { %2837 = vmatpush.bf16.msra.mxu3 %v8002_v6  ;;  %v7935_v6 = vld [vmem:[#allocation4 + $0x170] sm:$0xf0]  ;;  %v7877_v61 = vld [vmem:[#allocation4 + $0xe8] sm:$0xf]  ;;  %v9662_v62 = vld [vmem:[#allocation4 + $0xf4] sm:$0xf0] }
 0x692   :  { %v11801_v18 = vadd.f32 %v2309_v28, %v2304_v17  ;;  %v11803_v2 = vadd.f32 %v2310_v15, %v2305_v0  ;;  %v7854_v17 = vor.u32 %v9657_v9, %v7853_v16  ;;  %v9689_v0 = vld [vmem:[#allocation4 + $0x1cc] sm:$0xf0]  ;;  %v7938_v16 = vor.u32 %v9675_v60, %v7935_v6  ;;  %v7789_v9 = vld [vmem:[#allocation4 + $0x40] sm:$0xf]  ;;  %v8005_v57 = vld [vmem:[#allocation4 + $0x1e8] sm:$0xf] }
 0x693   :  { %v9660_v60 = vld [vmem:[#allocation4 + $0xec] sm:$0xf]  ;;  %v7879_v6 = vld [vmem:[#allocation4 + $0xf8] sm:$0xf0] }
 0x694   :  { %v2327_v54 = vadd.f32 %v11803_v2, %v11801_v18  ;;  %2781 = vmatpush.bf16.msra.mxu0 %v7854_v17  ;;  %v7917_v17 = vld [vmem:[#allocation4 + $0x140] sm:$0xf] }
 0x695   :  { %v2160_v44 = vpop.f32.mrf.mxu0  ;;  %v2179_v51 = vpop.f32.mrf.mxu1 }
 0x696   :  { %v2279_v45 = vadd.f32 %v2278_v14, %v2160_v44  ;;  %v2298_v19 = vadd.f32 %v2297_v37, %v2179_v51  ;;  %2328 = vadd.xlane.f32.xlu2 %v2327_v54  ;;  %v9655_v14 = vld [vmem:[#allocation4 + $0xc4] sm:$0xf]  ;;  %v7855_v37 = vld [vmem:[#allocation4 + $0xd0] sm:$0xf0]  ;;  %v7982_v54 = vor.u32 %v9689_v0, %v7981_v48  ;;  %v9641_v48 = vld [vmem:[#allocation4 + $0x4c] sm:$0xf0] }
 0x697   :  { %v7858_v44 = vor.u32 %v9655_v14, %v7855_v37  ;;  %v9687_v51 = vld [vmem:[#allocation4 + $0x1c4] sm:$0xf]  ;;  %v7790_v0 = vor.u32 %v9641_v48, %v7789_v9  ;;  %v9673_v14 = vld [vmem:[#allocation4 + $0x14c] sm:$0xf0]  ;;  %v7882_v48 = vor.u32 %v9660_v60, %v7879_v6  ;;  %v9682_v6 = vld [vmem:[#allocation4 + $0x194] sm:$0xf0] }
 0x698   :  { %v2306_v41 = vadd.f32 %v2279_v45, %v11238_v10  ;;  %v2307_v5 = vadd.f32 %v2298_v19, %v11240_v12  ;;  %v7983_v45 = vld [vmem:[#allocation4 + $0x1d0] sm:$0xf0]  ;;  %2800 = vmatpush.bf16.msra.mxu1 %v7982_v54  ;;  %v9639_v37 = vld [vmem:[#allocation4 + $0x44] sm:$0xf] }
 0x699   :  { %v7986_v19 = vor.u32 %v9687_v51, %v7983_v45  ;;  %2819 = vmatpush.bf16.msra.mxu2 %v7858_v44  ;;  %v7791_v54 = vld [vmem:[#allocation4 + $0x50] sm:$0xf0]  ;;  %v7918_v44 = vor.u32 %v9673_v14, %v7917_v17  ;;  %v9671_v45 = vld [vmem:[#allocation4 + $0x144] sm:$0xf]  ;;  %v9692_v17 = vld [vmem:[#allocation4 + $0x1ec] sm:$0xf] }
 0x69a   :  { %v11809_v63 = vadd.f32 %v2309_v28, %v2306_v41  ;;  %v11811_v7 = vadd.f32 %v2310_v15, %v2307_v5  ;;  %v7837_v41 = vld [vmem:[#allocation4 + $0xa0] sm:$0xf]  ;;  %v9653_v5 = vld [vmem:[#allocation4 + $0xac] sm:$0xf0]  ;;  %v7794_v51 = vor.u32 %v9639_v37, %v7791_v54  ;;  %v7861_v54 = vld [vmem:[#allocation4 + $0xc8] sm:$0xf] }
 0x69b   :  { %2838 = vmatpush.bf16.msra.mxu3 %v7986_v19  ;;  %v7919_v19 = vld [vmem:[#allocation4 + $0x150] sm:$0xf0] }
 0x69c   :  { %v2330_v50 = vadd.f32 %v11811_v7, %v11809_v63 }
 0x69e   :  { %2331 = vadd.xlane.f32.xlu0 %v2330_v50  ;;  %v7965_v50 = vld [vmem:[#allocation4 + $0x1a0] sm:$0xf] }
 0x6f8   :  { %v2323_v11 = vpop.xlane.xlu0 %2322 }
 0x6f9   :  { %v2333_v22 = vmul.f32 %v2323_v11, %v11244_v20  ;;  %v7838_v11 = vor.u32 %v9653_v5, %v7837_v41  ;;  %v7922_v41 = vor.u32 %v9671_v45, %v7919_v19  ;;  %v7773_v5 = vld [vmem:[#allocation4 + $0x20] sm:$0xf] }
 0x6fb   :  { %v11817_v25 = vsub.f32 %v11785_v49, %v2333_v22  ;;  %v11820_v36 = vsub.f32 %v11787_v52, %v2333_v22  ;;  %v9685_v22 = vld [vmem:[#allocation4 + $0x1ac] sm:$0xf0]  ;;  %2782 = vmatpush.bf16.msra.mxu0 %v7838_v11  ;;  %v7901_v11 = vld [vmem:[#allocation4 + $0x120] sm:$0xf] }
 0x6fd   :  { %v2345_v10 = vmul.f32 %v11817_v25, %v11817_v25  ;;  %v2346_v12 = vmul.f32 %v11820_v36, %v11820_v36 }
 0x6ff   :  { %v2353_v26 = vadd.f32 %v2346_v12, %v2345_v10  ;;  %v9651_v10 = vld [vmem:[#allocation4 + $0xa4] sm:$0xf]  ;;  %v7839_v12 = vld [vmem:[#allocation4 + $0xb0] sm:$0xf0] }
 0x700   :  { %v2326_v27 = vpop.xlane.xlu1 %2325 }
 0x701   :  { %v2334_v29 = vmul.f32 %v2326_v27, %v11244_v20  ;;  %2354 = vadd.xlane.f32.xlu1 %v2353_v26  ;;  %v7966_v26 = vor.u32 %v9685_v22, %v7965_v50  ;;  %v7842_v27 = vor.u32 %v9651_v10, %v7839_v12  ;;  %v9637_v50 = vld [vmem:[#allocation4 + $0x2c] sm:$0xf0]  ;;  %v9635_v12 = vld [vmem:[#allocation4 + $0x24] sm:$0xf] }
 0x702   :  { %v7774_v22 = vor.u32 %v9637_v50, %v7773_v5  ;;  %v9669_v10 = vld [vmem:[#allocation4 + $0x12c] sm:$0xf0]  ;;  %v9690_v5 = vld [vmem:[#allocation4 + $0x1d4] sm:$0xf0]  ;;  %v9656_v50 = vld [vmem:[#allocation4 + $0xcc] sm:$0xf] }
 0x703   :  { %v11828_v13 = vsub.f32 %v11793_v42, %v2334_v29  ;;  %v11831_v33 = vsub.f32 %v11795_v59, %v2334_v29  ;;  %v9683_v29 = vld [vmem:[#allocation4 + $0x1a4] sm:$0xf]  ;;  %2801 = vmatpush.bf16.msra.mxu1 %v7966_v26  ;;  %2820 = vmatpush.bf16.msra.mxu2 %v7842_v27  ;;  %v7775_v26 = vld [vmem:[#allocation4 + $0x30] sm:$0xf0] }
 0x705   :  { %v2347_v8 = vmul.f32 %v11828_v13, %v11828_v13  ;;  %v2348_v1 = vmul.f32 %v11831_v33, %v11831_v33 }
 0x707   :  { %v2356_v46 = vadd.f32 %v2348_v1, %v2347_v8  ;;  %v7967_v8 = vld [vmem:[#allocation4 + $0x1b0] sm:$0xf0] }
 0x708   :  { %v7970_v1 = vor.u32 %v9683_v29, %v7967_v8  ;;  %v7902_v29 = vor.u32 %v9669_v10, %v7901_v11  ;;  %v7778_v8 = vor.u32 %v9635_v12, %v7775_v26  ;;  %v7863_v10 = vld [vmem:[#allocation4 + $0xd8] sm:$0xf0]  ;;  %v9688_v12 = vld [vmem:[#allocation4 + $0x1cc] sm:$0xf] }
 0x709   :  { %v2329_v34 = vpop.xlane.xlu2 %2328  ;;  %2357 = vadd.xlane.f32.xlu2 %v2356_v46  ;;  %v7821_v46 = vld [vmem:[#allocation4 + $0x80] sm:$0xf]  ;;  %v7991_v26 = vld [vmem:[#allocation4 + $0x1d8] sm:$0xf0] }
 0x70a   :  { %v2335_v24 = vmul.f32 %v2329_v34, %v11244_v20  ;;  %v9649_v34 = vld [vmem:[#allocation4 + $0x8c] sm:$0xf0]  ;;  %2839 = vmatpush.bf16.msra.mxu3 %v7970_v1  ;;  %v9667_v1 = vld [vmem:[#allocation4 + $0x124] sm:$0xf] }
 0x70c   :  { %v11839_v38 = vsub.f32 %v11801_v18, %v2335_v24  ;;  %v11842_v21 = vsub.f32 %v11803_v2, %v2335_v24  ;;  %v7949_v24 = vld [vmem:[#allocation4 + $0x180] sm:$0xf] }
 0x70e   :  { %v2349_v23 = vmul.f32 %v11839_v38, %v11839_v38  ;;  %v2350_v56 = vmul.f32 %v11842_v21, %v11842_v21 }
 0x710   :  { %v2359_v32 = vadd.f32 %v2350_v56, %v2349_v23  ;;  %v7822_v23 = vor.u32 %v9649_v34, %v7821_v46  ;;  %v9681_v56 = vld [vmem:[#allocation4 + $0x18c] sm:$0xf0]  ;;  %v7903_v46 = vld [vmem:[#allocation4 + $0x130] sm:$0xf0] }
 0x711   :  { %v2332_v39 = vpop.xlane.xlu0 %2331 }
 0x712   :  { %v2336_v28 = vmul.f32 %v2332_v39, %v11244_v20  ;;  %2360 = vadd.xlane.f32.xlu0 %v2359_v32  ;;  %v9647_v32 = vld [vmem:[#allocation4 + $0x84] sm:$0xf]  ;;  %v7823_v39 = vld [vmem:[#allocation4 + $0x90] sm:$0xf0]  ;;  %2783 = vmatpush.bf16.msra.mxu0 %v7822_v23  ;;  %v7757_v23 = vld [vmem:[#allocation4] sm:$0xf] }
 0x714   :  { %v11850_v31 = vsub.f32 %v11809_v63, %v2336_v28  ;;  %v11853_v15 = vsub.f32 %v11811_v7, %v2336_v28  ;;  %v7950_v28 = vor.u32 %v9681_v56, %v7949_v24  ;;  %v7906_v24 = vor.u32 %v9667_v1, %v7903_v46  ;;  %v9633_v56 = vld [vmem:[#allocation4 + $0xc] sm:$0xf0]  ;;  %v7845_v1 = vld [vmem:[#allocation4 + $0xa8] sm:$0xf]  ;;  %v9654_v46 = vld [vmem:[#allocation4 + $0xb4] sm:$0xf0] }
 0x716   :  { %v2351_v35 = vmul.f32 %v11850_v31, %v11850_v31  ;;  %v2352_v30 = vmul.f32 %v11853_v15, %v11853_v15  ;;  %2802 = vmatpush.bf16.msra.mxu1 %v7950_v28  ;;  %2784 = vmatpush.bf16.msra.mxu0 %v7806_v58  ;;  %v7758_v28 = vor.u32 %v9633_v56, %v7757_v23  ;;  %v9686_v23 = vld [vmem:[#allocation4 + $0x1b4] sm:$0xf0]  ;;  %v9652_v56 = vld [vmem:[#allocation4 + $0xac] sm:$0xf] }
 0x717   :  { %v7890_v58 = vor.u32 %v9663_v53, %v7887_v55  ;;  %v7975_v53 = vld [vmem:[#allocation4 + $0x1b8] sm:$0xf0] }
 0x718   :  { %v2362_v43 = vadd.f32 %v2352_v30, %v2351_v35  ;;  %v7826_v35 = vor.u32 %v9647_v32, %v7823_v39  ;;  %v9679_v30 = vld [vmem:[#allocation4 + $0x184] sm:$0xf]  ;;  %v7885_v32 = vld [vmem:[#allocation4 + $0x100] sm:$0xf] }
 0x71a   :  { %2363 = vadd.xlane.f32.xlu1 %v2362_v43  ;;  %v7951_v43 = vld [vmem:[#allocation4 + $0x190] sm:$0xf0]  ;;  %2821 = vmatpush.bf16.msra.mxu2 %v7826_v35  ;;  %v9665_v35 = vld [vmem:[#allocation4 + $0x10c] sm:$0xf0] }
 0x71b   :  { %v7954_v47 = vor.u32 %v9679_v30, %v7951_v43  ;;  %2803 = vmatpush.bf16.msra.mxu1 %v7934_v3  ;;  %2785 = vmatpush.bf16.msra.mxu0 %v7790_v0  ;;  %v9631_v30 = vld [vmem:[#allocation4 + $0x4] sm:$0xf]  ;;  %v7886_v43 = vor.u32 %v9665_v35, %v7885_v32  ;;  %v7878_v3 = vor.u32 %v9662_v62, %v7877_v61  ;;  %v8007_v0 = vld [vmem:[#allocation4 + $0x1f8] sm:$0xf0]  ;;  %v725_v35 = vld [vmem:[%s13016_s24] sm:$0x3] }
 0x71c   :  { %v8010_v37 = vor.u32 %v9692_v17, %v8007_v0  ;;  %v7847_v32 = vld [vmem:[#allocation4 + $0xb8] sm:$0xf0]  ;;  %v7829_v61 = vld [vmem:[#allocation4 + $0x88] sm:$0xf]  ;;  %v9650_v62 = vld [vmem:[#allocation4 + $0x94] sm:$0xf0] }
 0x71d   :  { %2840 = vmatpush.bf16.msra.mxu3 %v7954_v47  ;;  %v7759_v47 = vld [vmem:[#allocation4 + $0x10] sm:$0xf0]  ;;  %v7830_v60 = vor.u32 %v9650_v62, %v7829_v61  ;;  %v7831_v17 = vld [vmem:[#allocation4 + $0x98] sm:$0xf0]  ;;  %v9680_v0 = vld [vmem:[#allocation4 + $0x18c] sm:$0xf] }
 0x71e   :  { %2822 = vmatpush.bf16.msra.mxu2 %v7810_v4  ;;  %v7762_v40 = vor.u32 %v9631_v30, %v7759_v47  ;;  %v9694_v4 = vld [vmem:[#allocation4 + $0x1f4] sm:$0xf0]  ;;  %v9684_v47 = vld [vmem:[#allocation4 + $0x1ac] sm:$0xf] }
 0x71f   :  { %2804 = vmatpush.bf16.msra.mxu1 %v7918_v44  ;;  %2786 = vmatpush.bf16.msra.mxu0 %v7774_v22  ;;  %v8006_v9 = vor.u32 %v9694_v4, %v8005_v57  ;;  %v9658_v44 = vld [vmem:[#allocation4 + $0xd4] sm:$0xf0]  ;;  %v7957_v57 = vld [vmem:[#allocation4 + $0x188] sm:$0xf] }
 0x721   :  { %2841 = vmatpush.bf16.msra.mxu3 %v7938_v16 }
 0x722   :  { %2823 = vmatpush.bf16.msra.mxu2 %v7794_v51  ;;  %v7989_v51 = vld [vmem:[#allocation4 + $0x1c8] sm:$0xf] }
 0x723   :  { %2805 = vmatpush.bf16.msra.mxu1 %v7902_v29  ;;  %2787 = vmatpush.bf16.msra.mxu0 %v7758_v28  ;;  %v7990_v22 = vor.u32 %v9690_v5, %v7989_v51  ;;  %v7994_v29 = vor.u32 %v9688_v12, %v7991_v26  ;;  %v11886_v51 = vperm.slane %v725_v35, 0  ;;  %v9646_v12 = vld [vmem:[#allocation4 + $0x74] sm:$0xf0]  ;;  %v7941_v26 = vld [vmem:[#allocation4 + $0x168] sm:$0xf] }
 0x725   :  { %2842 = vmatpush.bf16.msra.mxu3 %v7922_v41  ;;  %v7862_v41 = vor.u32 %v9658_v44, %v7861_v54 }
 0x726   :  { %2824 = vmatpush.bf16.msra.mxu2 %v7778_v8 }
 0x727   :  { %2806 = vmatpush.bf16.msra.mxu1 %v7886_v43  ;;  %2856 = vmatpush.bf16.msrb.mxu0 %v7878_v3  ;;  %v7850_v43 = vor.u32 %v9652_v56, %v7847_v32  ;;  %v9676_v56 = vld [vmem:[#allocation4 + $0x16c] sm:$0xf]  ;;  %v7943_v32 = vld [vmem:[#allocation4 + $0x178] sm:$0xf0] }
 0x729   :  { %2843 = vmatpush.bf16.msra.mxu3 %v7906_v24  ;;  %v7846_v24 = vor.u32 %v9654_v46, %v7845_v1  ;;  %v9678_v1 = vld [vmem:[#allocation4 + $0x174] sm:$0xf0]  ;;  %v9644_v46 = vld [vmem:[#allocation4 + $0x6c] sm:$0xf] }
 0x72a   :  { %2825 = vmatpush.bf16.msra.mxu2 %v7762_v40  ;;  %v726_v40 = vld [vmem:[%s13017_s14] sm:$0x3] }
 0x72b   :  { %2875 = vmatpush.bf16.msrb.mxu1 %v8006_v9  ;;  %2857 = vmatpush.bf16.msrb.mxu0 %v7862_v41  ;;  %v11888_v41 = vperm.slane %v725_v35, 1 }
 0x72d   :  { %2844 = vmatpush.bf16.msra.mxu3 %v7890_v58  ;;  %v7978_v58 = vor.u32 %v9684_v47, %v7975_v53  ;;  %v7797_v47 = vld [vmem:[#allocation4 + $0x48] sm:$0xf]  ;;  %v9642_v53 = vld [vmem:[#allocation4 + $0x54] sm:$0xf0] }
 0x72e   :  { %2894 = vmatpush.bf16.msrb.mxu2 %v7882_v48  ;;  %v7958_v48 = vor.u32 %v9682_v6, %v7957_v57 }
 0x72f   :  { %2876 = vmatpush.bf16.msrb.mxu1 %v7990_v22  ;;  %2858 = vmatpush.bf16.msrb.mxu0 %v7846_v24  ;;  %v7942_v24 = vor.u32 %v9678_v1, %v7941_v26  ;;  %v7783_v26 = vld [vmem:[#allocation4 + $0x38] sm:$0xf0] }
 0x731   :  { %2913 = vmatpush.bf16.msrb.mxu3 %v8010_v37 }
 0x733   :  { %2859 = vmatpush.bf16.msrb.mxu0 %v7830_v60  ;;  %v9672_v60 = vld [vmem:[#allocation4 + $0x14c] sm:$0xf] }
 0x735   :  { %2914 = vmatpush.bf16.msrb.mxu3 %v7994_v29  ;;  %v11895_v29 = vperm.slane %v726_v40, 1 }
 0x739   :  { %2915 = vmatpush.bf16.msrb.mxu3 %v7978_v58  ;;  %v9640_v58 = vld [vmem:[#allocation4 + $0x4c] sm:$0xf] }
 0x774   :  { %v2355_v27 = vpop.xlane.xlu1 %2354 }
 0x775   :  { %v2365_v34 = vmul.f32 %v2355_v27, %v11244_v20  ;;  %v7866_v27 = vor.u32 %v9656_v50, %v7863_v10  ;;  %v7813_v10 = vld [vmem:[#allocation4 + $0x68] sm:$0xf] }
 0x777   :  { %v11860_v39 = vadd.f32 1e-06, %v2365_v34  ;;  %v7973_v34 = vld [vmem:[#allocation4 + $0x1a8] sm:$0xf]  ;;  %2895 = vmatpush.bf16.msrb.mxu2 %v7866_v27 }
 0x778   :  { %v7974_v30 = vor.u32 %v9686_v23, %v7973_v34  ;;  %v7815_v23 = vld [vmem:[#allocation4 + $0x78] sm:$0xf0] }
 0x779   :  { %10183 = vrsqrt.f32 %v11860_v39  ;;  %vm2379_vm15 = vweird.f32 %v11860_v39 }
 0x77a   :  { %2877 = vmatpush.bf16.msrb.mxu1 %v7974_v30  ;;  %v7818_v30 = vor.u32 %v9644_v46, %v7815_v23  ;;  %v7911_v46 = vld [vmem:[#allocation4 + $0x138] sm:$0xf0] }
 0x77b   :  { %2896 = vmatpush.bf16.msrb.mxu2 %v7850_v43  ;;  %v7946_v43 = vor.u32 %v9676_v56, %v7943_v32  ;;  %v7893_v56 = vld [vmem:[#allocation4 + $0x108] sm:$0xf]  ;;  %v9666_v32 = vld [vmem:[#allocation4 + $0x114] sm:$0xf0] }
 0x77c   :  { %v2358_v16 = vpop.xlane.xlu2 %2357 }
 0x77d   :  { %v2366_v14 = vmul.f32 %v2358_v16, %v11244_v20  ;;  %v9648_v16 = vld [vmem:[#allocation4 + $0x8c] sm:$0xf] }
 0x77e   :  { %v7834_v5 = vor.u32 %v9648_v16, %v7831_v17  ;;  %2878 = vmatpush.bf16.msrb.mxu1 %v7958_v48  ;;  %v7927_v48 = vld [vmem:[#allocation4 + $0x158] sm:$0xf0]  ;;  %v7781_v17 = vld [vmem:[#allocation4 + $0x28] sm:$0xf] }
 0x77f   :  { %v11864_v45 = vpop.eup %10183  ;;  %v11866_v19 = vadd.f32 1e-06, %v2366_v14  ;;  %v7959_v14 = vld [vmem:[#allocation4 + $0x198] sm:$0xf0] }
 0x780   :  { %v2374_v11 = vmul.f32 %v11864_v45, %v11860_v39  ;;  %vm2380_vm14 = vweird.f32 %v11864_v45  ;;  %v7962_v50 = vor.u32 %v9680_v0, %v7959_v14  ;;  %v11893_v39 = vperm.slane %v726_v40, 0  ;;  %2897 = vmatpush.bf16.msrb.mxu2 %v7834_v5  ;;  %v9674_v40 = vld [vmem:[#allocation4 + $0x154] sm:$0xf0] }
 0x781   :  { %10185 = vrsqrt.f32 %v11866_v19  ;;  %vm2381_vm0 = vmor %vm2379_vm15, %vm2380_vm14  ;;  %vm2389_vm2 = vweird.f32 %v11866_v19  ;;  %v9638_v0 = vld [vmem:[#allocation4 + $0x34] sm:$0xf0] }
 0x782   :  { %v2375_v8 = vmul.f32 %v11864_v45, %v2374_v11  ;;  %2916 = vmatpush.bf16.msrb.mxu3 %v7962_v50  ;;  %2879 = vmatpush.bf16.msrb.mxu1 %v7942_v24  ;;  %v9670_v5 = vld [vmem:[#allocation4 + $0x134] sm:$0xf0] }
 0x784   :  { %v2376_v28 = vmul.f32 0.5, %v2375_v8  ;;  %v7814_v8 = vor.u32 %v9646_v12, %v7813_v10  ;;  %2898 = vmatpush.bf16.msrb.mxu2 %v7818_v30  ;;  %v7782_v10 = vor.u32 %v9638_v0, %v7781_v17  ;;  %v9636_v12 = vld [vmem:[#allocation4 + $0x2c] sm:$0xf]  ;;  %v7767_v30 = vld [vmem:[#allocation4 + $0x18] sm:$0xf0] }
 0x785   :  { %v2361_v55 = vpop.xlane.xlu0 %2360  ;;  %v7786_v1 = vor.u32 %v9636_v12, %v7783_v26 }
 0x786   :  { %v2377_v3 = vsub.f32 1.5, %v2376_v28  ;;  %v2367_v4 = vmul.f32 %v2361_v55, %v11244_v20  ;;  %2860 = vmatpush.bf16.msrb.mxu0 %v7814_v8  ;;  %v7798_v55 = vor.u32 %v9642_v53, %v7797_v47  ;;  %2917 = vmatpush.bf16.msrb.mxu3 %v7946_v43 }
 0x787   :  { %v11876_v9 = vpop.eup %10185 }
 0x788   :  { %v2378_v37 = vmul.f32 %v11864_v45, %v2377_v3  ;;  %v2384_v54 = vmul.f32 %v11876_v9, %v11866_v19  ;;  %v11882_v44 = vadd.f32 1e-06, %v2367_v4  ;;  %vm2390_vm1 = vweird.f32 %v11876_v9  ;;  %v7799_v19 = vld [vmem:[#allocation4 + $0x58] sm:$0xf0] }
 0x789   :  { %vm2391_vm3 = vmor %vm2389_vm2, %vm2390_vm1  ;;  %v7802_v16 = vor.u32 %v9640_v58, %v7799_v19 }
 0x78a   :  { %v2382_v11 = vsel %vm2381_vm0, %v11864_v45, %v2378_v37  ;;  %v2385_v22 = vmul.f32 %v11876_v9, %v2384_v54  ;;  %10187 = vrsqrt.f32 %v11882_v44  ;;  %2861 = vmatpush.bf16.msrb.mxu0 %v7798_v55  ;;  %v7930_v37 = vor.u32 %v9672_v60, %v7927_v48  ;;  %v7909_v54 = vld [vmem:[#allocation4 + $0x128] sm:$0xf] }
 0x78b   :  { %v2413_v45 = vmul.f32 %v2382_v11, %v11817_v25  ;;  %v7925_v25 = vld [vmem:[#allocation4 + $0x148] sm:$0xf]  ;;  %v2414_v62 = vmul.f32 %v2382_v11, %v11820_v36  ;;  %2899 = vmatpush.bf16.msrb.mxu2 %v7802_v16  ;;  %v7910_v8 = vor.u32 %v9670_v5, %v7909_v54  ;;  %vm2399_vm5 = vweird.f32 %v11882_v44 }
 0x78c   :  { %v2386_v27 = vmul.f32 0.5, %v2385_v22  ;;  %v7926_v4 = vor.u32 %v9674_v40, %v7925_v25  ;;  %2918 = vmatpush.bf16.msrb.mxu3 %v7930_v37  ;;  %v9664_v25 = vld [vmem:[#allocation4 + $0x10c] sm:$0xf]  ;;  %v7895_v40 = vld [vmem:[#allocation4 + $0x118] sm:$0xf0] }
 0x78d   :  { %v2364_v34 = vpop.xlane.xlu1 %2363  ;;  %v2426_v14 = vmul.f32 %v11886_v51, %v2413_v45  ;;  %v7765_v45 = vld [vmem:[#allocation4 + $0x8] sm:$0xf]  ;;  %v7898_v48 = vor.u32 %v9664_v25, %v7895_v40  ;;  %v8109_v25 = vld [vmem:[#allocation7 + $0xc0] sm:$0xf]  ;;  %v9720_v40 = vld [vmem:[#allocation7 + $0xc4] sm:$0xf0] }
 0x78e   :  { %v2387_v28 = vsub.f32 1.5, %v2386_v27  ;;  %v2368_v35 = vmul.f32 %v2364_v34, %v11244_v20  ;;  %2880 = vmatpush.bf16.msrb.mxu1 %v7926_v4  ;;  %v9668_v27 = vld [vmem:[#allocation4 + $0x12c] sm:$0xf]  ;;  %v9634_v34 = vld [vmem:[#allocation4 + $0x14] sm:$0xf0]  ;;  %2862 = vmatpush.bf16.msrb.mxu0 %v7782_v10 }
 0x78f   :  { %v7914_v23 = vor.u32 %v9668_v27, %v7911_v46  ;;  %v2439_v47 = vadd.f32 %v11893_v39, %v2426_v14  ;;  %2900 = vmatpush.bf16.msrb.mxu2 %v7786_v1  ;;  %v9726_v1 = vld [vmem:[#allocation7 + $0xf4] sm:$0xf0] }
 0x790   :  { %v11901_v61 = vpop.eup %10187  ;;  %v2388_v57 = vmul.f32 %v11876_v9, %v2387_v28  ;;  %v11907_v3 = vadd.f32 1e-06, %v2368_v35  ;;  %v7766_v28 = vor.u32 %v9634_v34, %v7765_v45  ;;  %v9632_v35 = vld [vmem:[#allocation4 + $0xc] sm:$0xf]  ;;  %v8053_v45 = vld [vmem:[#allocation7 + $0x50] sm:$0xf] }
 0x791   :  { %v2394_v6 = vmul.f32 %v11901_v61, %v11882_v44  ;;  %vm2400_vm4 = vweird.f32 %v11901_v61  ;;  %2919 = vmatpush.bf16.msrb.mxu3 %v7914_v23  ;;  %v9706_v34 = vld [vmem:[#allocation7 + $0x54] sm:$0xf0] }
 0x792   :  { %v2392_v36 = vsel %vm2391_vm3, %v11876_v9, %v2388_v57  ;;  %10189 = vrsqrt.f32 %v11907_v3  ;;  %v2427_v9 = vmul.f32 %v11888_v41, %v2414_v62  ;;  %2881 = vmatpush.bf16.msrb.mxu1 %v7910_v8  ;;  %v7894_v57 = vor.u32 %v9666_v32, %v7893_v56  ;;  %2863 = vmatpush.bf16.msrb.mxu0 %v7766_v28  ;;  %vm2401_vm6 = vmor %vm2399_vm5, %vm2400_vm4  ;;  %v8133_v8 = vld [vmem:[#allocation7 + $0xf0] sm:$0xf]  ;;  %v8045_v56 = vld [vmem:[#allocation7 + $0x40] sm:$0xf] }
 0x793   :  { %v2415_v50 = vmul.f32 %v2392_v36, %v11828_v13  ;;  %v2416_v11 = vmul.f32 %v2392_v36, %v11831_v33  ;;  %v2395_v22 = vmul.f32 %v11901_v61, %v2394_v6  ;;  %v7770_v6 = vor.u32 %v9632_v35, %v7767_v30  ;;  %v9704_v32 = vld [vmem:[#allocation7 + $0x44] sm:$0xf0]  ;;  %v8117_v35 = vld [vmem:[#allocation7 + $0xd0] sm:$0xf]  ;;  %v9722_v30 = vld [vmem:[#allocation7 + $0xd4] sm:$0xf0] }
 0x794   :  { %v2440_v62 = vadd.f32 %v11895_v29, %v2427_v9  ;;  %vm2409_vm8 = vweird.f32 %v11907_v3  ;;  %v8134_v46 = vor.u32 %v9726_v1, %v8133_v8  ;;  %v8046_v28 = vor.u32 %v9704_v32, %v8045_v56  ;;  %v9712_v8 = vld [vmem:[#allocation7 + $0x84] sm:$0xf0] }
 0x795   :  { %v2396_v24 = vmul.f32 0.5, %v2395_v22  ;;  %v2428_v13 = vmul.f32 %v11886_v51, %v2415_v50  ;;  %v2429_v33 = vmul.f32 %v11888_v41, %v2416_v11  ;;  %2901 = vmatpush.bf16.msrb.mxu2 %v7770_v6  ;;  %2920 = vmatpush.bf16.msrb.mxu3 %v7898_v48  ;;  %v9718_v6 = vld [vmem:[#allocation7 + $0xb4] sm:$0xf0]  ;;  %v8021_v48 = vld [vmem:[#allocation7 + $0x10] sm:$0xf] }
 0x796   :  { %2882 = vmatpush.bf16.msrb.mxu1 %v7894_v57  ;;  %v9700_v57 = vld [vmem:[#allocation7 + $0x24] sm:$0xf0] }
 0x797   :  { %v2397_v43 = vsub.f32 1.5, %v2396_v24  ;;  %v2441_v53 = vadd.f32 %v11893_v39, %v2428_v13  ;;  %v2442_v55 = vadd.f32 %v11895_v29, %v2429_v33  ;;  %v8054_v24 = vor.u32 %v9706_v34, %v8053_v45  ;;  %v8125_v13 = vld [vmem:[#allocation7 + $0xe0] sm:$0xf]  ;;  %v9724_v33 = vld [vmem:[#allocation7 + $0xe4] sm:$0xf0] }
 0x798   :  { %v10190_v58 = vpop.eup %10189  ;;  %v8126_v23 = vor.u32 %v9724_v33, %v8125_v13  ;;  %v8189_v13 = vld [vmem:[#allocation7 + $0x160] sm:$0xf]  ;;  %v9740_v33 = vld [vmem:[#allocation7 + $0x164] sm:$0xf0] }
 0x799   :  { %v2398_v4 = vmul.f32 %v11901_v61, %v2397_v43  ;;  %v2404_v19 = vmul.f32 %v10190_v58, %v11907_v3  ;;  %v2447_v60 = vpack.c.bf16 %v2441_v53, %v2439_v47  ;;  %v2448_v16 = vpack.c.bf16 %v2442_v55, %v2440_v62  ;;  %v8037_v47 = vld [vmem:[#allocation7 + $0x30] sm:$0xf]  ;;  %v9702_v53 = vld [vmem:[#allocation7 + $0x34] sm:$0xf0]  ;;  %v8029_v62 = vld [vmem:[#allocation7 + $0x20] sm:$0xf] }
 0x79a   :  { %vm2410_vm7 = vweird.f32 %v10190_v58  ;;  %v8118_v43 = vor.u32 %v9722_v30, %v8117_v35  ;;  %v8038_v55 = vor.u32 %v9702_v53, %v8037_v47  ;;  %v8190_v30 = vor.u32 %v9740_v33, %v8189_v13  ;;  %v8261_v53 = vld [vmem:[#allocation7 + $0x1f0] sm:$0xf]  ;;  %v9754_v33 = vld [vmem:[#allocation7 + $0x1d4] sm:$0xf0] }
 0x79b   :  { %v2405_v17 = vmul.f32 %v10190_v58, %v2404_v19  ;;  %2788 = vmatmul.bf16.vlgmr.msra.gmra.mxu0 %v2447_v60  ;;  %2826 = vmatmul.bf16.vlgmr.msra.gmra.mxu2 %v2447_v60  ;;  %v2402_v0 = vsel %vm2401_vm6, %v11901_v61, %v2398_v4  ;;  %vm2411_vm9 = vmor %vm2409_vm8, %vm2410_vm7  ;;  %v8030_v4 = vor.u32 %v9700_v57, %v8029_v62  ;;  %v11944_v19 = vld [vmem:[#allocation6] sm:$0xf]  ;;  %v8245_v13 = vld [vmem:[#allocation7 + $0x1d0] sm:$0xf] }
 0x79c   :  { %2807 = vmatmul.bf16.vlgmr.msra.gmra.mxu1 %v2448_v16  ;;  %2845 = vmatmul.bf16.vlgmr.msra.gmra.mxu3 %v2448_v16  ;;  %v2417_v37 = vmul.f32 %v2402_v0, %v11839_v38  ;;  %v2418_v44 = vmul.f32 %v2402_v0, %v11842_v21  ;;  %v11947_v0 = vperm.slane %v11944_v19, 0  ;;  %v8135_v57 = vld [vmem:[#allocation7 + $0xf8] sm:$0xf0] }
 0x79d   :  { %v2406_v36 = vmul.f32 0.5, %v2405_v17  ;;  %3428 = vmatpush.bf16.msra.mxu1 %v8134_v46  ;;  %v9698_v17 = vld [vmem:[#allocation7 + $0x14] sm:$0xf0] }
 0x79e   :  { %v2430_v61 = vmul.f32 %v11886_v51, %v2417_v37  ;;  %v2431_v22 = vmul.f32 %v11888_v41, %v2418_v44  ;;  %v9716_v37 = vld [vmem:[#allocation7 + $0xa4] sm:$0xf0] }
 0x79f   :  { %v2407_v14 = vsub.f32 1.5, %v2406_v36  ;;  %v8022_v36 = vor.u32 %v9698_v17, %v8021_v48 }
 0x7a0   :  { %v2443_v38 = vadd.f32 %v11893_v39, %v2430_v61  ;;  %v2444_v3 = vadd.f32 %v11895_v29, %v2431_v22 }
 0x7a1   :  { %v2408_v54 = vmul.f32 %v10190_v58, %v2407_v14  ;;  %3429 = vmatpush.bf16.msra.mxu1 %v8126_v23  ;;  %v8093_v14 = vld [vmem:[#allocation7 + $0xa0] sm:$0xf]  ;;  %v9707_v23 = vld [vmem:[#allocation7 + $0x64] sm:$0xf] }
 0x7a2   :  { %v8094_v44 = vor.u32 %v9716_v37, %v8093_v14 }
 0x7a3   :  { %v2412_v5 = vsel %vm2411_vm9, %v10190_v58, %v2408_v54  ;;  %v8110_v58 = vor.u32 %v9720_v40, %v8109_v25  ;;  %v9725_v25 = vld [vmem:[#allocation7 + $0xf4] sm:$0xf] }
 0x7a4   :  { %v2419_v50 = vmul.f32 %v2412_v5, %v11850_v31  ;;  %v2420_v11 = vmul.f32 %v2412_v5, %v11853_v15  ;;  %v8069_v15 = vld [vmem:[#allocation7 + $0x70] sm:$0xf]  ;;  %v8013_v5 = vld [vmem:[#allocation7] sm:$0xf] }
 0x7a5   :  { %3430 = vmatpush.bf16.msra.mxu1 %v8118_v43  ;;  %v8063_v43 = vld [vmem:[#allocation7 + $0x68] sm:$0xf0] }
 0x7a6   :  { %v2432_v10 = vmul.f32 %v11886_v51, %v2419_v50  ;;  %v2433_v12 = vmul.f32 %v11888_v41, %v2420_v11  ;;  %v9710_v51 = vld [vmem:[#allocation7 + $0x74] sm:$0xf0]  ;;  %v9696_v50 = vld [vmem:[#allocation7 + $0x4] sm:$0xf0]  ;;  %v8066_v47 = vor.u32 %v9707_v23, %v8063_v43  ;;  %v9721_v23 = vld [vmem:[#allocation7 + $0xd4] sm:$0xf]  ;;  %v8246_v43 = vor.u32 %v9754_v33, %v8245_v13 }
 0x7a7   :  { %v8070_v41 = vor.u32 %v9710_v51, %v8069_v15  ;;  %v8014_v22 = vor.u32 %v9696_v50, %v8013_v5  ;;  %v9756_v5 = vld [vmem:[#allocation7 + $0x1e4] sm:$0xf0] }
 0x7a8   :  { %v2445_v21 = vadd.f32 %v11893_v39, %v2432_v10  ;;  %v2446_v26 = vadd.f32 %v11895_v29, %v2433_v12  ;;  %v8061_v39 = vld [vmem:[#allocation7 + $0x60] sm:$0xf]  ;;  %v9708_v29 = vld [vmem:[#allocation7 + $0x64] sm:$0xf0]  ;;  %v8085_v10 = vld [vmem:[#allocation7 + $0x90] sm:$0xf] }
 0x7a9   :  { %3409 = vmatpush.bf16.msra.mxu0 %v8070_v41  ;;  %v8062_v9 = vor.u32 %v9708_v29, %v8061_v39  ;;  %3431 = vmatpush.bf16.msra.mxu1 %v8110_v58  ;;  %v9714_v12 = vld [vmem:[#allocation7 + $0x94] sm:$0xf0]  ;;  %v8071_v41 = vld [vmem:[#allocation7 + $0x78] sm:$0xf0] }
 0x7aa   :  { %v2449_v27 = vpack.c.bf16 %v2445_v21, %v2443_v38  ;;  %v2450_v31 = vpack.c.bf16 %v2446_v26, %v2444_v3  ;;  %v11953_v21 = vperm.slane %v11944_v19, 1  ;;  %v8086_v3 = vor.u32 %v9714_v12, %v8085_v10  ;;  %v8197_v26 = vld [vmem:[#allocation7 + $0x170] sm:$0xf]  ;;  %v9723_v12 = vld [vmem:[#allocation7 + $0xe4] sm:$0xf] }
 0x7ac   :  { %2793 = vmatmul.bf16.gmra.mxu0 %v2449_v27  ;;  %2812 = vmatmul.bf16.gmra.mxu1 %v2450_v31 }
 0x7ad   :  { %2831 = vmatmul.bf16.gmra.mxu2 %v2449_v27  ;;  %2850 = vmatmul.bf16.gmra.mxu3 %v2450_v31 }
 0x7ae   :  { %3410 = vmatpush.bf16.msra.mxu0 %v8062_v9  ;;  %v8077_v9 = vld [vmem:[#allocation7 + $0x80] sm:$0xf] }
 0x7af   :  { %v8078_v34 = vor.u32 %v9712_v8, %v8077_v9 }
 0x7b2   :  { %3411 = vmatpush.bf16.msra.mxu0 %v8054_v24 }
 0x7b6   :  { %3412 = vmatpush.bf16.msra.mxu0 %v8046_v28 }
 0x7ba   :  { %3413 = vmatpush.bf16.msra.mxu0 %v8038_v55  ;;  %v9758_v55 = vld [vmem:[#allocation7 + $0x1f4] sm:$0xf0] }
 0x7bc   :  { %2864 = vmatmul.bf16.vlgmr.msrb.gmra.mxu0 %v2447_v60  ;;  %2883 = vmatmul.bf16.vlgmr.msrb.gmra.mxu1 %v2448_v16 }
 0x7bd   :  { %2902 = vmatmul.bf16.vlgmr.msrb.gmra.mxu2 %v2447_v60  ;;  %2921 = vmatmul.bf16.vlgmr.msrb.gmra.mxu3 %v2448_v16  ;;  %v8101_v60 = vld [vmem:[#allocation7 + $0xb0] sm:$0xf] }
 0x7be   :  { %3414 = vmatpush.bf16.msra.mxu0 %v8030_v4  ;;  %v8102_v16 = vor.u32 %v9718_v6, %v8101_v60  ;;  %v8262_v4 = vor.u32 %v9758_v55, %v8261_v53  ;;  %v8138_v60 = vor.u32 %v9725_v25, %v8135_v57  ;;  %v8181_v6 = vld [vmem:[#allocation7 + $0x150] sm:$0xf]  ;;  %v9734_v55 = vld [vmem:[#allocation7 + $0x134] sm:$0xf0]  ;;  %v9701_v57 = vld [vmem:[#allocation7 + $0x34] sm:$0xf] }
 0x7bf   :  { %v8165_v53 = vld [vmem:[#allocation7 + $0x130] sm:$0xf] }
 0x7c0   :  { %3432 = vmatpush.bf16.msra.mxu1 %v8102_v16  ;;  %v9738_v16 = vld [vmem:[#allocation7 + $0x154] sm:$0xf0]  ;;  %3466 = vmatpush.bf16.msra.mxu3 %v8262_v4  ;;  %v8039_v4 = vld [vmem:[#allocation7 + $0x38] sm:$0xf0] }
 0x7c1   :  { %v8182_v37 = vor.u32 %v9738_v16, %v8181_v6  ;;  %v11986_v16 = vperm.slane %v11944_v19, 2 }
 0x7c2   :  { %3415 = vmatpush.bf16.msra.mxu0 %v8022_v36  ;;  %v9705_v36 = vld [vmem:[#allocation7 + $0x54] sm:$0xf] }
 0x7c4   :  { %3433 = vmatpush.bf16.msra.mxu1 %v8094_v44  ;;  %v8055_v44 = vld [vmem:[#allocation7 + $0x58] sm:$0xf0] }
 0x7c6   :  { %3416 = vmatpush.bf16.msra.mxu0 %v8014_v22 }
 0x7c8   :  { %3434 = vmatpush.bf16.msra.mxu1 %v8086_v3  ;;  %v8127_v3 = vld [vmem:[#allocation7 + $0xe8] sm:$0xf0] }
 0x7cc   :  { %2869 = vmatmul.bf16.gmra.mxu0 %v2449_v27  ;;  %2888 = vmatmul.bf16.gmra.mxu1 %v2450_v31 }
 0x7cd   :  { %2907 = vmatmul.bf16.gmra.mxu2 %v2449_v27  ;;  %2926 = vmatmul.bf16.gmra.mxu3 %v2450_v31  ;;  %v9742_v27 = vld [vmem:[#allocation7 + $0x174] sm:$0xf0]  ;;  %v9709_v31 = vld [vmem:[#allocation7 + $0x74] sm:$0xf] }
 0x7ce   :  { %v8198_v51 = vor.u32 %v9742_v27, %v8197_v26  ;;  %v8074_v29 = vor.u32 %v9709_v31, %v8071_v41  ;;  %3435 = vmatpush.bf16.msra.mxu1 %v8078_v34  ;;  %v8058_v26 = vor.u32 %v9705_v36, %v8055_v44  ;;  %v8130_v31 = vor.u32 %v9723_v12, %v8127_v3  ;;  %v9703_v41 = vld [vmem:[#allocation7 + $0x44] sm:$0xf] }
 0x7cf   :  { %v9719_v44 = vld [vmem:[#allocation7 + $0xc4] sm:$0xf] }
 0x7d0   :  { %3447 = vmatpush.bf16.msra.mxu2 %v8198_v51  ;;  %3485 = vmatpush.bf16.msrb.mxu0 %v8074_v29  ;;  %v9736_v51 = vld [vmem:[#allocation7 + $0x144] sm:$0xf0]  ;;  %v9699_v12 = vld [vmem:[#allocation7 + $0x24] sm:$0xf] }
 0x7d2   :  { %3504 = vmatpush.bf16.msrb.mxu1 %v8138_v60 }
 0x7d4   :  { %3448 = vmatpush.bf16.msra.mxu2 %v8190_v30  ;;  %3486 = vmatpush.bf16.msrb.mxu0 %v8066_v47  ;;  %v8119_v47 = vld [vmem:[#allocation7 + $0xd8] sm:$0xf0] }
 0x7d6   :  { %3505 = vmatpush.bf16.msrb.mxu1 %v8130_v31 }
 0x7d8   :  { %3449 = vmatpush.bf16.msra.mxu2 %v8182_v37  ;;  %3487 = vmatpush.bf16.msrb.mxu0 %v8058_v26  ;;  %v9752_v37 = vld [vmem:[#allocation7 + $0x1c4] sm:$0xf0] }
 0x818   :  { %v2789_v54 = vpop.f32.mrf.mxu0 }
 0x819   :  { %v2790_v11 = vadd.f32 %v2789_v54, %v11947_v0  ;;  %v2808_v61 = vpop.f32.mrf.mxu1  ;;  %v8253_v54 = vld [vmem:[#allocation7 + $0x1e0] sm:$0xf] }
 0x81a   :  { %v8254_v27 = vor.u32 %v9756_v5, %v8253_v54  ;;  %v8111_v54 = vld [vmem:[#allocation7 + $0xc8] sm:$0xf0] }
 0x81b   :  { %v11950_v38 = vadd.f32 %v2808_v61, %v2790_v11 }
 0x81c   :  { %3467 = vmatpush.bf16.msra.mxu3 %v8254_v27 }
 0x81d   :  { %v2948_v15 = vmul.f32 0.044715, %v11950_v38  ;;  %v11982_v60 = vmul.f32 0.5, %v11950_v38 }
 0x81e   :  { %v2827_v39 = vpop.f32.mrf.mxu2 }
 0x81f   :  { %v2964_v1 = vmul.f32 %v2948_v15, %v11950_v38  ;;  %v2828_v46 = vadd.f32 %v2827_v39, %v11953_v21  ;;  %v2846_v45 = vpop.f32.mrf.mxu3  ;;  %v8173_v15 = vld [vmem:[#allocation7 + $0x140] sm:$0xf] }
 0x820   :  { %v2791_v24 = vpop.f32.mrf.mxu0  ;;  %3468 = vmatpush.bf16.msra.mxu3 %v8246_v43 }
 0x821   :  { %v2980_v56 = vmul.f32 %v2964_v1, %v11950_v38  ;;  %v11959_v32 = vadd.f32 %v2846_v45, %v2828_v46  ;;  %v2792_v28 = vadd.f32 %v2791_v24, %v11947_v0  ;;  %v2810_v35 = vpop.f32.mrf.mxu1  ;;  %v8174_v46 = vor.u32 %v9736_v51, %v8173_v15  ;;  %v8047_v45 = vld [vmem:[#allocation7 + $0x48] sm:$0xf0] }
 0x822   :  { %v8050_v24 = vor.u32 %v9703_v41, %v8047_v45  ;;  %v9750_v45 = vld [vmem:[#allocation7 + $0x1b4] sm:$0xf0] }
 0x823   :  { %v2996_v40 = vadd.f32 %v2980_v56, %v11950_v38  ;;  %v2949_v58 = vmul.f32 0.044715, %v11959_v32  ;;  %v11964_v62 = vadd.f32 %v2810_v35, %v2792_v28  ;;  %3450 = vmatpush.bf16.msra.mxu2 %v8174_v46  ;;  %v11991_v26 = vmul.f32 0.5, %v11959_v32  ;;  %v8229_v46 = vld [vmem:[#allocation7 + $0x1b0] sm:$0xf] }
 0x824   :  { %3488 = vmatpush.bf16.msrb.mxu0 %v8050_v24 }
 0x825   :  { %v2965_v48 = vmul.f32 %v2949_v58, %v11959_v32  ;;  %v2952_v17 = vmul.f32 0.044715, %v11964_v62  ;;  %v3012_v50 = vmul.f32 0.7978846, %v2996_v40  ;;  %v8122_v58 = vor.u32 %v9721_v23, %v8119_v47  ;;  %v8149_v47 = vld [vmem:[#allocation7 + $0x110] sm:$0xf] }
 0x826   :  { %v2829_v14 = vpop.f32.mrf.mxu2  ;;  %v2936_v24 = vmul.f32 0.5, %v11964_v62  ;;  %v8230_v23 = vor.u32 %v9750_v45, %v8229_v46  ;;  %v9746_v46 = vld [vmem:[#allocation7 + $0x194] sm:$0xf0] }
 0x827   :  { %v2981_v11 = vmul.f32 %v2965_v48, %v11959_v32  ;;  %v2968_v61 = vmul.f32 %v2952_v17, %v11964_v62  ;;  %v2830_v22 = vadd.f32 %v2829_v14, %v11953_v21  ;;  %v2848_v10 = vpop.f32.mrf.mxu3  ;;  %10191 = vtanh.f32 %v3012_v50  ;;  %v8237_v17 = vld [vmem:[#allocation7 + $0x1c0] sm:$0xf]  ;;  %3506 = vmatpush.bf16.msrb.mxu1 %v8122_v58  ;;  %v9697_v58 = vld [vmem:[#allocation7 + $0x14] sm:$0xf] }
 0x828   :  { %v8166_v48 = vor.u32 %v9734_v55, %v8165_v53  ;;  %v8042_v14 = vor.u32 %v9701_v57, %v8039_v4  ;;  %v9730_v53 = vld [vmem:[#allocation7 + $0x114] sm:$0xf0] }
 0x829   :  { %v2997_v39 = vadd.f32 %v2981_v11, %v11959_v32  ;;  %v2984_v29 = vmul.f32 %v2968_v61, %v11964_v62  ;;  %v11973_v9 = vadd.f32 %v2848_v10, %v2830_v22  ;;  %v2794_v8 = vpop.f32.mrf.mxu0  ;;  %v2813_v1 = vpop.f32.mrf.mxu1  ;;  %v8238_v11 = vor.u32 %v9752_v37, %v8237_v17  ;;  %v8157_v22 = vld [vmem:[#allocation7 + $0x120] sm:$0xf]  ;;  %v9732_v10 = vld [vmem:[#allocation7 + $0x124] sm:$0xf0] }
 0x82a   :  { %v2795_v34 = vadd.f32 %v2794_v8, %v11947_v0  ;;  %3451 = vmatpush.bf16.msra.mxu2 %v8166_v48  ;;  %v8114_v61 = vor.u32 %v9719_v44, %v8111_v54  ;;  %v8158_v41 = vor.u32 %v9732_v10, %v8157_v22  ;;  %3489 = vmatpush.bf16.msrb.mxu0 %v8042_v14  ;;  %v8023_v48 = vld [vmem:[#allocation7 + $0x18] sm:$0xf0]  ;;  %v8221_v37 = vld [vmem:[#allocation7 + $0x1a0] sm:$0xf]  ;;  %v8095_v22 = vld [vmem:[#allocation7 + $0xa8] sm:$0xf0] }
 0x82b   :  { %v3013_v56 = vmul.f32 0.7978846, %v2997_v39  ;;  %v3000_v28 = vadd.f32 %v2984_v29, %v11964_v62  ;;  %v2953_v35 = vmul.f32 0.044715, %v11973_v9  ;;  %v8031_v39 = vld [vmem:[#allocation7 + $0x28] sm:$0xf0]  ;;  %3469 = vmatpush.bf16.msra.mxu3 %v8238_v11  ;;  %v8026_v14 = vor.u32 %v9697_v58, %v8023_v48 }
 0x82c   :  { %v11978_v30 = vadd.f32 %v2813_v1, %v2795_v34  ;;  %v8034_v1 = vor.u32 %v9699_v12, %v8031_v39  ;;  %v9717_v34 = vld [vmem:[#allocation7 + $0xb4] sm:$0xf]  ;;  %3507 = vmatpush.bf16.msrb.mxu1 %v8114_v61  ;;  %v9715_v61 = vld [vmem:[#allocation7 + $0xa4] sm:$0xf]  ;;  %v8141_v10 = vld [vmem:[#allocation7 + $0x100] sm:$0xf] }
 0x82d   :  { %10193 = vtanh.f32 %v3013_v56  ;;  %v3016_v25 = vmul.f32 0.7978846, %v3000_v28  ;;  %v2969_v40 = vmul.f32 %v2953_v35, %v11973_v9  ;;  %v10192_v3 = vpop.eup %10191  ;;  %v8103_v56 = vld [vmem:[#allocation7 + $0xb8] sm:$0xf0]  ;;  %v8015_v39 = vld [vmem:[#allocation7 + $0x8] sm:$0xf0] }
 0x82e   :  { %v2956_v6 = vmul.f32 0.044715, %v11978_v30  ;;  %v3044_v28 = vadd.f32 1.0, %v10192_v3  ;;  %3452 = vmatpush.bf16.msra.mxu2 %v8158_v41  ;;  %v8106_v43 = vor.u32 %v9717_v34, %v8103_v56  ;;  %3490 = vmatpush.bf16.msrb.mxu0 %v8034_v1  ;;  %v9695_v41 = vld [vmem:[#allocation7 + $0x4] sm:$0xf] }
 0x82f   :  { %10195 = vtanh.f32 %v3016_v25  ;;  %v2985_v36 = vmul.f32 %v2969_v40, %v11973_v9  ;;  %v12004_v25 = vmul.f32 0.5, %v11973_v9  ;;  %v8150_v40 = vor.u32 %v9730_v53, %v8149_v47  ;;  %3470 = vmatpush.bf16.msra.mxu3 %v8230_v23  ;;  %v8213_v1 = vld [vmem:[#allocation7 + $0x190] sm:$0xf]  ;;  %v8087_v23 = vld [vmem:[#allocation7 + $0x98] sm:$0xf0] }
 0x830   :  { %v2972_v38 = vmul.f32 %v2956_v6, %v11978_v30  ;;  %v2832_v5 = vpop.f32.mrf.mxu2  ;;  %v2851_v50 = vpop.f32.mrf.mxu3  ;;  %3508 = vmatpush.bf16.msrb.mxu1 %v8106_v43  ;;  %v8214_v43 = vor.u32 %v9746_v46, %v8213_v1  ;;  %v9741_v47 = vld [vmem:[#allocation7 + $0x174] sm:$0xf]  ;;  %v8199_v53 = vld [vmem:[#allocation7 + $0x178] sm:$0xf0] }
 0x831   :  { %v3001_v27 = vadd.f32 %v2985_v36, %v11973_v9  ;;  %v2833_v31 = vadd.f32 %v2832_v5, %v11953_v21  ;;  %v2796_v15 = vpop.f32.mrf.mxu0  ;;  %v2815_v51 = vpop.f32.mrf.mxu1  ;;  %v9748_v9 = vld [vmem:[#allocation7 + $0x1a4] sm:$0xf0]  ;;  %v3060_v5 = vmul.f32 %v3044_v28, %v11982_v60 }
 0x832   :  { %v2797_v29 = vadd.f32 %v2796_v15, %v11947_v0  ;;  %v2988_v8 = vmul.f32 %v2972_v38, %v11978_v30  ;;  %3453 = vmatpush.bf16.msra.mxu2 %v8150_v40  ;;  %v8222_v11 = vor.u32 %v9748_v9, %v8221_v37  ;;  %v8098_v15 = vor.u32 %v9715_v61, %v8095_v22  ;;  %v8205_v37 = vld [vmem:[#allocation7 + $0x180] sm:$0xf]  ;;  %v9711_v9 = vld [vmem:[#allocation7 + $0x84] sm:$0xf] }
 0x833   :  { %v10194_v32 = vpop.eup %10193  ;;  %v3017_v13 = vmul.f32 0.7978846, %v3001_v27  ;;  %v11998_v33 = vadd.f32 %v2851_v50, %v2833_v31  ;;  %3491 = vmatpush.bf16.msrb.mxu0 %v8026_v14  ;;  %v8202_v14 = vor.u32 %v9741_v47, %v8199_v53 }
 0x834   :  { %v12000_v35 = vadd.f32 %v2815_v51, %v2797_v29  ;;  %v3004_v0 = vadd.f32 %v2988_v8, %v11978_v30  ;;  %v3045_v57 = vadd.f32 1.0, %v10194_v32  ;;  %v9728_v51 = vld [vmem:[#allocation7 + $0x104] sm:$0xf0]  ;;  %3471 = vmatpush.bf16.msra.mxu3 %v8222_v11  ;;  %3509 = vmatpush.bf16.msrb.mxu1 %v8098_v15 }
 0x835   :  { %v10196_v55 = vpop.eup %10195  ;;  %10197 = vtanh.f32 %v3017_v13  ;;  %v2957_v62 = vmul.f32 0.044715, %v11998_v33  ;;  %v8018_v13 = vor.u32 %v9695_v41, %v8015_v39  ;;  %v8263_v41 = vld [vmem:[#allocation7 + $0x1f8] sm:$0xf0] }
 0x836   :  { %v2960_v4 = vmul.f32 0.044715, %v12000_v35  ;;  %v3048_v6 = vadd.f32 1.0, %v10196_v55  ;;  %v3020_v36 = vmul.f32 0.7978846, %v3004_v0 }
 0x837   :  { %v2973_v17 = vmul.f32 %v2957_v62, %v11998_v33  ;;  %v12026_v62 = vperm.slane %v11944_v19, 3  ;;  %3492 = vmatpush.bf16.msrb.mxu0 %v8018_v13  ;;  %v9744_v19 = vld [vmem:[#allocation7 + $0x184] sm:$0xf0] }
 0x838   :  { %v2976_v44 = vmul.f32 %v2960_v4, %v12000_v35  ;;  %v2834_v54 = vpop.f32.mrf.mxu2  ;;  %v2853_v38 = vpop.f32.mrf.mxu3  ;;  %v3064_v50 = vmul.f32 %v3048_v6, %v2936_v24  ;;  %10199 = vtanh.f32 %v3020_v36  ;;  %v8142_v24 = vor.u32 %v9728_v51, %v8141_v10  ;;  %3472 = vmatpush.bf16.msra.mxu3 %v8214_v43  ;;  %v9757_v51 = vld [vmem:[#allocation7 + $0x1f4] sm:$0xf] }
 0x839   :  { %v2835_v12 = vadd.f32 %v2834_v54, %v11953_v21  ;;  %v2865_v3 = vpop.f32.mrf.mxu0  ;;  %v2884_v27 = vpop.f32.mrf.mxu1  ;;  %v2989_v31 = vmul.f32 %v2973_v17, %v11998_v33  ;;  %v9713_v21 = vld [vmem:[#allocation7 + $0x94] sm:$0xf]  ;;  %v3061_v6 = vmul.f32 %v3045_v57, %v11991_v26  ;;  %v8079_v26 = vld [vmem:[#allocation7 + $0x88] sm:$0xf0]  ;;  %v8206_v10 = vor.u32 %v9744_v19, %v8205_v37 }
 0x83a   :  { %v2866_v29 = vadd.f32 %v2865_v3, %v11986_v16  ;;  %v12014_v8 = vpack.c.bf16 %v3064_v50, %v3060_v5  ;;  %v2992_v60 = vmul.f32 %v2976_v44, %v12000_v35  ;;  %3454 = vmatpush.bf16.msra.mxu2 %v8142_v24  ;;  %v8090_v58 = vor.u32 %v9713_v21, %v8087_v23  ;;  %v8191_v3 = vld [vmem:[#allocation7 + $0x168] sm:$0xf0] }
 0x83b   :  { %v10198_v45 = vpop.eup %10197  ;;  %v12017_v34 = vadd.f32 %v2853_v38, %v2835_v12  ;;  %v3005_v32 = vadd.f32 %v2989_v31, %v11998_v33  ;;  %v8082_v12 = vor.u32 %v9711_v9, %v8079_v26  ;;  %v8175_v9 = vld [vmem:[#allocation7 + $0x148] sm:$0xf0] }
 0x83c   :  { %v12020_v56 = vadd.f32 %v2884_v27, %v2866_v29  ;;  %3417 = vmatmul.bf16.vlgmr.msra.gmra.mxu0 %v12014_v8  ;;  %v3049_v28 = vadd.f32 1.0, %v10198_v45  ;;  %v3008_v0 = vadd.f32 %v2992_v60, %v12000_v35  ;;  %3510 = vmatpush.bf16.msrb.mxu1 %v8090_v58  ;;  %v8266_v60 = vor.u32 %v9757_v51, %v8263_v41  ;;  %v9737_v45 = vld [vmem:[#allocation7 + $0x154] sm:$0xf]  ;;  %v8167_v51 = vld [vmem:[#allocation7 + $0x138] sm:$0xf0] }
 0x83d   :  { %v2961_v55 = vmul.f32 0.044715, %v12017_v34  ;;  %v3021_v40 = vmul.f32 0.7978846, %v3005_v32  ;;  %3473 = vmatpush.bf16.msra.mxu3 %v8206_v10  ;;  %v8183_v32 = vld [vmem:[#allocation7 + $0x158] sm:$0xf0] }
 0x83e   :  { %v2950_v4 = vmul.f32 0.044715, %v12020_v56  ;;  %v3065_v48 = vmul.f32 %v3049_v28, %v12004_v25  ;;  %v3024_v17 = vmul.f32 0.7978846, %v3008_v0  ;;  %v10200_v44 = vpop.eup %10199  ;;  %v9739_v25 = vld [vmem:[#allocation7 + $0x164] sm:$0xf]  ;;  %3523 = vmatpush.bf16.msrb.mxu2 %v8202_v14  ;;  %v8186_v28 = vor.u32 %v9737_v45, %v8183_v32 }
 0x83f   :  { %v2977_v36 = vmul.f32 %v2961_v55, %v12017_v34  ;;  %10201 = vtanh.f32 %v3021_v40  ;;  %v8194_v15 = vor.u32 %v9739_v25, %v8191_v3  ;;  %v3052_v21 = vadd.f32 1.0, %v10200_v44  ;;  %v9755_v0 = vld [vmem:[#allocation7 + $0x1e4] sm:$0xf]  ;;  %v9753_v44 = vld [vmem:[#allocation7 + $0x1d4] sm:$0xf] }
 0x840   :  { %v2966_v54 = vmul.f32 %v2950_v4, %v12020_v56  ;;  %v2903_v38 = vpop.f32.mrf.mxu2  ;;  %v2922_v5 = vpop.f32.mrf.mxu3  ;;  %v12033_v50 = vpack.c.bf16 %v3065_v48, %v3061_v6  ;;  %10203 = vtanh.f32 %v3024_v17  ;;  %3511 = vmatpush.bf16.msrb.mxu1 %v8082_v12  ;;  %v2940_v55 = vmul.f32 0.5, %v11978_v30  ;;  %v8255_v6 = vld [vmem:[#allocation7 + $0x1e8] sm:$0xf0]  ;;  %v9735_v48 = vld [vmem:[#allocation7 + $0x144] sm:$0xf] }
 0x841   :  { %v2904_v57 = vadd.f32 %v2903_v38, %v12026_v62  ;;  %v2867_v11 = vpop.f32.mrf.mxu0  ;;  %v2886_v61 = vpop.f32.mrf.mxu1  ;;  %v2993_v22 = vmul.f32 %v2977_v36, %v12017_v34  ;;  %3542 = vmatpush.bf16.msrb.mxu3 %v8266_v60  ;;  %v2944_v58 = vmul.f32 0.5, %v12000_v35  ;;  %v8258_v19 = vor.u32 %v9755_v0, %v8255_v6  ;;  %v9751_v0 = vld [vmem:[#allocation7 + $0x1c4] sm:$0xf] }
 0x842   :  { %v2982_v27 = vmul.f32 %v2966_v54, %v12020_v56  ;;  %v2868_v31 = vadd.f32 %v2867_v11, %v11986_v16  ;;  %3436 = vmatmul.bf16.vlgmr.msra.gmra.mxu1 %v12033_v50  ;;  %3524 = vmatpush.bf16.msrb.mxu2 %v8194_v15  ;;  %v3068_v37 = vmul.f32 %v3052_v21, %v2940_v55  ;;  %v8247_v54 = vld [vmem:[#allocation7 + $0x1d8] sm:$0xf0]  ;;  %v9733_v15 = vld [vmem:[#allocation7 + $0x134] sm:$0xf]  ;;  %v2941_v60 = vmul.f32 0.5, %v11998_v33 }
 0x843   :  { %v12040_v39 = vadd.f32 %v2922_v5, %v2904_v57  ;;  %v3009_v29 = vadd.f32 %v2993_v22, %v12017_v34  ;;  %v8178_v25 = vor.u32 %v9735_v48, %v8175_v9  ;;  %v8250_v22 = vor.u32 %v9753_v44, %v8247_v54  ;;  %v9749_v9 = vld [vmem:[#allocation7 + $0x1b4] sm:$0xf]  ;;  %v8231_v44 = vld [vmem:[#allocation7 + $0x1b8] sm:$0xf0] }
 0x844   :  { %v2998_v1 = vadd.f32 %v2982_v27, %v12020_v56  ;;  %v12044_v46 = vadd.f32 %v2886_v61, %v2868_v31  ;;  %v2945_v32 = vmul.f32 0.5, %v12017_v34 }
 0x845   :  { %v10202_v24 = vpop.eup %10201  ;;  %v2951_v13 = vmul.f32 0.044715, %v12040_v39  ;;  %v3025_v23 = vmul.f32 0.7978846, %v3009_v29  ;;  %3543 = vmatpush.bf16.msrb.mxu3 %v8258_v19 }
 0x846   :  { %v10204_v43 = vpop.eup %10203  ;;  %v3014_v47 = vmul.f32 0.7978846, %v2998_v1  ;;  %v2954_v53 = vmul.f32 0.044715, %v12044_v46  ;;  %3525 = vmatpush.bf16.msrb.mxu2 %v8186_v28  ;;  %v3053_v61 = vadd.f32 1.0, %v10202_v24  ;;  %v8170_v1 = vor.u32 %v9733_v15, %v8167_v51 }
 0x847   :  { %v2967_v40 = vmul.f32 %v2951_v13, %v12040_v39  ;;  %v3056_v4 = vadd.f32 1.0, %v10204_v43  ;;  %10205 = vtanh.f32 %v3025_v23  ;;  %v8239_v43 = vld [vmem:[#allocation7 + $0x1c8] sm:$0xf0]  ;;  %v2934_v15 = vmul.f32 0.5, %v12020_v56 }
 0x848   :  { %v2970_v17 = vmul.f32 %v2954_v53, %v12044_v46  ;;  %v2905_v36 = vpop.f32.mrf.mxu2  ;;  %v2924_v14 = vpop.f32.mrf.mxu3  ;;  %10207 = vtanh.f32 %v3014_v47  ;;  %v3069_v28 = vmul.f32 %v3053_v61, %v2941_v60 }
 0x849   :  { %v2983_v38 = vmul.f32 %v2967_v40, %v12040_v39  ;;  %v2906_v30 = vadd.f32 %v2905_v36, %v12026_v62  ;;  %v2870_v5 = vpop.f32.mrf.mxu0  ;;  %v2889_v26 = vpop.f32.mrf.mxu1  ;;  %v3072_v35 = vmul.f32 %v3056_v4, %v2944_v58  ;;  %3544 = vmatpush.bf16.msrb.mxu3 %v8250_v22  ;;  %v8242_v40 = vor.u32 %v9751_v0, %v8239_v43  ;;  %v9731_v58 = vld [vmem:[#allocation7 + $0x124] sm:$0xf]  ;;  %v8159_v4 = vld [vmem:[#allocation7 + $0x128] sm:$0xf0]  ;;  %v8215_v0 = vld [vmem:[#allocation7 + $0x198] sm:$0xf0] }
 0x84a   :  { %v2986_v57 = vmul.f32 %v2970_v17, %v12044_v46  ;;  %v2871_v11 = vadd.f32 %v2870_v5, %v11986_v16  ;;  %3526 = vmatpush.bf16.msrb.mxu2 %v8178_v25  ;;  %v8162_v36 = vor.u32 %v9731_v58, %v8159_v4  ;;  %v8234_v5 = vor.u32 %v9749_v9, %v8231_v44  ;;  %v9729_v25 = vld [vmem:[#allocation7 + $0x114] sm:$0xf] }
 0x84b   :  { %v2999_v10 = vadd.f32 %v2983_v38, %v12040_v39  ;;  %v12057_v12 = vadd.f32 %v2924_v14, %v2906_v30  ;;  %v12059_v3 = vpack.c.bf16 %v3072_v35, %v3068_v37 }
 0x84c   :  { %v3002_v27 = vadd.f32 %v2986_v57, %v12044_v46  ;;  %v12062_v31 = vadd.f32 %v2889_v26, %v2871_v11  ;;  %v8151_v57 = vld [vmem:[#allocation7 + $0x118] sm:$0xf0] }
 0x84d   :  { %v10206_v41 = vpop.eup %10205  ;;  %v2955_v29 = vmul.f32 0.044715, %v12057_v12  ;;  %3422 = vmatmul.bf16.gmra.mxu0 %v12059_v3  ;;  %v3015_v13 = vmul.f32 0.7978846, %v2999_v10  ;;  %3545 = vmatpush.bf16.msrb.mxu3 %v8242_v40  ;;  %v8154_v22 = vor.u32 %v9729_v25, %v8151_v57  ;;  %v9747_v10 = vld [vmem:[#allocation7 + $0x1a4] sm:$0xf] }
 0x84e   :  { %v3018_v21 = vmul.f32 0.7978846, %v3002_v27  ;;  %v2958_v45 = vmul.f32 0.044715, %v12062_v31  ;;  %v3057_v24 = vadd.f32 1.0, %v10206_v41  ;;  %v10208_v6 = vpop.eup %10207  ;;  %3527 = vmatpush.bf16.msrb.mxu2 %v8170_v1 }
 0x84f   :  { %v2971_v23 = vmul.f32 %v2955_v29, %v12057_v12  ;;  %v3046_v26 = vadd.f32 1.0, %v10208_v6  ;;  %v2938_v29 = vmul.f32 0.5, %v12044_v46 }
 0x850   :  { %10209 = vtanh.f32 %v3018_v21  ;;  %v2974_v47 = vmul.f32 %v2958_v45, %v12062_v31  ;;  %v2908_v53 = vpop.f32.mrf.mxu2  ;;  %v2927_v33 = vpop.f32.mrf.mxu3  ;;  %v3073_v55 = vmul.f32 %v3057_v24, %v2945_v32  ;;  %v8223_v21 = vld [vmem:[#allocation7 + $0x1a8] sm:$0xf0]  ;;  %v9727_v45 = vld [vmem:[#allocation7 + $0x104] sm:$0xf] }
 0x851   :  { %v2987_v34 = vmul.f32 %v2971_v23, %v12057_v12  ;;  %v2909_v48 = vadd.f32 %v2908_v53, %v12026_v62  ;;  %v2872_v17 = vpop.f32.mrf.mxu0  ;;  %10211 = vtanh.f32 %v3015_v13  ;;  %v2891_v30 = vpop.f32.mrf.mxu1  ;;  %3546 = vmatpush.bf16.msrb.mxu3 %v8234_v5  ;;  %v8226_v13 = vor.u32 %v9747_v10, %v8223_v21  ;;  %v8143_v23 = vld [vmem:[#allocation7 + $0x108] sm:$0xf0] }
 0x852   :  { %v2873_v14 = vadd.f32 %v2872_v17, %v11986_v16  ;;  %v12074_v37 = vpack.c.bf16 %v3073_v55, %v3069_v28  ;;  %v2990_v19 = vmul.f32 %v2974_v47, %v12062_v31  ;;  %3528 = vmatpush.bf16.msrb.mxu2 %v8162_v36  ;;  %v9745_v28 = vld [vmem:[#allocation7 + $0x194] sm:$0xf]  ;;  %v3062_v47 = vmul.f32 %v3046_v26, %v2934_v15  ;;  %v8207_v26 = vld [vmem:[#allocation7 + $0x188] sm:$0xf0] }
 0x853   :  { %v3003_v54 = vadd.f32 %v2987_v34, %v12057_v12  ;;  %v12078_v38 = vadd.f32 %v2927_v33, %v2909_v48  ;;  %v8146_v40 = vor.u32 %v9727_v45, %v8143_v23  ;;  %v8218_v58 = vor.u32 %v9745_v28, %v8215_v0  ;;  %v9774_v28 = vld [vmem:[#allocation10 + $0x74] sm:$0xf0]  ;;  %v9773_v0 = vld [vmem:[#allocation10 + $0x74] sm:$0xf] }
 0x854   :  { %v12080_v35 = vadd.f32 %v2891_v30, %v2873_v14  ;;  %3441 = vmatmul.bf16.gmra.mxu1 %v12074_v37  ;;  %v3006_v16 = vadd.f32 %v2990_v19, %v12062_v31  ;;  %v2935_v36 = vmul.f32 0.5, %v12040_v39  ;;  %v2939_v19 = vmul.f32 0.5, %v12057_v12 }
 0x855   :  { %v3019_v11 = vmul.f32 0.7978846, %v3003_v54  ;;  %v2959_v61 = vmul.f32 0.044715, %v12078_v38  ;;  %3547 = vmatpush.bf16.msrb.mxu3 %v8226_v13  ;;  %v9743_v54 = vld [vmem:[#allocation7 + $0x184] sm:$0xf] }
 0x856   :  { %v10210_v27 = vpop.eup %10209  ;;  %v2962_v51 = vmul.f32 0.044715, %v12080_v35  ;;  %v3022_v41 = vmul.f32 0.7978846, %v3006_v16  ;;  %3529 = vmatpush.bf16.msrb.mxu2 %v8154_v22  ;;  %v8210_v57 = vor.u32 %v9743_v54, %v8207_v26  ;;  %v2946_v15 = vmul.f32 0.5, %v12080_v35 }
 0x857   :  { %10213 = vtanh.f32 %v3019_v11  ;;  %v2975_v60 = vmul.f32 %v2959_v61, %v12078_v38  ;;  %v3050_v1 = vadd.f32 1.0, %v10210_v27  ;;  %v10212_v56 = vpop.eup %10211  ;;  %v2942_v27 = vmul.f32 0.5, %v12062_v31  ;;  %v9765_v54 = vld [vmem:[#allocation10 + $0x34] sm:$0xf] }
 0x858   :  { %v2978_v32 = vmul.f32 %v2962_v51, %v12080_v35  ;;  %v2910_v24 = vpop.f32.mrf.mxu2  ;;  %v2929_v33 = vpop.f32.mrf.mxu3  ;;  %v3047_v48 = vadd.f32 1.0, %v10212_v56  ;;  %10215 = vtanh.f32 %v3022_v41 }
 0x859   :  { %v2911_v43 = vadd.f32 %v2910_v24, %v12026_v62  ;;  %v3066_v53 = vmul.f32 %v3050_v1, %v2938_v29  ;;  %v2991_v46 = vmul.f32 %v2975_v60, %v12078_v38  ;;  %3548 = vmatpush.bf16.msrb.mxu3 %v8218_v58  ;;  %v9769_v58 = vld [vmem:[#allocation10 + $0x54] sm:$0xf] }
 0x85a   :  { %v2994_v55 = vmul.f32 %v2978_v32, %v12080_v35  ;;  %3530 = vmatpush.bf16.msrb.mxu2 %v8146_v40  ;;  %v3063_v16 = vmul.f32 %v3047_v48, %v2935_v36  ;;  %v9770_v40 = vld [vmem:[#allocation10 + $0x54] sm:$0xf0]  ;;  %v8301_v48 = vld [vmem:[#allocation10 + $0x40] sm:$0xf] }
 0x85b   :  { %v2930_v4 = vadd.f32 %v2929_v33, %v2911_v43  ;;  %v3078_v6 = vpack.c.bf16 %v3066_v53, %v3062_v47  ;;  %v3007_v34 = vadd.f32 %v2991_v46, %v12078_v38  ;;  %v8327_v43 = vld [vmem:[#allocation10 + $0x78] sm:$0xf0]  ;;  %v9772_v47 = vld [vmem:[#allocation10 + $0x64] sm:$0xf0]  ;;  %v9771_v53 = vld [vmem:[#allocation10 + $0x64] sm:$0xf] }
 0x85c   :  { %v3010_v17 = vadd.f32 %v2994_v55, %v12080_v35  ;;  %v8325_v35 = vld [vmem:[#allocation10 + $0x70] sm:$0xf]  ;;  %v8319_v33 = vld [vmem:[#allocation10 + $0x68] sm:$0xf0] }
 0x85d   :  { %v10214_v62 = vpop.eup %10213  ;;  %v2963_v14 = vmul.f32 0.044715, %v2930_v4  ;;  %3455 = vmatmul.bf16.vlgmr.msra.gmra.mxu2 %v3078_v6  ;;  %3493 = vmatmul.bf16.vlgmr.msrb.gmra.mxu0 %v12014_v8  ;;  %v3023_v5 = vmul.f32 0.7978846, %v3007_v34  ;;  %v2947_v32 = vmul.f32 0.5, %v2930_v4  ;;  %v8326_v56 = vor.u32 %v9774_v28, %v8325_v35 }
 0x85e   :  { %v3051_v9 = vadd.f32 1.0, %v10214_v62  ;;  %v3026_v44 = vmul.f32 0.7978846, %v3010_v17  ;;  %v10216_v39 = vpop.eup %10215  ;;  %3549 = vmatpush.bf16.msrb.mxu3 %v8210_v57  ;;  %v8322_v55 = vor.u32 %v9771_v53, %v8319_v33  ;;  %v9768_v17 = vld [vmem:[#allocation10 + $0x44] sm:$0xf0] }
 0x85f   :  { %v2979_v30 = vmul.f32 %v2963_v14, %v2930_v4  ;;  %v3054_v8 = vadd.f32 1.0, %v10216_v39  ;;  %3765 = vmatpush.bf16.msra.mxu0 %v8326_v56  ;;  %v9767_v62 = vld [vmem:[#allocation10 + $0x44] sm:$0xf]  ;;  %v8302_v36 = vor.u32 %v9768_v17, %v8301_v48  ;;  %v8303_v14 = vld [vmem:[#allocation10 + $0x48] sm:$0xf0] }
 0x860   :  { %v3067_v25 = vmul.f32 %v3051_v9, %v2939_v19  ;;  %10217 = vtanh.f32 %v3026_v44  ;;  %v8306_v19 = vor.u32 %v9767_v62, %v8303_v14  ;;  %v8293_v9 = vld [vmem:[#allocation10 + $0x30] sm:$0xf]  ;;  %v9766_v44 = vld [vmem:[#allocation10 + $0x34] sm:$0xf0]  ;;  %v9763_v57 = vld [vmem:[#allocation10 + $0x24] sm:$0xf] }
 0x861   :  { %v2995_v11 = vmul.f32 %v2979_v30, %v2930_v4  ;;  %10219 = vtanh.f32 %v3023_v5  ;;  %v3070_v29 = vmul.f32 %v3054_v8, %v2942_v27  ;;  %v8294_v30 = vor.u32 %v9766_v44, %v8293_v9  ;;  %v8295_v5 = vld [vmem:[#allocation10 + $0x38] sm:$0xf0]  ;;  %v8287_v39 = vld [vmem:[#allocation10 + $0x28] sm:$0xf0]  ;;  %v9762_v8 = vld [vmem:[#allocation10 + $0x14] sm:$0xf0] }
 0x862   :  { %v3079_v61 = vpack.c.bf16 %v3067_v25, %v3063_v16  ;;  %v8298_v26 = vor.u32 %v9765_v54, %v8295_v5  ;;  %v8285_v16 = vld [vmem:[#allocation10 + $0x20] sm:$0xf]  ;;  %v9764_v25 = vld [vmem:[#allocation10 + $0x24] sm:$0xf0]  ;;  %v8279_v27 = vld [vmem:[#allocation10 + $0x18] sm:$0xf0] }
 0x863   :  { %v3011_v22 = vadd.f32 %v2995_v11, %v2930_v4  ;;  %v8286_v11 = vor.u32 %v9764_v25, %v8285_v16  ;;  %v8381_v28 = vld [vmem:[#allocation10 + $0xe0] sm:$0xf]  ;;  %v9787_v56 = vld [vmem:[#allocation10 + $0xe4] sm:$0xf]  ;;  %v8373_v53 = vld [vmem:[#allocation10 + $0xd0] sm:$0xf] }
 0x864   :  { %3474 = vmatmul.bf16.vlgmr.msra.gmra.mxu3 %v3079_v61  ;;  %3512 = vmatmul.bf16.vlgmr.msrb.gmra.mxu1 %v12033_v50  ;;  %v2943_v50 = vmul.f32 0.5, %v12078_v38  ;;  %v8317_v38 = vld [vmem:[#allocation10 + $0x60] sm:$0xf]  ;;  %v9785_v33 = vld [vmem:[#allocation10 + $0xd4] sm:$0xf] }
 0x865   :  { %v3027_v12 = vmul.f32 0.7978846, %v3011_v22  ;;  %v8318_v46 = vor.u32 %v9772_v47, %v8317_v38  ;;  %v8277_v22 = vld [vmem:[#allocation10 + $0x10] sm:$0xf]  ;;  %v9784_v48 = vld [vmem:[#allocation10 + $0xc4] sm:$0xf0] }
 0x866   :  { %v10218_v10 = vpop.eup %10217  ;;  %v9783_v17 = vld [vmem:[#allocation10 + $0xc4] sm:$0xf]  ;;  %v8357_v9 = vld [vmem:[#allocation10 + $0xb0] sm:$0xf]  ;;  %v9782_v44 = vld [vmem:[#allocation10 + $0xb4] sm:$0xf0] }
 0x867   :  { %v3058_v51 = vadd.f32 1.0, %v10218_v10  ;;  %10221 = vtanh.f32 %v3027_v12  ;;  %v10220_v41 = vpop.eup %10219  ;;  %3766 = vmatpush.bf16.msra.mxu0 %v8318_v46  ;;  %v9761_v12 = vld [vmem:[#allocation10 + $0x14] sm:$0xf]  ;;  %v8278_v10 = vor.u32 %v9762_v8, %v8277_v22  ;;  %v9786_v46 = vld [vmem:[#allocation10 + $0xd4] sm:$0xf0]  ;;  %v8358_v5 = vor.u32 %v9782_v44, %v8357_v9 }
 0x868   :  { %v3055_v21 = vadd.f32 1.0, %v10220_v41  ;;  %v9760_v41 = vld [vmem:[#allocation10 + $0x4] sm:$0xf0]  ;;  %v9781_v54 = vld [vmem:[#allocation10 + $0xb4] sm:$0xf] }
 0x869   :  { %v3074_v60 = vmul.f32 %v3058_v51, %v2946_v15  ;;  %v8282_v15 = vor.u32 %v9761_v12, %v8279_v27  ;;  %v8269_v51 = vld [vmem:[#allocation10] sm:$0xf]  ;;  %v9780_v22 = vld [vmem:[#allocation10 + $0xa4] sm:$0xf0]  ;;  %v9779_v8 = vld [vmem:[#allocation10 + $0xa4] sm:$0xf] }
 0x86a   :  { %v3071_v13 = vmul.f32 %v3055_v21, %v2943_v50  ;;  %v8271_v21 = vld [vmem:[#allocation10 + $0x8] sm:$0xf0] }
 0x86b   :  { %v3082_v1 = vpack.c.bf16 %v3074_v60, %v3070_v29  ;;  %v9759_v29 = vld [vmem:[#allocation10 + $0x4] sm:$0xf] }
 0x86d   :  { %v10222_v45 = vpop.eup %10221  ;;  %3460 = vmatmul.bf16.gmra.mxu2 %v3082_v1  ;;  %3498 = vmatmul.bf16.gmra.mxu0 %v12059_v3  ;;  %v8330_v3 = vor.u32 %v9773_v0, %v8327_v43  ;;  %v9788_v0 = vld [vmem:[#allocation10 + $0xe4] sm:$0xf0] }
 0x86e   :  { %v3059_v24 = vadd.f32 1.0, %v10222_v45  ;;  %v8274_v45 = vor.u32 %v9759_v29, %v8271_v21  ;;  %v8382_v43 = vor.u32 %v9788_v0, %v8381_v28  ;;  %v9778_v21 = vld [vmem:[#allocation10 + $0x94] sm:$0xf0] }
 0x86f   :  { %3803 = vmatpush.bf16.msra.mxu2 %v8330_v3  ;;  %v8383_v3 = vld [vmem:[#allocation10 + $0xe8] sm:$0xf0] }
 0x870   :  { %v3075_v23 = vmul.f32 %v3059_v24, %v2947_v32  ;;  %v8389_v32 = vld [vmem:[#allocation10 + $0xf0] sm:$0xf]  ;;  %v9790_v24 = vld [vmem:[#allocation10 + $0xf4] sm:$0xf0]  ;;  %v8386_v38 = vor.u32 %v9787_v56, %v8383_v3  ;;  %v9776_v56 = vld [vmem:[#allocation10 + $0x84] sm:$0xf0] }
 0x872   :  { %v3083_v31 = vpack.c.bf16 %v3075_v23, %v3071_v13  ;;  %v9789_v13 = vld [vmem:[#allocation10 + $0xf4] sm:$0xf]  ;;  %v8390_v23 = vor.u32 %v9790_v24, %v8389_v32  ;;  %v8343_v24 = vld [vmem:[#allocation10 + $0x98] sm:$0xf0] }
 0x873   :  { %3804 = vmatpush.bf16.msra.mxu2 %v8322_v55 }
 0x874   :  { %3479 = vmatmul.bf16.gmra.mxu3 %v3083_v31  ;;  %3517 = vmatmul.bf16.gmra.mxu1 %v12074_v37  ;;  %v8309_v37 = vld [vmem:[#allocation10 + $0x50] sm:$0xf] }
 0x875   :  { %v8310_v4 = vor.u32 %v9770_v40, %v8309_v37  ;;  %3784 = vmatpush.bf16.msra.mxu1 %v8390_v23  ;;  %v8374_v37 = vor.u32 %v9786_v46, %v8373_v53  ;;  %v8375_v40 = vld [vmem:[#allocation10 + $0xd8] sm:$0xf0] }
 0x877   :  { %3767 = vmatpush.bf16.msra.mxu0 %v8310_v4  ;;  %v12104_v4 = vld [vmem:[#allocation9] sm:$0x3] }
 0x879   :  { %3785 = vmatpush.bf16.msra.mxu1 %v8382_v43  ;;  %v9775_v43 = vld [vmem:[#allocation10 + $0x84] sm:$0xf] }
 0x87b   :  { %3768 = vmatpush.bf16.msra.mxu0 %v8302_v36  ;;  %v8367_v36 = vld [vmem:[#allocation10 + $0xc8] sm:$0xf0] }
 0x87c   :  { %v8370_v14 = vor.u32 %v9783_v17, %v8367_v36 }
 0x87d   :  { %3531 = vmatmul.bf16.vlgmr.msrb.gmra.mxu2 %v3078_v6  ;;  %v8311_v6 = vld [vmem:[#allocation10 + $0x58] sm:$0xf0]  ;;  %3786 = vmatpush.bf16.msra.mxu1 %v8374_v37 }
 0x87e   :  { %v8314_v34 = vor.u32 %v9769_v58, %v8311_v6  ;;  %v8378_v58 = vor.u32 %v9785_v33, %v8375_v40 }
 0x87f   :  { %3769 = vmatpush.bf16.msra.mxu0 %v8294_v30 }
 0x880   :  { %3805 = vmatpush.bf16.msra.mxu2 %v8314_v34  ;;  %v8365_v34 = vld [vmem:[#allocation10 + $0xc0] sm:$0xf] }
 0x881   :  { %v8366_v62 = vor.u32 %v9784_v48, %v8365_v34 }
 0x883   :  { %3770 = vmatpush.bf16.msra.mxu0 %v8286_v11  ;;  %3787 = vmatpush.bf16.msra.mxu1 %v8366_v62 }
 0x884   :  { %3550 = vmatmul.bf16.vlgmr.msrb.gmra.mxu3 %v3079_v61  ;;  %3806 = vmatpush.bf16.msra.mxu2 %v8306_v19  ;;  %v8290_v61 = vor.u32 %v9763_v57, %v8287_v39  ;;  %v3085_v19 = vperm.slane %v12104_v4, 0 }
 0x887   :  { %3771 = vmatpush.bf16.msra.mxu0 %v8278_v10  ;;  %3788 = vmatpush.bf16.msra.mxu1 %v8358_v5  ;;  %v8351_v10 = vld [vmem:[#allocation10 + $0xa8] sm:$0xf0] }
 0x888   :  { %3807 = vmatpush.bf16.msra.mxu2 %v8298_v26  ;;  %v8359_v26 = vld [vmem:[#allocation10 + $0xb8] sm:$0xf0] }
 0x889   :  { %v8362_v16 = vor.u32 %v9781_v54, %v8359_v26 }
 0x88c   :  { %3808 = vmatpush.bf16.msra.mxu2 %v8290_v61  ;;  %v8349_v61 = vld [vmem:[#allocation10 + $0xa0] sm:$0xf] }
 0x88d   :  { %3536 = vmatmul.bf16.gmra.mxu2 %v3082_v1  ;;  %v8270_v1 = vor.u32 %v9760_v41, %v8269_v51  ;;  %v8350_v12 = vor.u32 %v9780_v22, %v8349_v61  ;;  %v8354_v51 = vor.u32 %v9779_v8, %v8351_v10 }
 0x88f   :  { %3772 = vmatpush.bf16.msra.mxu0 %v8270_v1  ;;  %3789 = vmatpush.bf16.msra.mxu1 %v8350_v12  ;;  %v8341_v1 = vld [vmem:[#allocation10 + $0x90] sm:$0xf] }
 0x890   :  { %3809 = vmatpush.bf16.msra.mxu2 %v8282_v15  ;;  %v8342_v32 = vor.u32 %v9778_v21, %v8341_v1 }
 0x893   :  { %3790 = vmatpush.bf16.msra.mxu1 %v8342_v32 }
 0x894   :  { %3555 = vmatmul.bf16.gmra.mxu3 %v3083_v31  ;;  %3810 = vmatpush.bf16.msra.mxu2 %v8274_v45  ;;  %v8391_v31 = vld [vmem:[#allocation10 + $0xf8] sm:$0xf0]  ;;  %v9777_v45 = vld [vmem:[#allocation10 + $0x94] sm:$0xf] }
 0x895   :  { %v8394_v35 = vor.u32 %v9789_v13, %v8391_v31  ;;  %v8346_v23 = vor.u32 %v9777_v45, %v8343_v24 }
 0x897   :  { %3822 = vmatpush.bf16.msra.mxu3 %v8394_v35 }
 0x89b   :  { %3823 = vmatpush.bf16.msra.mxu3 %v8386_v38 }
 0x89f   :  { %3824 = vmatpush.bf16.msra.mxu3 %v8378_v58 }
 0x8a3   :  { %3825 = vmatpush.bf16.msra.mxu3 %v8370_v14 }
 0x8a7   :  { %3826 = vmatpush.bf16.msra.mxu3 %v8362_v16  ;;  %v3086_v16 = vperm.slane %v12104_v4, 1 }
 0x8ab   :  { %3827 = vmatpush.bf16.msra.mxu3 %v8354_v51 }
 0x8af   :  { %3828 = vmatpush.bf16.msra.mxu3 %v8346_v23 }
 0x8b9   :  { %v3418_v60 = vpop.f32.mrf.mxu0 }
 0x8ba   :  { %v3419_v11 = vadd.f32 %v3418_v60, %v3085_v19 }
 0x8bf   :  { %v3437_v50 = vpop.f32.mrf.mxu1 }
 0x8c0   :  { %v3438_v27 = vadd.f32 %v3437_v50, %v3419_v11  ;;  %v8333_v50 = vld [vmem:[#allocation10 + $0x80] sm:$0xf] }
 0x8c1   :  { %v3420_v47 = vpop.f32.mrf.mxu0  ;;  %v8334_v38 = vor.u32 %v9776_v56, %v8333_v50 }
 0x8c2   :  { %v3421_v15 = vadd.f32 %v3420_v47, %v3085_v19  ;;  %v8335_v47 = vld [vmem:[#allocation10 + $0x88] sm:$0xf0] }
 0x8c3   :  { %v8338_v33 = vor.u32 %v9775_v43, %v8335_v47  ;;  %3791 = vmatpush.bf16.msra.mxu1 %v8334_v38 }
 0x8c5   :  { %3829 = vmatpush.bf16.msra.mxu3 %v8338_v33  ;;  %v3842_v33 = vld [vmem:[#allocation12 + $0x8] sm:$0xff] }
 0x8c7   :  { %v3439_v55 = vpop.f32.mrf.mxu1 }
 0x8c8   :  { %v3440_v41 = vadd.f32 %v3439_v55, %v3421_v15 }
 0x8ca   :  { %v3423_v30 = vpop.f32.mrf.mxu0 }
 0x8cb   :  { %v3424_v40 = vadd.f32 %v3423_v30, %v3085_v19 }
 0x8d1   :  { %v3442_v25 = vpop.f32.mrf.mxu1 }
 0x8d2   :  { %v3425_v31 = vpop.f32.mrf.mxu0  ;;  %v3443_v34 = vadd.f32 %v3442_v25, %v3424_v40 }
 0x8d3   :  { %v3426_v48 = vadd.f32 %v3425_v31, %v3085_v19 }
 0x8d9   :  { %v3444_v3 = vpop.f32.mrf.mxu1 }
 0x8da   :  { %v3445_v62 = vadd.f32 %v3444_v3, %v3426_v48  ;;  %v3843_v48 = vld [vmem:[#allocation12 + $0x10] sm:$0xff] }
 0x8e0   :  { %v3456_v6 = vpop.f32.mrf.mxu2 }
 0x8e1   :  { %v3457_v29 = vadd.f32 %v3456_v6, %v3438_v27  ;;  %v3494_v6 = vpop.f32.mrf.mxu0  ;;  %v3513_v17 = vpop.f32.mrf.mxu1 }
 0x8e2   :  { %v3495_v25 = vadd.f32 %v3494_v6, %v3086_v16 }
 0x8e7   :  { %v3475_v57 = vpop.f32.mrf.mxu3 }
 0x8e8   :  { %v3458_v39 = vpop.f32.mrf.mxu2  ;;  %v3476_v60 = vadd.f32 %v3475_v57, %v3457_v29 }
 0x8e9   :  { %v3459_v13 = vadd.f32 %v3458_v39, %v3440_v41  ;;  %v3496_v26 = vpop.f32.mrf.mxu0  ;;  %v3515_v57 = vpop.f32.mrf.mxu1  ;;  %v3514_v39 = vadd.f32 %v3513_v17, %v3495_v25 }
 0x8ea   :  { %v3561_v53 = vadd.f32 %v3476_v60, %v11785_v49  ;;  %v3497_v61 = vadd.f32 %v3496_v26, %v3086_v16 }
 0x8ec   :  { %v3516_v22 = vadd.f32 %v3515_v57, %v3497_v61 }
 0x8ef   :  { %v3477_v35 = vpop.f32.mrf.mxu3 }
 0x8f0   :  { %v3478_v28 = vadd.f32 %v3477_v35, %v3459_v13  ;;  %v3461_v0 = vpop.f32.mrf.mxu2 }
 0x8f1   :  { %v3462_v36 = vadd.f32 %v3461_v0, %v3443_v34  ;;  %v3499_v12 = vpop.f32.mrf.mxu0 }
 0x8f2   :  { %v3563_v46 = vadd.f32 %v3478_v28, %v11793_v42  ;;  %v3500_v45 = vadd.f32 %v3499_v12, %v3086_v16 }
 0x8f4   :  { %v3569_v55 = vpack.c.bf16 %v3563_v46, %v3561_v53  ;;  %v3841_v53 = vld [vmem:[#allocation12] sm:$0xff] }
 0x8f6   :  { %3773 = vmatmul.bf16.vlgmr.msra.gmra.mxu0 %v3569_v55  ;;  %3811 = vmatmul.bf16.vlgmr.msra.gmra.mxu2 %v3569_v55 }
 0x8f7   :  { %v3480_v37 = vpop.f32.mrf.mxu3 }
 0x8f8   :  { %v3463_v58 = vpop.f32.mrf.mxu2  ;;  %v3481_v14 = vadd.f32 %v3480_v37, %v3462_v36 }
 0x8f9   :  { %v3464_v9 = vadd.f32 %v3463_v58, %v3445_v62  ;;  %v3501_v1 = vpop.f32.mrf.mxu0  ;;  %v3844_v62 = vld [vmem:[#allocation12 + $0x18] sm:$0xff] }
 0x8fa   :  { %v3565_v54 = vadd.f32 %v3481_v14, %v11801_v18  ;;  %v3518_v18 = vpop.f32.mrf.mxu1  ;;  %v3502_v60 = vadd.f32 %v3501_v1, %v3086_v16 }
 0x8fb   :  { %v3519_v24 = vadd.f32 %v3518_v18, %v3500_v45 }
 0x8ff   :  { %v3482_v49 = vpop.f32.mrf.mxu3 }
 0x900   :  { %v3483_v44 = vadd.f32 %v3482_v49, %v3464_v9  ;;  %v3532_v42 = vpop.f32.mrf.mxu2 }
 0x901   :  { %v3533_v8 = vadd.f32 %v3532_v42, %v3514_v39 }
 0x902   :  { %v3567_v5 = vadd.f32 %v3483_v44, %v11809_v63  ;;  %v3520_v32 = vpop.f32.mrf.mxu1 }
 0x903   :  { %v3521_v23 = vadd.f32 %v3520_v32, %v3502_v60 }
 0x904   :  { %v3571_v30 = vpack.c.bf16 %v3567_v5, %v3565_v54 }
 0x906   :  { %3778 = vmatmul.bf16.gmra.mxu0 %v3571_v30  ;;  %3816 = vmatmul.bf16.gmra.mxu2 %v3571_v30 }
 0x907   :  { %v3551_v19 = vpop.f32.mrf.mxu3 }
 0x908   :  { %v3534_v11 = vpop.f32.mrf.mxu2  ;;  %v3552_v10 = vadd.f32 %v3551_v19, %v3533_v8 }
 0x909   :  { %v3535_v27 = vadd.f32 %v3534_v11, %v3516_v22 }
 0x90a   :  { %v3562_v4 = vadd.f32 %v3552_v10, %v11787_v52 }
 0x90f   :  { %v3553_v15 = vpop.f32.mrf.mxu3 }
 0x910   :  { %v3554_v63 = vadd.f32 %v3553_v15, %v3535_v27  ;;  %v3537_v51 = vpop.f32.mrf.mxu2 }
 0x911   :  { %v3538_v31 = vadd.f32 %v3537_v51, %v3519_v24 }
 0x912   :  { %v3564_v41 = vadd.f32 %v3554_v63, %v11795_v59 }
 0x914   :  { %v3570_v29 = vpack.c.bf16 %v3564_v41, %v3562_v4 }
 0x916   :  { %3792 = vmatmul.bf16.vlgmr.msra.gmra.mxu1 %v3570_v29  ;;  %3830 = vmatmul.bf16.vlgmr.msra.gmra.mxu3 %v3570_v29 }
 0x917   :  { %v3556_v21 = vpop.f32.mrf.mxu3 }
 0x918   :  { %v3539_v13 = vpop.f32.mrf.mxu2  ;;  %v3557_v35 = vadd.f32 %v3556_v21, %v3538_v31 }
 0x919   :  { %v3540_v28 = vadd.f32 %v3539_v13, %v3521_v23 }
 0x91a   :  { %v3566_v52 = vadd.f32 %v3557_v35, %v11803_v2 }
 0x91f   :  { %v3558_v0 = vpop.f32.mrf.mxu3 }
 0x920   :  { %v3559_v50 = vadd.f32 %v3558_v0, %v3540_v28 }
 0x922   :  { %v3568_v59 = vadd.f32 %v3559_v50, %v11811_v7 }
 0x924   :  { %v3572_v56 = vpack.c.bf16 %v3568_v59, %v3566_v52 }
 0x926   :  { %3797 = vmatmul.bf16.gmra.mxu1 %v3572_v56  ;;  %3835 = vmatmul.bf16.gmra.mxu3 %v3572_v56 }
 0x973   :  { %v3774_v43 = vpop.f32.mrf.mxu0 }
 0x979   :  { %v3812_v3 = vpop.f32.mrf.mxu2 }
 0x97b   :  { %v3776_v37 = vpop.f32.mrf.mxu0 }
 0x981   :  { %v3814_v2 = vpop.f32.mrf.mxu2 }
 0x983   :  { %v3779_v44 = vpop.f32.mrf.mxu0 }
 0x989   :  { %v3817_v54 = vpop.f32.mrf.mxu2 }
 0x98b   :  { %v3781_v11 = vpop.f32.mrf.mxu0 }
 0x991   :  { %v3819_v61 = vpop.f32.mrf.mxu2 }
 0x993   :  { %v3793_v38 = vpop.f32.mrf.mxu1 }
 0x994   :  { %v3794_v47 = vadd.f32 %v3793_v38, %v3774_v43 }
 0x996   :  { %v12116_v58 = vadd.f32 %v3841_v53, %v3794_v47 }
 0x999   :  { %v3831_v46 = vpop.f32.mrf.mxu3 }
 0x99a   :  { %v3832_v55 = vadd.f32 %v3831_v46, %v3812_v3  ;;  %v8565_v46 = vld [vmem:[%s13018_s27 + $0x150] sm:$0xf] }
 0x99b   :  { %v3795_v40 = vpop.f32.mrf.mxu1 }
 0x99c   :  { %v12118_v6 = vadd.f32 %v3842_v33, %v3832_v55  ;;  %v3796_v34 = vadd.f32 %v3795_v40, %v3776_v37  ;;  %v8757_v55 = vld [vmem:[%s13018_s27 + $0x2d0] sm:$0xf]  ;;  %v9884_v40 = vld [vmem:[%s13018_s27 + $0x2e4] sm:$0xf0] }
 0x99e   :  { %v4117_v7 = vadd.f32 %v12118_v6, %v12116_v58  ;;  %v12122_v9 = vadd.f32 %v3843_v48, %v3796_v34  ;;  %v8758_v34 = vor.u32 %v9884_v40, %v8757_v55  ;;  %v9812_v55 = vld [vmem:[%s13018_s27 + $0xa4] sm:$0xf0] }
 0x9a0   :  { %4118 = vadd.xlane.f32.xlu2 %v4117_v7  ;;  %v8567_v7 = vld [vmem:[%s13018_s27 + $0x168] sm:$0xf0]  ;;  %4759 = vmatpush.bf16.msrb.mxu1 %v8758_v34 }
 0x9a1   :  { %v3833_v17 = vpop.f32.mrf.mxu3  ;;  %v8471_v34 = vld [vmem:[%s13018_s27 + $0xa8] sm:$0xf0] }
 0x9a2   :  { %v3834_v36 = vadd.f32 %v3833_v17, %v3814_v2  ;;  %v9833_v2 = vld [vmem:[%s13018_s27 + $0x154] sm:$0xf] }
 0x9a3   :  { %v3798_v14 = vpop.f32.mrf.mxu1  ;;  %v9881_v17 = vld [vmem:[%s13018_s27 + $0x2d4] sm:$0xf] }
 0x9a4   :  { %v12124_v49 = vadd.f32 %v3844_v62, %v3834_v36  ;;  %v3799_v5 = vadd.f32 %v3798_v14, %v3779_v44  ;;  %v8541_v14 = vld [vmem:[%s13018_s27 + $0x120] sm:$0xf]  ;;  %v9830_v44 = vld [vmem:[%s13018_s27 + $0x134] sm:$0xf0] }
 0x9a6   :  { %v4120_v42 = vadd.f32 %v12124_v49, %v12122_v9  ;;  %v12128_v30 = vadd.f32 %v3841_v53, %v3799_v5  ;;  %v9878_v5 = vld [vmem:[%s13018_s27 + $0x2b4] sm:$0xf0] }
 0x9a8   :  { %4121 = vadd.xlane.f32.xlu0 %v4120_v42  ;;  %v8733_v42 = vld [vmem:[%s13018_s27 + $0x2a0] sm:$0xf] }
 0x9a9   :  { %v3836_v26 = vpop.f32.mrf.mxu3 }
 0x9aa   :  { %v3837_v16 = vadd.f32 %v3836_v26, %v3817_v54  ;;  %v8542_v54 = vor.u32 %v9830_v44, %v8541_v14  ;;  %v9827_v26 = vld [vmem:[%s13018_s27 + $0x124] sm:$0xf]  ;;  %v8445_v44 = vld [vmem:[%s13018_s27 + $0x60] sm:$0xf] }
 0x9ab   :  { %v3800_v19 = vpop.f32.mrf.mxu1 }
 0x9ac   :  { %v12130_v57 = vadd.f32 %v3842_v33, %v3837_v16  ;;  %v3801_v39 = vadd.f32 %v3800_v19, %v3781_v11  ;;  %v9836_v33 = vld [vmem:[%s13018_s27 + $0x164] sm:$0xf0]  ;;  %v8543_v16 = vld [vmem:[%s13018_s27 + $0x138] sm:$0xf0]  ;;  %v8734_v19 = vor.u32 %v9878_v5, %v8733_v42  ;;  %v9875_v11 = vld [vmem:[%s13018_s27 + $0x2a4] sm:$0xf] }
 0x9ad   :  { %v8566_v37 = vor.u32 %v9836_v33, %v8565_v46  ;;  %v8469_v33 = vld [vmem:[%s13018_s27 + $0x90] sm:$0xf]  ;;  %v9806_v42 = vld [vmem:[%s13018_s27 + $0x74] sm:$0xf0] }
 0x9ae   :  { %v4123_v25 = vadd.f32 %v12130_v57, %v12128_v30  ;;  %v12134_v12 = vadd.f32 %v3843_v48, %v3801_v39  ;;  %v8570_v48 = vor.u32 %v9833_v2, %v8567_v7  ;;  %v8735_v39 = vld [vmem:[%s13018_s27 + $0x2b8] sm:$0xf0]  ;;  %4760 = vmatpush.bf16.msrb.mxu1 %v8734_v19  ;;  %v8470_v40 = vor.u32 %v9812_v55, %v8469_v33  ;;  %v9860_v2 = vld [vmem:[%s13018_s27 + $0x224] sm:$0xf0]  ;;  %v9809_v7 = vld [vmem:[%s13018_s27 + $0x94] sm:$0xf] }
 0x9af   :  { %4740 = vmatpush.bf16.msrb.mxu0 %v8566_v37  ;;  %v8661_v37 = vld [vmem:[%s13018_s27 + $0x210] sm:$0xf]  ;;  %v8446_v5 = vor.u32 %v9806_v42, %v8445_v44  ;;  %v8447_v19 = vld [vmem:[%s13018_s27 + $0x78] sm:$0xf0]  ;;  %v9839_v55 = vld [vmem:[%s13018_s27 + $0x184] sm:$0xf] }
 0x9b0   :  { %4124 = vadd.xlane.f32.xlu1 %v4123_v25  ;;  %4778 = vmatpush.bf16.msrb.mxu2 %v8570_v48  ;;  %v8546_v25 = vor.u32 %v9827_v26, %v8543_v16  ;;  %v8662_v48 = vor.u32 %v9860_v2, %v8661_v37  ;;  %v9854_v26 = vld [vmem:[%s13018_s27 + $0x1f4] sm:$0xf0]  ;;  %v9803_v16 = vld [vmem:[%s13018_s27 + $0x64] sm:$0xf]  ;;  %v8591_v37 = vld [vmem:[%s13018_s27 + $0x198] sm:$0xf0] }
 0x9b1   :  { %v3838_v22 = vpop.f32.mrf.mxu3  ;;  %v8573_v2 = vld [vmem:[%s13018_s27 + $0x158] sm:$0xf] }
 0x9b2   :  { %v3839_v8 = vadd.f32 %v3838_v22, %v3819_v61  ;;  %v8738_v61 = vor.u32 %v9875_v11, %v8735_v39  ;;  %v8517_v22 = vld [vmem:[%s13018_s27 + $0xf0] sm:$0xf]  ;;  %v8450_v11 = vor.u32 %v9803_v16, %v8447_v19  ;;  %v9851_v39 = vld [vmem:[%s13018_s27 + $0x1e4] sm:$0xf]  ;;  %v8549_v19 = vld [vmem:[%s13018_s27 + $0x128] sm:$0xf] }
 0x9b3   :  { %4741 = vmatpush.bf16.msrb.mxu0 %v8542_v54  ;;  %v8637_v54 = vld [vmem:[%s13018_s27 + $0x1e0] sm:$0xf] }
 0x9b4   :  { %v12136_v10 = vadd.f32 %v3844_v62, %v3839_v8  ;;  %v8759_v62 = vld [vmem:[%s13018_s27 + $0x2e8] sm:$0xf0]  ;;  %4779 = vmatpush.bf16.msrb.mxu2 %v8546_v25  ;;  %v9824_v8 = vld [vmem:[%s13018_s27 + $0x104] sm:$0xf0]  ;;  %v8638_v25 = vor.u32 %v9854_v26, %v8637_v54  ;;  %v9882_v54 = vld [vmem:[%s13018_s27 + $0x2dc] sm:$0xf] }
 0x9b5   :  { %v8762_v36 = vor.u32 %v9881_v17, %v8759_v62  ;;  %v8474_v17 = vor.u32 %v9809_v7, %v8471_v34  ;;  %v9857_v62 = vld [vmem:[%s13018_s27 + $0x214] sm:$0xf]  ;;  %v9837_v7 = vld [vmem:[%s13018_s27 + $0x16c] sm:$0xf0]  ;;  %v8765_v34 = vld [vmem:[%s13018_s27 + $0x2d8] sm:$0xf] }
 0x9b6   :  { %v4126_v27 = vadd.f32 %v12136_v10, %v12134_v12 }
 0x9b7   :  { %4797 = vmatpush.bf16.msrb.mxu3 %v8762_v36  ;;  %v8663_v36 = vld [vmem:[%s13018_s27 + $0x228] sm:$0xf0] }
 0x9b8   :  { %4127 = vadd.xlane.f32.xlu2 %v4126_v27  ;;  %v8709_v27 = vld [vmem:[%s13018_s27 + $0x270] sm:$0xf]  ;;  %v8666_v14 = vor.u32 %v9857_v62, %v8663_v36  ;;  %v9834_v62 = vld [vmem:[%s13018_s27 + $0x15c] sm:$0xf]  ;;  %v8575_v36 = vld [vmem:[%s13018_s27 + $0x170] sm:$0xf0] }
 0x9b9   :  { %v8578_v42 = vor.u32 %v9834_v62, %v8575_v36  ;;  %v8693_v36 = vld [vmem:[%s13018_s27 + $0x248] sm:$0xf] }
 0x9bb   :  { %4798 = vmatpush.bf16.msrb.mxu3 %v8738_v61  ;;  %v8639_v61 = vld [vmem:[%s13018_s27 + $0x1f8] sm:$0xf0] }
 0xa13   :  { %v4119_v18 = vpop.xlane.xlu2 %4118 }
 0xa14   :  { %v4129_v15 = vmul.f32 %v4119_v18, %v11244_v20  ;;  %v8518_v18 = vor.u32 %v9824_v8, %v8517_v22  ;;  %v8642_v22 = vor.u32 %v9851_v39, %v8639_v61  ;;  %v8421_v8 = vld [vmem:[%s13018_s27 + $0x30] sm:$0xf] }
 0xa16   :  { %v12142_v63 = vsub.f32 %v12116_v58, %v4129_v15  ;;  %v12145_v51 = vsub.f32 %v12118_v6, %v4129_v15  ;;  %v9872_v15 = vld [vmem:[%s13018_s27 + $0x284] sm:$0xf0]  ;;  %4742 = vmatpush.bf16.msrb.mxu0 %v8518_v18  ;;  %v8613_v18 = vld [vmem:[%s13018_s27 + $0x1b0] sm:$0xf] }
 0xa18   :  { %v4141_v4 = vmul.f32 %v12142_v63, %v12142_v63  ;;  %v4142_v41 = vmul.f32 %v12145_v51, %v12145_v51 }
 0xa1a   :  { %v4149_v29 = vadd.f32 %v4142_v41, %v4141_v4  ;;  %v9821_v4 = vld [vmem:[%s13018_s27 + $0xf4] sm:$0xf]  ;;  %v8519_v41 = vld [vmem:[%s13018_s27 + $0x108] sm:$0xf0] }
 0xa1b   :  { %v4122_v1 = vpop.xlane.xlu0 %4121 }
 0xa1c   :  { %v4130_v21 = vmul.f32 %v4122_v1, %v11244_v20  ;;  %4150 = vadd.xlane.f32.xlu0 %v4149_v29  ;;  %v8710_v29 = vor.u32 %v9872_v15, %v8709_v27  ;;  %v8522_v1 = vor.u32 %v9821_v4, %v8519_v41  ;;  %v9800_v27 = vld [vmem:[%s13018_s27 + $0x44] sm:$0xf0]  ;;  %v9797_v41 = vld [vmem:[%s13018_s27 + $0x34] sm:$0xf] }
 0xa1d   :  { %v8422_v15 = vor.u32 %v9800_v27, %v8421_v8  ;;  %v9848_v4 = vld [vmem:[%s13018_s27 + $0x1c4] sm:$0xf0]  ;;  %v9879_v8 = vld [vmem:[%s13018_s27 + $0x2bc] sm:$0xf0]  ;;  %v9828_v27 = vld [vmem:[%s13018_s27 + $0x12c] sm:$0xf] }
 0xa1e   :  { %v12153_v45 = vsub.f32 %v12122_v9, %v4130_v21  ;;  %v12156_v32 = vsub.f32 %v12124_v49, %v4130_v21  ;;  %v9869_v21 = vld [vmem:[%s13018_s27 + $0x274] sm:$0xf]  ;;  %4761 = vmatpush.bf16.msrb.mxu1 %v8710_v29  ;;  %4780 = vmatpush.bf16.msrb.mxu2 %v8522_v1  ;;  %v8423_v29 = vld [vmem:[%s13018_s27 + $0x48] sm:$0xf0]  ;;  %v8614_v1 = vor.u32 %v9848_v4, %v8613_v18  ;;  %v8551_v4 = vld [vmem:[%s13018_s27 + $0x140] sm:$0xf0] }
 0xa20   :  { %v4143_v24 = vmul.f32 %v12153_v45, %v12153_v45  ;;  %v4144_v60 = vmul.f32 %v12156_v32, %v12156_v32 }
 0xa22   :  { %v4152_v13 = vadd.f32 %v4144_v60, %v4143_v24  ;;  %v8711_v24 = vld [vmem:[%s13018_s27 + $0x288] sm:$0xf0] }
 0xa23   :  { %v4125_v23 = vpop.xlane.xlu1 %4124  ;;  %v8714_v60 = vor.u32 %v9869_v21, %v8711_v24  ;;  %v8426_v21 = vor.u32 %v9797_v41, %v8423_v29  ;;  %v9845_v24 = vld [vmem:[%s13018_s27 + $0x1b4] sm:$0xf]  ;;  %v9876_v41 = vld [vmem:[%s13018_s27 + $0x2ac] sm:$0xf]  ;;  %v8743_v29 = vld [vmem:[%s13018_s27 + $0x2c0] sm:$0xf0] }
 0xa24   :  { %v4131_v31 = vmul.f32 %v4125_v23, %v11244_v20  ;;  %4153 = vadd.xlane.f32.xlu1 %v4152_v13  ;;  %v8493_v13 = vld [vmem:[%s13018_s27 + $0xc0] sm:$0xf]  ;;  %v9818_v23 = vld [vmem:[%s13018_s27 + $0xd4] sm:$0xf0] }
 0xa25   :  { %4799 = vmatpush.bf16.msrb.mxu3 %v8714_v60  ;;  %v8615_v60 = vld [vmem:[%s13018_s27 + $0x1c8] sm:$0xf0] }
 0xa26   :  { %v12164_v35 = vsub.f32 %v12128_v30, %v4131_v31  ;;  %v12167_v28 = vsub.f32 %v12130_v57, %v4131_v31  ;;  %v8685_v31 = vld [vmem:[%s13018_s27 + $0x240] sm:$0xf] }
 0xa28   :  { %v4145_v0 = vmul.f32 %v12164_v35, %v12164_v35  ;;  %v4146_v50 = vmul.f32 %v12167_v28, %v12167_v28 }
 0xa2a   :  { %v4155_v52 = vadd.f32 %v4146_v50, %v4145_v0  ;;  %v8494_v0 = vor.u32 %v9818_v23, %v8493_v13  ;;  %v9866_v50 = vld [vmem:[%s13018_s27 + $0x254] sm:$0xf0]  ;;  %v8618_v23 = vor.u32 %v9845_v24, %v8615_v60 }
 0xa2b   :  { %v4128_v59 = vpop.xlane.xlu2 %4127  ;;  %v8525_v60 = vld [vmem:[%s13018_s27 + $0xf8] sm:$0xf] }
 0xa2c   :  { %v4132_v56 = vmul.f32 %v4128_v59, %v11244_v20  ;;  %4156 = vadd.xlane.f32.xlu2 %v4155_v52  ;;  %v9815_v52 = vld [vmem:[%s13018_s27 + $0xc4] sm:$0xf]  ;;  %v8495_v59 = vld [vmem:[%s13018_s27 + $0xd8] sm:$0xf0]  ;;  %4743 = vmatpush.bf16.msrb.mxu0 %v8494_v0  ;;  %v8397_v0 = vld [vmem:[%s13018_s27] sm:$0xf] }
 0xa2e   :  { %v12175_v43 = vsub.f32 %v12134_v12, %v4132_v56  ;;  %v12178_v3 = vsub.f32 %v12136_v10, %v4132_v56  ;;  %v8686_v56 = vor.u32 %v9866_v50, %v8685_v31  ;;  %v9794_v50 = vld [vmem:[%s13018_s27 + $0x14] sm:$0xf0] }
 0xa30   :  { %v4147_v38 = vmul.f32 %v12175_v43, %v12175_v43  ;;  %v4148_v47 = vmul.f32 %v12178_v3, %v12178_v3  ;;  %4762 = vmatpush.bf16.msrb.mxu1 %v8686_v56  ;;  %4744 = vmatpush.bf16.msrb.mxu0 %v8470_v40  ;;  %v9842_v56 = vld [vmem:[%s13018_s27 + $0x194] sm:$0xf0]  ;;  %v8594_v40 = vor.u32 %v9839_v55, %v8591_v37  ;;  %v3853_v55 = vld [vmem:[#allocation13] sm:$0x3] }
 0xa32   :  { %v4158_v53 = vadd.f32 %v4148_v47, %v4147_v38  ;;  %v8498_v38 = vor.u32 %v9815_v52, %v8495_v59  ;;  %v9863_v47 = vld [vmem:[%s13018_s27 + $0x244] sm:$0xf]  ;;  %v8589_v52 = vld [vmem:[%s13018_s27 + $0x180] sm:$0xf]  ;;  %v8398_v59 = vor.u32 %v9794_v50, %v8397_v0  ;;  %v9873_v0 = vld [vmem:[%s13018_s27 + $0x28c] sm:$0xf0] }
 0xa33   :  { %v9822_v50 = vld [vmem:[%s13018_s27 + $0xfc] sm:$0xf] }
 0xa34   :  { %4159 = vadd.xlane.f32.xlu0 %v4158_v53  ;;  %v8687_v53 = vld [vmem:[%s13018_s27 + $0x258] sm:$0xf0]  ;;  %4781 = vmatpush.bf16.msrb.mxu2 %v8498_v38  ;;  %v9791_v38 = vld [vmem:[%s13018_s27 + $0x4] sm:$0xf] }
 0xa35   :  { %v8690_v46 = vor.u32 %v9863_v47, %v8687_v53  ;;  %4763 = vmatpush.bf16.msrb.mxu1 %v8662_v48  ;;  %4745 = vmatpush.bf16.msrb.mxu0 %v8446_v5  ;;  %v8399_v47 = vld [vmem:[%s13018_s27 + $0x18] sm:$0xf0]  ;;  %v8574_v48 = vor.u32 %v9837_v7, %v8573_v2  ;;  %v8767_v5 = vld [vmem:[%s13018_s27 + $0x2f0] sm:$0xf0]  ;;  %v8501_v7 = vld [vmem:[%s13018_s27 + $0xc8] sm:$0xf] }
 0xa36   :  { %v8402_v33 = vor.u32 %v9791_v38, %v8399_v47  ;;  %v8770_v16 = vor.u32 %v9882_v54, %v8767_v5  ;;  %v9816_v5 = vld [vmem:[%s13018_s27 + $0xcc] sm:$0xf] }
 0xa37   :  { %4800 = vmatpush.bf16.msrb.mxu3 %v8690_v46  ;;  %v8590_v46 = vor.u32 %v9842_v56, %v8589_v52  ;;  %v8527_v52 = vld [vmem:[%s13018_s27 + $0x110] sm:$0xf0] }
 0xa38   :  { %4782 = vmatpush.bf16.msrb.mxu2 %v8474_v17  ;;  %v9885_v17 = vld [vmem:[%s13018_s27 + $0x2ec] sm:$0xf0]  ;;  %v8530_v47 = vor.u32 %v9822_v50, %v8527_v52  ;;  %v9858_v50 = vld [vmem:[%s13018_s27 + $0x21c] sm:$0xf]  ;;  %v8671_v52 = vld [vmem:[%s13018_s27 + $0x230] sm:$0xf0] }
 0xa39   :  { %4764 = vmatpush.bf16.msrb.mxu1 %v8638_v25  ;;  %4746 = vmatpush.bf16.msrb.mxu0 %v8422_v15  ;;  %v8766_v44 = vor.u32 %v9885_v17, %v8765_v34  ;;  %v9831_v25 = vld [vmem:[%s13018_s27 + $0x13c] sm:$0xf0] }
 0xa3a   :  { %v9819_v34 = vld [vmem:[%s13018_s27 + $0xdc] sm:$0xf0] }
 0xa3b   :  { %4801 = vmatpush.bf16.msrb.mxu3 %v8666_v14  ;;  %v8502_v62 = vor.u32 %v9819_v34, %v8501_v7 }
 0xa3c   :  { %4783 = vmatpush.bf16.msrb.mxu2 %v8450_v11  ;;  %v8741_v11 = vld [vmem:[%s13018_s27 + $0x2a8] sm:$0xf] }
 0xa3d   :  { %4765 = vmatpush.bf16.msrb.mxu1 %v8614_v1  ;;  %4747 = vmatpush.bf16.msrb.mxu0 %v8398_v59  ;;  %v8742_v15 = vor.u32 %v9879_v8, %v8741_v11  ;;  %v8554_v1 = vor.u32 %v9828_v27, %v8551_v4  ;;  %v12304_v11 = vperm.slane %v3853_v55, 1  ;;  %v8669_v4 = vld [vmem:[%s13018_s27 + $0x218] sm:$0xf] }
 0xa3f   :  { %4802 = vmatpush.bf16.msrb.mxu3 %v8642_v22  ;;  %v8550_v22 = vor.u32 %v9831_v25, %v8549_v19  ;;  %v3854_v19 = vld [vmem:[#allocation15] sm:$0x3]  ;;  %v12302_v25 = vperm.slane %v3853_v55, 0 }
 0xa40   :  { %4784 = vmatpush.bf16.msrb.mxu2 %v8426_v21  ;;  %v8746_v21 = vor.u32 %v9876_v41, %v8743_v29 }
 0xa41   :  { %4766 = vmatpush.bf16.msrb.mxu1 %v8590_v46  ;;  %4816 = vmatpush.bf16.msra.mxu0 %v8574_v48  ;;  %v9870_v46 = vld [vmem:[%s13018_s27 + $0x27c] sm:$0xf] }
 0xa43   :  { %4803 = vmatpush.bf16.msrb.mxu3 %v8618_v23  ;;  %v8717_v23 = vld [vmem:[%s13018_s27 + $0x278] sm:$0xf] }
 0xa44   :  { %4785 = vmatpush.bf16.msrb.mxu2 %v8402_v33  ;;  %v8718_v38 = vor.u32 %v9873_v0, %v8717_v23  ;;  %v8719_v33 = vld [vmem:[%s13018_s27 + $0x290] sm:$0xf0] }
 0xa45   :  { %4835 = vmatpush.bf16.msra.mxu1 %v8766_v44  ;;  %4817 = vmatpush.bf16.msra.mxu0 %v8550_v22  ;;  %v8695_v22 = vld [vmem:[%s13018_s27 + $0x260] sm:$0xf0] }
 0xa47   :  { %4804 = vmatpush.bf16.msrb.mxu3 %v8594_v40  ;;  %v8722_v40 = vor.u32 %v9870_v46, %v8719_v33 }
 0xa48   :  { %4854 = vmatpush.bf16.msra.mxu2 %v8578_v42 }
 0xa49   :  { %4836 = vmatpush.bf16.msra.mxu1 %v8742_v15  ;;  %v9813_v15 = vld [vmem:[%s13018_s27 + $0xac] sm:$0xf0] }
 0xa4b   :  { %4873 = vmatpush.bf16.msra.mxu3 %v8770_v16  ;;  %v9864_v16 = vld [vmem:[%s13018_s27 + $0x24c] sm:$0xf] }
 0xa4c   :  { %4855 = vmatpush.bf16.msra.mxu2 %v8554_v1  ;;  %v8698_v27 = vor.u32 %v9864_v16, %v8695_v22  ;;  %v9861_v1 = vld [vmem:[%s13018_s27 + $0x22c] sm:$0xf0] }
 0xa4d   :  { %4837 = vmatpush.bf16.msra.mxu1 %v8718_v38  ;;  %v9807_v38 = vld [vmem:[%s13018_s27 + $0x7c] sm:$0xf0]  ;;  %v9849_v22 = vld [vmem:[%s13018_s27 + $0x1cc] sm:$0xf0] }
 0xa4f   :  { %4874 = vmatpush.bf16.msra.mxu3 %v8746_v21  ;;  %v9810_v21 = vld [vmem:[%s13018_s27 + $0x9c] sm:$0xf] }
 0xa50   :  { %4856 = vmatpush.bf16.msra.mxu2 %v8530_v47  ;;  %v8645_v47 = vld [vmem:[%s13018_s27 + $0x1e8] sm:$0xf] }
 0xa53   :  { %4875 = vmatpush.bf16.msra.mxu3 %v8722_v40  ;;  %v9804_v40 = vld [vmem:[%s13018_s27 + $0x6c] sm:$0xf] }
 0xa57   :  { %4876 = vmatpush.bf16.msra.mxu3 %v8698_v27 }
 0xa8f   :  { %v4151_v13 = vpop.xlane.xlu0 %4150 }
 0xa90   :  { %v4161_v31 = vmul.f32 %v4151_v13, %v11244_v20  ;;  %v9825_v13 = vld [vmem:[%s13018_s27 + $0x10c] sm:$0xf0] }
 0xa92   :  { %v12247_v53 = vadd.f32 1e-06, %v4161_v31  ;;  %v8526_v31 = vor.u32 %v9825_v13, %v8525_v60  ;;  %v12318_v60 = vperm.slane %v3854_v19, 0 }
 0xa94   :  { %10223 = vrsqrt.f32 %v12247_v53  ;;  %4818 = vmatpush.bf16.msra.mxu0 %v8526_v31  ;;  %vm4175_vm11 = vweird.f32 %v12247_v53  ;;  %v8670_v31 = vor.u32 %v9861_v1, %v8669_v4  ;;  %v8431_v4 = vld [vmem:[%s13018_s27 + $0x50] sm:$0xf0] }
 0xa97   :  { %v4154_v14 = vpop.xlane.xlu1 %4153 }
 0xa98   :  { %v4162_v26 = vmul.f32 %v4154_v14, %v11244_v20  ;;  %v9867_v14 = vld [vmem:[%s13018_s27 + $0x25c] sm:$0xf0]  ;;  %4819 = vmatpush.bf16.msra.mxu0 %v8502_v62 }
 0xa99   :  { %v8694_v54 = vor.u32 %v9867_v14, %v8693_v36  ;;  %v8455_v36 = vld [vmem:[%s13018_s27 + $0x80] sm:$0xf0] }
 0xa9a   :  { %v12264_v39 = vpop.eup %10223  ;;  %v12266_v61 = vadd.f32 1e-06, %v4162_v26  ;;  %v8503_v26 = vld [vmem:[%s13018_s27 + $0xe0] sm:$0xf0] }
 0xa9b   :  { %v4170_v18 = vmul.f32 %v12264_v39, %v12247_v53  ;;  %vm4176_vm10 = vweird.f32 %v12264_v39  ;;  %v8506_v53 = vor.u32 %v9816_v5, %v8503_v26  ;;  %4838 = vmatpush.bf16.msra.mxu1 %v8694_v54  ;;  %v8647_v54 = vld [vmem:[%s13018_s27 + $0x200] sm:$0xf0]  ;;  %v9801_v5 = vld [vmem:[%s13018_s27 + $0x4c] sm:$0xf0]  ;;  %v12344_v26 = vperm.slane %v3854_v19, 1 }
 0xa9c   :  { %10225 = vrsqrt.f32 %v12266_v61  ;;  %vm4177_vm12 = vmor %vm4175_vm11, %vm4176_vm10  ;;  %vm4185_vm15 = vweird.f32 %v12266_v61 }
 0xa9d   :  { %v4171_v24 = vmul.f32 %v12264_v39, %v4170_v18  ;;  %v8477_v18 = vld [vmem:[%s13018_s27 + $0x98] sm:$0xf]  ;;  %4857 = vmatpush.bf16.msra.mxu2 %v8506_v53 }
 0xa9e   :  { %v8478_v29 = vor.u32 %v9813_v15, %v8477_v18  ;;  %v8621_v53 = vld [vmem:[%s13018_s27 + $0x1b8] sm:$0xf]  ;;  %v9798_v15 = vld [vmem:[%s13018_s27 + $0x3c] sm:$0xf] }
 0xa9f   :  { %v4172_v59 = vmul.f32 0.5, %v4171_v24  ;;  %v4157_v56 = vpop.xlane.xlu2 %4156  ;;  %v8479_v24 = vld [vmem:[%s13018_s27 + $0xb0] sm:$0xf0]  ;;  %4839 = vmatpush.bf16.msra.mxu1 %v8670_v31  ;;  %v8622_v18 = vor.u32 %v9849_v22, %v8621_v53  ;;  %v9886_v22 = vld [vmem:[%s13018_s27 + $0x2f4] sm:$0xf0] }
 0xaa0   :  { %v4163_v37 = vmul.f32 %v4157_v56, %v11244_v20  ;;  %v8482_v0 = vor.u32 %v9810_v21, %v8479_v24  ;;  %4820 = vmatpush.bf16.msra.mxu0 %v8478_v29  ;;  %v8453_v56 = vld [vmem:[%s13018_s27 + $0x68] sm:$0xf]  ;;  %v8434_v24 = vor.u32 %v9798_v15, %v8431_v4  ;;  %v9883_v15 = vld [vmem:[%s13018_s27 + $0x2e4] sm:$0xf]  ;;  %v8775_v4 = vld [vmem:[%s13018_s27 + $0x2f8] sm:$0xf0] }
 0xaa1   :  { %v4173_v2 = vsub.f32 1.5, %v4172_v59  ;;  %v8674_v59 = vor.u32 %v9858_v50, %v8671_v52  ;;  %v8454_v55 = vor.u32 %v9807_v38, %v8453_v56  ;;  %v8597_v50 = vld [vmem:[%s13018_s27 + $0x188] sm:$0xf]  ;;  %v9843_v52 = vld [vmem:[%s13018_s27 + $0x19c] sm:$0xf0] }
 0xaa2   :  { %v12289_v48 = vpop.eup %10225  ;;  %v12291_v17 = vadd.f32 1e-06, %v4163_v37  ;;  %v9855_v37 = vld [vmem:[%s13018_s27 + $0x1fc] sm:$0xf0]  ;;  %4858 = vmatpush.bf16.msra.mxu2 %v8482_v0  ;;  %v8407_v56 = vld [vmem:[%s13018_s27 + $0x20] sm:$0xf0] }
 0xaa3   :  { %v4174_v44 = vmul.f32 %v12264_v39, %v4173_v2  ;;  %v4180_v42 = vmul.f32 %v12289_v48, %v12266_v61  ;;  %vm4186_vm14 = vweird.f32 %v12289_v48  ;;  %v8646_v62 = vor.u32 %v9855_v37, %v8645_v47  ;;  %4877 = vmatpush.bf16.msra.mxu3 %v8674_v59 }
 0xaa4   :  { %10227 = vrsqrt.f32 %v12291_v17  ;;  %vm4187_vm0 = vmor %vm4185_vm15, %vm4186_vm14  ;;  %4821 = vmatpush.bf16.msra.mxu0 %v8454_v55  ;;  %v8598_v47 = vor.u32 %v9843_v52, %v8597_v50  ;;  %vm4195_vm2 = vweird.f32 %v12291_v17  ;;  %v9877_v50 = vld [vmem:[%s13018_s27 + $0x2b4] sm:$0xf]  ;;  %v8751_v52 = vld [vmem:[%s13018_s27 + $0x2c8] sm:$0xf0] }
 0xaa5   :  { %v4181_v8 = vmul.f32 %v12289_v48, %v4180_v42  ;;  %v4178_v41 = vsel %vm4177_vm12, %v12264_v39, %v4174_v44  ;;  %v8458_v42 = vor.u32 %v9804_v40, %v8455_v36  ;;  %4840 = vmatpush.bf16.msra.mxu1 %v8646_v62 }
 0xaa6   :  { %v4209_v46 = vmul.f32 %v4178_v41, %v12142_v63  ;;  %v4210_v7 = vmul.f32 %v4178_v41, %v12145_v51  ;;  %v9852_v63 = vld [vmem:[%s13018_s27 + $0x1ec] sm:$0xf]  ;;  %v8429_v51 = vld [vmem:[%s13018_s27 + $0x38] sm:$0xf]  ;;  %v9846_v41 = vld [vmem:[%s13018_s27 + $0x1bc] sm:$0xf] }
 0xaa7   :  { %v4182_v13 = vmul.f32 0.5, %v4181_v8  ;;  %v4160_v23 = vpop.xlane.xlu0 %4159  ;;  %v8650_v61 = vor.u32 %v9852_v63, %v8647_v54  ;;  %v8430_v16 = vor.u32 %v9801_v5, %v8429_v51  ;;  %4859 = vmatpush.bf16.msra.mxu2 %v8458_v42  ;;  %v8581_v5 = vld [vmem:[%s13018_s27 + $0x160] sm:$0xf] }
 0xaa8   :  { %v4164_v39 = vmul.f32 %v4160_v23, %v11244_v20  ;;  %v4222_v8 = vmul.f32 %v12302_v25, %v4209_v46  ;;  %v4223_v29 = vmul.f32 %v12304_v11, %v4210_v7  ;;  %v9795_v23 = vld [vmem:[%s13018_s27 + $0x1c] sm:$0xf0]  ;;  %v9840_v46 = vld [vmem:[%s13018_s27 + $0x18c] sm:$0xf] }
 0xaa9   :  { %v4183_v33 = vsub.f32 1.5, %v4182_v13  ;;  %v8405_v13 = vld [vmem:[%s13018_s27 + $0x8] sm:$0xf]  ;;  %4878 = vmatpush.bf16.msra.mxu3 %v8650_v61  ;;  %4822 = vmatpush.bf16.msra.mxu0 %v8430_v16  ;;  %v9838_v61 = vld [vmem:[%s13018_s27 + $0x174] sm:$0xf0] }
 0xaaa   :  { %v12330_v2 = vpop.eup %10227  ;;  %v12333_v34 = vadd.f32 1e-06, %v4164_v39  ;;  %v8406_v59 = vor.u32 %v9795_v23, %v8405_v13  ;;  %4841 = vmatpush.bf16.msra.mxu1 %v8622_v18  ;;  %v4235_v37 = vadd.f32 %v12318_v60, %v4222_v8  ;;  %v4236_v40 = vadd.f32 %v12344_v26, %v4223_v29  ;;  %v8773_v16 = vld [vmem:[%s13018_s27 + $0x2e0] sm:$0xf]  ;;  %v9835_v8 = vld [vmem:[%s13018_s27 + $0x164] sm:$0xf] }
 0xaab   :  { %v4184_v14 = vmul.f32 %v12289_v48, %v4183_v33  ;;  %v4190_v44 = vmul.f32 %v12330_v2, %v12291_v17  ;;  %vm4196_vm1 = vweird.f32 %v12330_v2  ;;  %v8599_v33 = vld [vmem:[%s13018_s27 + $0x1a0] sm:$0xf0]  ;;  %4860 = vmatpush.bf16.msra.mxu2 %v8434_v24  ;;  %v8582_v53 = vor.u32 %v9838_v61, %v8581_v5  ;;  %v9832_v24 = vld [vmem:[%s13018_s27 + $0x144] sm:$0xf0] }
 0xaac   :  { %10229 = vrsqrt.f32 %v12333_v34  ;;  %vm4197_vm3 = vmor %vm4195_vm2, %vm4196_vm1  ;;  %v8602_v54 = vor.u32 %v9840_v46, %v8599_v33  ;;  %vm4205_vm5 = vweird.f32 %v12333_v34  ;;  %v9811_v23 = vld [vmem:[%s13018_s27 + $0xa4] sm:$0xf] }
 0xaad   :  { %v4188_v27 = vsel %vm4187_vm0, %v12289_v48, %v4184_v14  ;;  %v4191_v19 = vmul.f32 %v12330_v2, %v4190_v44  ;;  %v8623_v48 = vld [vmem:[%s13018_s27 + $0x1d0] sm:$0xf0]  ;;  %4823 = vmatpush.bf16.msra.mxu0 %v8406_v59  ;;  %v8754_v59 = vor.u32 %v9877_v50, %v8751_v52 }
 0xaae   :  { %v4211_v1 = vmul.f32 %v4188_v27, %v12153_v45  ;;  %v4212_v21 = vmul.f32 %v4188_v27, %v12156_v32  ;;  %v8626_v0 = vor.u32 %v9846_v41, %v8623_v48  ;;  %v9792_v32 = vld [vmem:[%s13018_s27 + $0xc] sm:$0xf]  ;;  %4842 = vmatpush.bf16.msra.mxu1 %v8598_v47  ;;  %v8749_v48 = vld [vmem:[%s13018_s27 + $0x2b0] sm:$0xf] }
 0xaaf   :  { %v4192_v31 = vmul.f32 0.5, %v4191_v19  ;;  %v8410_v42 = vor.u32 %v9792_v32, %v8407_v56  ;;  %v8774_v19 = vor.u32 %v9886_v22, %v8773_v16  ;;  %v8533_v32 = vld [vmem:[%s13018_s27 + $0x100] sm:$0xf]  ;;  %v9826_v56 = vld [vmem:[%s13018_s27 + $0x114] sm:$0xf0] }
 0xab0   :  { %v4224_v39 = vmul.f32 %v12302_v25, %v4211_v1  ;;  %v4225_v45 = vmul.f32 %v12304_v11, %v4212_v21  ;;  %4879 = vmatpush.bf16.msra.mxu3 %v8626_v0  ;;  %v8778_v1 = vor.u32 %v9883_v15, %v8775_v4  ;;  %v8557_v21 = vld [vmem:[%s13018_s27 + $0x130] sm:$0xf]  ;;  %v8559_v0 = vld [vmem:[%s13018_s27 + $0x148] sm:$0xf0]  ;;  %v8534_v33 = vor.u32 %v9826_v56, %v8533_v32  ;;  %v9820_v16 = vld [vmem:[%s13018_s27 + $0xe4] sm:$0xf0] }
 0xab1   :  { %v4193_v38 = vsub.f32 1.5, %v4192_v31  ;;  %4861 = vmatpush.bf16.msra.mxu2 %v8410_v42  ;;  %v9871_v42 = vld [vmem:[%s13018_s27 + $0x284] sm:$0xf]  ;;  %v8703_v15 = vld [vmem:[%s13018_s27 + $0x268] sm:$0xf0] }
 0xab2   :  { %v12372_v55 = vpop.eup %10229  ;;  %v4237_v7 = vadd.f32 %v12318_v60, %v4224_v39  ;;  %v4238_v62 = vadd.f32 %v12344_v26, %v4225_v45 }
 0xab3   :  { %v4194_v36 = vmul.f32 %v12330_v2, %v4193_v38  ;;  %v4200_v63 = vmul.f32 %v12372_v55, %v12333_v34  ;;  %vm4206_vm4 = vweird.f32 %v12372_v55  ;;  %v9829_v34 = vld [vmem:[%s13018_s27 + $0x134] sm:$0xf]  ;;  %v8725_v38 = vld [vmem:[%s13018_s27 + $0x280] sm:$0xf] }
 0xab4   :  { %v12382_v14 = vpack.c.bf16 %v4237_v7, %v4235_v37  ;;  %v12384_v44 = vpack.c.bf16 %v4238_v62, %v4236_v40  ;;  %4880 = vmatpush.bf16.msra.mxu3 %v8602_v54  ;;  %vm12411_vm6 = vmor %vm4205_vm5, %vm4206_vm4  ;;  %v8562_v45 = vor.u32 %v9829_v34, %v8559_v0  ;;  %v9874_v37 = vld [vmem:[%s13018_s27 + $0x294] sm:$0xf0]  ;;  %v9823_v40 = vld [vmem:[%s13018_s27 + $0x104] sm:$0xf] }
 0xab5   :  { %v4198_v51 = vsel %vm4197_vm3, %v12330_v2, %v4194_v36  ;;  %v4201_v17 = vmul.f32 %v12372_v55, %v4200_v63  ;;  %v8583_v2 = vld [vmem:[%s13018_s27 + $0x178] sm:$0xf0]  ;;  %v8726_v36 = vor.u32 %v9874_v37, %v8725_v38  ;;  %v9859_v34 = vld [vmem:[%s13018_s27 + $0x224] sm:$0xf]  ;;  %v8461_v0 = vld [vmem:[%s13018_s27 + $0x70] sm:$0xf] }
 0xab6   :  { %4748 = vmatmul.bf16.vlgmr.msrb.gmra.mxu0 %v12382_v14  ;;  %4767 = vmatmul.bf16.vlgmr.msrb.gmra.mxu1 %v12384_v44  ;;  %v8586_v18 = vor.u32 %v9835_v8, %v8583_v2  ;;  %v4213_v41 = vmul.f32 %v4198_v51, %v12164_v35  ;;  %v4214_v29 = vmul.f32 %v4198_v51, %v12167_v28  ;;  %v9880_v28 = vld [vmem:[%s13018_s27 + $0x2c4] sm:$0xf0]  ;;  %v8535_v7 = vld [vmem:[%s13018_s27 + $0x118] sm:$0xf0]  ;;  %v8509_v51 = vld [vmem:[%s13018_s27 + $0xd0] sm:$0xf] }
 0xab7   :  { %v4202_v27 = vmul.f32 0.5, %v4201_v17  ;;  %4786 = vmatmul.bf16.vlgmr.msrb.gmra.mxu2 %v12382_v14  ;;  %4805 = vmatmul.bf16.vlgmr.msrb.gmra.mxu3 %v12384_v44  ;;  %v8558_v35 = vor.u32 %v9832_v24, %v8557_v21  ;;  %v8750_v31 = vor.u32 %v9880_v28, %v8749_v48  ;;  %v8538_v63 = vor.u32 %v9823_v40, %v8535_v7  ;;  %v8727_v54 = vld [vmem:[%s13018_s27 + $0x298] sm:$0xf0]  ;;  %v9817_v2 = vld [vmem:[%s13018_s27 + $0xd4] sm:$0xf] }
 0xab8   :  { %4892 = vmatpush.bf16.msrb.mxu0 %v8582_v53  ;;  %4911 = vmatpush.bf16.msrb.mxu1 %v8774_v19  ;;  %v4226_v47 = vmul.f32 %v12302_v25, %v4213_v41  ;;  %v4227_v46 = vmul.f32 %v12304_v11, %v4214_v29  ;;  %v8730_v61 = vor.u32 %v9871_v42, %v8727_v54  ;;  %v9868_v53 = vld [vmem:[%s13018_s27 + $0x264] sm:$0xf0]  ;;  %v8511_v19 = vld [vmem:[%s13018_s27 + $0xe8] sm:$0xf0]  ;;  %v8485_v24 = vld [vmem:[%s13018_s27 + $0xa0] sm:$0xf] }
 0xab9   :  { %v4203_v13 = vsub.f32 1.5, %v4202_v27  ;;  %4930 = vmatpush.bf16.msrb.mxu2 %v8586_v18  ;;  %4949 = vmatpush.bf16.msrb.mxu3 %v8778_v1  ;;  %v9865_v18 = vld [vmem:[%s13018_s27 + $0x254] sm:$0xf]  ;;  %v8514_v1 = vor.u32 %v9817_v2, %v8511_v19  ;;  %v8677_v48 = vld [vmem:[%s13018_s27 + $0x220] sm:$0xf] }
 0xaba   :  { %v4239_v27 = vadd.f32 %v12318_v60, %v4226_v47  ;;  %v4240_v4 = vadd.f32 %v12344_v26, %v4227_v46  ;;  %v8706_v21 = vor.u32 %v9865_v18, %v8703_v15  ;;  %v9805_v38 = vld [vmem:[%s13018_s27 + $0x74] sm:$0xf]  ;;  %v8463_v47 = vld [vmem:[%s13018_s27 + $0x88] sm:$0xf0]  ;;  %v8437_v37 = vld [vmem:[%s13018_s27 + $0x40] sm:$0xf] }
 0xabb   :  { %v4204_v39 = vmul.f32 %v12372_v55, %v4203_v13  ;;  %v9862_v13 = vld [vmem:[%s13018_s27 + $0x234] sm:$0xf0]  ;;  %v9853_v46 = vld [vmem:[%s13018_s27 + $0x1f4] sm:$0xf]  ;;  %v8629_v7 = vld [vmem:[%s13018_s27 + $0x1c0] sm:$0xf] }
 0xabc   :  { %4893 = vmatpush.bf16.msrb.mxu0 %v8558_v35  ;;  %4912 = vmatpush.bf16.msrb.mxu1 %v8750_v31  ;;  %v8487_v35 = vld [vmem:[%s13018_s27 + $0xb8] sm:$0xf0]  ;;  %v8678_v28 = vor.u32 %v9862_v13, %v8677_v48  ;;  %v9802_v40 = vld [vmem:[%s13018_s27 + $0x54] sm:$0xf0]  ;;  %v9799_v42 = vld [vmem:[%s13018_s27 + $0x44] sm:$0xf] }
 0xabd   :  { %v4208_v62 = vsel %vm12411_vm6, %v12372_v55, %v4204_v39  ;;  %4931 = vmatpush.bf16.msrb.mxu2 %v8562_v45  ;;  %4950 = vmatpush.bf16.msrb.mxu3 %v8754_v59  ;;  %v8701_v55 = vld [vmem:[%s13018_s27 + $0x250] sm:$0xf]  ;;  %v8679_v31 = vld [vmem:[%s13018_s27 + $0x238] sm:$0xf0]  ;;  %v8490_v50 = vor.u32 %v9811_v23, %v8487_v35  ;;  %v9808_v39 = vld [vmem:[%s13018_s27 + $0x84] sm:$0xf0] }
 0xabe   :  { %v4215_v17 = vmul.f32 %v4208_v62, %v12175_v43  ;;  %v4216_v5 = vmul.f32 %v4208_v62, %v12178_v3  ;;  %v8510_v43 = vor.u32 %v9820_v16, %v8509_v51  ;;  %v8702_v3 = vor.u32 %v9868_v53, %v8701_v55  ;;  %v8653_v45 = vld [vmem:[%s13018_s27 + $0x1f0] sm:$0xf]  ;;  %v9856_v59 = vld [vmem:[%s13018_s27 + $0x204] sm:$0xf0]  ;;  %v9850_v62 = vld [vmem:[%s13018_s27 + $0x1d4] sm:$0xf0] }
 0xabf   :  { %v8682_v52 = vor.u32 %v9859_v34, %v8679_v31  ;;  %v8462_v32 = vor.u32 %v9808_v39, %v8461_v0  ;;  %v8654_v56 = vor.u32 %v9856_v59, %v8653_v45  ;;  %v8439_v54 = vld [vmem:[%s13018_s27 + $0x58] sm:$0xf0]  ;;  %v8438_v51 = vor.u32 %v9802_v40, %v8437_v37  ;;  %v8413_v16 = vld [vmem:[%s13018_s27 + $0x10] sm:$0xf]  ;;  %v9796_v55 = vld [vmem:[%s13018_s27 + $0x24] sm:$0xf0] }
 0xac0   :  { %v4228_v22 = vmul.f32 %v12302_v25, %v4215_v17  ;;  %v4229_v8 = vmul.f32 %v12304_v11, %v4216_v5  ;;  %4894 = vmatpush.bf16.msrb.mxu0 %v8534_v33  ;;  %4913 = vmatpush.bf16.msrb.mxu1 %v8726_v36  ;;  %v8655_v33 = vld [vmem:[%s13018_s27 + $0x208] sm:$0xf0]  ;;  %v8466_v36 = vor.u32 %v9805_v38, %v8463_v47  ;;  %v9847_v5 = vld [vmem:[%s13018_s27 + $0x1c4] sm:$0xf]  ;;  %v8605_v53 = vld [vmem:[%s13018_s27 + $0x190] sm:$0xf] }
 0xac1   :  { %4932 = vmatpush.bf16.msrb.mxu2 %v8538_v63  ;;  %4951 = vmatpush.bf16.msrb.mxu3 %v8730_v61  ;;  %v8658_v63 = vor.u32 %v9853_v46, %v8655_v33  ;;  %v8630_v17 = vor.u32 %v9850_v62, %v8629_v7  ;;  %v8631_v61 = vld [vmem:[%s13018_s27 + $0x1d8] sm:$0xf0]  ;;  %v8415_v19 = vld [vmem:[%s13018_s27 + $0x28] sm:$0xf0]  ;;  %v9841_v18 = vld [vmem:[%s13018_s27 + $0x194] sm:$0xf] }
 0xac2   :  { %v4241_v41 = vadd.f32 %v12318_v60, %v4228_v22  ;;  %v4242_v25 = vadd.f32 %v12344_v26, %v4229_v8  ;;  %v9814_v60 = vld [vmem:[%s13018_s27 + $0xb4] sm:$0xf0]  ;;  %v9844_v22 = vld [vmem:[%s13018_s27 + $0x1a4] sm:$0xf0]  ;;  %v8442_v8 = vor.u32 %v9799_v42, %v8439_v54  ;;  %v8634_v2 = vor.u32 %v9847_v5, %v8631_v61  ;;  %v8607_v15 = vld [vmem:[%s13018_s27 + $0x1a8] sm:$0xf0] }
 0xac3   :  { %v8486_v26 = vor.u32 %v9814_v60, %v8485_v24 }
 0xac4   :  { %v12450_v11 = vpack.c.bf16 %v4241_v41, %v4239_v27  ;;  %v12452_v29 = vpack.c.bf16 %v4242_v25, %v4240_v4  ;;  %4895 = vmatpush.bf16.msrb.mxu0 %v8510_v43  ;;  %4914 = vmatpush.bf16.msrb.mxu1 %v8702_v3  ;;  %v9793_v27 = vld [vmem:[%s13018_s27 + $0x14] sm:$0xf]  ;;  %v8414_v43 = vor.u32 %v9796_v55, %v8413_v16 }
 0xac5   :  { %4933 = vmatpush.bf16.msrb.mxu2 %v8514_v1  ;;  %4952 = vmatpush.bf16.msrb.mxu3 %v8706_v21  ;;  %v8606_v3 = vor.u32 %v9844_v22, %v8605_v53  ;;  %v8418_v4 = vor.u32 %v9793_v27, %v8415_v19  ;;  %v8610_v41 = vor.u32 %v9841_v18, %v8607_v15 }
 0xac6   :  { %4753 = vmatmul.bf16.gmra.mxu0 %v12450_v11  ;;  %4772 = vmatmul.bf16.gmra.mxu1 %v12452_v29 }
 0xac7   :  { %4791 = vmatmul.bf16.gmra.mxu2 %v12450_v11  ;;  %4810 = vmatmul.bf16.gmra.mxu3 %v12452_v29 }
 0xac8   :  { %4896 = vmatpush.bf16.msrb.mxu0 %v8486_v26  ;;  %4915 = vmatpush.bf16.msrb.mxu1 %v8678_v28  ;;  %v12522_v28 = vld [vmem:[#allocation16] sm:$0x3f] }
 0xac9   :  { %4934 = vmatpush.bf16.msrb.mxu2 %v8490_v50  ;;  %4953 = vmatpush.bf16.msrb.mxu3 %v8682_v52  ;;  %v4250_v0 = vperm.slane %v12522_v28, 2  ;;  %v12530_v45 = vperm.slane %v12522_v28, 3  ;;  %v4248_v59 = vperm.slane %v12522_v28, 0 }
 0xacc   :  { %4897 = vmatpush.bf16.msrb.mxu0 %v8462_v32  ;;  %4916 = vmatpush.bf16.msrb.mxu1 %v8654_v56 }
 0xacd   :  { %4935 = vmatpush.bf16.msrb.mxu2 %v8466_v36  ;;  %4954 = vmatpush.bf16.msrb.mxu3 %v8658_v63 }
 0xad0   :  { %4898 = vmatpush.bf16.msrb.mxu0 %v8438_v51  ;;  %4917 = vmatpush.bf16.msrb.mxu1 %v8630_v17 }
 0xad1   :  { %4936 = vmatpush.bf16.msrb.mxu2 %v8442_v8  ;;  %4955 = vmatpush.bf16.msrb.mxu3 %v8634_v2 }
 0xad4   :  { %4899 = vmatpush.bf16.msrb.mxu0 %v8414_v43  ;;  %4918 = vmatpush.bf16.msrb.mxu1 %v8606_v3 }
 0xad5   :  { %4937 = vmatpush.bf16.msrb.mxu2 %v8418_v4  ;;  %4956 = vmatpush.bf16.msrb.mxu3 %v8610_v41  ;;  %v12536_v4 = vperm.slane %v12522_v28, 1 }
 0xad6   :  { %4824 = vmatmul.bf16.vlgmr.msra.gmra.mxu0 %v12382_v14  ;;  %4843 = vmatmul.bf16.vlgmr.msra.gmra.mxu1 %v12384_v44 }
 0xad7   :  { %4862 = vmatmul.bf16.vlgmr.msra.gmra.mxu2 %v12382_v14  ;;  %4881 = vmatmul.bf16.vlgmr.msra.gmra.mxu3 %v12384_v44 }
 0xae6   :  { %4829 = vmatmul.bf16.gmra.mxu0 %v12450_v11  ;;  %4848 = vmatmul.bf16.gmra.mxu1 %v12452_v29 }
 0xae7   :  { %4867 = vmatmul.bf16.gmra.mxu2 %v12450_v11  ;;  %4886 = vmatmul.bf16.gmra.mxu3 %v12452_v29 }
 0xaf6   :  { %4900 = vmatmul.bf16.vlgmr.msrb.gmra.mxu0 %v12382_v14  ;;  %4919 = vmatmul.bf16.vlgmr.msrb.gmra.mxu1 %v12384_v44 }
 0xaf7   :  { %4938 = vmatmul.bf16.vlgmr.msrb.gmra.mxu2 %v12382_v14  ;;  %4957 = vmatmul.bf16.vlgmr.msrb.gmra.mxu3 %v12384_v44 }
 0xb06   :  { %4905 = vmatmul.bf16.gmra.mxu0 %v12450_v11  ;;  %4924 = vmatmul.bf16.gmra.mxu1 %v12452_v29 }
 0xb07   :  { %4943 = vmatmul.bf16.gmra.mxu2 %v12450_v11  ;;  %4962 = vmatmul.bf16.gmra.mxu3 %v12452_v29 }
 0xb33   :  { %v4749_v25 = vpop.f32.mrf.mxu0  ;;  %v4768_v1 = vpop.f32.mrf.mxu1 }
 0xb34   :  { %v4750_v7 = vadd.f32 %v4749_v25, %v4248_v59 }
 0xb36   :  { %v4769_v51 = vadd.f32 %v4768_v1, %v4750_v7 }
 0xb38   :  { %v4968_v3 = vpack.c.bf16 %v4769_v51, %v4769_v51 }
 0xb3a   :  { %v12506_v21 = vpop.f32.mrf.mxu2  ;;  %v12508_v24 = vpop.f32.mrf.mxu3  ;;  %v4982_v1 = vunpack.c.l.b16 %v4968_v3 }
 0xb3b   :  { %v4751_v60 = vpop.f32.mrf.mxu0  ;;  %v4770_v48 = vpop.f32.mrf.mxu1 }
 0xb3c   :  { %v4752_v33 = vadd.f32 %v4751_v60, %v4248_v59 }
 0xb3e   :  { %v4771_v63 = vadd.f32 %v4770_v48, %v4752_v33  ;;  %v4788_v33 = vadd.f32 %v12506_v21, %v12536_v4 }
 0xb40   :  { %v4969_v8 = vpack.c.bf16 %v4771_v63, %v4771_v63 }
 0xb42   :  { %v4789_v26 = vpop.f32.mrf.mxu2  ;;  %v12510_v14 = vpop.f32.mrf.mxu3  ;;  %v4983_v15 = vunpack.c.l.b16 %v4969_v8 }
 0xb43   :  { %v12512_v44 = vpop.f32.mrf.mxu0  ;;  %v12514_v13 = vpop.f32.mrf.mxu1 }
 0xb4a   :  { %v12516_v23 = vpop.f32.mrf.mxu2  ;;  %v12518_v11 = vpop.f32.mrf.mxu3 }
 0xb4b   :  { %v4756_v29 = vpop.f32.mrf.mxu0  ;;  %v12520_v35 = vpop.f32.mrf.mxu1 }
 0xb52   :  { %v12524_v34 = vpop.f32.mrf.mxu2  ;;  %v12526_v31 = vpop.f32.mrf.mxu3 }
 0xb53   :  { %v4825_v50 = vpop.f32.mrf.mxu0  ;;  %v4844_v52 = vpop.f32.mrf.mxu1 }
 0xb54   :  { %v4826_v39 = vadd.f32 %v4825_v50, %v4250_v0 }
 0xb56   :  { %v4845_v32 = vadd.f32 %v4844_v52, %v4826_v39 }
 0xb58   :  { %v4972_v62 = vpack.c.bf16 %v4845_v32, %v4845_v32 }
 0xb5a   :  { %v4863_v56 = vpop.f32.mrf.mxu2  ;;  %v4882_v38 = vpop.f32.mrf.mxu3  ;;  %v4988_v17 = vunpack.c.l.b16 %v4972_v62 }
 0xb5b   :  { %v4827_v47 = vpop.f32.mrf.mxu0  ;;  %v4846_v46 = vpop.f32.mrf.mxu1  ;;  %v4864_v40 = vadd.f32 %v4863_v56, %v12530_v45  ;;  %v4984_v56 = vpack.c.b16 %v4983_v15, %v4982_v1 }
 0xb5c   :  { %v4828_v37 = vadd.f32 %v4827_v47, %v4250_v0  ;;  %v4757_v47 = vadd.f32 %v4756_v29, %v4248_v59 }
 0xb5d   :  { %v4883_v54 = vadd.f32 %v4882_v38, %v4864_v40  ;;  %v4790_v38 = vadd.f32 %v4789_v26, %v12536_v4  ;;  %v4755_v40 = vadd.f32 %v12512_v44, %v4248_v59  ;;  %v4807_v26 = vadd.f32 %v12508_v24, %v4788_v33 }
 0xb5e   :  { %v4847_v36 = vadd.f32 %v4846_v46, %v4828_v37  ;;  %v4776_v63 = vadd.f32 %v12520_v35, %v4757_v47 }
 0xb5f   :  { %v5146_v27 = vpack.c.bf16 %v4883_v54, %v4883_v54  ;;  %v5142_v24 = vpack.c.bf16 %v4807_v26, %v4807_v26 }
 0xb60   :  { %v4973_v42 = vpack.c.bf16 %v4847_v36, %v4847_v36  ;;  %v4809_v36 = vadd.f32 %v12510_v14, %v4790_v38 }
 0xb61   :  { %v5162_v41 = vunpack.c.l.b16 %v5146_v27 }
 0xb62   :  { %v4989_v5 = vunpack.c.l.b16 %v4973_v42  ;;  %v4865_v61 = vpop.f32.mrf.mxu2  ;;  %v4884_v16 = vpop.f32.mrf.mxu3  ;;  %v5143_v14 = vpack.c.bf16 %v4809_v36, %v4809_v36 }
 0xb63   :  { %v4866_v55 = vadd.f32 %v4865_v61, %v12530_v45  ;;  %v4830_v53 = vpop.f32.mrf.mxu0  ;;  %v4849_v22 = vpop.f32.mrf.mxu1 }
 0xb64   :  { %v4990_v2 = vpack.c.b16 %v4989_v5, %v4988_v17  ;;  %v4831_v19 = vadd.f32 %v4830_v53, %v4250_v0  ;;  %v12548_v5 = vperm.slane %v12522_v28, 4 }
 0xb65   :  { %v4885_v43 = vadd.f32 %v4884_v16, %v4866_v55  ;;  %v4971_v16 = vpack.c.bf16 %v4776_v63, %v4776_v63 }
 0xb66   :  { %4999 = vmatpush.bf16.xpose.msra.mxu0 %v4990_v2  ;;  %v4850_v60 = vadd.f32 %v4849_v22, %v4831_v19  ;;  %v5157_v2 = vunpack.c.l.b16 %v5143_v14  ;;  %v4253_v19 = vperm.slane %v12522_v28, 5  ;;  %v4793_v28 = vadd.f32 %v12516_v23, %v12536_v4 }
 0xb67   :  { %v5147_v18 = vpack.c.bf16 %v4885_v43, %v4885_v43  ;;  %v5009_v27 = vunpack.c.l.b16 %v4971_v16 }
 0xb68   :  { %v4974_v7 = vpack.c.bf16 %v4850_v60, %v4850_v60 }
 0xb69   :  { %v5163_v25 = vunpack.c.l.b16 %v5147_v18 }
 0xb6a   :  { %v4868_v48 = vpop.f32.mrf.mxu2  ;;  %v4887_v50 = vpop.f32.mrf.mxu3  ;;  %v5014_v54 = vunpack.c.l.b16 %v4974_v7 }
 0xb6b   :  { %v5164_v52 = vpack.c.b16 %v5163_v25, %v5162_v41  ;;  %v4832_v39 = vpop.f32.mrf.mxu0  ;;  %v4851_v32 = vpop.f32.mrf.mxu1  ;;  %v4869_v37 = vadd.f32 %v4868_v48, %v12530_v45 }
 0xb6c   :  { %v4833_v46 = vadd.f32 %v4832_v39, %v4250_v0  ;;  %v4774_v0 = vadd.f32 %v12514_v13, %v4755_v40  ;;  %v4795_v39 = vadd.f32 %v12524_v34, %v12536_v4  ;;  %v4812_v40 = vadd.f32 %v12518_v11, %v4793_v28 }
 0xb6d   :  { %5000 = vmatmul.bf16.vlgmr.msra.gmra.mxu0 %v4984_v56  ;;  %v4888_v29 = vadd.f32 %v4887_v50, %v4869_v37 }
 0xb6e   :  { %5173 = vmatpush.bf16.xpose.msrb.mxu0 %v5164_v52  ;;  %v4852_v62 = vadd.f32 %v4851_v32, %v4833_v46  ;;  %v4970_v22 = vpack.c.bf16 %v4774_v0, %v4774_v0  ;;  %v4814_v46 = vadd.f32 %v12526_v31, %v4795_v39 }
 0xb6f   :  { %v5148_v55 = vpack.c.bf16 %v4888_v29, %v4888_v29 }
 0xb70   :  { %v4975_v42 = vpack.c.bf16 %v4852_v62, %v4852_v62  ;;  %v5008_v18 = vunpack.c.l.b16 %v4970_v22  ;;  %v5145_v29 = vpack.c.bf16 %v4814_v46, %v4814_v46 }
 0xb71   :  { %v5188_v43 = vunpack.c.l.b16 %v5148_v55 }
 0xb72   :  { %v5015_v21 = vunpack.c.l.b16 %v4975_v42  ;;  %v4870_v51 = vpop.f32.mrf.mxu2  ;;  %v4889_v17 = vpop.f32.mrf.mxu3  ;;  %v5010_v52 = vpack.c.b16 %v5009_v27, %v5008_v18 }
 0xb73   :  { %v4871_v44 = vadd.f32 %v4870_v51, %v12530_v45  ;;  %v4901_v59 = vpop.f32.mrf.mxu0  ;;  %v4920_v61 = vpop.f32.mrf.mxu1  ;;  %v5156_v45 = vunpack.c.l.b16 %v5142_v24  ;;  %v5183_v51 = vunpack.c.l.b16 %v5145_v29 }
 0xb74   :  { %v5016_v35 = vpack.c.b16 %v5015_v21, %v5014_v54  ;;  %v4902_v13 = vadd.f32 %v4901_v59, %v12548_v5  ;;  %v5144_v54 = vpack.c.bf16 %v4812_v40, %v4812_v40 }
 0xb75   :  { %v4890_v53 = vadd.f32 %v4889_v17, %v4871_v44  ;;  %v5158_v50 = vpack.c.b16 %v5157_v2, %v5156_v45 }
 0xb76   :  { %5025 = vmatpush.bf16.xpose.msra.mxu1 %v5016_v35  ;;  %v4921_v15 = vadd.f32 %v4920_v61, %v4902_v13  ;;  %v5182_v11 = vunpack.c.l.b16 %v5144_v54 }
 0xb77   :  { %v5149_v8 = vpack.c.bf16 %v4890_v53, %v4890_v53 }
 0xb78   :  { %v4976_v38 = vpack.c.bf16 %v4921_v15, %v4921_v15  ;;  %v5184_v55 = vpack.c.b16 %v5183_v51, %v5182_v11 }
 0xb79   :  { %v5189_v3 = vunpack.c.l.b16 %v5149_v8 }
 0xb7a   :  { %v4939_v41 = vpop.f32.mrf.mxu2  ;;  %v4958_v25 = vpop.f32.mrf.mxu3  ;;  %v5091_v7 = vunpack.c.l.b16 %v4976_v38 }
 0xb7b   :  { %v5190_v1 = vpack.c.b16 %v5189_v3, %v5188_v43  ;;  %v4903_v60 = vpop.f32.mrf.mxu0  ;;  %v4922_v48 = vpop.f32.mrf.mxu1  ;;  %v4940_v56 = vadd.f32 %v4939_v41, %v4253_v19 }
 0xb7c   :  { %v4904_v32 = vadd.f32 %v4903_v60, %v12548_v5 }
 0xb7d   :  { %5026 = vmatmul.bf16.vlgmr.msra.gmra.mxu1 %v5010_v52  ;;  %5174 = vmatmul.bf16.vlgmr.msrb.gmra.mxu0 %v5158_v50  ;;  %v4959_v37 = vadd.f32 %v4958_v25, %v4940_v56 }
 0xb7e   :  { %5199 = vmatpush.bf16.xpose.msrb.mxu1 %v5190_v1  ;;  %v4923_v47 = vadd.f32 %v4922_v48, %v4904_v32 }
 0xb7f   :  { %v5150_v23 = vpack.c.bf16 %v4959_v37, %v4959_v37 }
 0xb80   :  { %v4977_v33 = vpack.c.bf16 %v4923_v47, %v4923_v47 }
 0xb81   :  { %v5265_v17 = vunpack.c.l.b16 %v5150_v23 }
 0xb82   :  { %v5092_v62 = vunpack.c.l.b16 %v4977_v33  ;;  %v4941_v34 = vpop.f32.mrf.mxu2  ;;  %v4960_v36 = vpop.f32.mrf.mxu3 }
 0xb83   :  { %v4942_v63 = vadd.f32 %v4941_v34, %v4253_v19  ;;  %v4906_v42 = vpop.f32.mrf.mxu0  ;;  %v4925_v26 = vpop.f32.mrf.mxu1 }
 0xb84   :  { %v5093_v0 = vpack.c.b16 %v5092_v62, %v5091_v7  ;;  %v4907_v21 = vadd.f32 %v4906_v42, %v12548_v5 }
 0xb85   :  { %v4961_v4 = vadd.f32 %v4960_v36, %v4942_v63 }
 0xb86   :  { %5105 = vmatpush.bf16.msra.mxu2 %v5093_v0  ;;  %v4926_v59 = vadd.f32 %v4925_v26, %v4907_v21 }
 0xb87   :  { %v5151_v31 = vpack.c.bf16 %v4961_v4, %v4961_v4 }
 0xb88   :  { %v4978_v13 = vpack.c.bf16 %v4926_v59, %v4926_v59 }
 0xb89   :  { %v5266_v44 = vunpack.c.l.b16 %v5151_v31 }
 0xb8a   :  { %v4944_v61 = vpop.f32.mrf.mxu2  ;;  %v4963_v14 = vpop.f32.mrf.mxu3  ;;  %v5119_v43 = vunpack.c.l.b16 %v4978_v13 }
 0xb8b   :  { %v5267_v16 = vpack.c.b16 %v5266_v44, %v5265_v17  ;;  %v4908_v35 = vpop.f32.mrf.mxu0  ;;  %v4945_v24 = vadd.f32 %v4944_v61, %v4253_v19  ;;  %v4927_v22 = vpop.f32.mrf.mxu1 }
 0xb8c   :  { %v4909_v53 = vadd.f32 %v4908_v35, %v12548_v5 }
 0xb8d   :  { %5279 = vmatpush.bf16.msrb.mxu2 %v5267_v16  ;;  %5200 = vmatmul.bf16.vlgmr.msrb.gmra.mxu1 %v5184_v55  ;;  %v4964_v27 = vadd.f32 %v4963_v14, %v4945_v24 }
 0xb8e   :  { %v4928_v8 = vadd.f32 %v4927_v22, %v4909_v53 }
 0xb8f   :  { %v5152_v25 = vpack.c.bf16 %v4964_v27, %v4964_v27 }
 0xb90   :  { %v4979_v2 = vpack.c.bf16 %v4928_v8, %v4928_v8 }
 0xb91   :  { %v5293_v48 = vunpack.c.l.b16 %v5152_v25 }
 0xb92   :  { %v5120_v3 = vunpack.c.l.b16 %v4979_v2  ;;  %v4946_v45 = vpop.f32.mrf.mxu2  ;;  %v4965_v41 = vpop.f32.mrf.mxu3 }
 0xb93   :  { %v4947_v18 = vadd.f32 %v4946_v45, %v4253_v19 }
 0xb94   :  { %v5121_v15 = vpack.c.b16 %v5120_v3, %v5119_v43 }
 0xb95   :  { %v4966_v1 = vadd.f32 %v4965_v41, %v4947_v18 }
 0xb96   :  { %5133 = vmatpush.bf16.msra.mxu3 %v5121_v15 }
 0xb97   :  { %v5153_v60 = vpack.c.bf16 %v4966_v1, %v4966_v1 }
 0xb99   :  { %v5294_v5 = vunpack.c.l.b16 %v5153_v60 }
 0xb9b   :  { %v5295_v50 = vpack.c.b16 %v5294_v5, %v5293_v48 }
 0xb9d   :  { %5307 = vmatpush.bf16.msrb.mxu3 %v5295_v50 }
 0xbea   :  { %v5001_v52 = vpop.f32.mrf.mxu0 }
 0xbeb   :  { %v5032_v39 = vmul.f32 0.088388346, %v5001_v52 }
 0xbed   :  { %v5036_v32 = vsel %vm1783_vm13, %v5032_v39, -inf }
 0xbee   :  { %5037 = vmax.xlane.f32.xlu1 %v5036_v32 }
 0xbf2   :  { %v5003_v56 = vpop.f32.mrf.mxu0 }
 0xbf3   :  { %v5033_v28 = vmul.f32 0.088388346, %v5003_v56 }
 0xbf5   :  { %v5039_v38 = vsel %vm1783_vm13, %v5033_v28, -inf }
 0xbf6   :  { %5040 = vmax.xlane.f32.xlu2 %v5039_v38 }
 0xbfa   :  { %v5027_v19 = vpop.f32.mrf.mxu1  ;;  %v5175_v47 = vpop.f32.mrf.mxu0 }
 0xbfb   :  { %v5034_v46 = vmul.f32 0.088388346, %v5027_v19  ;;  %v5206_v33 = vmul.f32 0.088388346, %v5175_v47 }
 0xbfd   :  { %v5210_v37 = vsel %vm1783_vm13, %v5206_v33, -inf  ;;  %v5042_v40 = vsel %vm1783_vm13, %v5034_v46, -inf }
 0xbfe   :  { %5211 = vmax.xlane.f32.xlu2 %v5210_v37  ;;  %5043 = vmax.xlane.f32.xlu0 %v5042_v40 }
 0xc02   :  { %v5029_v7 = vpop.f32.mrf.mxu1  ;;  %v5177_v62 = vpop.f32.mrf.mxu0 }
 0xc03   :  { %v5035_v34 = vmul.f32 0.088388346, %v5029_v7  ;;  %v5207_v36 = vmul.f32 0.088388346, %v5177_v62 }
 0xc05   :  { %v5213_v63 = vsel %vm1783_vm13, %v5207_v36, -inf  ;;  %v5045_v42 = vsel %vm1783_vm13, %v5035_v34, -inf }
 0xc06   :  { %5214 = vmax.xlane.f32.xlu0 %v5213_v63  ;;  %5046 = vmax.xlane.f32.xlu1 %v5045_v42 }
 0xc0a   :  { %v5201_v26 = vpop.f32.mrf.mxu1 }
 0xc0b   :  { %v5208_v29 = vmul.f32 0.088388346, %v5201_v26 }
 0xc0d   :  { %v5216_v0 = vsel %vm1783_vm13, %v5208_v29, -inf }
 0xc0e   :  { %5217 = vmax.xlane.f32.xlu1 %v5216_v0 }
 0xc12   :  { %v5203_v23 = vpop.f32.mrf.mxu1 }
 0xc13   :  { %v5209_v4 = vmul.f32 0.088388346, %v5203_v23 }
 0xc15   :  { %v5219_v54 = vsel %vm1783_vm13, %v5209_v4, -inf }
 0xc16   :  { %5220 = vmax.xlane.f32.xlu2 %v5219_v54 }
 0xc61   :  { %v5038_v21 = vpop.xlane.xlu1 %5037 }
 0xc62   :  { %v5048_v31 = vsub.f32 %v5032_v39, %v5038_v21 }
 0xc64   :  { %v5052_v51 = vmul.f32 1.442695, %v5048_v31  ;;  %v8905_v31 = vld [vmem:[#allocation18 + $0x70] sm:$0xf] }
 0xc66   :  { %10231 = vpow2.f32 %v5052_v51  ;;  %v9902_v51 = vld [vmem:[#allocation18 + $0x74] sm:$0xf0] }
 0xc69   :  { %v5041_v17 = vpop.xlane.xlu2 %5040 }
 0xc6a   :  { %v5049_v44 = vsub.f32 %v5033_v28, %v5041_v17 }
 0xc6c   :  { %v10232_v11 = vpop.eup %10231  ;;  %v5054_v59 = vmul.f32 1.442695, %v5049_v44  ;;  %v8906_v44 = vor.u32 %v9902_v51, %v8905_v31  ;;  %v9895_v51 = vld [vmem:[#allocation18 + $0x44] sm:$0xf] }
 0xc6d   :  { %v5060_v61 = vsel %vm1783_vm13, %v10232_v11, 0.0 }
 0xc6e   :  { %10233 = vpow2.f32 %v5054_v59  ;;  %5061 = vadd.xlane.f32.xlu0 %v5060_v61  ;;  %v9900_v59 = vld [vmem:[#allocation18 + $0x64] sm:$0xf0] }
 0xc71   :  { %v5212_v14 = vpop.xlane.xlu2 %5211  ;;  %v5044_v16 = vpop.xlane.xlu0 %5043 }
 0xc72   :  { %v5222_v35 = vsub.f32 %v5206_v33, %v5212_v14  ;;  %v5050_v55 = vsub.f32 %v5034_v46, %v5044_v16 }
 0xc74   :  { %v10234_v53 = vpop.eup %10233  ;;  %v5226_v24 = vmul.f32 1.442695, %v5222_v35  ;;  %v5056_v22 = vmul.f32 1.442695, %v5050_v55  ;;  %v8889_v35 = vld [vmem:[#allocation18 + $0x50] sm:$0xf] }
 0xc75   :  { %v5063_v13 = vsel %vm1783_vm13, %v10234_v53, 0.0  ;;  %v9898_v55 = vld [vmem:[#allocation18 + $0x54] sm:$0xf0] }
 0xc76   :  { %10235 = vpow2.f32 %v5226_v24  ;;  %5064 = vadd.xlane.f32.xlu1 %v5063_v13  ;;  %v9918_v24 = vld [vmem:[#allocation18 + $0xf4] sm:$0xf0] }
 0xc77   :  { %10237 = vpow2.f32 %v5056_v22 }
 0xc79   :  { %v5215_v8 = vpop.xlane.xlu0 %5214  ;;  %v5047_v2 = vpop.xlane.xlu1 %5046 }
 0xc7a   :  { %v5223_v27 = vsub.f32 %v5207_v36, %v5215_v8  ;;  %v5051_v43 = vsub.f32 %v5035_v34, %v5047_v2  ;;  %v9917_v8 = vld [vmem:[#allocation18 + $0xf4] sm:$0xf]  ;;  %v8843_v2 = vld [vmem:[#allocation18 + $0xf8] sm:$0xf0] }
 0xc7c   :  { %v10236_v3 = vpop.eup %10235  ;;  %v5228_v45 = vmul.f32 1.442695, %v5223_v27  ;;  %v5058_v18 = vmul.f32 1.442695, %v5051_v43 }
 0xc7d   :  { %v10238_v15 = vpop.eup %10237  ;;  %v5234_v41 = vsel %vm1783_vm13, %v10236_v3, 0.0 }
 0xc7e   :  { %10239 = vpow2.f32 %v5228_v45  ;;  %v5066_v25 = vsel %vm1783_vm13, %v10238_v15, 0.0  ;;  %5235 = vadd.xlane.f32.xlu1 %v5234_v41  ;;  %v8890_v41 = vor.u32 %v9898_v55, %v8889_v35  ;;  %v8833_v55 = vld [vmem:[#allocation18 + $0xe0] sm:$0xf] }
 0xc7f   :  { %10241 = vpow2.f32 %v5058_v18  ;;  %5067 = vadd.xlane.f32.xlu2 %v5066_v25  ;;  %v8846_v25 = vor.u32 %v9917_v8, %v8843_v2  ;;  %v9892_v8 = vld [vmem:[#allocation18 + $0x24] sm:$0xf0] }
 0xc81   :  { %v5218_v1 = vpop.xlane.xlu1 %5217  ;;  %5415 = vmatpush.bf16.msra.mxu1 %v8846_v25  ;;  %v9914_v25 = vld [vmem:[#allocation18 + $0xd4] sm:$0xf0] }
 0xc82   :  { %v5224_v60 = vsub.f32 %v5208_v29, %v5218_v1 }
 0xc84   :  { %v10240_v48 = vpop.eup %10239  ;;  %v5230_v5 = vmul.f32 1.442695, %v5224_v60  ;;  %v8881_v60 = vld [vmem:[#allocation18 + $0x40] sm:$0xf] }
 0xc85   :  { %v12574_v50 = vpop.eup %10241  ;;  %v5237_v52 = vsel %vm1783_vm13, %v10240_v48, 0.0 }
 0xc86   :  { %10243 = vpow2.f32 %v5230_v5  ;;  %v5069_v39 = vsel %vm1783_vm13, %v12574_v50, 0.0  ;;  %v9896_v5 = vld [vmem:[#allocation18 + $0x44] sm:$0xf0] }
 0xc87   :  { %5238 = vadd.xlane.f32.xlu2 %v5237_v52  ;;  %5070 = vadd.xlane.f32.xlu0 %v5069_v39  ;;  %v9901_v39 = vld [vmem:[#allocation18 + $0x74] sm:$0xf] }
 0xc89   :  { %v5221_v32 = vpop.xlane.xlu2 %5220 }
 0xc8a   :  { %v5225_v56 = vsub.f32 %v5209_v4, %v5221_v32  ;;  %v8907_v32 = vld [vmem:[#allocation18 + $0x78] sm:$0xf0] }
 0xc8c   :  { %v12579_v28 = vpop.eup %10243  ;;  %v5232_v38 = vmul.f32 1.442695, %v5225_v56 }
 0xc8d   :  { %v5240_v19 = vsel %vm1783_vm13, %v12579_v28, 0.0 }
 0xc8e   :  { %10245 = vpow2.f32 %v5232_v38 }
 0xc8f   :  { %5241 = vadd.xlane.f32.xlu0 %v5240_v19 }
 0xc94   :  { %v12583_v47 = vpop.eup %10245 }
 0xc95   :  { %v5243_v46 = vsel %vm1783_vm13, %v12583_v47, 0.0 }
 0xc96   :  { %5244 = vadd.xlane.f32.xlu1 %v5243_v46  ;;  %v8882_v46 = vor.u32 %v9896_v5, %v8881_v60  ;;  %v8857_v5 = vld [vmem:[#allocation18 + $0x10] sm:$0xf] }
 0xce1   :  { %v5062_v33 = vpop.xlane.xlu0 %5061 }
 0xce2   :  { %10247 = vrcp.f32 %v5062_v33 }
 0xce8   :  { %v10248_v40 = vpop.eup %10247 }
 0xce9   :  { %v5065_v37 = vpop.xlane.xlu1 %5064  ;;  %v5076_v7 = vmul.f32 %v10248_v40, %v10232_v11  ;;  %v8897_v11 = vld [vmem:[#allocation18 + $0x60] sm:$0xf]  ;;  %v8873_v40 = vld [vmem:[#allocation18 + $0x30] sm:$0xf] }
 0xcea   :  { %10249 = vrcp.f32 %v5065_v37  ;;  %v8898_v14 = vor.u32 %v9900_v59, %v8897_v11  ;;  %v8910_v37 = vor.u32 %v9901_v39, %v8907_v32  ;;  %v9889_v39 = vld [vmem:[#allocation18 + $0x14] sm:$0xf] }
 0xceb   :  { %v5080_v34 = vpack.c.bf16 %v5076_v7, %v5076_v7  ;;  %v9894_v7 = vld [vmem:[#allocation18 + $0x34] sm:$0xf0] }
 0xced   :  { %v5086_v29 = vunpack.c.l.b16 %v5080_v34  ;;  %v9899_v34 = vld [vmem:[#allocation18 + $0x64] sm:$0xf] }
 0xcf0   :  { %v10250_v62 = vpop.eup %10249 }
 0xcf1   :  { %v5077_v36 = vmul.f32 %v10250_v62, %v10234_v53  ;;  %v5236_v42 = vpop.xlane.xlu1 %5235  ;;  %v8841_v53 = vld [vmem:[#allocation18 + $0xf0] sm:$0xf] }
 0xcf2   :  { %v5068_v63 = vpop.xlane.xlu2 %5067  ;;  %10251 = vrcp.f32 %v5236_v42  ;;  %v8842_v13 = vor.u32 %v9918_v24, %v8841_v53  ;;  %v8874_v42 = vor.u32 %v9894_v7, %v8873_v40  ;;  %v9916_v53 = vld [vmem:[#allocation18 + $0xe4] sm:$0xf0]  ;;  %v9915_v24 = vld [vmem:[#allocation18 + $0xe4] sm:$0xf]  ;;  %v8849_v40 = vld [vmem:[#allocation18] sm:$0xf] }
 0xcf3   :  { %v5081_v26 = vpack.c.bf16 %v5077_v36, %v5077_v36  ;;  %10253 = vrcp.f32 %v5068_v63  ;;  %v8899_v36 = vld [vmem:[#allocation18 + $0x68] sm:$0xf0]  ;;  %v9888_v7 = vld [vmem:[#allocation18 + $0x4] sm:$0xf0] }
 0xcf4   :  { %5396 = vmatpush.bf16.msra.mxu0 %v8842_v13  ;;  %v8865_v13 = vld [vmem:[#allocation18 + $0x20] sm:$0xf] }
 0xcf5   :  { %v5087_v0 = vunpack.c.l.b16 %v5081_v26  ;;  %v8902_v26 = vor.u32 %v9899_v34, %v8899_v36  ;;  %v9887_v34 = vld [vmem:[#allocation18 + $0x4] sm:$0xf]  ;;  %v8851_v36 = vld [vmem:[#allocation18 + $0x8] sm:$0xf0] }
 0xcf7   :  { %v5088_v23 = vpack.c.b16 %v5087_v0, %v5086_v29  ;;  %v9897_v0 = vld [vmem:[#allocation18 + $0x54] sm:$0xf] }
 0xcf8   :  { %v10252_v21 = vpop.eup %10251 }
 0xcf9   :  { %8779 = vmatmul.msk.bf16.vlgmr.msra.gmra.mxu2 %vm1783_vm13, %v5088_v23  ;;  %v10254_v17 = vpop.eup %10253  ;;  %v5250_v61 = vmul.f32 %v10252_v21, %v10236_v3  ;;  %v8891_v23 = vld [vmem:[#allocation18 + $0x58] sm:$0xf0] }
 0xcfa   :  { %v5239_v4 = vpop.xlane.xlu2 %5238  ;;  %v5071_v54 = vpop.xlane.xlu0 %5070  ;;  %5514 = vmatpush.bf16.msra.mxu2 %v8906_v44  ;;  %v5078_v16 = vmul.f32 %v10254_v17, %v10238_v15  ;;  %v8883_v17 = vld [vmem:[#allocation18 + $0x48] sm:$0xf0] }
 0xcfb   :  { %10255 = vrcp.f32 %v5239_v4  ;;  %v5254_v43 = vpack.c.bf16 %v5250_v61, %v5250_v61  ;;  %v8886_v11 = vor.u32 %v9895_v51, %v8883_v17  ;;  %v8803_v17 = vld [vmem:[#allocation18 + $0xa8] sm:$0xf0] }
 0xcfc   :  { %10257 = vrcp.f32 %v5071_v54  ;;  %v5082_v1 = vpack.c.bf16 %v5078_v16, %v5078_v16  ;;  %v8894_v54 = vor.u32 %v9897_v0, %v8891_v23  ;;  %v8875_v16 = vld [vmem:[#allocation18 + $0x38] sm:$0xf0] }
 0xcfd   :  { %v5260_v56 = vunpack.c.l.b16 %v5254_v43  ;;  %v9891_v43 = vld [vmem:[#allocation18 + $0x24] sm:$0xf]  ;;  %v8811_v23 = vld [vmem:[#allocation18 + $0xb8] sm:$0xf0] }
 0xcfe   :  { %5515 = vmatpush.bf16.msra.mxu2 %v8898_v14  ;;  %v9893_v14 = vld [vmem:[#allocation18 + $0x34] sm:$0xf] }
 0xd01   :  { %v10256_v22 = vpop.eup %10255 }
 0xd02   :  { %v10258_v27 = vpop.eup %10257  ;;  %v5251_v45 = vmul.f32 %v10256_v22, %v10240_v48  ;;  %v5242_v18 = vpop.xlane.xlu0 %5241  ;;  %5516 = vmatpush.bf16.msra.mxu2 %v8890_v41  ;;  %v5114_v48 = vunpack.c.l.b16 %v5082_v1  ;;  %v8834_v22 = vor.u32 %v9916_v53, %v8833_v55  ;;  %v9913_v1 = vld [vmem:[#allocation18 + $0xd4] sm:$0xf]  ;;  %v9904_v55 = vld [vmem:[#allocation18 + $0x84] sm:$0xf0]  ;;  %v9903_v53 = vld [vmem:[#allocation18 + $0x84] sm:$0xf] }
 0xd03   :  { %v5079_v3 = vmul.f32 %v10258_v27, %v12574_v50  ;;  %10259 = vrcp.f32 %v5242_v18  ;;  %v8866_v27 = vor.u32 %v9892_v8, %v8865_v13  ;;  %v8825_v18 = vld [vmem:[#allocation18 + $0xd0] sm:$0xf] }
 0xd04   :  { %v5255_v15 = vpack.c.bf16 %v5251_v45, %v5251_v45  ;;  %v8867_v45 = vld [vmem:[#allocation18 + $0x28] sm:$0xf0]  ;;  %5397 = vmatpush.bf16.msra.mxu0 %v8834_v22 }
 0xd05   :  { %v5083_v52 = vpack.c.bf16 %v5079_v3, %v5079_v3  ;;  %v8870_v41 = vor.u32 %v9891_v43, %v8867_v45  ;;  %v8827_v3 = vld [vmem:[#allocation18 + $0xd8] sm:$0xf0]  ;;  %v8787_v22 = vld [vmem:[#allocation18 + $0x88] sm:$0xf0] }
 0xd06   :  { %v5261_v38 = vunpack.c.l.b16 %v5255_v15  ;;  %5517 = vmatpush.bf16.msra.mxu2 %v8882_v46  ;;  %v8826_v15 = vor.u32 %v9914_v25, %v8825_v18  ;;  %v8830_v60 = vor.u32 %v9913_v1, %v8827_v3  ;;  %v9911_v46 = vld [vmem:[#allocation18 + $0xc4] sm:$0xf] }
 0xd07   :  { %v5115_v19 = vunpack.c.l.b16 %v5083_v52  ;;  %v9890_v52 = vld [vmem:[#allocation18 + $0x14] sm:$0xf0] }
 0xd08   :  { %v5262_v33 = vpack.c.b16 %v5261_v38, %v5260_v56  ;;  %v8858_v32 = vor.u32 %v9890_v52, %v8857_v5  ;;  %v8859_v56 = vld [vmem:[#allocation18 + $0x18] sm:$0xf0]  ;;  %5398 = vmatpush.bf16.msra.mxu0 %v8826_v15  ;;  %v3984_v52 = vld [vmem:[#allocation19] sm:$0x3] }
 0xd09   :  { %v5116_v50 = vpack.c.b16 %v5115_v19, %v5114_v48  ;;  %v5245_v62 = vpop.xlane.xlu1 %5244  ;;  %v10260_v63 = vpop.eup %10259  ;;  %v8862_v38 = vor.u32 %v9889_v39, %v8859_v56  ;;  %v8817_v48 = vld [vmem:[#allocation18 + $0xc0] sm:$0xf]  ;;  %v9912_v19 = vld [vmem:[#allocation18 + $0xc4] sm:$0xf0] }
 0xd0a   :  { %8781 = vmatmul.msk.bf16.vlgmr.msrb.gmra.mxu2 %vm1783_vm13, %v5262_v33  ;;  %10261 = vrcp.f32 %v5245_v62  ;;  %v5252_v29 = vmul.f32 %v10260_v63, %v12579_v28  ;;  %v8878_v28 = vor.u32 %v9893_v14, %v8875_v16  ;;  %v8818_v33 = vor.u32 %v9912_v19, %v8817_v48  ;;  %v8795_v16 = vld [vmem:[#allocation18 + $0x98] sm:$0xf0] }
 0xd0b   :  { %8780 = vmatmul.msk.bf16.vlgmr.msra.gmra.mxu3 %vm1783_vm13, %v5116_v50  ;;  %5518 = vmatpush.bf16.msra.mxu2 %v8874_v42  ;;  %v8850_v62 = vor.u32 %v9888_v7, %v8849_v40  ;;  %v8854_v63 = vor.u32 %v9887_v34, %v8851_v36  ;;  %v8809_v42 = vld [vmem:[#allocation18 + $0xb0] sm:$0xf]  ;;  %v5562_v19 = vperm.slane %v3984_v52, 1 }
 0xd0c   :  { %5533 = vmatpush.bf16.msra.mxu3 %v8910_v37  ;;  %v5256_v21 = vpack.c.bf16 %v5252_v29, %v5252_v29  ;;  %v8819_v37 = vld [vmem:[#allocation18 + $0xc8] sm:$0xf0]  ;;  %5399 = vmatpush.bf16.msra.mxu0 %v8818_v33  ;;  %v9909_v29 = vld [vmem:[#allocation18 + $0xb4] sm:$0xf] }
 0xd0d   :  { %v8822_v50 = vor.u32 %v9911_v46, %v8819_v37 }
 0xd0e   :  { %v5288_v59 = vunpack.c.l.b16 %v5256_v21  ;;  %v9908_v21 = vld [vmem:[#allocation18 + $0xa4] sm:$0xf0] }
 0xd0f   :  { %5519 = vmatpush.bf16.msra.mxu2 %v8866_v27 }
 0xd10   :  { %v10262_v4 = vpop.eup %10261  ;;  %5534 = vmatpush.bf16.msra.mxu3 %v8902_v26  ;;  %v9910_v26 = vld [vmem:[#allocation18 + $0xb4] sm:$0xf0] }
 0xd11   :  { %v5253_v31 = vmul.f32 %v10262_v4, %v12583_v47  ;;  %v8835_v47 = vld [vmem:[#allocation18 + $0xe8] sm:$0xf0]  ;;  %v8810_v0 = vor.u32 %v9910_v26, %v8809_v42  ;;  %v8814_v4 = vor.u32 %v9909_v29, %v8811_v23 }
 0xd12   :  { %v8838_v2 = vor.u32 %v9915_v24, %v8835_v47  ;;  %v8790_v47 = vor.u32 %v9903_v53, %v8787_v22 }
 0xd13   :  { %v5257_v44 = vpack.c.bf16 %v5253_v31, %v5253_v31  ;;  %5520 = vmatpush.bf16.msra.mxu2 %v8858_v32  ;;  %5400 = vmatpush.bf16.msra.mxu0 %v8810_v0  ;;  %v9907_v31 = vld [vmem:[#allocation18 + $0xa4] sm:$0xf] }
 0xd14   :  { %5535 = vmatpush.bf16.msra.mxu3 %v8894_v54  ;;  %5416 = vmatpush.bf16.msra.mxu1 %v8838_v2  ;;  %v8801_v54 = vld [vmem:[#allocation18 + $0xa0] sm:$0xf] }
 0xd15   :  { %v5289_v61 = vunpack.c.l.b16 %v5257_v44  ;;  %v8802_v51 = vor.u32 %v9908_v21, %v8801_v54  ;;  %v8806_v44 = vor.u32 %v9907_v31, %v8803_v17 }
 0xd17   :  { %v5290_v35 = vpack.c.b16 %v5289_v61, %v5288_v59  ;;  %5521 = vmatpush.bf16.msra.mxu2 %v8850_v62  ;;  %5401 = vmatpush.bf16.msra.mxu0 %v8802_v51  ;;  %v9906_v59 = vld [vmem:[#allocation18 + $0x94] sm:$0xf0]  ;;  %v9905_v61 = vld [vmem:[#allocation18 + $0x94] sm:$0xf] }
 0xd18   :  { %5536 = vmatpush.bf16.msra.mxu3 %v8886_v11  ;;  %5417 = vmatpush.bf16.msra.mxu1 %v8830_v60  ;;  %v8793_v11 = vld [vmem:[#allocation18 + $0x90] sm:$0xf] }
 0xd19   :  { %v8794_v14 = vor.u32 %v9906_v59, %v8793_v11 }
 0xd1b   :  { %8782 = vmatmul.msk.bf16.vlgmr.msrb.gmra.mxu3 %vm1783_vm13, %v5290_v35  ;;  %v8798_v35 = vor.u32 %v9905_v61, %v8795_v16  ;;  %5402 = vmatpush.bf16.msra.mxu0 %v8794_v14 }
 0xd1c   :  { %5537 = vmatpush.bf16.msra.mxu3 %v8878_v28  ;;  %5418 = vmatpush.bf16.msra.mxu1 %v8822_v50  ;;  %v8785_v28 = vld [vmem:[#allocation18 + $0x80] sm:$0xf] }
 0xd1d   :  { %v8786_v24 = vor.u32 %v9904_v55, %v8785_v28 }
 0xd1f   :  { %5403 = vmatpush.bf16.msra.mxu0 %v8786_v24 }
 0xd20   :  { %5538 = vmatpush.bf16.msra.mxu3 %v8870_v41  ;;  %5419 = vmatpush.bf16.msra.mxu1 %v8814_v4 }
 0xd24   :  { %5539 = vmatpush.bf16.msra.mxu3 %v8862_v38  ;;  %5420 = vmatpush.bf16.msra.mxu1 %v8806_v44  ;;  %v5561_v38 = vperm.slane %v3984_v52, 0 }
 0xd28   :  { %5540 = vmatpush.bf16.msra.mxu3 %v8854_v63  ;;  %5421 = vmatpush.bf16.msra.mxu1 %v8798_v35 }
 0xd2c   :  { %5422 = vmatpush.bf16.msra.mxu1 %v8790_v47 }
 0xd7c   :  { %v5107_v13 = vpop.f32.mrf.mxu2 }
 0xd84   :  { %v5109_v8 = vpop.f32.mrf.mxu2 }
 0xd85   :  { %v5140_v2 = vpack.c.bf16 %v5109_v8, %v5107_v13 }
 0xd87   :  { %5522 = vmatmul.bf16.vlgmr.msra.gmra.mxu2 %v5140_v2  ;;  %5541 = vmatmul.bf16.vlgmr.msra.gmra.mxu3 %v5140_v2 }
 0xd8d   :  { %v5281_v27 = vpop.f32.mrf.mxu2 }
 0xd8e   :  { %v5135_v43 = vpop.f32.mrf.mxu3 }
 0xd95   :  { %v5283_v45 = vpop.f32.mrf.mxu2 }
 0xd96   :  { %v5137_v18 = vpop.f32.mrf.mxu3  ;;  %v5314_v41 = vpack.c.bf16 %v5283_v45, %v5281_v27 }
 0xd97   :  { %v5141_v25 = vpack.c.bf16 %v5137_v18, %v5135_v43 }
 0xd98   :  { %5404 = vmatmul.bf16.vlgmr.msra.gmra.mxu0 %v5314_v41  ;;  %5423 = vmatmul.bf16.vlgmr.msra.gmra.mxu1 %v5314_v41 }
 0xd99   :  { %5527 = vmatmul.bf16.gmra.mxu2 %v5141_v25  ;;  %5546 = vmatmul.bf16.gmra.mxu3 %v5141_v25 }
 0xd9e   :  { %v5309_v1 = vpop.f32.mrf.mxu3 }
 0xda6   :  { %v5311_v3 = vpop.f32.mrf.mxu3 }
 0xda7   :  { %v5315_v15 = vpack.c.bf16 %v5311_v3, %v5309_v1 }
 0xda9   :  { %5409 = vmatmul.bf16.gmra.mxu0 %v5315_v15  ;;  %5428 = vmatmul.bf16.gmra.mxu1 %v5315_v15 }
 0xe0a   :  { %v5523_v60 = vpop.f32.mrf.mxu2  ;;  %v5542_v5 = vpop.f32.mrf.mxu3 }
 0xe12   :  { %v5525_v37 = vpop.f32.mrf.mxu2  ;;  %v5544_v40 = vpop.f32.mrf.mxu3 }
 0xe15   :  { %v5405_v39 = vpop.f32.mrf.mxu0  ;;  %v5424_v32 = vpop.f32.mrf.mxu1 }
 0xe16   :  { %v5524_v56 = vadd.f32 %v5523_v60, %v5405_v39  ;;  %v5543_v48 = vadd.f32 %v5542_v5, %v5424_v32 }
 0xe18   :  { %v5552_v46 = vadd.f32 %v5524_v56, %v12116_v58  ;;  %v5553_v33 = vadd.f32 %v5543_v48, %v12118_v6 }
 0xe1a   :  { %v12596_v7 = vadd.f32 %v5561_v38, %v5552_v46  ;;  %v12598_v50 = vadd.f32 %v5562_v19, %v5553_v33 }
 0xe1c   :  { %v5573_v62 = vadd.f32 %v12598_v50, %v12596_v7  ;;  %v5528_v0 = vpop.f32.mrf.mxu2  ;;  %v5547_v23 = vpop.f32.mrf.mxu3 }
 0xe1d   :  { %v5407_v34 = vpop.f32.mrf.mxu0  ;;  %v5426_v36 = vpop.f32.mrf.mxu1 }
 0xe1e   :  { %v5526_v63 = vadd.f32 %v5525_v37, %v5407_v34  ;;  %v5545_v42 = vadd.f32 %v5544_v40, %v5426_v36  ;;  %5574 = vadd.xlane.f32.xlu2 %v5573_v62  ;;  %v9025_v40 = vld [vmem:[#allocation24 + $0xe0] sm:$0xf]  ;;  %v9949_v62 = vld [vmem:[#allocation24 + $0xec] sm:$0xf0] }
 0xe1f   :  { %v9153_v34 = vld [vmem:[#allocation24 + $0x1e0] sm:$0xf]  ;;  %v9026_v36 = vor.u32 %v9949_v62, %v9025_v40 }
 0xe20   :  { %v5554_v26 = vadd.f32 %v5526_v63, %v12122_v9  ;;  %v5555_v58 = vadd.f32 %v5545_v42, %v12124_v49  ;;  %v9981_v63 = vld [vmem:[#allocation24 + $0x1ec] sm:$0xf0]  ;;  %v9947_v42 = vld [vmem:[#allocation24 + $0xe4] sm:$0xf]  ;;  %v8961_v62 = vld [vmem:[#allocation24 + $0x60] sm:$0xf] }
 0xe21   :  { %6032 = vmatpush.bf16.msrb.mxu0 %v9026_v36  ;;  %v9089_v36 = vld [vmem:[#allocation24 + $0x160] sm:$0xf] }
 0xe22   :  { %v12604_v29 = vadd.f32 %v5561_v38, %v5554_v26  ;;  %v12606_v6 = vadd.f32 %v5562_v19, %v5555_v58  ;;  %v9027_v26 = vld [vmem:[#allocation24 + $0xf0] sm:$0xf0]  ;;  %v9154_v58 = vor.u32 %v9981_v63, %v9153_v34  ;;  %v9933_v34 = vld [vmem:[#allocation24 + $0x6c] sm:$0xf0] }
 0xe23   :  { %v8962_v63 = vor.u32 %v9933_v34, %v8961_v62  ;;  %v9951_v62 = vld [vmem:[#allocation24 + $0x104] sm:$0xf]  ;;  %v9043_v34 = vld [vmem:[#allocation24 + $0x110] sm:$0xf0] }
 0xe24   :  { %v5576_v4 = vadd.f32 %v12606_v6, %v12604_v29  ;;  %v5530_v11 = vpop.f32.mrf.mxu2  ;;  %v5549_v59 = vpop.f32.mrf.mxu3  ;;  %6051 = vmatpush.bf16.msrb.mxu1 %v9154_v58  ;;  %v8963_v58 = vld [vmem:[#allocation24 + $0x70] sm:$0xf0] }
 0xe26   :  { %v5410_v54 = vpop.f32.mrf.mxu0  ;;  %v5429_v21 = vpop.f32.mrf.mxu1  ;;  %5577 = vadd.xlane.f32.xlu0 %v5576_v4  ;;  %v9155_v4 = vld [vmem:[#allocation24 + $0x1f0] sm:$0xf0] }
 0xe27   :  { %v5529_v31 = vadd.f32 %v5528_v0, %v5410_v54  ;;  %v5548_v51 = vadd.f32 %v5547_v23, %v5429_v21  ;;  %v9030_v0 = vor.u32 %v9947_v42, %v9027_v26  ;;  %v9979_v23 = vld [vmem:[#allocation24 + $0x1e4] sm:$0xf]  ;;  %v9009_v21 = vld [vmem:[#allocation24 + $0xc0] sm:$0xf]  ;;  %v9965_v42 = vld [vmem:[#allocation24 + $0x16c] sm:$0xf0] }
 0xe28   :  { %v9158_v54 = vor.u32 %v9979_v23, %v9155_v4  ;;  %v9931_v26 = vld [vmem:[#allocation24 + $0x64] sm:$0xf] }
 0xe29   :  { %v5556_v17 = vadd.f32 %v5529_v31, %v12128_v30  ;;  %v5557_v9 = vadd.f32 %v5548_v51, %v12130_v57  ;;  %6070 = vmatpush.bf16.msrb.mxu2 %v9030_v0  ;;  %v9945_v31 = vld [vmem:[#allocation24 + $0xcc] sm:$0xf0]  ;;  %v9137_v51 = vld [vmem:[#allocation24 + $0x1c0] sm:$0xf]  ;;  %v9090_v0 = vor.u32 %v9965_v42, %v9089_v36  ;;  %v8966_v23 = vor.u32 %v9931_v26, %v8963_v58  ;;  %v9963_v4 = vld [vmem:[#allocation24 + $0x164] sm:$0xf] }
 0xe2a   :  { %6089 = vmatpush.bf16.msrb.mxu3 %v9158_v54  ;;  %v9091_v54 = vld [vmem:[#allocation24 + $0x170] sm:$0xf0]  ;;  %v9033_v42 = vld [vmem:[#allocation24 + $0xe8] sm:$0xf]  ;;  %v9950_v26 = vld [vmem:[#allocation24 + $0xf4] sm:$0xf0] }
 0xe2b   :  { %v12612_v44 = vadd.f32 %v5561_v38, %v5556_v17  ;;  %v12614_v49 = vadd.f32 %v5562_v19, %v5557_v9  ;;  %v9010_v17 = vor.u32 %v9945_v31, %v9009_v21  ;;  %v9977_v9 = vld [vmem:[#allocation24 + $0x1cc] sm:$0xf0]  ;;  %v9094_v21 = vor.u32 %v9963_v4, %v9091_v54  ;;  %v8945_v31 = vld [vmem:[#allocation24 + $0x40] sm:$0xf]  ;;  %v9161_v58 = vld [vmem:[#allocation24 + $0x1e8] sm:$0xf] }
 0xe2c   :  { %v9948_v4 = vld [vmem:[#allocation24 + $0xec] sm:$0xf]  ;;  %v9035_v54 = vld [vmem:[#allocation24 + $0xf8] sm:$0xf0] }
 0xe2d   :  { %v5579_v61 = vadd.f32 %v12614_v49, %v12612_v44  ;;  %6033 = vmatpush.bf16.msrb.mxu0 %v9010_v17  ;;  %v9073_v17 = vld [vmem:[#allocation24 + $0x140] sm:$0xf] }
 0xe2e   :  { %v5412_v14 = vpop.f32.mrf.mxu0  ;;  %v5431_v16 = vpop.f32.mrf.mxu1 }
 0xe2f   :  { %v5531_v35 = vadd.f32 %v5530_v11, %v5412_v14  ;;  %v5550_v28 = vadd.f32 %v5549_v59, %v5431_v16  ;;  %5580 = vadd.xlane.f32.xlu1 %v5579_v61  ;;  %v9943_v11 = vld [vmem:[#allocation24 + $0xc4] sm:$0xf]  ;;  %v9011_v59 = vld [vmem:[#allocation24 + $0xd0] sm:$0xf0]  ;;  %v9138_v61 = vor.u32 %v9977_v9, %v9137_v51  ;;  %v9929_v51 = vld [vmem:[#allocation24 + $0x4c] sm:$0xf0] }
 0xe30   :  { %v9014_v14 = vor.u32 %v9943_v11, %v9011_v59  ;;  %v9975_v16 = vld [vmem:[#allocation24 + $0x1c4] sm:$0xf]  ;;  %v8946_v9 = vor.u32 %v9929_v51, %v8945_v31  ;;  %v9961_v11 = vld [vmem:[#allocation24 + $0x14c] sm:$0xf0]  ;;  %v9038_v51 = vor.u32 %v9948_v4, %v9035_v54  ;;  %v9970_v54 = vld [vmem:[#allocation24 + $0x194] sm:$0xf0] }
 0xe31   :  { %v5558_v55 = vadd.f32 %v5531_v35, %v12134_v12  ;;  %v5559_v30 = vadd.f32 %v5550_v28, %v12136_v10  ;;  %v9139_v35 = vld [vmem:[#allocation24 + $0x1d0] sm:$0xf0]  ;;  %6052 = vmatpush.bf16.msrb.mxu1 %v9138_v61  ;;  %v9927_v59 = vld [vmem:[#allocation24 + $0x44] sm:$0xf] }
 0xe32   :  { %v9142_v28 = vor.u32 %v9975_v16, %v9139_v35  ;;  %6071 = vmatpush.bf16.msrb.mxu2 %v9014_v14  ;;  %v8947_v61 = vld [vmem:[#allocation24 + $0x50] sm:$0xf0]  ;;  %v9074_v14 = vor.u32 %v9961_v11, %v9073_v17  ;;  %v9959_v35 = vld [vmem:[#allocation24 + $0x144] sm:$0xf]  ;;  %v9980_v17 = vld [vmem:[#allocation24 + $0x1ec] sm:$0xf] }
 0xe33   :  { %v12620_v53 = vadd.f32 %v5561_v38, %v5558_v55  ;;  %v12622_v57 = vadd.f32 %v5562_v19, %v5559_v30  ;;  %v8993_v55 = vld [vmem:[#allocation24 + $0xa0] sm:$0xf]  ;;  %v9941_v30 = vld [vmem:[#allocation24 + $0xac] sm:$0xf0]  ;;  %v8950_v16 = vor.u32 %v9927_v59, %v8947_v61  ;;  %v9017_v61 = vld [vmem:[#allocation24 + $0xc8] sm:$0xf] }
 0xe34   :  { %6090 = vmatpush.bf16.msrb.mxu3 %v9142_v28  ;;  %v9075_v28 = vld [vmem:[#allocation24 + $0x150] sm:$0xf0] }
 0xe35   :  { %v5582_v24 = vadd.f32 %v12622_v57, %v12620_v53 }
 0xe37   :  { %5583 = vadd.xlane.f32.xlu2 %v5582_v24  ;;  %v9121_v24 = vld [vmem:[#allocation24 + $0x1a0] sm:$0xf] }
 0xe91   :  { %v5575_v22 = vpop.xlane.xlu2 %5574 }
 0xe92   :  { %v5585_v47 = vmul.f32 %v5575_v22, %v11244_v20  ;;  %v8994_v22 = vor.u32 %v9941_v30, %v8993_v55  ;;  %v9078_v55 = vor.u32 %v9959_v35, %v9075_v28  ;;  %v8929_v30 = vld [vmem:[#allocation24 + $0x20] sm:$0xf] }
 0xe94   :  { %v12628_v13 = vsub.f32 %v12596_v7, %v5585_v47  ;;  %v12631_v8 = vsub.f32 %v12598_v50, %v5585_v47  ;;  %v9973_v47 = vld [vmem:[#allocation24 + $0x1ac] sm:$0xf0]  ;;  %6034 = vmatpush.bf16.msrb.mxu0 %v8994_v22  ;;  %v9057_v22 = vld [vmem:[#allocation24 + $0x120] sm:$0xf] }
 0xe96   :  { %v5597_v12 = vmul.f32 %v12628_v13, %v12628_v13  ;;  %v5598_v10 = vmul.f32 %v12631_v8, %v12631_v8 }
 0xe98   :  { %v5605_v2 = vadd.f32 %v5598_v10, %v5597_v12  ;;  %v9939_v12 = vld [vmem:[#allocation24 + $0xa4] sm:$0xf]  ;;  %v8995_v10 = vld [vmem:[#allocation24 + $0xb0] sm:$0xf0] }
 0xe99   :  { %v5578_v27 = vpop.xlane.xlu0 %5577 }
 0xe9a   :  { %v5586_v43 = vmul.f32 %v5578_v27, %v11244_v20  ;;  %5606 = vadd.xlane.f32.xlu0 %v5605_v2  ;;  %v9122_v2 = vor.u32 %v9973_v47, %v9121_v24  ;;  %v8998_v27 = vor.u32 %v9939_v12, %v8995_v10  ;;  %v9925_v24 = vld [vmem:[#allocation24 + $0x2c] sm:$0xf0]  ;;  %v9923_v10 = vld [vmem:[#allocation24 + $0x24] sm:$0xf] }
 0xe9b   :  { %v8930_v47 = vor.u32 %v9925_v24, %v8929_v30  ;;  %v9957_v12 = vld [vmem:[#allocation24 + $0x12c] sm:$0xf0]  ;;  %v9978_v30 = vld [vmem:[#allocation24 + $0x1d4] sm:$0xf0]  ;;  %v9944_v24 = vld [vmem:[#allocation24 + $0xcc] sm:$0xf] }
 0xe9c   :  { %v12639_v45 = vsub.f32 %v12604_v29, %v5586_v43  ;;  %v12642_v18 = vsub.f32 %v12606_v6, %v5586_v43  ;;  %v9971_v43 = vld [vmem:[#allocation24 + $0x1a4] sm:$0xf]  ;;  %6053 = vmatpush.bf16.msrb.mxu1 %v9122_v2  ;;  %6072 = vmatpush.bf16.msrb.mxu2 %v8998_v27  ;;  %v8931_v2 = vld [vmem:[#allocation24 + $0x30] sm:$0xf0] }
 0xe9e   :  { %v5599_v41 = vmul.f32 %v12639_v45, %v12639_v45  ;;  %v5600_v25 = vmul.f32 %v12642_v18, %v12642_v18 }
 0xea0   :  { %v5608_v1 = vadd.f32 %v5600_v25, %v5599_v41  ;;  %v9123_v41 = vld [vmem:[#allocation24 + $0x1b0] sm:$0xf0] }
 0xea1   :  { %v9126_v25 = vor.u32 %v9971_v43, %v9123_v41  ;;  %v9058_v43 = vor.u32 %v9957_v12, %v9057_v22  ;;  %v8934_v41 = vor.u32 %v9923_v10, %v8931_v2  ;;  %v9019_v12 = vld [vmem:[#allocation24 + $0xd8] sm:$0xf0]  ;;  %v9976_v10 = vld [vmem:[#allocation24 + $0x1cc] sm:$0xf] }
 0xea2   :  { %v5581_v3 = vpop.xlane.xlu1 %5580  ;;  %5609 = vadd.xlane.f32.xlu1 %v5608_v1  ;;  %v8977_v1 = vld [vmem:[#allocation24 + $0x80] sm:$0xf]  ;;  %v9147_v2 = vld [vmem:[#allocation24 + $0x1d8] sm:$0xf0] }
 0xea3   :  { %v5587_v15 = vmul.f32 %v5581_v3, %v11244_v20  ;;  %v9937_v3 = vld [vmem:[#allocation24 + $0x8c] sm:$0xf0]  ;;  %6091 = vmatpush.bf16.msrb.mxu3 %v9126_v25  ;;  %v9955_v25 = vld [vmem:[#allocation24 + $0x124] sm:$0xf] }
 0xea5   :  { %v12650_v60 = vsub.f32 %v12612_v44, %v5587_v15  ;;  %v12653_v5 = vsub.f32 %v12614_v49, %v5587_v15  ;;  %v9105_v15 = vld [vmem:[#allocation24 + $0x180] sm:$0xf] }
 0xea7   :  { %v5601_v52 = vmul.f32 %v12650_v60, %v12650_v60  ;;  %v5602_v39 = vmul.f32 %v12653_v5, %v12653_v5 }
 0xea9   :  { %v5611_v32 = vadd.f32 %v5602_v39, %v5601_v52  ;;  %v8978_v52 = vor.u32 %v9937_v3, %v8977_v1  ;;  %v9969_v39 = vld [vmem:[#allocation24 + $0x18c] sm:$0xf0]  ;;  %v9059_v1 = vld [vmem:[#allocation24 + $0x130] sm:$0xf0] }
 0xeaa   :  { %v5584_v56 = vpop.xlane.xlu2 %5583 }
 0xeab   :  { %v5588_v38 = vmul.f32 %v5584_v56, %v11244_v20  ;;  %5612 = vadd.xlane.f32.xlu2 %v5611_v32  ;;  %v9935_v32 = vld [vmem:[#allocation24 + $0x84] sm:$0xf]  ;;  %v8979_v56 = vld [vmem:[#allocation24 + $0x90] sm:$0xf0]  ;;  %6035 = vmatpush.bf16.msrb.mxu0 %v8978_v52  ;;  %v8913_v52 = vld [vmem:[#allocation24] sm:$0xf] }
 0xead   :  { %v12661_v48 = vsub.f32 %v12620_v53, %v5588_v38  ;;  %v12664_v19 = vsub.f32 %v12622_v57, %v5588_v38  ;;  %v9106_v38 = vor.u32 %v9969_v39, %v9105_v15  ;;  %v9062_v15 = vor.u32 %v9955_v25, %v9059_v1  ;;  %v9921_v39 = vld [vmem:[#allocation24 + $0xc] sm:$0xf0]  ;;  %v9001_v25 = vld [vmem:[#allocation24 + $0xa8] sm:$0xf]  ;;  %v9942_v1 = vld [vmem:[#allocation24 + $0xb4] sm:$0xf0] }
 0xeaf   :  { %v5603_v46 = vmul.f32 %v12661_v48, %v12661_v48  ;;  %v5604_v33 = vmul.f32 %v12664_v19, %v12664_v19  ;;  %6054 = vmatpush.bf16.msrb.mxu1 %v9106_v38  ;;  %6036 = vmatpush.bf16.msrb.mxu0 %v8962_v63  ;;  %v8914_v38 = vor.u32 %v9921_v39, %v8913_v52  ;;  %v9974_v52 = vld [vmem:[#allocation24 + $0x1b4] sm:$0xf0]  ;;  %v9940_v39 = vld [vmem:[#allocation24 + $0xac] sm:$0xf] }
 0xeb0   :  { %v9046_v63 = vor.u32 %v9951_v62, %v9043_v34  ;;  %v9131_v62 = vld [vmem:[#allocation24 + $0x1b8] sm:$0xf0] }
 0xeb1   :  { %v5614_v37 = vadd.f32 %v5604_v33, %v5603_v46  ;;  %v8982_v46 = vor.u32 %v9935_v32, %v8979_v56  ;;  %v9967_v33 = vld [vmem:[#allocation24 + $0x184] sm:$0xf]  ;;  %v9041_v32 = vld [vmem:[#allocation24 + $0x100] sm:$0xf]  ;;  %v3986_v34 = vld [vmem:[#allocation22] sm:$0x3] }
 0xeb3   :  { %5615 = vadd.xlane.f32.xlu0 %v5614_v37  ;;  %v9107_v37 = vld [vmem:[#allocation24 + $0x190] sm:$0xf0]  ;;  %6073 = vmatpush.bf16.msrb.mxu2 %v8982_v46  ;;  %v9953_v46 = vld [vmem:[#allocation24 + $0x10c] sm:$0xf0] }
 0xeb4   :  { %v9110_v40 = vor.u32 %v9967_v33, %v9107_v37  ;;  %6055 = vmatpush.bf16.msrb.mxu1 %v9090_v0  ;;  %6037 = vmatpush.bf16.msrb.mxu0 %v8946_v9  ;;  %v9919_v33 = vld [vmem:[#allocation24 + $0x4] sm:$0xf]  ;;  %v9042_v37 = vor.u32 %v9953_v46, %v9041_v32  ;;  %v9034_v0 = vor.u32 %v9950_v26, %v9033_v42  ;;  %v9163_v9 = vld [vmem:[#allocation24 + $0x1f8] sm:$0xf0]  ;;  %v8985_v42 = vld [vmem:[#allocation24 + $0x88] sm:$0xf] }
 0xeb5   :  { %v9166_v59 = vor.u32 %v9980_v17, %v9163_v9  ;;  %v9003_v32 = vld [vmem:[#allocation24 + $0xb8] sm:$0xf0]  ;;  %v9938_v26 = vld [vmem:[#allocation24 + $0x94] sm:$0xf0]  ;;  %v9968_v9 = vld [vmem:[#allocation24 + $0x18c] sm:$0xf] }
 0xeb6   :  { %6092 = vmatpush.bf16.msrb.mxu3 %v9110_v40  ;;  %v8915_v40 = vld [vmem:[#allocation24 + $0x10] sm:$0xf0]  ;;  %v8986_v4 = vor.u32 %v9938_v26, %v8985_v42  ;;  %v8987_v17 = vld [vmem:[#allocation24 + $0x98] sm:$0xf0] }
 0xeb7   :  { %6074 = vmatpush.bf16.msrb.mxu2 %v8966_v23  ;;  %v8918_v36 = vor.u32 %v9919_v33, %v8915_v40  ;;  %v9982_v23 = vld [vmem:[#allocation24 + $0x1f4] sm:$0xf0]  ;;  %v9972_v40 = vld [vmem:[#allocation24 + $0x1ac] sm:$0xf] }
 0xeb8   :  { %6056 = vmatpush.bf16.msrb.mxu1 %v9074_v14  ;;  %6038 = vmatpush.bf16.msrb.mxu0 %v8930_v47  ;;  %v9162_v31 = vor.u32 %v9982_v23, %v9161_v58  ;;  %v9946_v14 = vld [vmem:[#allocation24 + $0xd4] sm:$0xf0]  ;;  %v9113_v58 = vld [vmem:[#allocation24 + $0x188] sm:$0xf] }
 0xeba   :  { %6093 = vmatpush.bf16.msrb.mxu3 %v9094_v21 }
 0xebb   :  { %6075 = vmatpush.bf16.msrb.mxu2 %v8950_v16  ;;  %v9145_v16 = vld [vmem:[#allocation24 + $0x1c8] sm:$0xf] }
 0xebc   :  { %6057 = vmatpush.bf16.msrb.mxu1 %v9058_v43  ;;  %6039 = vmatpush.bf16.msrb.mxu0 %v8914_v38  ;;  %v9146_v47 = vor.u32 %v9978_v30, %v9145_v16  ;;  %v9150_v43 = vor.u32 %v9976_v10, %v9147_v2  ;;  %v3985_v38 = vld [vmem:[#allocation21] sm:$0x3]  ;;  %v9934_v10 = vld [vmem:[#allocation24 + $0x74] sm:$0xf0]  ;;  %v9097_v2 = vld [vmem:[#allocation24 + $0x168] sm:$0xf] }
 0xebd   :  { %v12693_v16 = vperm.slane %v3985_v38, 0 }
 0xebe   :  { %6094 = vmatpush.bf16.msrb.mxu3 %v9078_v55  ;;  %v9018_v55 = vor.u32 %v9946_v14, %v9017_v61 }
 0xebf   :  { %6076 = vmatpush.bf16.msrb.mxu2 %v8934_v41 }
 0xec0   :  { %6058 = vmatpush.bf16.msrb.mxu1 %v9042_v37  ;;  %6108 = vmatpush.bf16.msra.mxu0 %v9034_v0  ;;  %v9006_v37 = vor.u32 %v9940_v39, %v9003_v32  ;;  %v9964_v39 = vld [vmem:[#allocation24 + $0x16c] sm:$0xf]  ;;  %v9099_v32 = vld [vmem:[#allocation24 + $0x178] sm:$0xf0] }
 0xec2   :  { %6095 = vmatpush.bf16.msrb.mxu3 %v9062_v15  ;;  %v9002_v15 = vor.u32 %v9942_v1, %v9001_v25  ;;  %v9966_v25 = vld [vmem:[#allocation24 + $0x174] sm:$0xf0]  ;;  %v9932_v1 = vld [vmem:[#allocation24 + $0x6c] sm:$0xf] }
 0xec3   :  { %6077 = vmatpush.bf16.msrb.mxu2 %v8918_v36 }
 0xec4   :  { %6127 = vmatpush.bf16.msra.mxu1 %v9162_v31  ;;  %6109 = vmatpush.bf16.msra.mxu0 %v9018_v55  ;;  %v12695_v55 = vperm.slane %v3985_v38, 1 }
 0xec6   :  { %6096 = vmatpush.bf16.msrb.mxu3 %v9046_v63  ;;  %v9134_v63 = vor.u32 %v9972_v40, %v9131_v62  ;;  %v8953_v40 = vld [vmem:[#allocation24 + $0x48] sm:$0xf]  ;;  %v9930_v62 = vld [vmem:[#allocation24 + $0x54] sm:$0xf0] }
 0xec7   :  { %6146 = vmatpush.bf16.msra.mxu2 %v9038_v51  ;;  %v9114_v51 = vor.u32 %v9970_v54, %v9113_v58 }
 0xec8   :  { %6128 = vmatpush.bf16.msra.mxu1 %v9146_v47  ;;  %6110 = vmatpush.bf16.msra.mxu0 %v9002_v15  ;;  %v9098_v15 = vor.u32 %v9966_v25, %v9097_v2  ;;  %v8939_v2 = vld [vmem:[#allocation24 + $0x38] sm:$0xf0] }
 0xeca   :  { %6165 = vmatpush.bf16.msra.mxu3 %v9166_v59 }
 0xecc   :  { %6111 = vmatpush.bf16.msra.mxu0 %v8986_v4  ;;  %v9960_v4 = vld [vmem:[#allocation24 + $0x14c] sm:$0xf] }
 0xece   :  { %6166 = vmatpush.bf16.msra.mxu3 %v9150_v43 }
 0xed2   :  { %6167 = vmatpush.bf16.msra.mxu3 %v9134_v63  ;;  %v9928_v63 = vld [vmem:[#allocation24 + $0x4c] sm:$0xf] }
 0xf0d   :  { %v5607_v27 = vpop.xlane.xlu0 %5606 }
 0xf0e   :  { %v5617_v3 = vmul.f32 %v5607_v27, %v11244_v20  ;;  %v9022_v27 = vor.u32 %v9944_v24, %v9019_v12  ;;  %v8969_v12 = vld [vmem:[#allocation24 + $0x68] sm:$0xf] }
 0xf10   :  { %v12671_v56 = vadd.f32 1e-06, %v5617_v3  ;;  %v9129_v3 = vld [vmem:[#allocation24 + $0x1a8] sm:$0xf]  ;;  %6147 = vmatpush.bf16.msra.mxu2 %v9022_v27  ;;  %v12704_v27 = vperm.slane %v3986_v34, 1 }
 0xf11   :  { %v9130_v33 = vor.u32 %v9974_v52, %v9129_v3  ;;  %v8971_v52 = vld [vmem:[#allocation24 + $0x78] sm:$0xf0] }
 0xf12   :  { %10263 = vrsqrt.f32 %v12671_v56  ;;  %vm5631_vm7 = vweird.f32 %v12671_v56 }
 0xf13   :  { %6129 = vmatpush.bf16.msra.mxu1 %v9130_v33  ;;  %v8974_v33 = vor.u32 %v9932_v1, %v8971_v52  ;;  %v9067_v1 = vld [vmem:[#allocation24 + $0x138] sm:$0xf0] }
 0xf14   :  { %6148 = vmatpush.bf16.msra.mxu2 %v9006_v37  ;;  %v9102_v37 = vor.u32 %v9964_v39, %v9099_v32  ;;  %v9049_v39 = vld [vmem:[#allocation24 + $0x108] sm:$0xf]  ;;  %v9954_v32 = vld [vmem:[#allocation24 + $0x114] sm:$0xf0] }
 0xf15   :  { %v5610_v21 = vpop.xlane.xlu1 %5609 }
 0xf16   :  { %v5618_v11 = vmul.f32 %v5610_v21, %v11244_v20  ;;  %v9936_v21 = vld [vmem:[#allocation24 + $0x8c] sm:$0xf] }
 0xf17   :  { %v8990_v30 = vor.u32 %v9936_v21, %v8987_v17  ;;  %6130 = vmatpush.bf16.msra.mxu1 %v9114_v51  ;;  %v9083_v51 = vld [vmem:[#allocation24 + $0x158] sm:$0xf0]  ;;  %v8937_v17 = vld [vmem:[#allocation24 + $0x28] sm:$0xf] }
 0xf18   :  { %v12675_v35 = vpop.eup %10263  ;;  %v12677_v28 = vadd.f32 1e-06, %v5618_v11  ;;  %v9115_v11 = vld [vmem:[#allocation24 + $0x198] sm:$0xf0] }
 0xf19   :  { %v5626_v22 = vmul.f32 %v12675_v35, %v12671_v56  ;;  %vm5632_vm13 = vweird.f32 %v12675_v35  ;;  %v9118_v24 = vor.u32 %v9968_v9, %v9115_v11  ;;  %6149 = vmatpush.bf16.msra.mxu2 %v8990_v30  ;;  %v9926_v9 = vld [vmem:[#allocation24 + $0x34] sm:$0xf0] }
 0xf1a   :  { %10265 = vrsqrt.f32 %v12677_v28  ;;  %vm5633_vm8 = vmor %vm5631_vm7, %vm5632_vm13  ;;  %vm5641_vm10 = vweird.f32 %v12677_v28  ;;  %v9958_v30 = vld [vmem:[#allocation24 + $0x134] sm:$0xf0] }
 0xf1b   :  { %v5627_v41 = vmul.f32 %v12675_v35, %v5626_v22  ;;  %v12699_v22 = vperm.slane %v3986_v34, 0  ;;  %6168 = vmatpush.bf16.msra.mxu3 %v9118_v24  ;;  %6131 = vmatpush.bf16.msra.mxu1 %v9098_v15  ;;  %v8954_v34 = vor.u32 %v9930_v62, %v8953_v40 }
 0xf1d   :  { %v5628_v46 = vmul.f32 0.5, %v5627_v41  ;;  %v8970_v41 = vor.u32 %v9934_v10, %v8969_v12  ;;  %6150 = vmatpush.bf16.msra.mxu2 %v8974_v33  ;;  %v8938_v12 = vor.u32 %v9926_v9, %v8937_v17  ;;  %v9924_v10 = vld [vmem:[#allocation24 + $0x2c] sm:$0xf]  ;;  %v8923_v33 = vld [vmem:[#allocation24 + $0x18] sm:$0xf0] }
 0xf1e   :  { %v5613_v36 = vpop.xlane.xlu2 %5612  ;;  %v8942_v25 = vor.u32 %v9924_v10, %v8939_v2 }
 0xf1f   :  { %v5629_v0 = vsub.f32 1.5, %v5628_v46  ;;  %v5619_v23 = vmul.f32 %v5613_v36, %v11244_v20  ;;  %6112 = vmatpush.bf16.msra.mxu0 %v8970_v41  ;;  %v9962_v36 = vld [vmem:[#allocation24 + $0x154] sm:$0xf0]  ;;  %6169 = vmatpush.bf16.msra.mxu3 %v9102_v37 }
 0xf20   :  { %v12685_v31 = vpop.eup %10265 }
 0xf21   :  { %v5630_v59 = vmul.f32 %v12675_v35, %v5629_v0  ;;  %v5636_v61 = vmul.f32 %v12685_v31, %v12677_v28  ;;  %v12691_v14 = vadd.f32 1e-06, %v5619_v23  ;;  %vm5642_vm9 = vweird.f32 %v12685_v31  ;;  %v8955_v28 = vld [vmem:[#allocation24 + $0x58] sm:$0xf0] }
 0xf22   :  { %vm5643_vm11 = vmor %vm5641_vm10, %vm5642_vm9  ;;  %v8958_v21 = vor.u32 %v9928_v63, %v8955_v28 }
 0xf23   :  { %v5634_v47 = vsel %vm5633_vm8, %v12675_v35, %v5630_v59  ;;  %v5637_v56 = vmul.f32 %v12685_v31, %v5636_v61  ;;  %10267 = vrsqrt.f32 %v12691_v14  ;;  %6113 = vmatpush.bf16.msra.mxu0 %v8954_v34  ;;  %v9086_v59 = vor.u32 %v9960_v4, %v9083_v51  ;;  %v9065_v61 = vld [vmem:[#allocation24 + $0x128] sm:$0xf] }
 0xf24   :  { %v5665_v3 = vmul.f32 %v5634_v47, %v12628_v13  ;;  %v9081_v13 = vld [vmem:[#allocation24 + $0x148] sm:$0xf]  ;;  %v5666_v26 = vmul.f32 %v5634_v47, %v12631_v8  ;;  %6151 = vmatpush.bf16.msra.mxu2 %v8958_v21  ;;  %vm5651_vm14 = vweird.f32 %v12691_v14 }
 0xf25   :  { %v5638_v43 = vmul.f32 0.5, %v5637_v56  ;;  %v9082_v23 = vor.u32 %v9962_v36, %v9081_v13  ;;  %6170 = vmatpush.bf16.msra.mxu3 %v9086_v59  ;;  %v9952_v13 = vld [vmem:[#allocation24 + $0x10c] sm:$0xf]  ;;  %v9051_v36 = vld [vmem:[#allocation24 + $0x118] sm:$0xf0] }
 0xf26   :  { %v5616_v35 = vpop.xlane.xlu0 %5615  ;;  %v5678_v8 = vmul.f32 %v12693_v16, %v5665_v3  ;;  %v5679_v41 = vmul.f32 %v12695_v55, %v5666_v26  ;;  %v8921_v3 = vld [vmem:[#allocation24 + $0x8] sm:$0xf]  ;;  %v9054_v51 = vor.u32 %v9952_v13, %v9051_v36  ;;  %v9265_v13 = vld [vmem:[#allocation27 + $0xc0] sm:$0xf]  ;;  %v10008_v36 = vld [vmem:[#allocation27 + $0xc4] sm:$0xf0] }
 0xf27   :  { %v5639_v38 = vsub.f32 1.5, %v5638_v43  ;;  %v5620_v46 = vmul.f32 %v5616_v35, %v11244_v20  ;;  %6132 = vmatpush.bf16.msra.mxu1 %v9082_v23  ;;  %v9956_v43 = vld [vmem:[#allocation24 + $0x12c] sm:$0xf]  ;;  %v9922_v35 = vld [vmem:[#allocation24 + $0x14] sm:$0xf0]  ;;  %6114 = vmatpush.bf16.msra.mxu0 %v8938_v12 }
 0xf28   :  { %v9070_v52 = vor.u32 %v9956_v43, %v9067_v1  ;;  %v5691_v37 = vadd.f32 %v12699_v22, %v5678_v8  ;;  %v5692_v26 = vadd.f32 %v12704_v27, %v5679_v41  ;;  %6152 = vmatpush.bf16.msra.mxu2 %v8942_v25  ;;  %v10014_v25 = vld [vmem:[#allocation27 + $0xf4] sm:$0xf0] }
 0xf29   :  { %v12710_v42 = vpop.eup %10267  ;;  %v5640_v58 = vmul.f32 %v12685_v31, %v5639_v38  ;;  %v12716_v0 = vadd.f32 1e-06, %v5620_v46  ;;  %v8922_v38 = vor.u32 %v9922_v35, %v8921_v3  ;;  %v9920_v46 = vld [vmem:[#allocation24 + $0xc] sm:$0xf]  ;;  %v9209_v3 = vld [vmem:[#allocation27 + $0x50] sm:$0xf] }
 0xf2a   :  { %v5646_v54 = vmul.f32 %v12710_v42, %v12691_v14  ;;  %vm5652_vm12 = vweird.f32 %v12710_v42  ;;  %6171 = vmatpush.bf16.msra.mxu3 %v9070_v52  ;;  %v9994_v35 = vld [vmem:[#allocation27 + $0x54] sm:$0xf0] }
 0xf2b   :  { %v5644_v11 = vsel %vm5643_vm11, %v12685_v31, %v5640_v58  ;;  %10269 = vrsqrt.f32 %v12716_v0  ;;  %v9066_v31 = vor.u32 %v9958_v30, %v9065_v61  ;;  %v9050_v58 = vor.u32 %v9954_v32, %v9049_v39  ;;  %6115 = vmatpush.bf16.msra.mxu0 %v8922_v38  ;;  %vm5653_vm15 = vmor %vm5651_vm14, %vm5652_vm12  ;;  %v9201_v39 = vld [vmem:[#allocation27 + $0x40] sm:$0xf]  ;;  %v9992_v32 = vld [vmem:[#allocation27 + $0x44] sm:$0xf0] }
 0xf2c   :  { %v5667_v24 = vmul.f32 %v5644_v11, %v12639_v45  ;;  %v5668_v47 = vmul.f32 %v5644_v11, %v12642_v18  ;;  %v5647_v56 = vmul.f32 %v12710_v42, %v5646_v54  ;;  %v8926_v54 = vor.u32 %v9920_v46, %v8923_v33  ;;  %v9273_v46 = vld [vmem:[#allocation27 + $0xd0] sm:$0xf]  ;;  %v10010_v33 = vld [vmem:[#allocation27 + $0xd4] sm:$0xf0] }
 0xf2d   :  { %6133 = vmatpush.bf16.msra.mxu1 %v9066_v31  ;;  %vm5661_vm1 = vweird.f32 %v12716_v0  ;;  %v9289_v31 = vld [vmem:[#allocation27 + $0xf0] sm:$0xf]  ;;  %v9202_v38 = vor.u32 %v9992_v32, %v9201_v39 }
 0xf2e   :  { %v5680_v45 = vmul.f32 %v12693_v16, %v5667_v24  ;;  %v5681_v18 = vmul.f32 %v12695_v55, %v5668_v47  ;;  %v5648_v15 = vmul.f32 0.5, %v5647_v56  ;;  %6153 = vmatpush.bf16.msra.mxu2 %v8926_v54  ;;  %6172 = vmatpush.bf16.msra.mxu3 %v9054_v51  ;;  %v9290_v1 = vor.u32 %v10014_v25, %v9289_v31  ;;  %v10006_v54 = vld [vmem:[#allocation27 + $0xb4] sm:$0xf0]  ;;  %v9177_v51 = vld [vmem:[#allocation27 + $0x10] sm:$0xf] }
 0xf2f   :  { %v10000_v31 = vld [vmem:[#allocation27 + $0x84] sm:$0xf0] }
 0xf30   :  { %v5693_v40 = vadd.f32 %v12699_v22, %v5680_v45  ;;  %v5694_v62 = vadd.f32 %v12704_v27, %v5681_v18  ;;  %v5649_v34 = vsub.f32 1.5, %v5648_v15  ;;  %v9210_v45 = vor.u32 %v9994_v35, %v9209_v3  ;;  %v9281_v18 = vld [vmem:[#allocation27 + $0xe0] sm:$0xf]  ;;  %v10012_v15 = vld [vmem:[#allocation27 + $0xe4] sm:$0xf0] }
 0xf31   :  { %v10270_v63 = vpop.eup %10269  ;;  %6134 = vmatpush.bf16.msra.mxu1 %v9050_v58  ;;  %v9282_v52 = vor.u32 %v10012_v15, %v9281_v18  ;;  %v9988_v58 = vld [vmem:[#allocation27 + $0x24] sm:$0xf0]  ;;  %v9345_v18 = vld [vmem:[#allocation27 + $0x160] sm:$0xf] }
 0xf32   :  { %v5650_v23 = vmul.f32 %v12710_v42, %v5649_v34  ;;  %v5656_v28 = vmul.f32 %v10270_v63, %v12716_v0  ;;  %v5699_v4 = vpack.c.bf16 %v5693_v40, %v5691_v37  ;;  %v5700_v21 = vpack.c.bf16 %v5694_v62, %v5692_v26  ;;  %v9193_v40 = vld [vmem:[#allocation27 + $0x30] sm:$0xf]  ;;  %v9990_v62 = vld [vmem:[#allocation27 + $0x34] sm:$0xf0]  ;;  %v9185_v26 = vld [vmem:[#allocation27 + $0x20] sm:$0xf] }
 0xf33   :  { %vm5662_vm0 = vweird.f32 %v10270_v63  ;;  %v9274_v37 = vor.u32 %v10010_v33, %v9273_v46  ;;  %v9194_v34 = vor.u32 %v9990_v62, %v9193_v40  ;;  %v10028_v15 = vld [vmem:[#allocation27 + $0x164] sm:$0xf0]  ;;  %v9417_v62 = vld [vmem:[#allocation27 + $0x1f0] sm:$0xf] }
 0xf34   :  { %v5657_v17 = vmul.f32 %v10270_v63, %v5656_v28  ;;  %6040 = vmatmul.bf16.vlgmr.msrb.gmra.mxu0 %v5699_v4  ;;  %6078 = vmatmul.bf16.vlgmr.msrb.gmra.mxu2 %v5699_v4  ;;  %v5654_v9 = vsel %vm5653_vm15, %v12710_v42, %v5650_v23  ;;  %vm5663_vm2 = vmor %vm5661_vm1, %vm5662_vm0  ;;  %v9186_v23 = vor.u32 %v9988_v58, %v9185_v26  ;;  %v12753_v28 = vld [vmem:[#allocation25] sm:$0xf] }
 0xf35   :  { %6059 = vmatmul.bf16.vlgmr.msrb.gmra.mxu1 %v5700_v21  ;;  %6097 = vmatmul.bf16.vlgmr.msrb.gmra.mxu3 %v5700_v21  ;;  %v5669_v59 = vmul.f32 %v5654_v9, %v12650_v60  ;;  %v5670_v14 = vmul.f32 %v5654_v9, %v12653_v5  ;;  %v12756_v9 = vperm.slane %v12753_v28, 0  ;;  %v9346_v33 = vor.u32 %v10028_v15, %v9345_v18  ;;  %v9291_v58 = vld [vmem:[#allocation27 + $0xf8] sm:$0xf0]  ;;  %v9401_v18 = vld [vmem:[#allocation27 + $0x1d0] sm:$0xf] }
 0xf36   :  { %v5658_v8 = vmul.f32 0.5, %v5657_v17  ;;  %6680 = vmatpush.bf16.msrb.mxu1 %v9290_v1  ;;  %v9986_v17 = vld [vmem:[#allocation27 + $0x14] sm:$0xf0] }
 0xf37   :  { %v5682_v42 = vmul.f32 %v12693_v16, %v5669_v59  ;;  %v5683_v56 = vmul.f32 %v12695_v55, %v5670_v14  ;;  %v10004_v59 = vld [vmem:[#allocation27 + $0xa4] sm:$0xf0]  ;;  %v10042_v15 = vld [vmem:[#allocation27 + $0x1d4] sm:$0xf0] }
 0xf38   :  { %v5659_v11 = vsub.f32 1.5, %v5658_v8  ;;  %v9178_v8 = vor.u32 %v9986_v17, %v9177_v51 }
 0xf39   :  { %v5695_v60 = vadd.f32 %v12699_v22, %v5682_v42  ;;  %v5696_v0 = vadd.f32 %v12704_v27, %v5683_v56 }
 0xf3a   :  { %v5660_v61 = vmul.f32 %v10270_v63, %v5659_v11  ;;  %6681 = vmatpush.bf16.msrb.mxu1 %v9282_v52  ;;  %v9249_v11 = vld [vmem:[#allocation27 + $0xa0] sm:$0xf]  ;;  %v9995_v52 = vld [vmem:[#allocation27 + $0x64] sm:$0xf] }
 0xf3b   :  { %v9250_v14 = vor.u32 %v10004_v59, %v9249_v11 }
 0xf3c   :  { %v5664_v30 = vsel %vm5663_vm2, %v10270_v63, %v5660_v61  ;;  %v9266_v63 = vor.u32 %v10008_v36, %v9265_v13  ;;  %v10013_v13 = vld [vmem:[#allocation27 + $0xf4] sm:$0xf] }
 0xf3d   :  { %v5671_v24 = vmul.f32 %v5664_v30, %v12661_v48  ;;  %v5672_v47 = vmul.f32 %v5664_v30, %v12664_v19  ;;  %v9225_v19 = vld [vmem:[#allocation27 + $0x70] sm:$0xf]  ;;  %v9169_v30 = vld [vmem:[#allocation27] sm:$0xf] }
 0xf3e   :  { %6682 = vmatpush.bf16.msrb.mxu1 %v9274_v37  ;;  %v9219_v37 = vld [vmem:[#allocation27 + $0x68] sm:$0xf0] }
 0xf3f   :  { %v5684_v12 = vmul.f32 %v12693_v16, %v5671_v24  ;;  %v5685_v10 = vmul.f32 %v12695_v55, %v5672_v47  ;;  %v9998_v16 = vld [vmem:[#allocation27 + $0x74] sm:$0xf0]  ;;  %v9984_v24 = vld [vmem:[#allocation27 + $0x4] sm:$0xf0]  ;;  %v9222_v40 = vor.u32 %v9995_v52, %v9219_v37  ;;  %v10009_v52 = vld [vmem:[#allocation27 + $0xd4] sm:$0xf]  ;;  %v9402_v37 = vor.u32 %v10042_v15, %v9401_v18 }
 0xf40   :  { %v9226_v55 = vor.u32 %v9998_v16, %v9225_v19  ;;  %v9170_v56 = vor.u32 %v9984_v24, %v9169_v30  ;;  %v10044_v30 = vld [vmem:[#allocation27 + $0x1e4] sm:$0xf0] }
 0xf41   :  { %v5697_v5 = vadd.f32 %v12699_v22, %v5684_v12  ;;  %v5698_v2 = vadd.f32 %v12704_v27, %v5685_v10  ;;  %v9217_v22 = vld [vmem:[#allocation27 + $0x60] sm:$0xf]  ;;  %v9996_v27 = vld [vmem:[#allocation27 + $0x64] sm:$0xf0]  ;;  %v9241_v12 = vld [vmem:[#allocation27 + $0x90] sm:$0xf] }
 0xf42   :  { %6661 = vmatpush.bf16.msrb.mxu0 %v9226_v55  ;;  %v9218_v41 = vor.u32 %v9996_v27, %v9217_v22  ;;  %6683 = vmatpush.bf16.msrb.mxu1 %v9266_v63  ;;  %v10002_v10 = vld [vmem:[#allocation27 + $0x94] sm:$0xf0]  ;;  %v9227_v55 = vld [vmem:[#allocation27 + $0x78] sm:$0xf0] }
 0xf43   :  { %v5701_v43 = vpack.c.bf16 %v5697_v5, %v5695_v60  ;;  %v5702_v48 = vpack.c.bf16 %v5698_v2, %v5696_v0  ;;  %v12762_v5 = vperm.slane %v12753_v28, 1  ;;  %v9242_v0 = vor.u32 %v10002_v10, %v9241_v12  ;;  %v9353_v2 = vld [vmem:[#allocation27 + $0x170] sm:$0xf]  ;;  %v10011_v10 = vld [vmem:[#allocation27 + $0xe4] sm:$0xf] }
 0xf45   :  { %6045 = vmatmul.bf16.gmra.mxu0 %v5701_v43  ;;  %6064 = vmatmul.bf16.gmra.mxu1 %v5702_v48 }
 0xf46   :  { %6083 = vmatmul.bf16.gmra.mxu2 %v5701_v43  ;;  %6102 = vmatmul.bf16.gmra.mxu3 %v5702_v48 }
 0xf47   :  { %6662 = vmatpush.bf16.msrb.mxu0 %v9218_v41  ;;  %v9233_v41 = vld [vmem:[#allocation27 + $0x80] sm:$0xf] }
 0xf48   :  { %v9234_v35 = vor.u32 %v10000_v31, %v9233_v41 }
 0xf4b   :  { %6663 = vmatpush.bf16.msrb.mxu0 %v9210_v45 }
 0xf4f   :  { %6664 = vmatpush.bf16.msrb.mxu0 %v9202_v38 }
 0xf53   :  { %6665 = vmatpush.bf16.msrb.mxu0 %v9194_v34  ;;  %v10046_v34 = vld [vmem:[#allocation27 + $0x1f4] sm:$0xf0] }
 0xf55   :  { %6116 = vmatmul.bf16.vlgmr.msra.gmra.mxu0 %v5699_v4  ;;  %6135 = vmatmul.bf16.vlgmr.msra.gmra.mxu1 %v5700_v21 }
 0xf56   :  { %6154 = vmatmul.bf16.vlgmr.msra.gmra.mxu2 %v5699_v4  ;;  %6173 = vmatmul.bf16.vlgmr.msra.gmra.mxu3 %v5700_v21  ;;  %v9257_v4 = vld [vmem:[#allocation27 + $0xb0] sm:$0xf] }
 0xf57   :  { %6666 = vmatpush.bf16.msrb.mxu0 %v9186_v23  ;;  %v9258_v21 = vor.u32 %v10006_v54, %v9257_v4  ;;  %v9418_v23 = vor.u32 %v10046_v34, %v9417_v62  ;;  %v9294_v4 = vor.u32 %v10013_v13, %v9291_v58  ;;  %v9337_v54 = vld [vmem:[#allocation27 + $0x150] sm:$0xf]  ;;  %v10022_v34 = vld [vmem:[#allocation27 + $0x134] sm:$0xf0]  ;;  %v9989_v58 = vld [vmem:[#allocation27 + $0x34] sm:$0xf] }
 0xf58   :  { %v9321_v62 = vld [vmem:[#allocation27 + $0x130] sm:$0xf] }
 0xf59   :  { %6684 = vmatpush.bf16.msrb.mxu1 %v9258_v21  ;;  %v10026_v21 = vld [vmem:[#allocation27 + $0x154] sm:$0xf0]  ;;  %6718 = vmatpush.bf16.msrb.mxu3 %v9418_v23  ;;  %v9195_v23 = vld [vmem:[#allocation27 + $0x38] sm:$0xf0] }
 0xf5a   :  { %v9338_v59 = vor.u32 %v10026_v21, %v9337_v54  ;;  %v12795_v21 = vperm.slane %v12753_v28, 2 }
 0xf5b   :  { %6667 = vmatpush.bf16.msrb.mxu0 %v9178_v8  ;;  %v9993_v8 = vld [vmem:[#allocation27 + $0x54] sm:$0xf] }
 0xf5d   :  { %6685 = vmatpush.bf16.msrb.mxu1 %v9250_v14  ;;  %v9211_v14 = vld [vmem:[#allocation27 + $0x58] sm:$0xf0] }
 0xf5f   :  { %6668 = vmatpush.bf16.msrb.mxu0 %v9170_v56 }
 0xf61   :  { %6686 = vmatpush.bf16.msrb.mxu1 %v9242_v0  ;;  %v9283_v0 = vld [vmem:[#allocation27 + $0xe8] sm:$0xf0] }
 0xf65   :  { %6121 = vmatmul.bf16.gmra.mxu0 %v5701_v43  ;;  %6140 = vmatmul.bf16.gmra.mxu1 %v5702_v48 }
 0xf66   :  { %6159 = vmatmul.bf16.gmra.mxu2 %v5701_v43  ;;  %6178 = vmatmul.bf16.gmra.mxu3 %v5702_v48  ;;  %v10030_v43 = vld [vmem:[#allocation27 + $0x174] sm:$0xf0]  ;;  %v9997_v48 = vld [vmem:[#allocation27 + $0x74] sm:$0xf] }
 0xf67   :  { %v9354_v16 = vor.u32 %v10030_v43, %v9353_v2  ;;  %v9230_v27 = vor.u32 %v9997_v48, %v9227_v55  ;;  %6687 = vmatpush.bf16.msrb.mxu1 %v9234_v35  ;;  %v9214_v2 = vor.u32 %v9993_v8, %v9211_v14  ;;  %v9286_v48 = vor.u32 %v10011_v10, %v9283_v0  ;;  %v9991_v55 = vld [vmem:[#allocation27 + $0x44] sm:$0xf] }
 0xf68   :  { %v10007_v14 = vld [vmem:[#allocation27 + $0xc4] sm:$0xf] }
 0xf69   :  { %6699 = vmatpush.bf16.msrb.mxu2 %v9354_v16  ;;  %6737 = vmatpush.bf16.msra.mxu0 %v9230_v27  ;;  %v10024_v16 = vld [vmem:[#allocation27 + $0x144] sm:$0xf0]  ;;  %v9987_v10 = vld [vmem:[#allocation27 + $0x24] sm:$0xf] }
 0xf6b   :  { %6756 = vmatpush.bf16.msra.mxu1 %v9294_v4 }
 0xf6d   :  { %6700 = vmatpush.bf16.msrb.mxu2 %v9346_v33  ;;  %6738 = vmatpush.bf16.msra.mxu0 %v9222_v40  ;;  %v9275_v40 = vld [vmem:[#allocation27 + $0xd8] sm:$0xf0] }
 0xf6f   :  { %6757 = vmatpush.bf16.msra.mxu1 %v9286_v48 }
 0xf71   :  { %6701 = vmatpush.bf16.msrb.mxu2 %v9338_v59  ;;  %6739 = vmatpush.bf16.msra.mxu0 %v9214_v2  ;;  %v10040_v59 = vld [vmem:[#allocation27 + $0x1c4] sm:$0xf0] }
 0xfb1   :  { %v6041_v61 = vpop.f32.mrf.mxu0 }
 0xfb2   :  { %v6042_v47 = vadd.f32 %v6041_v61, %v12756_v9  ;;  %v6060_v42 = vpop.f32.mrf.mxu1  ;;  %v9409_v61 = vld [vmem:[#allocation27 + $0x1e0] sm:$0xf] }
 0xfb3   :  { %v9410_v43 = vor.u32 %v10044_v30, %v9409_v61  ;;  %v9267_v61 = vld [vmem:[#allocation27 + $0xc8] sm:$0xf0] }
 0xfb4   :  { %v12759_v60 = vadd.f32 %v6060_v42, %v6042_v47 }
 0xfb5   :  { %6719 = vmatpush.bf16.msrb.mxu3 %v9410_v43 }
 0xfb6   :  { %v6200_v19 = vmul.f32 0.044715, %v12759_v60  ;;  %v12791_v4 = vmul.f32 0.5, %v12759_v60 }
 0xfb7   :  { %v6079_v22 = vpop.f32.mrf.mxu2 }
 0xfb8   :  { %v6216_v25 = vmul.f32 %v6200_v19, %v12759_v60  ;;  %v6080_v1 = vadd.f32 %v6079_v22, %v12762_v5  ;;  %v6098_v3 = vpop.f32.mrf.mxu3  ;;  %v9329_v19 = vld [vmem:[#allocation27 + $0x140] sm:$0xf] }
 0xfb9   :  { %v6043_v45 = vpop.f32.mrf.mxu0  ;;  %6720 = vmatpush.bf16.msrb.mxu3 %v9402_v37 }
 0xfba   :  { %v6232_v39 = vmul.f32 %v6216_v25, %v12759_v60  ;;  %v12768_v32 = vadd.f32 %v6098_v3, %v6080_v1  ;;  %v6044_v38 = vadd.f32 %v6043_v45, %v12756_v9  ;;  %v6062_v46 = vpop.f32.mrf.mxu1  ;;  %v9330_v1 = vor.u32 %v10024_v16, %v9329_v19  ;;  %v9203_v3 = vld [vmem:[#allocation27 + $0x48] sm:$0xf0] }
 0xfbb   :  { %v9206_v45 = vor.u32 %v9991_v55, %v9203_v3  ;;  %v10038_v3 = vld [vmem:[#allocation27 + $0x1b4] sm:$0xf0] }
 0xfbc   :  { %v6248_v36 = vadd.f32 %v6232_v39, %v12759_v60  ;;  %v6201_v63 = vmul.f32 0.044715, %v12768_v32  ;;  %v12773_v26 = vadd.f32 %v6062_v46, %v6044_v38  ;;  %6702 = vmatpush.bf16.msrb.mxu2 %v9330_v1  ;;  %v12800_v2 = vmul.f32 0.5, %v12768_v32  ;;  %v9385_v1 = vld [vmem:[#allocation27 + $0x1b0] sm:$0xf] }
 0xfbd   :  { %6740 = vmatpush.bf16.msra.mxu0 %v9206_v45 }
 0xfbe   :  { %v6217_v51 = vmul.f32 %v6201_v63, %v12768_v32  ;;  %v6204_v17 = vmul.f32 0.044715, %v12773_v26  ;;  %v6264_v24 = vmul.f32 0.7978846, %v6248_v36  ;;  %v9278_v63 = vor.u32 %v10009_v52, %v9275_v40  ;;  %v9305_v40 = vld [vmem:[#allocation27 + $0x110] sm:$0xf] }
 0xfbf   :  { %v6081_v11 = vpop.f32.mrf.mxu2  ;;  %v6188_v45 = vmul.f32 0.5, %v12773_v26  ;;  %v9386_v52 = vor.u32 %v10038_v3, %v9385_v1  ;;  %v10034_v1 = vld [vmem:[#allocation27 + $0x194] sm:$0xf0] }
 0xfc0   :  { %v6233_v47 = vmul.f32 %v6217_v51, %v12768_v32  ;;  %v6220_v42 = vmul.f32 %v6204_v17, %v12773_v26  ;;  %v6082_v56 = vadd.f32 %v6081_v11, %v12762_v5  ;;  %v6100_v12 = vpop.f32.mrf.mxu3  ;;  %10271 = vtanh.f32 %v6264_v24  ;;  %v9393_v17 = vld [vmem:[#allocation27 + $0x1c0] sm:$0xf]  ;;  %6758 = vmatpush.bf16.msra.mxu1 %v9278_v63  ;;  %v9985_v63 = vld [vmem:[#allocation27 + $0x14] sm:$0xf] }
 0xfc1   :  { %v9322_v51 = vor.u32 %v10022_v34, %v9321_v62  ;;  %v9198_v11 = vor.u32 %v9989_v58, %v9195_v23  ;;  %v10018_v62 = vld [vmem:[#allocation27 + $0x114] sm:$0xf0] }
 0xfc2   :  { %v6249_v22 = vadd.f32 %v6233_v47, %v12768_v32  ;;  %v6236_v27 = vmul.f32 %v6220_v42, %v12773_v26  ;;  %v12782_v41 = vadd.f32 %v6100_v12, %v6082_v56  ;;  %v6046_v31 = vpop.f32.mrf.mxu0  ;;  %v6065_v25 = vpop.f32.mrf.mxu1  ;;  %v9394_v47 = vor.u32 %v10040_v59, %v9393_v17  ;;  %v9313_v56 = vld [vmem:[#allocation27 + $0x120] sm:$0xf]  ;;  %v10020_v12 = vld [vmem:[#allocation27 + $0x124] sm:$0xf0] }
 0xfc3   :  { %v6047_v35 = vadd.f32 %v6046_v31, %v12756_v9  ;;  %6703 = vmatpush.bf16.msrb.mxu2 %v9322_v51  ;;  %v9270_v42 = vor.u32 %v10007_v14, %v9267_v61  ;;  %v9314_v55 = vor.u32 %v10020_v12, %v9313_v56  ;;  %6741 = vmatpush.bf16.msra.mxu0 %v9198_v11  ;;  %v9179_v51 = vld [vmem:[#allocation27 + $0x18] sm:$0xf0]  ;;  %v9377_v59 = vld [vmem:[#allocation27 + $0x1a0] sm:$0xf]  ;;  %v9251_v56 = vld [vmem:[#allocation27 + $0xa8] sm:$0xf0] }
 0xfc4   :  { %v6265_v39 = vmul.f32 0.7978846, %v6249_v22  ;;  %v6252_v38 = vadd.f32 %v6236_v27, %v12773_v26  ;;  %v6205_v46 = vmul.f32 0.044715, %v12782_v41  ;;  %v9187_v22 = vld [vmem:[#allocation27 + $0x28] sm:$0xf0]  ;;  %6721 = vmatpush.bf16.msrb.mxu3 %v9394_v47  ;;  %v9182_v11 = vor.u32 %v9985_v63, %v9179_v51 }
 0xfc5   :  { %v12787_v33 = vadd.f32 %v6065_v25, %v6047_v35  ;;  %v9190_v25 = vor.u32 %v9987_v10, %v9187_v22  ;;  %v10005_v35 = vld [vmem:[#allocation27 + $0xb4] sm:$0xf]  ;;  %6759 = vmatpush.bf16.msra.mxu1 %v9270_v42  ;;  %v10003_v42 = vld [vmem:[#allocation27 + $0xa4] sm:$0xf]  ;;  %v9297_v12 = vld [vmem:[#allocation27 + $0x100] sm:$0xf] }
 0xfc6   :  { %10273 = vtanh.f32 %v6265_v39  ;;  %v6268_v13 = vmul.f32 0.7978846, %v6252_v38  ;;  %v6221_v36 = vmul.f32 %v6205_v46, %v12782_v41  ;;  %v10272_v0 = vpop.eup %10271  ;;  %v9259_v39 = vld [vmem:[#allocation27 + $0xb8] sm:$0xf0]  ;;  %v9171_v22 = vld [vmem:[#allocation27 + $0x8] sm:$0xf0] }
 0xfc7   :  { %v6208_v54 = vmul.f32 0.044715, %v12787_v33  ;;  %v6296_v38 = vadd.f32 1.0, %v10272_v0  ;;  %6704 = vmatpush.bf16.msrb.mxu2 %v9314_v55  ;;  %v9262_v37 = vor.u32 %v10005_v35, %v9259_v39  ;;  %6742 = vmatpush.bf16.msra.mxu0 %v9190_v25  ;;  %v9983_v55 = vld [vmem:[#allocation27 + $0x4] sm:$0xf] }
 0xfc8   :  { %10275 = vtanh.f32 %v6268_v13  ;;  %v6237_v8 = vmul.f32 %v6221_v36, %v12782_v41  ;;  %v12813_v13 = vmul.f32 0.5, %v12782_v41  ;;  %v9306_v36 = vor.u32 %v10018_v62, %v9305_v40  ;;  %6722 = vmatpush.bf16.msrb.mxu3 %v9386_v52  ;;  %v9369_v25 = vld [vmem:[#allocation27 + $0x190] sm:$0xf]  ;;  %v9243_v52 = vld [vmem:[#allocation27 + $0x98] sm:$0xf0] }
 0xfc9   :  { %v6224_v60 = vmul.f32 %v6208_v54, %v12787_v33  ;;  %v6084_v30 = vpop.f32.mrf.mxu2  ;;  %v6103_v24 = vpop.f32.mrf.mxu3  ;;  %6760 = vmatpush.bf16.msra.mxu1 %v9262_v37  ;;  %v9370_v37 = vor.u32 %v10034_v1, %v9369_v25  ;;  %v10029_v40 = vld [vmem:[#allocation27 + $0x174] sm:$0xf]  ;;  %v9355_v62 = vld [vmem:[#allocation27 + $0x178] sm:$0xf0] }
 0xfca   :  { %v6253_v43 = vadd.f32 %v6237_v8, %v12782_v41  ;;  %v6085_v48 = vadd.f32 %v6084_v30, %v12762_v5  ;;  %v6048_v19 = vpop.f32.mrf.mxu0  ;;  %v6067_v16 = vpop.f32.mrf.mxu1  ;;  %v10036_v41 = vld [vmem:[#allocation27 + $0x1a4] sm:$0xf0]  ;;  %v6312_v30 = vmul.f32 %v6296_v38, %v12791_v4 }
 0xfcb   :  { %v6049_v27 = vadd.f32 %v6048_v19, %v12756_v9  ;;  %v6240_v31 = vmul.f32 %v6224_v60, %v12787_v33  ;;  %6705 = vmatpush.bf16.msrb.mxu2 %v9306_v36  ;;  %v9378_v47 = vor.u32 %v10036_v41, %v9377_v59  ;;  %v9254_v19 = vor.u32 %v10003_v42, %v9251_v56  ;;  %v9361_v59 = vld [vmem:[#allocation27 + $0x180] sm:$0xf]  ;;  %v9999_v41 = vld [vmem:[#allocation27 + $0x84] sm:$0xf] }
 0xfcc   :  { %v10274_v32 = vpop.eup %10273  ;;  %v6269_v18 = vmul.f32 0.7978846, %v6253_v43  ;;  %v12807_v15 = vadd.f32 %v6103_v24, %v6085_v48  ;;  %6743 = vmatpush.bf16.msra.mxu0 %v9182_v11  ;;  %v9358_v11 = vor.u32 %v10029_v40, %v9355_v62 }
 0xfcd   :  { %v12809_v46 = vadd.f32 %v6067_v16, %v6049_v27  ;;  %v6256_v9 = vadd.f32 %v6240_v31, %v12787_v33  ;;  %v6297_v58 = vadd.f32 1.0, %v10274_v32  ;;  %v10016_v16 = vld [vmem:[#allocation27 + $0x104] sm:$0xf0]  ;;  %6723 = vmatpush.bf16.msrb.mxu3 %v9378_v47  ;;  %6761 = vmatpush.bf16.msra.mxu1 %v9254_v19 }
 0xfce   :  { %v10276_v34 = vpop.eup %10275  ;;  %10277 = vtanh.f32 %v6269_v18  ;;  %v6209_v26 = vmul.f32 0.044715, %v12807_v15  ;;  %v9174_v18 = vor.u32 %v9983_v55, %v9171_v22  ;;  %v9419_v55 = vld [vmem:[#allocation27 + $0x1f8] sm:$0xf0] }
 0xfcf   :  { %v6300_v23 = vadd.f32 1.0, %v10276_v34  ;;  %v6212_v54 = vmul.f32 0.044715, %v12809_v46  ;;  %v6272_v8 = vmul.f32 0.7978846, %v6256_v9 }
 0xfd0   :  { %v6225_v17 = vmul.f32 %v6209_v26, %v12807_v15  ;;  %v12835_v26 = vperm.slane %v12753_v28, 3  ;;  %6744 = vmatpush.bf16.msra.mxu0 %v9174_v18  ;;  %v10032_v28 = vld [vmem:[#allocation27 + $0x184] sm:$0xf0] }
 0xfd1   :  { %v6228_v14 = vmul.f32 %v6212_v54, %v12809_v46  ;;  %v6086_v61 = vpop.f32.mrf.mxu2  ;;  %v6105_v60 = vpop.f32.mrf.mxu3  ;;  %v6316_v24 = vmul.f32 %v6300_v23, %v6188_v45  ;;  %10279 = vtanh.f32 %v6272_v8  ;;  %v9298_v45 = vor.u32 %v10016_v16, %v9297_v12  ;;  %6724 = vmatpush.bf16.msrb.mxu3 %v9370_v37  ;;  %v10045_v16 = vld [vmem:[#allocation27 + $0x1f4] sm:$0xf] }
 0xfd2   :  { %v6087_v10 = vadd.f32 %v6086_v61, %v12762_v5  ;;  %v6117_v0 = vpop.f32.mrf.mxu0  ;;  %v6136_v43 = vpop.f32.mrf.mxu1  ;;  %v6241_v48 = vmul.f32 %v6225_v17, %v12807_v15  ;;  %v10001_v5 = vld [vmem:[#allocation27 + $0x94] sm:$0xf]  ;;  %v6313_v54 = vmul.f32 %v6297_v58, %v12800_v2  ;;  %v9235_v2 = vld [vmem:[#allocation27 + $0x88] sm:$0xf0]  ;;  %v9362_v12 = vor.u32 %v10032_v28, %v9361_v59 }
 0xfd3   :  { %v6118_v27 = vadd.f32 %v6117_v0, %v12795_v21  ;;  %v12823_v31 = vpack.c.bf16 %v6316_v24, %v6312_v30  ;;  %v6244_v4 = vmul.f32 %v6228_v14, %v12809_v46  ;;  %6706 = vmatpush.bf16.msrb.mxu2 %v9298_v45  ;;  %v9246_v63 = vor.u32 %v10001_v5, %v9243_v52  ;;  %v9347_v0 = vld [vmem:[#allocation27 + $0x168] sm:$0xf0] }
 0xfd4   :  { %v10278_v3 = vpop.eup %10277  ;;  %v12826_v35 = vadd.f32 %v6105_v60, %v6087_v10  ;;  %v6257_v32 = vadd.f32 %v6241_v48, %v12807_v15  ;;  %v9238_v10 = vor.u32 %v9999_v41, %v9235_v2  ;;  %v9331_v41 = vld [vmem:[#allocation27 + $0x148] sm:$0xf0] }
 0xfd5   :  { %v6301_v39 = vadd.f32 1.0, %v10278_v3  ;;  %v12829_v38 = vadd.f32 %v6136_v43, %v6118_v27  ;;  %6669 = vmatmul.bf16.vlgmr.msrb.gmra.mxu0 %v12823_v31  ;;  %v6260_v9 = vadd.f32 %v6244_v4, %v12809_v46  ;;  %6762 = vmatpush.bf16.msra.mxu1 %v9246_v63  ;;  %v9422_v4 = vor.u32 %v10045_v16, %v9419_v55  ;;  %v10025_v3 = vld [vmem:[#allocation27 + $0x154] sm:$0xf]  ;;  %v9323_v16 = vld [vmem:[#allocation27 + $0x138] sm:$0xf0] }
 0xfd6   :  { %v6213_v34 = vmul.f32 0.044715, %v12826_v35  ;;  %v6273_v36 = vmul.f32 0.7978846, %v6257_v32  ;;  %6725 = vmatpush.bf16.msrb.mxu3 %v9362_v12  ;;  %v9339_v32 = vld [vmem:[#allocation27 + $0x158] sm:$0xf0] }
 0xfd7   :  { %v6202_v23 = vmul.f32 0.044715, %v12829_v38  ;;  %v6317_v51 = vmul.f32 %v6301_v39, %v12813_v13  ;;  %v6276_v17 = vmul.f32 0.7978846, %v6260_v9  ;;  %v10280_v14 = vpop.eup %10279  ;;  %v10027_v13 = vld [vmem:[#allocation27 + $0x164] sm:$0xf]  ;;  %6775 = vmatpush.bf16.msra.mxu2 %v9358_v11  ;;  %v9342_v39 = vor.u32 %v10025_v3, %v9339_v32 }
 0xfd8   :  { %v6229_v8 = vmul.f32 %v6213_v34, %v12826_v35  ;;  %10281 = vtanh.f32 %v6273_v36  ;;  %v9350_v19 = vor.u32 %v10027_v13, %v9347_v0  ;;  %v6304_v5 = vadd.f32 1.0, %v10280_v14  ;;  %v10043_v9 = vld [vmem:[#allocation27 + $0x1e4] sm:$0xf]  ;;  %v10041_v14 = vld [vmem:[#allocation27 + $0x1d4] sm:$0xf] }
 0xfd9   :  { %v6218_v61 = vmul.f32 %v6202_v23, %v12829_v38  ;;  %v6155_v60 = vpop.f32.mrf.mxu2  ;;  %v6174_v30 = vpop.f32.mrf.mxu3  ;;  %v12842_v24 = vpack.c.bf16 %v6317_v51, %v6313_v54  ;;  %10283 = vtanh.f32 %v6276_v17  ;;  %6763 = vmatpush.bf16.msra.mxu1 %v9238_v10  ;;  %v6192_v34 = vmul.f32 0.5, %v12787_v33  ;;  %v9411_v54 = vld [vmem:[#allocation27 + $0x1e8] sm:$0xf0]  ;;  %v10023_v51 = vld [vmem:[#allocation27 + $0x144] sm:$0xf] }
 0xfda   :  { %v6156_v58 = vadd.f32 %v6155_v60, %v12835_v26  ;;  %v6119_v47 = vpop.f32.mrf.mxu0  ;;  %v6138_v42 = vpop.f32.mrf.mxu1  ;;  %v6245_v56 = vmul.f32 %v6229_v8, %v12826_v35  ;;  %6794 = vmatpush.bf16.msra.mxu3 %v9422_v4  ;;  %v6196_v63 = vmul.f32 0.5, %v12809_v46  ;;  %v9414_v28 = vor.u32 %v10043_v9, %v9411_v54  ;;  %v10039_v9 = vld [vmem:[#allocation27 + $0x1c4] sm:$0xf] }
 0xfdb   :  { %v6234_v43 = vmul.f32 %v6218_v61, %v12829_v38  ;;  %v6120_v48 = vadd.f32 %v6119_v47, %v12795_v21  ;;  %6688 = vmatmul.bf16.vlgmr.msrb.gmra.mxu1 %v12842_v24  ;;  %6776 = vmatpush.bf16.msra.mxu2 %v9350_v19  ;;  %v6320_v59 = vmul.f32 %v6304_v5, %v6192_v34  ;;  %v9403_v61 = vld [vmem:[#allocation27 + $0x1d8] sm:$0xf0]  ;;  %v10021_v19 = vld [vmem:[#allocation27 + $0x134] sm:$0xf]  ;;  %v6193_v4 = vmul.f32 0.5, %v12807_v15 }
 0xfdc   :  { %v12849_v22 = vadd.f32 %v6174_v30, %v6156_v58  ;;  %v6261_v27 = vadd.f32 %v6245_v56, %v12826_v35  ;;  %v9334_v13 = vor.u32 %v10023_v51, %v9331_v41  ;;  %v9406_v56 = vor.u32 %v10041_v14, %v9403_v61  ;;  %v10037_v41 = vld [vmem:[#allocation27 + $0x1b4] sm:$0xf]  ;;  %v9387_v14 = vld [vmem:[#allocation27 + $0x1b8] sm:$0xf0] }
 0xfdd   :  { %v6250_v25 = vadd.f32 %v6234_v43, %v12829_v38  ;;  %v12853_v1 = vadd.f32 %v6138_v42, %v6120_v48  ;;  %v6197_v32 = vmul.f32 0.5, %v12826_v35 }
 0xfde   :  { %v10282_v45 = vpop.eup %10281  ;;  %v6203_v18 = vmul.f32 0.044715, %v12849_v22  ;;  %v6277_v52 = vmul.f32 0.7978846, %v6261_v27  ;;  %6795 = vmatpush.bf16.msra.mxu3 %v9414_v28 }
 0xfdf   :  { %v10284_v37 = vpop.eup %10283  ;;  %v6266_v40 = vmul.f32 0.7978846, %v6250_v25  ;;  %v6206_v62 = vmul.f32 0.044715, %v12853_v1  ;;  %6777 = vmatpush.bf16.msra.mxu2 %v9342_v39  ;;  %v6305_v42 = vadd.f32 1.0, %v10282_v45  ;;  %v9326_v25 = vor.u32 %v10021_v19, %v9323_v16 }
 0xfe0   :  { %v6219_v36 = vmul.f32 %v6203_v18, %v12849_v22  ;;  %v6308_v23 = vadd.f32 1.0, %v10284_v37  ;;  %10285 = vtanh.f32 %v6277_v52  ;;  %v9395_v37 = vld [vmem:[#allocation27 + $0x1c8] sm:$0xf0]  ;;  %v6186_v19 = vmul.f32 0.5, %v12829_v38 }
 0xfe1   :  { %v6222_v17 = vmul.f32 %v6206_v62, %v12853_v1  ;;  %v6157_v8 = vpop.f32.mrf.mxu2  ;;  %v6176_v11 = vpop.f32.mrf.mxu3  ;;  %10287 = vtanh.f32 %v6266_v40  ;;  %v6321_v39 = vmul.f32 %v6305_v42, %v6193_v4 }
 0xfe2   :  { %v6235_v60 = vmul.f32 %v6219_v36, %v12849_v22  ;;  %v6158_v33 = vadd.f32 %v6157_v8, %v12835_v26  ;;  %v6122_v30 = vpop.f32.mrf.mxu0  ;;  %v6141_v2 = vpop.f32.mrf.mxu1  ;;  %v6324_v46 = vmul.f32 %v6308_v23, %v6196_v63  ;;  %6796 = vmatpush.bf16.msra.mxu3 %v9406_v56  ;;  %v9398_v36 = vor.u32 %v10039_v9, %v9395_v37  ;;  %v10019_v63 = vld [vmem:[#allocation27 + $0x124] sm:$0xf]  ;;  %v9315_v23 = vld [vmem:[#allocation27 + $0x128] sm:$0xf0]  ;;  %v9371_v9 = vld [vmem:[#allocation27 + $0x198] sm:$0xf0] }
 0xfe3   :  { %v6238_v58 = vmul.f32 %v6222_v17, %v12853_v1  ;;  %v6123_v47 = vadd.f32 %v6122_v30, %v12795_v21  ;;  %6778 = vmatpush.bf16.msra.mxu2 %v9334_v13  ;;  %v9318_v8 = vor.u32 %v10019_v63, %v9315_v23  ;;  %v9390_v30 = vor.u32 %v10037_v41, %v9387_v14  ;;  %v10017_v13 = vld [vmem:[#allocation27 + $0x114] sm:$0xf] }
 0xfe4   :  { %v6251_v12 = vadd.f32 %v6235_v60, %v12849_v22  ;;  %v12866_v10 = vadd.f32 %v6176_v11, %v6158_v33  ;;  %v12868_v0 = vpack.c.bf16 %v6324_v46, %v6320_v59 }
 0xfe5   :  { %v6254_v43 = vadd.f32 %v6238_v58, %v12853_v1  ;;  %v12871_v48 = vadd.f32 %v6141_v2, %v6123_v47  ;;  %v9307_v58 = vld [vmem:[#allocation27 + $0x118] sm:$0xf0] }
 0xfe6   :  { %v10286_v55 = vpop.eup %10285  ;;  %v6207_v27 = vmul.f32 0.044715, %v12866_v10  ;;  %6674 = vmatmul.bf16.gmra.mxu0 %v12868_v0  ;;  %v6267_v18 = vmul.f32 0.7978846, %v6251_v12  ;;  %6797 = vmatpush.bf16.msra.mxu3 %v9398_v36  ;;  %v9310_v56 = vor.u32 %v10017_v13, %v9307_v58  ;;  %v10035_v12 = vld [vmem:[#allocation27 + $0x1a4] sm:$0xf] }
 0xfe7   :  { %v6270_v5 = vmul.f32 0.7978846, %v6254_v43  ;;  %v6210_v3 = vmul.f32 0.044715, %v12871_v48  ;;  %v6309_v45 = vadd.f32 1.0, %v10286_v55  ;;  %v10288_v54 = vpop.eup %10287  ;;  %6779 = vmatpush.bf16.msra.mxu2 %v9326_v25 }
 0xfe8   :  { %v6223_v52 = vmul.f32 %v6207_v27, %v12866_v10  ;;  %v6298_v2 = vadd.f32 1.0, %v10288_v54  ;;  %v6190_v27 = vmul.f32 0.5, %v12853_v1 }
 0xfe9   :  { %10289 = vtanh.f32 %v6270_v5  ;;  %v6226_v40 = vmul.f32 %v6210_v3, %v12871_v48  ;;  %v6160_v62 = vpop.f32.mrf.mxu2  ;;  %v6179_v15 = vpop.f32.mrf.mxu3  ;;  %v6325_v34 = vmul.f32 %v6309_v45, %v6197_v32  ;;  %v9379_v5 = vld [vmem:[#allocation27 + $0x1a8] sm:$0xf0]  ;;  %v10015_v3 = vld [vmem:[#allocation27 + $0x104] sm:$0xf] }
 0xfea   :  { %v6239_v35 = vmul.f32 %v6223_v52, %v12866_v10  ;;  %v6161_v51 = vadd.f32 %v6160_v62, %v12835_v26  ;;  %v6124_v17 = vpop.f32.mrf.mxu0  ;;  %10291 = vtanh.f32 %v6267_v18  ;;  %v6143_v33 = vpop.f32.mrf.mxu1  ;;  %6798 = vmatpush.bf16.msra.mxu3 %v9390_v30  ;;  %v9382_v18 = vor.u32 %v10035_v12, %v9379_v5  ;;  %v9299_v52 = vld [vmem:[#allocation27 + $0x108] sm:$0xf0] }
 0xfeb   :  { %v6125_v11 = vadd.f32 %v6124_v17, %v12795_v21  ;;  %v12883_v59 = vpack.c.bf16 %v6325_v34, %v6321_v39  ;;  %v6242_v28 = vmul.f32 %v6226_v40, %v12871_v48  ;;  %6780 = vmatpush.bf16.msra.mxu2 %v9318_v8  ;;  %v10033_v39 = vld [vmem:[#allocation27 + $0x194] sm:$0xf]  ;;  %v6314_v40 = vmul.f32 %v6298_v2, %v6186_v19  ;;  %v9363_v2 = vld [vmem:[#allocation27 + $0x188] sm:$0xf0] }
 0xfec   :  { %v6255_v61 = vadd.f32 %v6239_v35, %v12866_v10  ;;  %v12887_v60 = vadd.f32 %v6179_v15, %v6161_v51  ;;  %v9302_v36 = vor.u32 %v10015_v3, %v9299_v52  ;;  %v9374_v63 = vor.u32 %v10033_v39, %v9371_v9 }
 0xfed   :  { %v12889_v46 = vadd.f32 %v6143_v33, %v6125_v11  ;;  %6693 = vmatmul.bf16.gmra.mxu1 %v12883_v59  ;;  %v6258_v21 = vadd.f32 %v6242_v28, %v12871_v48  ;;  %v6187_v8 = vmul.f32 0.5, %v12849_v22  ;;  %v6191_v28 = vmul.f32 0.5, %v12866_v10 }
 0xfee   :  { %v6271_v47 = vmul.f32 0.7978846, %v6255_v61  ;;  %v6211_v42 = vmul.f32 0.044715, %v12887_v60  ;;  %6799 = vmatpush.bf16.msra.mxu3 %v9382_v18  ;;  %v10031_v61 = vld [vmem:[#allocation27 + $0x184] sm:$0xf] }
 0xfef   :  { %v10290_v43 = vpop.eup %10289  ;;  %v6214_v16 = vmul.f32 0.044715, %v12889_v46  ;;  %v6274_v55 = vmul.f32 0.7978846, %v6258_v21  ;;  %6781 = vmatpush.bf16.msra.mxu2 %v9310_v56  ;;  %v9366_v58 = vor.u32 %v10031_v61, %v9363_v2  ;;  %v6198_v19 = vmul.f32 0.5, %v12889_v46 }
 0xff0   :  { %v6302_v4 = vadd.f32 1.0, %v10290_v43  ;;  %10293 = vtanh.f32 %v6271_v47  ;;  %v6227_v25 = vmul.f32 %v6211_v42, %v12887_v60  ;;  %v10292_v38 = vpop.eup %10291  ;;  %v6194_v43 = vmul.f32 0.5, %v12871_v48 }
 0xff1   :  { %v6230_v32 = vmul.f32 %v6214_v16, %v12889_v46  ;;  %v6162_v45 = vpop.f32.mrf.mxu2  ;;  %v6181_v15 = vpop.f32.mrf.mxu3  ;;  %v6299_v51 = vadd.f32 1.0, %v10292_v38  ;;  %10295 = vtanh.f32 %v6274_v55 }
 0xff2   :  { %v6163_v37 = vadd.f32 %v6162_v45, %v12835_v26  ;;  %v6318_v62 = vmul.f32 %v6302_v4, %v6190_v27  ;;  %v6243_v1 = vmul.f32 %v6227_v25, %v12887_v60  ;;  %6800 = vmatpush.bf16.msra.mxu3 %v9374_v63 }
 0xff3   :  { %v6246_v34 = vmul.f32 %v6230_v32, %v12889_v46  ;;  %6782 = vmatpush.bf16.msra.mxu2 %v9302_v36  ;;  %v6315_v21 = vmul.f32 %v6299_v51, %v6187_v8 }
 0xff4   :  { %v6182_v23 = vadd.f32 %v6181_v15, %v6163_v37  ;;  %v6330_v54 = vpack.c.bf16 %v6318_v62, %v6314_v40  ;;  %v6259_v35 = vadd.f32 %v6243_v1, %v12887_v60 }
 0xff5   :  { %v6262_v17 = vadd.f32 %v6246_v34, %v12889_v46 }
 0xff6   :  { %v10294_v26 = vpop.eup %10293  ;;  %v6215_v11 = vmul.f32 0.044715, %v6182_v23  ;;  %6707 = vmatmul.bf16.vlgmr.msrb.gmra.mxu2 %v6330_v54  ;;  %6745 = vmatmul.bf16.vlgmr.msra.gmra.mxu0 %v12823_v31  ;;  %v6275_v30 = vmul.f32 0.7978846, %v6259_v35  ;;  %v6199_v32 = vmul.f32 0.5, %v6182_v23 }
 0xff7   :  { %v6303_v41 = vadd.f32 1.0, %v10294_v26  ;;  %v6278_v14 = vmul.f32 0.7978846, %v6262_v17  ;;  %v10296_v22 = vpop.eup %10295  ;;  %6801 = vmatpush.bf16.msra.mxu3 %v9366_v58 }
 0xff8   :  { %v6231_v33 = vmul.f32 %v6215_v11, %v6182_v23  ;;  %v6306_v31 = vadd.f32 1.0, %v10296_v22 }
 0xff9   :  { %v6319_v13 = vmul.f32 %v6303_v41, %v6191_v28  ;;  %10297 = vtanh.f32 %v6278_v14 }
 0xffa   :  { %v6247_v47 = vmul.f32 %v6231_v33, %v6182_v23  ;;  %10299 = vtanh.f32 %v6275_v30  ;;  %v6322_v27 = vmul.f32 %v6306_v31, %v6194_v43 }
 0xffb   :  { %v6331_v42 = vpack.c.bf16 %v6319_v13, %v6315_v21 }
 0xffc   :  { %v6263_v56 = vadd.f32 %v6247_v47, %v6182_v23 }
 0xffd   :  { %6726 = vmatmul.bf16.vlgmr.msrb.gmra.mxu3 %v6331_v42  ;;  %6764 = vmatmul.bf16.vlgmr.msra.gmra.mxu1 %v12842_v24  ;;  %v6195_v24 = vmul.f32 0.5, %v12887_v60 }
 0xffe   :  { %v6279_v10 = vmul.f32 0.7978846, %v6263_v56 }
 0xfff   :  { %v10298_v12 = vpop.eup %10297 }
0x1000   :  { %v6310_v16 = vadd.f32 1.0, %v10298_v12  ;;  %10301 = vtanh.f32 %v6279_v10  ;;  %v10300_v55 = vpop.eup %10299 }
0x1001   :  { %v6307_v5 = vadd.f32 1.0, %v10300_v55 }
0x1002   :  { %v6326_v4 = vmul.f32 %v6310_v16, %v6198_v19 }
0x1003   :  { %v6323_v18 = vmul.f32 %v6307_v5, %v6195_v24 }
0x1004   :  { %v6334_v25 = vpack.c.bf16 %v6326_v4, %v6322_v27 }
0x1006   :  { %v10302_v3 = vpop.eup %10301  ;;  %6712 = vmatmul.bf16.gmra.mxu2 %v6334_v25  ;;  %6750 = vmatmul.bf16.gmra.mxu0 %v12868_v0 }
0x1007   :  { %v6311_v45 = vadd.f32 1.0, %v10302_v3 }
0x1009   :  { %v6327_v52 = vmul.f32 %v6311_v45, %v6199_v32 }
0x100b   :  { %v6335_v48 = vpack.c.bf16 %v6327_v52, %v6323_v18 }
0x100d   :  { %6731 = vmatmul.bf16.gmra.mxu3 %v6335_v48  ;;  %6769 = vmatmul.bf16.gmra.mxu1 %v12883_v59  ;;  %v4116_v59 = vld [vmem:[#allocation28] sm:$0x3] }
0x100e   :  { %v6337_v51 = vperm.slane %v4116_v59, 0  ;;  %v6338_v17 = vperm.slane %v4116_v59, 1 }
0x1016   :  { %6783 = vmatmul.bf16.vlgmr.msra.gmra.mxu2 %v6330_v54 }
0x101d   :  { %6802 = vmatmul.bf16.vlgmr.msra.gmra.mxu3 %v6331_v42 }
0x1026   :  { %6788 = vmatmul.bf16.gmra.mxu2 %v6334_v25 }
0x102d   :  { %6807 = vmatmul.bf16.gmra.mxu3 %v6335_v48 }
0x1052   :  { %v6670_v46 = vpop.f32.mrf.mxu0 }
0x1053   :  { %v6671_v8 = vadd.f32 %v6670_v46, %v6337_v51 }
0x1058   :  { %v6689_v39 = vpop.f32.mrf.mxu1 }
0x1059   :  { %v6690_v28 = vadd.f32 %v6689_v39, %v6671_v8 }
0x105a   :  { %v6672_v9 = vpop.f32.mrf.mxu0 }
0x105b   :  { %v6673_v58 = vadd.f32 %v6672_v9, %v6337_v51 }
0x1060   :  { %v6691_v38 = vpop.f32.mrf.mxu1 }
0x1061   :  { %v6692_v42 = vadd.f32 %v6691_v38, %v6673_v58 }
0x1063   :  { %v6675_v0 = vpop.f32.mrf.mxu0 }
0x1064   :  { %v6676_v5 = vadd.f32 %v6675_v0, %v6337_v51 }
0x106a   :  { %v6694_v40 = vpop.f32.mrf.mxu1 }
0x106b   :  { %v6677_v1 = vpop.f32.mrf.mxu0  ;;  %v6695_v32 = vadd.f32 %v6694_v40, %v6676_v5  ;;  %v10061_v5 = vld [vmem:[#allocation33 + $0x70] sm:$0xff] }
0x1072   :  { %v6696_v36 = vpop.f32.mrf.mxu1 }
0x1073   :  { %v6746_v54 = vpop.f32.mrf.mxu0 }
0x1074   :  { %v6747_v41 = vadd.f32 %v6746_v54, %v6338_v17 }
0x1079   :  { %v6708_v37 = vpop.f32.mrf.mxu2 }
0x107a   :  { %v6765_v35 = vpop.f32.mrf.mxu1  ;;  %v6709_v61 = vadd.f32 %v6708_v37, %v6690_v28  ;;  %v6678_v37 = vadd.f32 %v6677_v1, %v6337_v51 }
0x107b   :  { %v6748_v14 = vpop.f32.mrf.mxu0  ;;  %v6766_v33 = vadd.f32 %v6765_v35, %v6747_v41 }
0x107c   :  { %v6749_v56 = vadd.f32 %v6748_v14, %v6338_v17  ;;  %v6697_v0 = vadd.f32 %v6696_v36, %v6678_v37  ;;  %v10055_v37 = vld [vmem:[#allocation33 + $0x40] sm:$0xff] }
0x1080   :  { %v6727_v60 = vpop.f32.mrf.mxu3 }
0x1081   :  { %v6710_v62 = vpop.f32.mrf.mxu2  ;;  %v6728_v2 = vadd.f32 %v6727_v60, %v6709_v61 }
0x1082   :  { %v6767_v30 = vpop.f32.mrf.mxu1  ;;  %v6711_v12 = vadd.f32 %v6710_v62, %v6692_v42 }
0x1083   :  { %v6813_v31 = vadd.f32 %v6728_v2, %v12596_v7  ;;  %v6768_v43 = vadd.f32 %v6767_v30, %v6749_v56  ;;  %v6751_v16 = vpop.f32.mrf.mxu0 }
0x1084   :  { %v6752_v45 = vadd.f32 %v6751_v16, %v6338_v17 }
0x1088   :  { %v6729_v15 = vpop.f32.mrf.mxu3 }
0x1089   :  { %v6713_v34 = vpop.f32.mrf.mxu2  ;;  %v6730_v55 = vadd.f32 %v6729_v15, %v6711_v12 }
0x108a   :  { %v6770_v4 = vpop.f32.mrf.mxu1  ;;  %v6714_v52 = vadd.f32 %v6713_v34, %v6695_v32  ;;  %v10051_v32 = vld [vmem:[#allocation33 + $0x20] sm:$0xff] }
0x108b   :  { %v6815_v18 = vadd.f32 %v6730_v55, %v12604_v29  ;;  %v6753_v9 = vpop.f32.mrf.mxu0 }
0x108c   :  { %v6754_v15 = vadd.f32 %v6753_v9, %v6338_v17 }
0x1090   :  { %v6732_v63 = vpop.f32.mrf.mxu3 }
0x1091   :  { %v6715_v23 = vpop.f32.mrf.mxu2  ;;  %v6733_v46 = vadd.f32 %v6732_v63, %v6714_v52  ;;  %v10049_v52 = vld [vmem:[#allocation33 + $0x10] sm:$0xff] }
0x1092   :  { %v6772_v62 = vpop.f32.mrf.mxu1  ;;  %v6716_v54 = vadd.f32 %v6715_v23, %v6697_v0 }
0x1093   :  { %v6817_v40 = vadd.f32 %v6733_v46, %v12612_v44  ;;  %v10056_v46 = vld [vmem:[#allocation33 + $0x48] sm:$0xff] }
0x1098   :  { %v6734_v26 = vpop.f32.mrf.mxu3 }
0x1099   :  { %v6784_v11 = vpop.f32.mrf.mxu2  ;;  %v6735_v35 = vadd.f32 %v6734_v26, %v6716_v54 }
0x109a   :  { %v6785_v21 = vadd.f32 %v6784_v11, %v6766_v33 }
0x109b   :  { %v6819_v28 = vadd.f32 %v6735_v35, %v12620_v53 }
0x10a0   :  { %v6803_v13 = vpop.f32.mrf.mxu3 }
0x10a1   :  { %v6804_v47 = vadd.f32 %v6803_v13, %v6785_v21  ;;  %v6786_v22 = vpop.f32.mrf.mxu2 }
0x10a2   :  { %v6787_v27 = vadd.f32 %v6786_v22, %v6768_v43 }
0x10a3   :  { %v6814_v10 = vadd.f32 %v6804_v47, %v12598_v50  ;;  %v6771_v50 = vadd.f32 %v6770_v4, %v6752_v45  ;;  %v10062_v4 = vld [vmem:[#allocation33 + $0x78] sm:$0xff]  ;;  %v10059_v45 = vld [vmem:[#allocation33 + $0x60] sm:$0xff] }
0x10a4   :  { %7104 = vmatpush.bf16.msrb.mxu1 %v10062_v4 }
0x10a5   :  { %v6823_v19 = vadd.f32 %v6814_v10, %v6813_v31 }
0x10a7   :  { %6824 = vadd.xlane.f32.xlu1 %v6823_v19 }
0x10a8   :  { %v6805_v25 = vpop.f32.mrf.mxu3  ;;  %7105 = vmatpush.bf16.msrb.mxu1 %v10061_v5 }
0x10a9   :  { %v6806_v3 = vadd.f32 %v6805_v25, %v6787_v27  ;;  %v6789_v24 = vpop.f32.mrf.mxu2  ;;  %v10054_v27 = vld [vmem:[#allocation33 + $0x38] sm:$0xff]  ;;  %v10053_v25 = vld [vmem:[#allocation33 + $0x30] sm:$0xff] }
0x10aa   :  { %v6790_v39 = vadd.f32 %v6789_v24, %v6771_v50  ;;  %7085 = vmatpush.bf16.msrb.mxu0 %v10054_v27  ;;  %v10060_v24 = vld [vmem:[#allocation33 + $0x68] sm:$0xff]  ;;  %v10057_v50 = vld [vmem:[#allocation33 + $0x50] sm:$0xff] }
0x10ab   :  { %v6816_v7 = vadd.f32 %v6806_v3, %v12606_v6  ;;  %v6773_v6 = vadd.f32 %v6772_v62, %v6754_v15  ;;  %v10052_v3 = vld [vmem:[#allocation33 + $0x28] sm:$0xff] }
0x10ac   :  { %7106 = vmatpush.bf16.msrb.mxu1 %v10060_v24 }
0x10ad   :  { %v6826_v48 = vadd.f32 %v6816_v7, %v6815_v18 }
0x10ae   :  { %7086 = vmatpush.bf16.msrb.mxu0 %v10053_v25 }
0x10af   :  { %6827 = vadd.xlane.f32.xlu2 %v6826_v48  ;;  %v10048_v48 = vld [vmem:[#allocation33 + $0x8] sm:$0xff] }
0x10b0   :  { %v6808_v38 = vpop.f32.mrf.mxu3  ;;  %7107 = vmatpush.bf16.msrb.mxu1 %v10059_v45 }
0x10b1   :  { %v6809_v60 = vadd.f32 %v6808_v38, %v6790_v39  ;;  %v6791_v29 = vpop.f32.mrf.mxu2  ;;  %v10047_v38 = vld [vmem:[#allocation33] sm:$0xff] }
0x10b2   :  { %v6792_v8 = vadd.f32 %v6791_v29, %v6773_v6  ;;  %7087 = vmatpush.bf16.msrb.mxu0 %v10052_v3 }
0x10b3   :  { %v6818_v59 = vadd.f32 %v6809_v60, %v12614_v49 }
0x10b5   :  { %v6829_v34 = vadd.f32 %v6818_v59, %v6817_v40 }
0x10b6   :  { %7088 = vmatpush.bf16.msrb.mxu0 %v10051_v32 }
0x10b7   :  { %6830 = vadd.xlane.f32.xlu0 %v6829_v34 }
0x10b8   :  { %v6810_v63 = vpop.f32.mrf.mxu3 }
0x10b9   :  { %v6811_v11 = vadd.f32 %v6810_v63, %v6792_v8 }
0x10bb   :  { %v6820_v1 = vadd.f32 %v6811_v11, %v12622_v57 }
0x10bd   :  { %v6832_v51 = vadd.f32 %v6820_v1, %v6819_v28 }
0x10bf   :  { %6833 = vadd.xlane.f32.xlu1 %v6832_v51  ;;  %v6821_v51 = vld [vmem:[#allocation30] sm:$0x3] }
0x111a   :  { %v6825_v36 = vpop.xlane.xlu1 %6824 }
0x111b   :  { %v6835_v44 = vmul.f32 %v6825_v36, %v11244_v20 }
0x111d   :  { %v12922_v17 = vsub.f32 %v6813_v31, %v6835_v44  ;;  %v12924_v49 = vsub.f32 %v6814_v10, %v6835_v44 }
0x111f   :  { %v6847_v23 = vmul.f32 %v12922_v17, %v12922_v17  ;;  %v6848_v26 = vmul.f32 %v12924_v49, %v12924_v49 }
0x1121   :  { %v6855_v41 = vadd.f32 %v6848_v26, %v6847_v23 }
0x1122   :  { %v6828_v14 = vpop.xlane.xlu2 %6827 }
0x1123   :  { %v6836_v53 = vmul.f32 %v6828_v14, %v11244_v20  ;;  %6856 = vadd.xlane.f32.xlu2 %v6855_v41  ;;  %v6924_v41 = vperm.slane %v6821_v51, 0 }
0x1125   :  { %v12931_v57 = vsub.f32 %v6815_v18, %v6836_v53  ;;  %v12933_v61 = vsub.f32 %v6816_v7, %v6836_v53  ;;  %v10050_v18 = vld [vmem:[#allocation33 + $0x18] sm:$0xff] }
0x1126   :  { %v10058_v7 = vld [vmem:[#allocation33 + $0x58] sm:$0xff]  ;;  %7089 = vmatpush.bf16.msrb.mxu0 %v10050_v18 }
0x1127   :  { %v6849_v33 = vmul.f32 %v12931_v57, %v12931_v57  ;;  %v6850_v30 = vmul.f32 %v12933_v61, %v12933_v61  ;;  %7108 = vmatpush.bf16.msrb.mxu1 %v10058_v7 }
0x1129   :  { %v6858_v2 = vadd.f32 %v6850_v30, %v6849_v33  ;;  %v6822_v33 = vld [vmem:[#allocation31] sm:$0x3]  ;;  %v6925_v30 = vperm.slane %v6821_v51, 1 }
0x112a   :  { %v6831_v21 = vpop.xlane.xlu0 %6830  ;;  %7090 = vmatpush.bf16.msrb.mxu0 %v10049_v52 }
0x112b   :  { %v6837_v13 = vmul.f32 %v6831_v21, %v11244_v20  ;;  %6859 = vadd.xlane.f32.xlu0 %v6858_v2  ;;  %7109 = vmatpush.bf16.msrb.mxu1 %v10057_v50 }
0x112d   :  { %v12940_v58 = vsub.f32 %v6817_v40, %v6837_v13  ;;  %v12942_v47 = vsub.f32 %v6818_v59, %v6837_v13 }
0x112e   :  { %7091 = vmatpush.bf16.msrb.mxu0 %v10048_v48 }
0x112f   :  { %v6851_v22 = vmul.f32 %v12940_v58, %v12940_v58  ;;  %v6852_v42 = vmul.f32 %v12942_v47, %v12942_v47  ;;  %7110 = vmatpush.bf16.msrb.mxu1 %v10056_v46 }
0x1131   :  { %v6861_v56 = vadd.f32 %v6852_v42, %v6851_v22 }
0x1132   :  { %v6834_v31 = vpop.xlane.xlu1 %6833  ;;  %7092 = vmatpush.bf16.msrb.mxu0 %v10047_v38 }
0x1133   :  { %v6838_v10 = vmul.f32 %v6834_v31, %v11244_v20  ;;  %6862 = vadd.xlane.f32.xlu1 %v6861_v56  ;;  %7111 = vmatpush.bf16.msrb.mxu1 %v10055_v37  ;;  %v6937_v56 = vperm.slane %v6822_v33, 0  ;;  %v6938_v31 = vperm.slane %v6822_v33, 1 }
0x1135   :  { %v12949_v12 = vsub.f32 %v6819_v28, %v6838_v10  ;;  %v12951_v43 = vsub.f32 %v6820_v1, %v6838_v10 }
0x1137   :  { %v6853_v19 = vmul.f32 %v12949_v12, %v12949_v12  ;;  %v6854_v16 = vmul.f32 %v12951_v43, %v12951_v43 }
0x1139   :  { %v6864_v55 = vadd.f32 %v6854_v16, %v6853_v19 }
0x113b   :  { %6865 = vadd.xlane.f32.xlu2 %v6864_v55 }
0x1196   :  { %v6857_v39 = vpop.xlane.xlu2 %6856 }
0x1197   :  { %v6867_v9 = vmul.f32 %v6857_v39, %v11244_v20 }
0x1199   :  { %v6871_v60 = vadd.f32 1e-06, %v6867_v9 }
0x119b   :  { %10303 = vrsqrt.f32 %v6871_v60  ;;  %vm6881_vm4 = vweird.f32 %v6871_v60 }
0x119e   :  { %v6860_v62 = vpop.xlane.xlu0 %6859 }
0x119f   :  { %v6868_v0 = vmul.f32 %v6860_v62, %v11244_v20 }
0x11a1   :  { %v10304_v15 = vpop.eup %10303  ;;  %v6872_v40 = vadd.f32 1e-06, %v6868_v0 }
0x11a2   :  { %v6876_v59 = vmul.f32 %v10304_v15, %v6871_v60  ;;  %vm6882_vm3 = vweird.f32 %v10304_v15 }
0x11a3   :  { %10305 = vrsqrt.f32 %v6872_v40  ;;  %vm6883_vm5 = vmor %vm6881_vm4, %vm6882_vm3  ;;  %vm6891_vm13 = vweird.f32 %v6872_v40 }
0x11a4   :  { %v6877_v29 = vmul.f32 %v10304_v15, %v6876_v59 }
0x11a6   :  { %v6878_v54 = vmul.f32 0.5, %v6877_v29  ;;  %v6863_v6 = vpop.xlane.xlu1 %6862 }
0x11a7   :  { %v6869_v34 = vmul.f32 %v6863_v6, %v11244_v20 }
0x11a8   :  { %v6879_v35 = vsub.f32 1.5, %v6878_v54 }
0x11a9   :  { %v10306_v8 = vpop.eup %10305  ;;  %v6873_v63 = vadd.f32 1e-06, %v6869_v34 }
0x11aa   :  { %v6880_v11 = vmul.f32 %v10304_v15, %v6879_v35  ;;  %v6886_v28 = vmul.f32 %v10306_v8, %v6872_v40  ;;  %vm6892_vm6 = vweird.f32 %v10306_v8  ;;  %v10140_v35 = vld [vmem:[%s11066_s3] ss:$0 sm:$0xff] }
0x11ab   :  { %10307 = vrsqrt.f32 %v6873_v63  ;;  %vm6893_vm7 = vmor %vm6891_vm13, %vm6892_vm6  ;;  %vm6901_vm9 = vweird.f32 %v6873_v63 }
0x11ac   :  { %v6887_v1 = vmul.f32 %v10306_v8, %v6886_v28  ;;  %v6884_v36 = vsel %vm6883_vm5, %v10304_v15, %v6880_v11 }
0x11ad   :  { %v6915_v2 = vmul.f32 %v6884_v36, %v12922_v17  ;;  %v6916_v21 = vmul.f32 %v6884_v36, %v12924_v49 }
0x11ae   :  { %v6888_v44 = vmul.f32 0.5, %v6887_v1  ;;  %v6866_v23 = vpop.xlane.xlu2 %6865 }
0x11af   :  { %v6870_v26 = vmul.f32 %v6866_v23, %v11244_v20  ;;  %v6928_v19 = vmul.f32 %v6924_v41, %v6915_v2  ;;  %v6929_v16 = vmul.f32 %v6925_v30, %v6916_v21 }
0x11b0   :  { %v6889_v14 = vsub.f32 1.5, %v6888_v44 }
0x11b1   :  { %v10308_v53 = vpop.eup %10307  ;;  %v6874_v13 = vadd.f32 1e-06, %v6870_v26  ;;  %v6941_v3 = vadd.f32 %v6937_v56, %v6928_v19  ;;  %v6942_v24 = vadd.f32 %v6938_v31, %v6929_v16 }
0x11b2   :  { %v6890_v22 = vmul.f32 %v10306_v8, %v6889_v14  ;;  %v6896_v42 = vmul.f32 %v10308_v53, %v6873_v63  ;;  %vm6902_vm8 = vweird.f32 %v10308_v53 }
0x11b3   :  { %10309 = vrsqrt.f32 %v6874_v13  ;;  %vm6903_vm10 = vmor %vm6901_vm9, %vm6902_vm8  ;;  %vm6911_vm12 = vweird.f32 %v6874_v13 }
0x11b4   :  { %v6894_v10 = vsel %vm6893_vm7, %v10306_v8, %v6890_v22  ;;  %v6897_v20 = vmul.f32 %v10308_v53, %v6896_v42 }
0x11b5   :  { %v6917_v55 = vmul.f32 %v6894_v10, %v12931_v57  ;;  %v6918_v27 = vmul.f32 %v6894_v10, %v12933_v61 }
0x11b6   :  { %v6898_v4 = vmul.f32 0.5, %v6897_v20 }
0x11b7   :  { %v6930_v17 = vmul.f32 %v6924_v41, %v6917_v55  ;;  %v6931_v25 = vmul.f32 %v6925_v30, %v6918_v27 }
0x11b8   :  { %v6899_v49 = vsub.f32 1.5, %v6898_v4 }
0x11b9   :  { %v10310_v5 = vpop.eup %10309  ;;  %v6943_v32 = vadd.f32 %v6937_v56, %v6930_v17  ;;  %v6944_v45 = vadd.f32 %v6938_v31, %v6931_v25 }
0x11ba   :  { %v6900_v18 = vmul.f32 %v10308_v53, %v6899_v49  ;;  %v6906_v7 = vmul.f32 %v10310_v5, %v6874_v13  ;;  %vm6912_vm11 = vweird.f32 %v10310_v5 }
0x11bb   :  { %v6949_v52 = vpack.c.bf16 %v6943_v32, %v6941_v3  ;;  %v6950_v50 = vpack.c.bf16 %v6944_v45, %v6942_v24  ;;  %vm6913_vm14 = vmor %vm6911_vm12, %vm6912_vm11 }
0x11bc   :  { %v6907_v48 = vmul.f32 %v10310_v5, %v6906_v7  ;;  %v6904_v57 = vsel %vm6903_vm10, %v10308_v53, %v6900_v18 }
0x11bd   :  { %7093 = vmatmul.bf16.vlgmr.msrb.gmra.mxu0 %v6949_v52  ;;  %7112 = vmatmul.bf16.vlgmr.msrb.gmra.mxu1 %v6950_v50  ;;  %v6919_v39 = vmul.f32 %v6904_v57, %v12940_v58  ;;  %v6920_v9 = vmul.f32 %v6904_v57, %v12942_v47 }
0x11be   :  { %v6908_v61 = vmul.f32 0.5, %v6907_v48 }
0x11bf   :  { %v6932_v0 = vmul.f32 %v6924_v41, %v6919_v39  ;;  %v6933_v15 = vmul.f32 %v6925_v30, %v6920_v9 }
0x11c0   :  { %v6909_v46 = vsub.f32 1.5, %v6908_v61 }
0x11c1   :  { %v6945_v29 = vadd.f32 %v6937_v56, %v6932_v0  ;;  %v6946_v6 = vadd.f32 %v6938_v31, %v6933_v15 }
0x11c2   :  { %v6910_v38 = vmul.f32 %v10310_v5, %v6909_v46 }
0x11c4   :  { %v6914_v37 = vsel %vm6913_vm14, %v10310_v5, %v6910_v38 }
0x11c5   :  { %v6921_v60 = vmul.f32 %v6914_v37, %v12949_v12  ;;  %v6922_v62 = vmul.f32 %v6914_v37, %v12951_v43 }
0x11c7   :  { %v6934_v40 = vmul.f32 %v6924_v41, %v6921_v60  ;;  %v6935_v59 = vmul.f32 %v6925_v30, %v6922_v62 }
0x11c9   :  { %v6947_v54 = vadd.f32 %v6937_v56, %v6934_v40  ;;  %v6948_v58 = vadd.f32 %v6938_v31, %v6935_v59 }
0x11cb   :  { %v6951_v47 = vpack.c.bf16 %v6947_v54, %v6945_v29  ;;  %v6952_v34 = vpack.c.bf16 %v6948_v58, %v6946_v6 }
0x11cd   :  { %7098 = vmatmul.bf16.gmra.mxu0 %v6951_v47  ;;  %7117 = vmatmul.bf16.gmra.mxu1 %v6952_v34 }
0x123a   :  { %v7094_v8 = vpop.f32.mrf.mxu0  ;;  %v7113_v12 = vpop.f32.mrf.mxu1 }
0x123b   :  { %v7095_v63 = vadd.f32 %v10140_v35, %v7094_v8 }
0x123d   :  { %v7114_v43 = vadd.f32 %v7113_v12, %v7095_v63 }
0x123f   :  { %7123 = vst [vmem:[%s11071_s17] sm:$0xff] %v7114_v43 }
0x1242   :  { %v7096_v11 = vpop.f32.mrf.mxu0  ;;  %v7115_v28 = vpop.f32.mrf.mxu1 }
0x1243   :  { %v7097_v1 = vadd.f32 %v10140_v35, %v7096_v11 }
0x1245   :  { %v7116_v51 = vadd.f32 %v7115_v28, %v7097_v1 }
0x1247   :  { %7124 = vst [vmem:[%s11071_s17 + $0x8] sm:$0xff] %v7116_v51 }
0x124a   :  { %v7099_v36 = vpop.f32.mrf.mxu0  ;;  %v7118_v44 = vpop.f32.mrf.mxu1 }
0x124b   :  { %v7100_v23 = vadd.f32 %v10140_v35, %v7099_v36 }
0x124d   :  { %v7119_v26 = vadd.f32 %v7118_v44, %v7100_v23 }
0x124f   :  { %7125 = vst [vmem:[%s11071_s17 + $0x10] sm:$0xff] %v7119_v26 }
0x1252   :  { %v7101_v41 = vpop.f32.mrf.mxu0  ;;  %v7120_v53 = vpop.f32.mrf.mxu1 }
0x1253   :  { %v7102_v14 = vadd.f32 %v10140_v35, %v7101_v41 }
0x1255   :  { %v7121_v33 = vadd.f32 %v7120_v53, %v7102_v14 }
0x1257   :  { %7126 = vst [vmem:[%s11071_s17 + $0x18] sm:$0xff] %v7121_v33 }
0x1258   :  { %7131 = vsyncpa [#allocation3], 1 }
0x1259   :  { %7132 = vsyncpa [#allocation5], 1 }
0x125a   :  { %7133 = vsyncpa [#allocation8], 1 }
0x125b   :  { %7134 = vsyncpa [#allocation11], 1 }
0x125c   :  { %7135 = vsyncpa [#allocation14], 1 }
0x125d   :  { %7136 = vsyncpa [#allocation17], 1 }
0x125e   :  { %7137 = vsyncpa [#allocation20], 1 }
0x125f   :  { %7138 = vsyncpa [#allocation23], 1 }
0x1260   :  { %7139 = vsyncpa [#allocation26], 1 }
0x1261   :  { %7140 = vsyncpa [#allocation29], 1 }
0x1262   :  { %7141 = vsyncpa [#allocation32], 1 }

</bundles_post_ra>
